<compile_context>
chip_gen: v7x
topology: tpu7x:2x2x1
jax: 0.10.0
libtpu: 0.0.40
codegen_flags: <defaults>
</compile_context>

<pallas_src>
import functools

import jax
import jax.numpy as jnp
from jax.experimental import pallas as pl
from jax.experimental.pallas import tpu as pltpu


SQRT_HALF = 0.7071067811865476
_VMEM_LIMIT_BYTES = 32 * 1024 * 1024   # > v5e 16 MiB scoped default, < v7x 64 MiB physical


def _erf(x):
    # Abramowitz & Stegun 7.1.26 polynomial erf, |err| <= 1.5e-7 (matches exact
    # torch.nn.GELU to f32 precision) using only exp / mul / add / select.
    a1, a2, a3, a4, a5 = (0.254829592, -0.284496736, 1.421413741,
                          -1.453152027, 1.061405429)
    p = 0.3275911
    sgn = jnp.where(x >= 0.0, 1.0, -1.0)
    ax = jnp.abs(x)
    t = 1.0 / (1.0 + p * ax)
    poly = ((((a5 * t + a4) * t + a3) * t + a2) * t + a1) * t
    return sgn * (1.0 - poly * jnp.exp(-ax * ax))


def _gelu(x):
    # Exact (erf-based) GELU, like the default nn.GELU() in the reference.
    return 0.5 * x * (1.0 + _erf(x * SQRT_HALF))


def _compiler_params(n_parallel_axes=1):
    return pltpu.CompilerParams(
        dimension_semantics=("parallel",) * n_parallel_axes,
        vmem_limit_bytes=_VMEM_LIMIT_BYTES)


def _choose_tile_n(n, max_tile=1024):
    """Large row tile, but keep >=2 grid steps when N allows (megacore / pipelining)."""
    if n <= max_tile:
        half = n // 2
        if n >= 512 and half % 8 == 0:
            return half
        return n
    return max_tile


# ----------------------------------------------------------------------------
# Pallas kernel: lifting Linear p (3 -> W)
# ----------------------------------------------------------------------------
def _lift_kernel(x_ref, w_ref, b_ref, o_ref):
    y = jnp.dot(x_ref[...], w_ref[...], preferred_element_type=jnp.float32)
    o_ref[...] = (y + b_ref[...]).astype(o_ref.dtype)


def lift(x, w, b):
    N, Cin = x.shape
    Cout = w.shape[1]
    tile_n = _choose_tile_n(N)
    grid = (pl.cdiv(N, tile_n),)
    return pl.pallas_call(
        _lift_kernel,
        out_shape=jax.ShapeDtypeStruct((N, Cout), jnp.float32),
        grid=grid,
        in_specs=[
            pl.BlockSpec((tile_n, Cin), lambda i: (i, 0)),
            pl.BlockSpec((Cin, Cout), lambda i: (0, 0)),
            pl.BlockSpec((1, Cout), lambda i: (0, 0)),
        ],
        out_specs=pl.BlockSpec((tile_n, Cout), lambda i: (i, 0)),
        compiler_params=_compiler_params(),
    )(x, w, b.reshape(1, Cout))


# ----------------------------------------------------------------------------
# Pallas kernel: fused Fourier-layer pointwise chain
#   x2 = x @ w_w + w_b           (1x1 conv w_i)
#   h  = gelu(x1 @ m1w + m1b)    (MLP conv 1)
#   y  = h @ m2w + m2b + x2      (MLP conv 2 + skip)
#   out = gelu(y)                (F.gelu)
# ----------------------------------------------------------------------------
def _fused_layer_kernel(x_ref, x1_ref, ww_ref, wb_ref, m1w_ref, m1b_ref,
                        m2w_ref, m2b_ref, o_ref):
    x2 = jnp.dot(x_ref[...], ww_ref[...],
                 preferred_element_type=jnp.float32) + wb_ref[...]
    h = _gelu(jnp.dot(x1_ref[...], m1w_ref[...],
                      preferred_element_type=jnp.float32) + m1b_ref[...])
    y = jnp.dot(h, m2w_ref[...],
                preferred_element_type=jnp.float32) + m2b_ref[...] + x2
    o_ref[...] = _gelu(y).astype(o_ref.dtype)


def fused_layer(x_rows, x1_rows, ww, wb, m1w, m1b, m2w, m2b):
    N, W = x_rows.shape
    tile_n = _choose_tile_n(N)
    grid = (pl.cdiv(N, tile_n),)
    row_spec = pl.BlockSpec((tile_n, W), lambda i: (i, 0))
    wmat_spec = pl.BlockSpec((W, W), lambda i: (0, 0))
    bias_spec = pl.BlockSpec((1, W), lambda i: (0, 0))
    return pl.pallas_call(
        _fused_layer_kernel,
        out_shape=jax.ShapeDtypeStruct((N, W), jnp.float32),
        grid=grid,
        in_specs=[row_spec, row_spec,
                  wmat_spec, bias_spec,
                  wmat_spec, bias_spec,
                  wmat_spec, bias_spec],
        out_specs=row_spec,
        compiler_params=_compiler_params(),
    )(x_rows, x1_rows, ww, wb.reshape(1, W), m1w, m1b.reshape(1, W),
      m2w, m2b.reshape(1, W))


# ----------------------------------------------------------------------------
# Pallas kernel: fused projection q  (W -> 4W, gelu, 4W -> 1)
# ----------------------------------------------------------------------------
def _fused_q_kernel(x_ref, w1_ref, b1_ref, w2_ref, b2_ref, o_ref):
    h = _gelu(jnp.dot(x_ref[...], w1_ref[...],
                      preferred_element_type=jnp.float32) + b1_ref[...])
    y = jnp.dot(h, w2_ref[...], preferred_element_type=jnp.float32) + b2_ref[...]
    o_ref[...] = y.astype(o_ref.dtype)


def fused_q(x_rows, w1, b1, w2, b2):
    N, W = x_rows.shape
    H = w1.shape[1]
    Cout = w2.shape[1]
    tile_n = _choose_tile_n(N)
    grid = (pl.cdiv(N, tile_n),)
    return pl.pallas_call(
        _fused_q_kernel,
        out_shape=jax.ShapeDtypeStruct((N, Cout), jnp.float32),
        grid=grid,
        in_specs=[
            pl.BlockSpec((tile_n, W), lambda i: (i, 0)),
            pl.BlockSpec((W, H), lambda i: (0, 0)),
            pl.BlockSpec((1, H), lambda i: (0, 0)),
            pl.BlockSpec((H, Cout), lambda i: (0, 0)),
            pl.BlockSpec((1, Cout), lambda i: (0, 0)),
        ],
        out_specs=pl.BlockSpec((tile_n, Cout), lambda i: (i, 0)),
        compiler_params=_compiler_params(),
    )(x_rows, w1, b1.reshape(1, H), w2, b2.reshape(1, Cout))


# ----------------------------------------------------------------------------
# Pallas kernel: per-mode complex channel mixing ('bixy,ioxy->boxy')
# Complex product expressed as ONE real matmul per mode using block weights
#   [ wr  wi ]
#   [-wi  wr ]   applied to [xr | xi]  ->  [yr | yi]
# All modes processed in a 2-step grid of batched matmuls.
# ----------------------------------------------------------------------------
def _spec_mix_kernel(x_ref, w_ref, o_ref):
    o_ref[...] = jnp.einsum('mbi,mio->mbo', x_ref[...], w_ref[...],
                            preferred_element_type=jnp.float32)


def spectral_mix(x_ri, w_blk):
    """x_ri: (M, B, 2W) stacked real|imag; w_blk: (M, 2W, 2W) -> (M, B, 2W)."""
    M, B, C2 = x_ri.shape
    mode_tiles = 2 if M % 2 == 0 else 1   # 2 steps feed both v7x TensorCores
    tm = M // mode_tiles
    return pl.pallas_call(
        _spec_mix_kernel,
        out_shape=jax.ShapeDtypeStruct((M, B, C2), jnp.float32),
        grid=(mode_tiles,),
        in_specs=[pl.BlockSpec((tm, B, C2), lambda m: (m, 0, 0)),
                  pl.BlockSpec((tm, C2, C2), lambda m: (m, 0, 0))],
        out_specs=pl.BlockSpec((tm, B, C2), lambda m: (m, 0, 0)),
        compiler_params=_compiler_params(),
    )(x_ri, w_blk)


# ----------------------------------------------------------------------------
# SpectralConv2d forward, channels-last (FFT stays in plain JAX)
# ----------------------------------------------------------------------------
def build_spectral_block_weights(w1_r, w1_i, w2_r, w2_i):
    """(Cin, Cout, m1, m2) real/imag -> (M, 2Cin, 2Cout) real block-form."""
    def to_mio(w):
        Cin, Cout, m1, m2 = w.shape
        return jnp.transpose(w, (2, 3, 0, 1)).reshape(m1 * m2, Cin, Cout)
    wr = jnp.concatenate([to_mio(w1_r), to_mio(w2_r)], axis=0)   # (M, Cin, Cout)
    wi = jnp.concatenate([to_mio(w1_i), to_mio(w2_i)], axis=0)
    top = jnp.concatenate([wr, wi], axis=-1)       # (M, Cin, 2Cout)
    bot = jnp.concatenate([-wi, wr], axis=-1)      # (M, Cin, 2Cout)
    return jnp.concatenate([top, bot], axis=1)     # (M, 2Cin, 2Cout)


def spectral_conv2d(x_bhwc, w_blk, modes1, modes2):
    """x_bhwc: (B, S1, S2, W) f32 channels-last; w_blk: (M, 2W, 2W)."""
    B, S1, S2, W = x_bhwc.shape
    M = 2 * modes1 * modes2
    Wf = S2 // 2 + 1

    # TODO(synk): rfft2/irfft2 have no Pallas TPU primitive; FFTs stay in plain JAX.
    x_ft = jnp.fft.rfft2(x_bhwc, axes=(1, 2))                # (B, S1, Wf, W) c64
    top = x_ft[:, :modes1, :modes2, :]
    bot = x_ft[:, S1 - modes1:, :modes2, :]
    xm = jnp.concatenate([top, bot], axis=1)                 # (B, 2m1, m2, W)
    xm = jnp.transpose(xm, (1, 2, 0, 3)).reshape(M, B, W)    # tiny permute
    x_ri = jnp.concatenate(
        [jnp.real(xm), jnp.imag(xm)], axis=-1).astype(jnp.float32)   # (M, B, 2W)

    y = spectral_mix(x_ri, w_blk)                            # (M, B, 2W)
    om = (y[..., :W] + 1j * y[..., W:]).astype(jnp.complex64)        # (M, B, W)
    om = om.reshape(2 * modes1, modes2, B, W).transpose(2, 0, 1, 3)  # (B, 2m1, m2, W)

    # Assemble out_ft by concatenation (no zeros buffer + scatter updates).
    zero_cols = jnp.zeros((B, modes1, Wf - modes2, W), jnp.complex64)
    top_band = jnp.concatenate([om[:, :modes1], zero_cols], axis=2)  # (B, m1, Wf, W)
    bot_band = jnp.concatenate([om[:, modes1:], zero_cols], axis=2)  # (B, m1, Wf, W)
    mid = jnp.zeros((B, S1 - 2 * modes1, Wf, W), jnp.complex64)
    out_ft = jnp.concatenate([top_band, mid, bot_band], axis=1)      # (B, S1, Wf, W)

    return jnp.fft.irfft2(out_ft, s=(S1, S2), axes=(1, 2)).astype(jnp.float32)


# ----------------------------------------------------------------------------
# Parameter init (deterministic, shapes follow the PyTorch module __init__)
# ----------------------------------------------------------------------------
def _uniform(key, shape, fan_in):
    bound = 1.0 / jnp.sqrt(jnp.float32(fan_in))
    return jax.random.uniform(key, shape, jnp.float32, -bound, bound)


def init_fno_params(key, modes1, modes2, width):
    keys = iter(jax.random.split(key, 64))
    params = {
        "p_w": _uniform(next(keys), (3, width), 3),
        "p_b": _uniform(next(keys), (width,), 3),
        "layers": [],
    }
    spec_scale = 1.0 / (width * width)
    for _ in range(4):
        lp = {
            "spec_w1_r": spec_scale * jax.random.uniform(next(keys), (width, width, modes1, modes2)),
            "spec_w1_i": spec_scale * jax.random.uniform(next(keys), (width, width, modes1, modes2)),
            "spec_w2_r": spec_scale * jax.random.uniform(next(keys), (width, width, modes1, modes2)),
            "spec_w2_i": spec_scale * jax.random.uniform(next(keys), (width, width, modes1, modes2)),
            "mlp1_w": _uniform(next(keys), (width, width), width),
            "mlp1_b": _uniform(next(keys), (width,), width),
            "mlp2_w": _uniform(next(keys), (width, width), width),
            "mlp2_b": _uniform(next(keys), (width,), width),
            "w_w": _uniform(next(keys), (width, width), width),
            "w_b": _uniform(next(keys), (width,), width),
        }
        params["layers"].append(lp)
    params["q1_w"] = _uniform(next(keys), (width, 4 * width), width)
    params["q1_b"] = _uniform(next(keys), (4 * width,), width)
    params["q2_w"] = _uniform(next(keys), (4 * width, 1), 4 * width)
    params["q2_b"] = _uniform(next(keys), (1,), 4 * width)
    return params


# ----------------------------------------------------------------------------
# FNO forward
# ----------------------------------------------------------------------------
def fno_forward(params, a, modes1, modes2, width):
    B, S1, S2 = a.shape
    N = B * S1 * S2

    # get_grid + cat((a, x, y), dim=-1)
    gx = jnp.broadcast_to(
        jnp.linspace(0.0, 1.0, S1, dtype=jnp.float32).reshape(1, S1, 1, 1),
        (B, S1, S2, 1))
    gy = jnp.broadcast_to(
        jnp.linspace(0.0, 1.0, S2, dtype=jnp.float32).reshape(1, 1, S2, 1),
        (B, S1, S2, 1))
    x = jnp.concatenate([a[..., None], gx, gy], axis=-1)      # (B, S1, S2, 3)

    rows = lift(x.reshape(N, 3), params["p_w"], params["p_b"])  # Linear p -> (N, W)

    for lp in params["layers"]:
        # channels-last reshape is contiguous (no HBM transpose)
        x_bhwc = rows.reshape(B, S1, S2, width)
        w_blk = build_spectral_block_weights(lp["spec_w1_r"], lp["spec_w1_i"],
                                             lp["spec_w2_r"], lp["spec_w2_i"])
        x1 = spectral_conv2d(x_bhwc, w_blk, modes1, modes2)     # (B, S1, S2, W)
        # fused: x2 = w_i(x); x1 = mlp_i(x1); x = gelu(x1 + x2)
        rows = fused_layer(rows, x1.reshape(N, width),
                           lp["w_w"], lp["w_b"],
                           lp["mlp1_w"], lp["mlp1_b"],
                           lp["mlp2_w"], lp["mlp2_b"])

    out = fused_q(rows, params["q1_w"], params["q1_b"],
                  params["q2_w"], params["q2_b"])               # (N, 1)
    return out.reshape(B, S1, S2)


if __name__ == "__main__":
    B, S = 2, 16
    modes1 = modes2 = 4
    width = 16

    key = jax.random.PRNGKey(0)
    k_param, k_inp = jax.random.split(key)
    params = init_fno_params(k_param, modes1, modes2, width)
    a = jax.random.normal(k_inp, (B, S, S), dtype=jnp.float32)

    fwd = jax.jit(functools.partial(fno_forward, modes1=modes1,
                                    modes2=modes2, width=width))
    out = fwd(params, a)
    out = jax.block_until_ready(out)
    assert out.shape == (B, S, S), out.shape
    assert jnp.all(jnp.isfinite(out))
    print("KERNEL_OK")
</pallas_src>

<mosaic_0001>
module attributes {stable_mosaic.version = 11 : i64} {
  func.func @_lift_kernel(%arg0: i32, %arg1: memref<256x3xf32, #tpu.memory_space<vmem>>, %arg2: memref<3x16xf32, #tpu.memory_space<vmem>>, %arg3: memref<1x16xf32, #tpu.memory_space<vmem>>, %arg4: memref<256x16xf32, #tpu.memory_space<vmem>>) attributes {dimension_semantics = [#tpu.dimension_semantics<parallel>], iteration_bounds = array<i64: 2>, scalar_prefetch = 0 : i64, scratch_operands = 0 : i64, tpu.core_type = #tpu.core_type<tc>, window_params = [{transform_indices = @transform_0, window_bounds = array<i64: 256, 3>}, {pipeline_mode = #tpu.pipeline_mode<synchronous>, transform_indices = @transform_1, window_bounds = array<i64: 3, 16>}, {pipeline_mode = #tpu.pipeline_mode<synchronous>, transform_indices = @transform_2, window_bounds = array<i64: 1, 16>}, {transform_indices = @transform_3, window_bounds = array<i64: 256, 16>}]} {
    %c0 = arith.constant 0 : index
    %c0_0 = arith.constant 0 : index
    %0 = vector.load %arg1[%c0, %c0_0] : memref<256x3xf32, #tpu.memory_space<vmem>>, vector<256x3xf32>
    %c0_1 = arith.constant 0 : index
    %c0_2 = arith.constant 0 : index
    %1 = vector.load %arg2[%c0_1, %c0_2] : memref<3x16xf32, #tpu.memory_space<vmem>>, vector<3x16xf32>
    %cst = arith.constant dense<0.000000e+00> : vector<256x16xf32>
    %2 = tpu.matmul %0, %1, %cst {dimension_numbers = #tpu.dot_dimension_numbers<[1], [0], [0], [1], [0, 0, 1, 1], [], []>} : vector<256x3xf32>, vector<3x16xf32>, vector<256x16xf32> -> vector<256x16xf32>
    %c0_3 = arith.constant 0 : index
    %c0_4 = arith.constant 0 : index
    %3 = vector.load %arg3[%c0_3, %c0_4] : memref<1x16xf32, #tpu.memory_space<vmem>>, vector<1x16xf32>
    %4 = vector.broadcast %3 : vector<1x16xf32> to vector<256x16xf32>
    %5 = arith.addf %2, %4 : vector<256x16xf32>
    %c0_5 = arith.constant 0 : index
    %c0_6 = arith.constant 0 : index
    %6 = vector.load %arg4[%c0_5, %c0_6] : memref<256x16xf32, #tpu.memory_space<vmem>>, vector<256x16xf32>
    tpu.vector_store %arg4[%c0_5, %c0_6], %5 {strides = array<i32>} : memref<256x16xf32, #tpu.memory_space<vmem>>, vector<256x16xf32>,
    return
  }
  func.func @transform_0(%arg0: i32) -> (i32, i32) {
    %c0_i32 = arith.constant 0 : i32
    %c0_i32_0 = arith.constant 0 : i32
    return %arg0, %c0_i32 : i32, i32
  }
  func.func @transform_1(%arg0: i32) -> (i32, i32) {
    %c0_i32 = arith.constant 0 : i32
    %c0_i32_0 = arith.constant 0 : i32
    %c0_i32_1 = arith.constant 0 : i32
    return %c0_i32, %c0_i32_0 : i32, i32
  }
  func.func @transform_2(%arg0: i32) -> (i32, i32) {
    %c0_i32 = arith.constant 0 : i32
    %c0_i32_0 = arith.constant 0 : i32
    %c0_i32_1 = arith.constant 0 : i32
    return %c0_i32, %c0_i32_0 : i32, i32
  }
  func.func @transform_3(%arg0: i32) -> (i32, i32) {
    %c0_i32 = arith.constant 0 : i32
    %c0_i32_0 = arith.constant 0 : i32
    return %arg0, %c0_i32 : i32, i32
  }
}

module attributes {stable_mosaic.version = 11 : i64} {
  func.func @_spec_mix_kernel(%arg0: i32, %arg1: memref<16x2x32xf32, #tpu.memory_space<vmem>>, %arg2: memref<16x32x32xf32, #tpu.memory_space<vmem>>, %arg3: memref<16x2x32xf32, #tpu.memory_space<vmem>>) attributes {dimension_semantics = [#tpu.dimension_semantics<parallel>], iteration_bounds = array<i64: 2>, scalar_prefetch = 0 : i64, scratch_operands = 0 : i64, tpu.core_type = #tpu.core_type<tc>, window_params = [{transform_indices = @transform_0, window_bounds = array<i64: 16, 2, 32>}, {transform_indices = @transform_1, window_bounds = array<i64: 16, 32, 32>}, {transform_indices = @transform_2, window_bounds = array<i64: 16, 2, 32>}]} {
    %c0 = arith.constant 0 : index
    %c0_0 = arith.constant 0 : index
    %c0_1 = arith.constant 0 : index
    %0 = vector.load %arg1[%c0, %c0_0, %c0_1] : memref<16x2x32xf32, #tpu.memory_space<vmem>>, vector<16x2x32xf32>
    %c0_2 = arith.constant 0 : index
    %c0_3 = arith.constant 0 : index
    %c0_4 = arith.constant 0 : index
    %1 = vector.load %arg2[%c0_2, %c0_3, %c0_4] : memref<16x32x32xf32, #tpu.memory_space<vmem>>, vector<16x32x32xf32>
    "tpu.trace_start"() <{level = 10 : i32, message = "mbi,mio->mbo"}> : () -> ()
    %cst = arith.constant dense<0.000000e+00> : vector<16x2x32xf32>
    %2 = tpu.matmul %0, %1, %cst {dimension_numbers = #tpu.dot_dimension_numbers<[2], [1], [1], [2], [0, 0, 0, 1, 1, 2], [0], [0]>} : vector<16x2x32xf32>, vector<16x32x32xf32>, vector<16x2x32xf32> -> vector<16x2x32xf32>
    "tpu.trace_stop"() : () -> ()
    %c0_5 = arith.constant 0 : index
    %c0_6 = arith.constant 0 : index
    %c0_7 = arith.constant 0 : index
    %3 = vector.load %arg3[%c0_5, %c0_6, %c0_7] : memref<16x2x32xf32, #tpu.memory_space<vmem>>, vector<16x2x32xf32>
    tpu.vector_store %arg3[%c0_5, %c0_6, %c0_7], %2 {strides = array<i32>} : memref<16x2x32xf32, #tpu.memory_space<vmem>>, vector<16x2x32xf32>,
    return
  }
  func.func @transform_0(%arg0: i32) -> (i32, i32, i32) {
    %c0_i32 = arith.constant 0 : i32
    %c0_i32_0 = arith.constant 0 : i32
    %c0_i32_1 = arith.constant 0 : i32
    return %arg0, %c0_i32, %c0_i32_0 : i32, i32, i32
  }
  func.func @transform_1(%arg0: i32) -> (i32, i32, i32) {
    %c0_i32 = arith.constant 0 : i32
    %c0_i32_0 = arith.constant 0 : i32
    %c0_i32_1 = arith.constant 0 : i32
    return %arg0, %c0_i32, %c0_i32_0 : i32, i32, i32
  }
  func.func @transform_2(%arg0: i32) -> (i32, i32, i32) {
    %c0_i32 = arith.constant 0 : i32
    %c0_i32_0 = arith.constant 0 : i32
    %c0_i32_1 = arith.constant 0 : i32
    return %arg0, %c0_i32, %c0_i32_0 : i32, i32, i32
  }
}

module attributes {stable_mosaic.version = 11 : i64} {
  func.func @_fused_layer_kernel(%arg0: i32, %arg1: memref<256x16xf32, #tpu.memory_space<vmem>>, %arg2: memref<256x16xf32, #tpu.memory_space<vmem>>, %arg3: memref<16x16xf32, #tpu.memory_space<vmem>>, %arg4: memref<1x16xf32, #tpu.memory_space<vmem>>, %arg5: memref<16x16xf32, #tpu.memory_space<vmem>>, %arg6: memref<1x16xf32, #tpu.memory_space<vmem>>, %arg7: memref<16x16xf32, #tpu.memory_space<vmem>>, %arg8: memref<1x16xf32, #tpu.memory_space<vmem>>, %arg9: memref<256x16xf32, #tpu.memory_space<vmem>>) attributes {dimension_semantics = [#tpu.dimension_semantics<parallel>], iteration_bounds = array<i64: 2>, scalar_prefetch = 0 : i64, scratch_operands = 0 : i64, tpu.core_type = #tpu.core_type<tc>, window_params = [{transform_indices = @transform_0, window_bounds = array<i64: 256, 16>}, {transform_indices = @transform_1, window_bounds = array<i64: 256, 16>}, {pipeline_mode = #tpu.pipeline_mode<synchronous>, transform_indices = @transform_2, window_bounds = array<i64: 16, 16>}, {pipeline_mode = #tpu.pipeline_mode<synchronous>, transform_indices = @transform_3, window_bounds = array<i64: 1, 16>}, {pipeline_mode = #tpu.pipeline_mode<synchronous>, transform_indices = @transform_4, window_bounds = array<i64: 16, 16>}, {pipeline_mode = #tpu.pipeline_mode<synchronous>, transform_indices = @transform_5, window_bounds = array<i64: 1, 16>}, {pipeline_mode = #tpu.pipeline_mode<synchronous>, transform_indices = @transform_6, window_bounds = array<i64: 16, 16>}, {pipeline_mode = #tpu.pipeline_mode<synchronous>, transform_indices = @transform_7, window_bounds = array<i64: 1, 16>}, {transform_indices = @transform_8, window_bounds = array<i64: 256, 16>}]} {
    %c0 = arith.constant 0 : index
    %c0_0 = arith.constant 0 : index
    %0 = vector.load %arg1[%c0, %c0_0] : memref<256x16xf32, #tpu.memory_space<vmem>>, vector<256x16xf32>
    %c0_1 = arith.constant 0 : index
    %c0_2 = arith.constant 0 : index
    %1 = vector.load %arg3[%c0_1, %c0_2] : memref<16x16xf32, #tpu.memory_space<vmem>>, vector<16x16xf32>
    %cst = arith.constant dense<0.000000e+00> : vector<256x16xf32>
    %2 = tpu.matmul %0, %1, %cst {dimension_numbers = #tpu.dot_dimension_numbers<[1], [0], [0], [1], [0, 0, 1, 1], [], []>} : vector<256x16xf32>, vector<16x16xf32>, vector<256x16xf32> -> vector<256x16xf32>
    %c0_3 = arith.constant 0 : index
    %c0_4 = arith.constant 0 : index
    %3 = vector.load %arg4[%c0_3, %c0_4] : memref<1x16xf32, #tpu.memory_space<vmem>>, vector<1x16xf32>
    %4 = vector.broadcast %3 : vector<1x16xf32> to vector<256x16xf32>
    %5 = arith.addf %2, %4 : vector<256x16xf32>
    %c0_5 = arith.constant 0 : index
    %c0_6 = arith.constant 0 : index
    %6 = vector.load %arg2[%c0_5, %c0_6] : memref<256x16xf32, #tpu.memory_space<vmem>>, vector<256x16xf32>
    %c0_7 = arith.constant 0 : index
    %c0_8 = arith.constant 0 : index
    %7 = vector.load %arg5[%c0_7, %c0_8] : memref<16x16xf32, #tpu.memory_space<vmem>>, vector<16x16xf32>
    %cst_9 = arith.constant dense<0.000000e+00> : vector<256x16xf32>
    %8 = tpu.matmul %6, %7, %cst_9 {dimension_numbers = #tpu.dot_dimension_numbers<[1], [0], [0], [1], [0, 0, 1, 1], [], []>} : vector<256x16xf32>, vector<16x16xf32>, vector<256x16xf32> -> vector<256x16xf32>
    %c0_10 = arith.constant 0 : index
    %c0_11 = arith.constant 0 : index
    %9 = vector.load %arg6[%c0_10, %c0_11] : memref<1x16xf32, #tpu.memory_space<vmem>>, vector<1x16xf32>
    %10 = vector.broadcast %9 : vector<1x16xf32> to vector<256x16xf32>
    %11 = arith.addf %8, %10 : vector<256x16xf32>
    %cst_12 = arith.constant 5.000000e-01 : f32
    %12 = vector.broadcast %cst_12 : f32 to vector<256x16xf32>
    %13 = arith.mulf %12, %11 : vector<256x16xf32>
    %cst_13 = arith.constant 0.707106769 : f32
    %14 = vector.broadcast %cst_13 : f32 to vector<256x16xf32>
    %15 = arith.mulf %11, %14 : vector<256x16xf32>
    %cst_14 = arith.constant 0.000000e+00 : f32
    %16 = vector.broadcast %cst_14 : f32 to vector<256x16xf32>
    %17 = arith.cmpf oge, %15, %16 : vector<256x16xf32>
    %cst_15 = arith.constant 1.000000e+00 : f32
    %cst_16 = arith.constant -1.000000e+00 : f32
    %18 = vector.broadcast %cst_15 : f32 to vector<256x16xf32>
    %19 = vector.broadcast %cst_16 : f32 to vector<256x16xf32>
    %20 = arith.select %17, %18, %19 : vector<256x16xi1>, vector<256x16xf32>
    %21 = math.absf %15 : vector<256x16xf32>
    %cst_17 = arith.constant 0.327591091 : f32
    %22 = vector.broadcast %cst_17 : f32 to vector<256x16xf32>
    %23 = arith.mulf %22, %21 : vector<256x16xf32>
    %cst_18 = arith.constant 1.000000e+00 : f32
    %24 = vector.broadcast %cst_18 : f32 to vector<256x16xf32>
    %25 = arith.addf %24, %23 : vector<256x16xf32>
    %cst_19 = arith.constant 1.000000e+00 : f32
    %26 = vector.broadcast %cst_19 : f32 to vector<256x16xf32>
    %27 = arith.divf %26, %25 : vector<256x16xf32>
    %cst_20 = arith.constant 1.06140542 : f32
    %28 = vector.broadcast %cst_20 : f32 to vector<256x16xf32>
    %29 = arith.mulf %28, %27 : vector<256x16xf32>
    %cst_21 = arith.constant -1.45315206 : f32
    %30 = vector.broadcast %cst_21 : f32 to vector<256x16xf32>
    %31 = arith.addf %29, %30 : vector<256x16xf32>
    %32 = arith.mulf %31, %27 : vector<256x16xf32>
    %cst_22 = arith.constant 1.42141378 : f32
    %33 = vector.broadcast %cst_22 : f32 to vector<256x16xf32>
    %34 = arith.addf %32, %33 : vector<256x16xf32>
    %35 = arith.mulf %34, %27 : vector<256x16xf32>
    %cst_23 = arith.constant -0.284496725 : f32
    %36 = vector.broadcast %cst_23 : f32 to vector<256x16xf32>
    %37 = arith.addf %35, %36 : vector<256x16xf32>
    %38 = arith.mulf %37, %27 : vector<256x16xf32>
    %cst_24 = arith.constant 0.254829586 : f32
    %39 = vector.broadcast %cst_24 : f32 to vector<256x16xf32>
    %40 = arith.addf %38, %39 : vector<256x16xf32>
    %41 = arith.mulf %40, %27 : vector<256x16xf32>
    %cst_25 = arith.constant 0.000000e+00 : f32
    %42 = vector.broadcast %cst_25 : f32 to vector<256x16xf32>
    %43 = arith.subf %42, %21 : vector<256x16xf32>
    %44 = arith.mulf %43, %21 : vector<256x16xf32>
    %45 = math.exp %44 : vector<256x16xf32>
    %46 = arith.mulf %41, %45 : vector<256x16xf32>
    %cst_26 = arith.constant 1.000000e+00 : f32
    %47 = vector.broadcast %cst_26 : f32 to vector<256x16xf32>
    %48 = arith.subf %47, %46 : vector<256x16xf32>
    %49 = arith.mulf %20, %48 : vector<256x16xf32>
    %cst_27 = arith.constant 1.000000e+00 : f32
    %50 = vector.broadcast %cst_27 : f32 to vector<256x16xf32>
    %51 = arith.addf %50, %49 : vector<256x16xf32>
    %52 = arith.mulf %13, %51 : vector<256x16xf32>
    %c0_28 = arith.constant 0 : index
    %c0_29 = arith.constant 0 : index
    %53 = vector.load %arg7[%c0_28, %c0_29] : memref<16x16xf32, #tpu.memory_space<vmem>>, vector<16x16xf32>
    %cst_30 = arith.constant dense<0.000000e+00> : vector<256x16xf32>
    %54 = tpu.matmul %52, %53, %cst_30 {dimension_numbers = #tpu.dot_dimension_numbers<[1], [0], [0], [1], [0, 0, 1, 1], [], []>} : vector<256x16xf32>, vector<16x16xf32>, vector<256x16xf32> -> vector<256x16xf32>
    %c0_31 = arith.constant 0 : index
    %c0_32 = arith.constant 0 : index
    %55 = vector.load %arg8[%c0_31, %c0_32] : memref<1x16xf32, #tpu.memory_space<vmem>>, vector<1x16xf32>
    %56 = vector.broadcast %55 : vector<1x16xf32> to vector<256x16xf32>
    %57 = arith.addf %54, %56 : vector<256x16xf32>
    %58 = arith.addf %57, %5 : vector<256x16xf32>
    %cst_33 = arith.constant 5.000000e-01 : f32
    %59 = vector.broadcast %cst_33 : f32 to vector<256x16xf32>
    %60 = arith.mulf %59, %58 : vector<256x16xf32>
    %cst_34 = arith.constant 0.707106769 : f32
    %61 = vector.broadcast %cst_34 : f32 to vector<256x16xf32>
    %62 = arith.mulf %58, %61 : vector<256x16xf32>
    %cst_35 = arith.constant 0.000000e+00 : f32
    %63 = vector.broadcast %cst_35 : f32 to vector<256x16xf32>
    %64 = arith.cmpf oge, %62, %63 : vector<256x16xf32>
    %cst_36 = arith.constant 1.000000e+00 : f32
    %cst_37 = arith.constant -1.000000e+00 : f32
    %65 = vector.broadcast %cst_36 : f32 to vector<256x16xf32>
    %66 = vector.broadcast %cst_37 : f32 to vector<256x16xf32>
    %67 = arith.select %64, %65, %66 : vector<256x16xi1>, vector<256x16xf32>
    %68 = math.absf %62 : vector<256x16xf32>
    %cst_38 = arith.constant 0.327591091 : f32
    %69 = vector.broadcast %cst_38 : f32 to vector<256x16xf32>
    %70 = arith.mulf %69, %68 : vector<256x16xf32>
    %cst_39 = arith.constant 1.000000e+00 : f32
    %71 = vector.broadcast %cst_39 : f32 to vector<256x16xf32>
    %72 = arith.addf %71, %70 : vector<256x16xf32>
    %cst_40 = arith.constant 1.000000e+00 : f32
    %73 = vector.broadcast %cst_40 : f32 to vector<256x16xf32>
    %74 = arith.divf %73, %72 : vector<256x16xf32>
    %cst_41 = arith.constant 1.06140542 : f32
    %75 = vector.broadcast %cst_41 : f32 to vector<256x16xf32>
    %76 = arith.mulf %75, %74 : vector<256x16xf32>
    %cst_42 = arith.constant -1.45315206 : f32
    %77 = vector.broadcast %cst_42 : f32 to vector<256x16xf32>
    %78 = arith.addf %76, %77 : vector<256x16xf32>
    %79 = arith.mulf %78, %74 : vector<256x16xf32>
    %cst_43 = arith.constant 1.42141378 : f32
    %80 = vector.broadcast %cst_43 : f32 to vector<256x16xf32>
    %81 = arith.addf %79, %80 : vector<256x16xf32>
    %82 = arith.mulf %81, %74 : vector<256x16xf32>
    %cst_44 = arith.constant -0.284496725 : f32
    %83 = vector.broadcast %cst_44 : f32 to vector<256x16xf32>
    %84 = arith.addf %82, %83 : vector<256x16xf32>
    %85 = arith.mulf %84, %74 : vector<256x16xf32>
    %cst_45 = arith.constant 0.254829586 : f32
    %86 = vector.broadcast %cst_45 : f32 to vector<256x16xf32>
    %87 = arith.addf %85, %86 : vector<256x16xf32>
    %88 = arith.mulf %87, %74 : vector<256x16xf32>
    %cst_46 = arith.constant 0.000000e+00 : f32
    %89 = vector.broadcast %cst_46 : f32 to vector<256x16xf32>
    %90 = arith.subf %89, %68 : vector<256x16xf32>
    %91 = arith.mulf %90, %68 : vector<256x16xf32>
    %92 = math.exp %91 : vector<256x16xf32>
    %93 = arith.mulf %88, %92 : vector<256x16xf32>
    %cst_47 = arith.constant 1.000000e+00 : f32
    %94 = vector.broadcast %cst_47 : f32 to vector<256x16xf32>
    %95 = arith.subf %94, %93 : vector<256x16xf32>
    %96 = arith.mulf %67, %95 : vector<256x16xf32>
    %cst_48 = arith.constant 1.000000e+00 : f32
    %97 = vector.broadcast %cst_48 : f32 to vector<256x16xf32>
    %98 = arith.addf %97, %96 : vector<256x16xf32>
    %99 = arith.mulf %60, %98 : vector<256x16xf32>
    %c0_49 = arith.constant 0 : index
    %c0_50 = arith.constant 0 : index
    %100 = vector.load %arg9[%c0_49, %c0_50] : memref<256x16xf32, #tpu.memory_space<vmem>>, vector<256x16xf32>
    tpu.vector_store %arg9[%c0_49, %c0_50], %99 {strides = array<i32>} : memref<256x16xf32, #tpu.memory_space<vmem>>, vector<256x16xf32>,
    return
  }
  func.func @transform_0(%arg0: i32) -> (i32, i32) {
    %c0_i32 = arith.constant 0 : i32
    %c0_i32_0 = arith.constant 0 : i32
    return %arg0, %c0_i32 : i32, i32
  }
  func.func @transform_1(%arg0: i32) -> (i32, i32) {
    %c0_i32 = arith.constant 0 : i32
    %c0_i32_0 = arith.constant 0 : i32
    return %arg0, %c0_i32 : i32, i32
  }
  func.func @transform_2(%arg0: i32) -> (i32, i32) {
    %c0_i32 = arith.constant 0 : i32
    %c0_i32_0 = arith.constant 0 : i32
    %c0_i32_1 = arith.constant 0 : i32
    return %c0_i32, %c0_i32_0 : i32, i32
  }
  func.func @transform_3(%arg0: i32) -> (i32, i32) {
    %c0_i32 = arith.constant 0 : i32
    %c0_i32_0 = arith.constant 0 : i32
    %c0_i32_1 = arith.constant 0 : i32
    return %c0_i32, %c0_i32_0 : i32, i32
  }
  func.func @transform_4(%arg0: i32) -> (i32, i32) {
    %c0_i32 = arith.constant 0 : i32
    %c0_i32_0 = arith.constant 0 : i32
    %c0_i32_1 = arith.constant 0 : i32
    return %c0_i32, %c0_i32_0 : i32, i32
  }
  func.func @transform_5(%arg0: i32) -> (i32, i32) {
    %c0_i32 = arith.constant 0 : i32
    %c0_i32_0 = arith.constant 0 : i32
    %c0_i32_1 = arith.constant 0 : i32
    return %c0_i32, %c0_i32_0 : i32, i32
  }
  func.func @transform_6(%arg0: i32) -> (i32, i32) {
    %c0_i32 = arith.constant 0 : i32
    %c0_i32_0 = arith.constant 0 : i32
    %c0_i32_1 = arith.constant 0 : i32
    return %c0_i32, %c0_i32_0 : i32, i32
  }
  func.func @transform_7(%arg0: i32) -> (i32, i32) {
    %c0_i32 = arith.constant 0 : i32
    %c0_i32_0 = arith.constant 0 : i32
    %c0_i32_1 = arith.constant 0 : i32
    return %c0_i32, %c0_i32_0 : i32, i32
  }
  func.func @transform_8(%arg0: i32) -> (i32, i32) {
    %c0_i32 = arith.constant 0 : i32
    %c0_i32_0 = arith.constant 0 : i32
    return %arg0, %c0_i32 : i32, i32
  }
}

module attributes {stable_mosaic.version = 11 : i64} {
  func.func @_fused_q_kernel(%arg0: i32, %arg1: memref<256x16xf32, #tpu.memory_space<vmem>>, %arg2: memref<16x64xf32, #tpu.memory_space<vmem>>, %arg3: memref<1x64xf32, #tpu.memory_space<vmem>>, %arg4: memref<64x1xf32, #tpu.memory_space<vmem>>, %arg5: memref<1x1xf32, #tpu.memory_space<vmem>>, %arg6: memref<256x1xf32, #tpu.memory_space<vmem>>) attributes {dimension_semantics = [#tpu.dimension_semantics<parallel>], iteration_bounds = array<i64: 2>, scalar_prefetch = 0 : i64, scratch_operands = 0 : i64, tpu.core_type = #tpu.core_type<tc>, window_params = [{transform_indices = @transform_0, window_bounds = array<i64: 256, 16>}, {pipeline_mode = #tpu.pipeline_mode<synchronous>, transform_indices = @transform_1, window_bounds = array<i64: 16, 64>}, {pipeline_mode = #tpu.pipeline_mode<synchronous>, transform_indices = @transform_2, window_bounds = array<i64: 1, 64>}, {pipeline_mode = #tpu.pipeline_mode<synchronous>, transform_indices = @transform_3, window_bounds = array<i64: 64, 1>}, {pipeline_mode = #tpu.pipeline_mode<synchronous>, transform_indices = @transform_4, window_bounds = array<i64: 1, 1>}, {transform_indices = @transform_5, window_bounds = array<i64: 256, 1>}]} {
    %c0 = arith.constant 0 : index
    %c0_0 = arith.constant 0 : index
    %0 = vector.load %arg1[%c0, %c0_0] : memref<256x16xf32, #tpu.memory_space<vmem>>, vector<256x16xf32>
    %c0_1 = arith.constant 0 : index
    %c0_2 = arith.constant 0 : index
    %1 = vector.load %arg2[%c0_1, %c0_2] : memref<16x64xf32, #tpu.memory_space<vmem>>, vector<16x64xf32>
    %cst = arith.constant dense<0.000000e+00> : vector<256x64xf32>
    %2 = tpu.matmul %0, %1, %cst {dimension_numbers = #tpu.dot_dimension_numbers<[1], [0], [0], [1], [0, 0, 1, 1], [], []>} : vector<256x16xf32>, vector<16x64xf32>, vector<256x64xf32> -> vector<256x64xf32>
    %c0_3 = arith.constant 0 : index
    %c0_4 = arith.constant 0 : index
    %3 = vector.load %arg3[%c0_3, %c0_4] : memref<1x64xf32, #tpu.memory_space<vmem>>, vector<1x64xf32>
    %4 = vector.broadcast %3 : vector<1x64xf32> to vector<256x64xf32>
    %5 = arith.addf %2, %4 : vector<256x64xf32>
    %cst_5 = arith.constant 5.000000e-01 : f32
    %6 = vector.broadcast %cst_5 : f32 to vector<256x64xf32>
    %7 = arith.mulf %6, %5 : vector<256x64xf32>
    %cst_6 = arith.constant 0.707106769 : f32
    %8 = vector.broadcast %cst_6 : f32 to vector<256x64xf32>
    %9 = arith.mulf %5, %8 : vector<256x64xf32>
    %cst_7 = arith.constant 0.000000e+00 : f32
    %10 = vector.broadcast %cst_7 : f32 to vector<256x64xf32>
    %11 = arith.cmpf oge, %9, %10 : vector<256x64xf32>
    %cst_8 = arith.constant 1.000000e+00 : f32
    %cst_9 = arith.constant -1.000000e+00 : f32
    %12 = vector.broadcast %cst_8 : f32 to vector<256x64xf32>
    %13 = vector.broadcast %cst_9 : f32 to vector<256x64xf32>
    %14 = arith.select %11, %12, %13 : vector<256x64xi1>, vector<256x64xf32>
    %15 = math.absf %9 : vector<256x64xf32>
    %cst_10 = arith.constant 0.327591091 : f32
    %16 = vector.broadcast %cst_10 : f32 to vector<256x64xf32>
    %17 = arith.mulf %16, %15 : vector<256x64xf32>
    %cst_11 = arith.constant 1.000000e+00 : f32
    %18 = vector.broadcast %cst_11 : f32 to vector<256x64xf32>
    %19 = arith.addf %18, %17 : vector<256x64xf32>
    %cst_12 = arith.constant 1.000000e+00 : f32
    %20 = vector.broadcast %cst_12 : f32 to vector<256x64xf32>
    %21 = arith.divf %20, %19 : vector<256x64xf32>
    %cst_13 = arith.constant 1.06140542 : f32
    %22 = vector.broadcast %cst_13 : f32 to vector<256x64xf32>
    %23 = arith.mulf %22, %21 : vector<256x64xf32>
    %cst_14 = arith.constant -1.45315206 : f32
    %24 = vector.broadcast %cst_14 : f32 to vector<256x64xf32>
    %25 = arith.addf %23, %24 : vector<256x64xf32>
    %26 = arith.mulf %25, %21 : vector<256x64xf32>
    %cst_15 = arith.constant 1.42141378 : f32
    %27 = vector.broadcast %cst_15 : f32 to vector<256x64xf32>
    %28 = arith.addf %26, %27 : vector<256x64xf32>
    %29 = arith.mulf %28, %21 : vector<256x64xf32>
    %cst_16 = arith.constant -0.284496725 : f32
    %30 = vector.broadcast %cst_16 : f32 to vector<256x64xf32>
    %31 = arith.addf %29, %30 : vector<256x64xf32>
    %32 = arith.mulf %31, %21 : vector<256x64xf32>
    %cst_17 = arith.constant 0.254829586 : f32
    %33 = vector.broadcast %cst_17 : f32 to vector<256x64xf32>
    %34 = arith.addf %32, %33 : vector<256x64xf32>
    %35 = arith.mulf %34, %21 : vector<256x64xf32>
    %cst_18 = arith.constant 0.000000e+00 : f32
    %36 = vector.broadcast %cst_18 : f32 to vector<256x64xf32>
    %37 = arith.subf %36, %15 : vector<256x64xf32>
    %38 = arith.mulf %37, %15 : vector<256x64xf32>
    %39 = math.exp %38 : vector<256x64xf32>
    %40 = arith.mulf %35, %39 : vector<256x64xf32>
    %cst_19 = arith.constant 1.000000e+00 : f32
    %41 = vector.broadcast %cst_19 : f32 to vector<256x64xf32>
    %42 = arith.subf %41, %40 : vector<256x64xf32>
    %43 = arith.mulf %14, %42 : vector<256x64xf32>
    %cst_20 = arith.constant 1.000000e+00 : f32
    %44 = vector.broadcast %cst_20 : f32 to vector<256x64xf32>
    %45 = arith.addf %44, %43 : vector<256x64xf32>
    %46 = arith.mulf %7, %45 : vector<256x64xf32>
    %c0_21 = arith.constant 0 : index
    %c0_22 = arith.constant 0 : index
    %47 = vector.load %arg4[%c0_21, %c0_22] : memref<64x1xf32, #tpu.memory_space<vmem>>, vector<64x1xf32>
    %cst_23 = arith.constant dense<0.000000e+00> : vector<256x1xf32>
    %48 = tpu.matmul %46, %47, %cst_23 {dimension_numbers = #tpu.dot_dimension_numbers<[1], [0], [0], [1], [0, 0, 1, 1], [], []>} : vector<256x64xf32>, vector<64x1xf32>, vector<256x1xf32> -> vector<256x1xf32>
    %c0_24 = arith.constant 0 : index
    %c0_25 = arith.constant 0 : index
    %49 = vector.load %arg5[%c0_24, %c0_25] : memref<1x1xf32, #tpu.memory_space<vmem>>, vector<1x1xf32>
    %50 = vector.broadcast %49 : vector<1x1xf32> to vector<256x1xf32>
    %51 = arith.addf %48, %50 : vector<256x1xf32>
    %c0_26 = arith.constant 0 : index
    %c0_27 = arith.constant 0 : index
    %52 = vector.load %arg6[%c0_26, %c0_27] : memref<256x1xf32, #tpu.memory_space<vmem>>, vector<256x1xf32>
    tpu.vector_store %arg6[%c0_26, %c0_27], %51 {strides = array<i32>} : memref<256x1xf32, #tpu.memory_space<vmem>>, vector<256x1xf32>,
    return
  }
  func.func @transform_0(%arg0: i32) -> (i32, i32) {
    %c0_i32 = arith.constant 0 : i32
    %c0_i32_0 = arith.constant 0 : i32
    return %arg0, %c0_i32 : i32, i32
  }
  func.func @transform_1(%arg0: i32) -> (i32, i32) {
    %c0_i32 = arith.constant 0 : i32
    %c0_i32_0 = arith.constant 0 : i32
    %c0_i32_1 = arith.constant 0 : i32
    return %c0_i32, %c0_i32_0 : i32, i32
  }
  func.func @transform_2(%arg0: i32) -> (i32, i32) {
    %c0_i32 = arith.constant 0 : i32
    %c0_i32_0 = arith.constant 0 : i32
    %c0_i32_1 = arith.constant 0 : i32
    return %c0_i32, %c0_i32_0 : i32, i32
  }
  func.func @transform_3(%arg0: i32) -> (i32, i32) {
    %c0_i32 = arith.constant 0 : i32
    %c0_i32_0 = arith.constant 0 : i32
    %c0_i32_1 = arith.constant 0 : i32
    return %c0_i32, %c0_i32_0 : i32, i32
  }
  func.func @transform_4(%arg0: i32) -> (i32, i32) {
    %c0_i32 = arith.constant 0 : i32
    %c0_i32_0 = arith.constant 0 : i32
    %c0_i32_1 = arith.constant 0 : i32
    return %c0_i32, %c0_i32_0 : i32, i32
  }
  func.func @transform_5(%arg0: i32) -> (i32, i32) {
    %c0_i32 = arith.constant 0 : i32
    %c0_i32_0 = arith.constant 0 : i32
    return %arg0, %c0_i32 : i32, i32
  }
}

</mosaic_0001>

<bundles_post_ra>
// kernel: fno_forward.10
= control target key start
LH: loop header
LB: loop body
LE: loop exit
PB: predicated region body
PF: predicated region fallthrough
CT: control target
= control target key end

     0   :  { %s795_s12 = smov 0   ;;  %s991_s0 = inlined_call_operand.vmem [shape: f32[512,3], index: 0, kind: input, shape index: {}]   ;;  %s992_s1 = inlined_call_operand.vmem [shape: f32[3,16], index: 1, kind: input, shape index: {}]   ;;  %s993_s2 = inlined_call_operand.vmem [shape: f32[1,16], index: 2, kind: input, shape index: {}]   ;;  %s994_s3 = inlined_call_operand.vmem [shape: f32[512,16], index: 3, kind: output, shape index: {}]  }
   0x1 LB: > { %s629_s13 = sadd.s32 4294967295, %s773_s12   ;;  %p633_p0 = scmp.ge.s32.totalorder %s773_s12, 1  ;;  %s773_s12 = sphi %s795_s12, %s13_s12  }
   0x2   : > { %p138_p1 = scmp.lt.s32.totalorder %s773_s12, 3 }
   0x4   : > { %p139_p2 = pnand %p633_p0, %p138_p1 }
   0x5   : > { %v206_v0 = vld [vmem:[%s992_s1] sm:$0x7] (!%p139_p2)  ;;  %vm311_vm0 = vcmask (!%p139_p2), 1042432   ;;  %s634_s16 = sshll.u32 (!%p139_p2), %s629_s13, 5  ;;  %vm214_vm1 = vcmask (!%p139_p2), 23552   ;;  %vm540_vm2 = vcmask (!%p139_p2), 130048  }
   0x6   : > { %142 = sbr.rel (%p139_p2) target bundleno = 263 (0x107), region = 32  ;;  %707 = vmatprep.subr.msk.mxu0 (!%p139_p2), %vm311_vm0, %v206_v0  ;;  %757 = vmatprep.subr.msk.mxu1 (!%p139_p2), %vm311_vm0, %v206_v0  ;;  %p163_p3 = scmp.lt.s32.totalorder (!%p139_p2), %s634_s16, 63  ;;  %v883_v33 = vld [vmem:[%s993_s2] ss:$0 sm:$0xff] (!%p139_p2) }
   0x7   : > { %708 = vmatpush3.msk.msra.mxu0 (!%p139_p2), %vm311_vm0, %v206_v0  ;;  %758 = vmatpush3.msk.msra.mxu1 (!%p139_p2), %vm311_vm0, %v206_v0 }
   0xd   : > { %s996_s16 = smov (!%p163_p3, %s634_s16), 63 }
   0xe   : > { %s635_s17 = sshll.u32 %s996_s16, 3 }
   0xf   : > { %s814_s20 = scalar_lea.vmem %s991_s0, %s635_s17  ;;  %s890_s25 = scalar_lea.vmem %s994_s3, %s635_s17 }
  0x10   : > { %v174_v1 = vld [vmem:[%s814_s20] sm:$0xff]  ;;  %v175_v3 = vld [vmem:[%s814_s20 + $0x8] sm:$0xff]  ;;  %v176_v5 = vld [vmem:[%s814_s20 + $0x10] sm:$0xff] }
  0x11   : > { %v190_v2 = vld [vmem:[%s814_s20 + $0x80] sm:$0xff]  ;;  %709 = vmatprep.mubr.msk.f32.mxu0 %vm214_vm1, %v174_v1  ;;  %v191_v4 = vld [vmem:[%s814_s20 + $0x88] sm:$0xff]  ;;  %v192_v6 = vld [vmem:[%s814_s20 + $0x90] sm:$0xff] }
  0x12   : > { %733 = vmatprep.mubr.msk.f32.mxu1 %vm214_vm1, %v190_v2  ;;  %710 = vmatmul.mubr.msk.f32.vlgmr.msra.gmra.mrb[0].mxu0 %vm214_vm1, %v175_v3  ;;  %v177_v7 = vld [vmem:[%s814_s20 + $0x18] sm:$0xff]  ;;  %v178_v9 = vld [vmem:[%s814_s20 + $0x20] sm:$0xff]  ;;  %v179_v11 = vld [vmem:[%s814_s20 + $0x28] sm:$0xff] }
  0x13   : > { %734 = vmatmul.mubr.msk.f32.vlgmr.msra.gmra.mrb[0].mxu1 %vm214_vm1, %v191_v4  ;;  %712 = vmatprep.mubr.msk.f32.mxu0 %vm214_vm1, %v176_v5  ;;  %v193_v8 = vld [vmem:[%s814_s20 + $0x98] sm:$0xff]  ;;  %v194_v10 = vld [vmem:[%s814_s20 + $0xa0] sm:$0xff]  ;;  %v195_v12 = vld [vmem:[%s814_s20 + $0xa8] sm:$0xff] }
  0x14   : > { %736 = vmatprep.mubr.msk.f32.mxu1 %vm214_vm1, %v192_v6  ;;  %v180_v13 = vld [vmem:[%s814_s20 + $0x30] sm:$0xff]  ;;  %v181_v15 = vld [vmem:[%s814_s20 + $0x38] sm:$0xff]  ;;  %v182_v17 = vld [vmem:[%s814_s20 + $0x40] sm:$0xff] }
  0x15   : > { %v196_v14 = vld [vmem:[%s814_s20 + $0xb0] sm:$0xff]  ;;  %v197_v16 = vld [vmem:[%s814_s20 + $0xb8] sm:$0xff]  ;;  %v198_v18 = vld [vmem:[%s814_s20 + $0xc0] sm:$0xff] }
  0x16   : > { %713 = vmatmul.mubr.msk.f32.gmra.mrb[2].mxu0 %vm214_vm1, %v177_v7  ;;  %v183_v19 = vld [vmem:[%s814_s20 + $0x48] sm:$0xff]  ;;  %v184_v21 = vld [vmem:[%s814_s20 + $0x50] sm:$0xff]  ;;  %v185_v23 = vld [vmem:[%s814_s20 + $0x58] sm:$0xff] }
  0x17   : > { %737 = vmatmul.mubr.msk.f32.gmra.mrb[2].mxu1 %vm214_vm1, %v193_v8  ;;  %715 = vmatprep.mubr.msk.f32.mxu0 %vm214_vm1, %v178_v9  ;;  %v199_v20 = vld [vmem:[%s814_s20 + $0xc8] sm:$0xff]  ;;  %v200_v22 = vld [vmem:[%s814_s20 + $0xd0] sm:$0xff]  ;;  %v201_v24 = vld [vmem:[%s814_s20 + $0xd8] sm:$0xff] }
  0x18   : > { %739 = vmatprep.mubr.msk.f32.mxu1 %vm214_vm1, %v194_v10  ;;  %v186_v25 = vld [vmem:[%s814_s20 + $0x60] sm:$0xff]  ;;  %v187_v27 = vld [vmem:[%s814_s20 + $0x68] sm:$0xff]  ;;  %v188_v29 = vld [vmem:[%s814_s20 + $0x70] sm:$0xff] }
  0x19   : > { %v202_v26 = vld [vmem:[%s814_s20 + $0xe0] sm:$0xff]  ;;  %v203_v28 = vld [vmem:[%s814_s20 + $0xe8] sm:$0xff]  ;;  %v204_v30 = vld [vmem:[%s814_s20 + $0xf0] sm:$0xff] }
  0x1a   : > { %716 = vmatmul.mubr.msk.f32.gmra.mrb[4].mxu0 %vm214_vm1, %v179_v11  ;;  %v189_v31 = vld [vmem:[%s814_s20 + $0x78] sm:$0xff] }
  0x1b   : > { %740 = vmatmul.mubr.msk.f32.gmra.mrb[4].mxu1 %vm214_vm1, %v195_v12  ;;  %718 = vmatprep.mubr.msk.f32.mxu0 %vm214_vm1, %v180_v13  ;;  %v205_v32 = vld [vmem:[%s814_s20 + $0xf8] sm:$0xff] }
  0x1c   : > { %742 = vmatprep.mubr.msk.f32.mxu1 %vm214_vm1, %v196_v14 }
  0x1e   : > { %719 = vmatmul.mubr.msk.f32.gmra.mrb[6].mxu0 %vm214_vm1, %v181_v15 }
  0x1f   : > { %743 = vmatmul.mubr.msk.f32.gmra.mrb[6].mxu1 %vm214_vm1, %v197_v16  ;;  %721 = vmatprep.mubr.msk.f32.mxu0 %vm214_vm1, %v182_v17 }
  0x20   : > { %745 = vmatprep.mubr.msk.f32.mxu1 %vm214_vm1, %v198_v18 }
  0x22   : > { %722 = vmatmul.mubr.msk.f32.gmra.mrb[8].mxu0 %vm214_vm1, %v183_v19 }
  0x23   : > { %746 = vmatmul.mubr.msk.f32.gmra.mrb[8].mxu1 %vm214_vm1, %v199_v20  ;;  %724 = vmatprep.mubr.msk.f32.mxu0 %vm214_vm1, %v184_v21 }
  0x24   : > { %748 = vmatprep.mubr.msk.f32.mxu1 %vm214_vm1, %v200_v22 }
  0x26   : > { %725 = vmatmul.mubr.msk.f32.gmra.mrb[10].mxu0 %vm214_vm1, %v185_v23 }
  0x27   : > { %749 = vmatmul.mubr.msk.f32.gmra.mrb[10].mxu1 %vm214_vm1, %v201_v24  ;;  %727 = vmatprep.mubr.msk.f32.mxu0 %vm214_vm1, %v186_v25 }
  0x28   : > { %751 = vmatprep.mubr.msk.f32.mxu1 %vm214_vm1, %v202_v26 }
  0x2a   : > { %728 = vmatmul.mubr.msk.f32.gmra.mrb[12].mxu0 %vm214_vm1, %v187_v27 }
  0x2b   : > { %752 = vmatmul.mubr.msk.f32.gmra.mrb[12].mxu1 %vm214_vm1, %v203_v28  ;;  %730 = vmatprep.mubr.msk.f32.mxu0 %vm214_vm1, %v188_v29 }
  0x2c   : > { %754 = vmatprep.mubr.msk.f32.mxu1 %vm214_vm1, %v204_v30 }
  0x2e   : > { %731 = vmatmul.mubr.msk.f32.gmra.mrb[14].mxu0 %vm214_vm1, %v189_v31 }
  0x2f   : > { %755 = vmatmul.mubr.msk.f32.gmra.mrb[14].mxu1 %vm214_vm1, %v205_v32 }
  0xe5   : > { %v711_v34 = vpop.f32.mrb[0].mxu0 }
  0xe6   : > { %v735_v35 = vpop.f32.mrb[0].mxu1  ;;  %v387_v36 = vadd.f32 %v711_v34, %v883_v33  ;;  %v381_v38 = vpop.f32.mrb[1].mxu0 }
  0xe7   : > { %v467_v37 = vadd.f32 %v735_v35, %v883_v33  ;;  %v461_v39 = vpop.f32.mrb[1].mxu1  ;;  %v382_v40 = vadd.f32 %v883_v33, %v381_v38 }
  0xe8   : > { %v462_v41 = vadd.f32 %v883_v33, %v461_v39  ;;  %542 = vst.msk [vmem:[%s890_s25 + $0x8] sm:$0xff] %vm540_vm2, %v387_v36 }
  0xe9   : > { %558 = vst.msk [vmem:[%s890_s25 + $0x88] sm:$0xff] %vm540_vm2, %v467_v37  ;;  %541 = vst.msk [vmem:[%s890_s25] sm:$0xff] %vm540_vm2, %v382_v40  ;;  %v714_v42 = vpop.f32.mrb[2].mxu0 }
  0xea   : > { %557 = vst.msk [vmem:[%s890_s25 + $0x80] sm:$0xff] %vm540_vm2, %v462_v41  ;;  %v738_v43 = vpop.f32.mrb[2].mxu1  ;;  %v397_v44 = vadd.f32 %v714_v42, %v883_v33  ;;  %v391_v46 = vpop.f32.mrb[3].mxu0 }
  0xeb   : > { %v477_v45 = vadd.f32 %v738_v43, %v883_v33  ;;  %v471_v47 = vpop.f32.mrb[3].mxu1  ;;  %v392_v48 = vadd.f32 %v883_v33, %v391_v46 }
  0xec   : > { %v472_v49 = vadd.f32 %v883_v33, %v471_v47  ;;  %544 = vst.msk [vmem:[%s890_s25 + $0x18] sm:$0xff] %vm540_vm2, %v397_v44 }
  0xed   : > { %560 = vst.msk [vmem:[%s890_s25 + $0x98] sm:$0xff] %vm540_vm2, %v477_v45  ;;  %543 = vst.msk [vmem:[%s890_s25 + $0x10] sm:$0xff] %vm540_vm2, %v392_v48  ;;  %v717_v50 = vpop.f32.mrb[4].mxu0 }
  0xee   : > { %559 = vst.msk [vmem:[%s890_s25 + $0x90] sm:$0xff] %vm540_vm2, %v472_v49  ;;  %v741_v51 = vpop.f32.mrb[4].mxu1  ;;  %v407_v52 = vadd.f32 %v717_v50, %v883_v33  ;;  %v401_v54 = vpop.f32.mrb[5].mxu0 }
  0xef   : > { %v487_v53 = vadd.f32 %v741_v51, %v883_v33  ;;  %v481_v55 = vpop.f32.mrb[5].mxu1  ;;  %v402_v56 = vadd.f32 %v883_v33, %v401_v54 }
  0xf0   : > { %v482_v57 = vadd.f32 %v883_v33, %v481_v55  ;;  %546 = vst.msk [vmem:[%s890_s25 + $0x28] sm:$0xff] %vm540_vm2, %v407_v52 }
  0xf1   : > { %562 = vst.msk [vmem:[%s890_s25 + $0xa8] sm:$0xff] %vm540_vm2, %v487_v53  ;;  %545 = vst.msk [vmem:[%s890_s25 + $0x20] sm:$0xff] %vm540_vm2, %v402_v56  ;;  %v720_v58 = vpop.f32.mrb[6].mxu0 }
  0xf2   : > { %561 = vst.msk [vmem:[%s890_s25 + $0xa0] sm:$0xff] %vm540_vm2, %v482_v57  ;;  %v744_v59 = vpop.f32.mrb[6].mxu1  ;;  %v417_v60 = vadd.f32 %v720_v58, %v883_v33  ;;  %v411_v62 = vpop.f32.mrb[7].mxu0 }
  0xf3   : > { %v497_v61 = vadd.f32 %v744_v59, %v883_v33  ;;  %v491_v63 = vpop.f32.mrb[7].mxu1  ;;  %v412_v0 = vadd.f32 %v883_v33, %v411_v62 }
  0xf4   : > { %v492_v1 = vadd.f32 %v883_v33, %v491_v63  ;;  %548 = vst.msk [vmem:[%s890_s25 + $0x38] sm:$0xff] %vm540_vm2, %v417_v60 }
  0xf5   : > { %564 = vst.msk [vmem:[%s890_s25 + $0xb8] sm:$0xff] %vm540_vm2, %v497_v61  ;;  %547 = vst.msk [vmem:[%s890_s25 + $0x30] sm:$0xff] %vm540_vm2, %v412_v0  ;;  %v723_v2 = vpop.f32.mrb[8].mxu0 }
  0xf6   : > { %563 = vst.msk [vmem:[%s890_s25 + $0xb0] sm:$0xff] %vm540_vm2, %v492_v1  ;;  %v747_v3 = vpop.f32.mrb[8].mxu1  ;;  %v427_v4 = vadd.f32 %v723_v2, %v883_v33  ;;  %v421_v6 = vpop.f32.mrb[9].mxu0 }
  0xf7   : > { %v507_v5 = vadd.f32 %v747_v3, %v883_v33  ;;  %v501_v7 = vpop.f32.mrb[9].mxu1  ;;  %v422_v8 = vadd.f32 %v883_v33, %v421_v6 }
  0xf8   : > { %v502_v9 = vadd.f32 %v883_v33, %v501_v7  ;;  %550 = vst.msk [vmem:[%s890_s25 + $0x48] sm:$0xff] %vm540_vm2, %v427_v4 }
  0xf9   : > { %566 = vst.msk [vmem:[%s890_s25 + $0xc8] sm:$0xff] %vm540_vm2, %v507_v5  ;;  %549 = vst.msk [vmem:[%s890_s25 + $0x40] sm:$0xff] %vm540_vm2, %v422_v8  ;;  %v726_v10 = vpop.f32.mrb[10].mxu0 }
  0xfa   : > { %565 = vst.msk [vmem:[%s890_s25 + $0xc0] sm:$0xff] %vm540_vm2, %v502_v9  ;;  %v750_v11 = vpop.f32.mrb[10].mxu1  ;;  %v437_v12 = vadd.f32 %v726_v10, %v883_v33  ;;  %v431_v14 = vpop.f32.mrb[11].mxu0 }
  0xfb   : > { %v517_v13 = vadd.f32 %v750_v11, %v883_v33  ;;  %v511_v15 = vpop.f32.mrb[11].mxu1  ;;  %v432_v16 = vadd.f32 %v883_v33, %v431_v14 }
  0xfc   : > { %v512_v17 = vadd.f32 %v883_v33, %v511_v15  ;;  %552 = vst.msk [vmem:[%s890_s25 + $0x58] sm:$0xff] %vm540_vm2, %v437_v12 }
  0xfd   : > { %568 = vst.msk [vmem:[%s890_s25 + $0xd8] sm:$0xff] %vm540_vm2, %v517_v13  ;;  %551 = vst.msk [vmem:[%s890_s25 + $0x50] sm:$0xff] %vm540_vm2, %v432_v16  ;;  %v729_v18 = vpop.f32.mrb[12].mxu0 }
  0xfe   : > { %567 = vst.msk [vmem:[%s890_s25 + $0xd0] sm:$0xff] %vm540_vm2, %v512_v17  ;;  %v753_v19 = vpop.f32.mrb[12].mxu1  ;;  %v447_v20 = vadd.f32 %v729_v18, %v883_v33  ;;  %v441_v22 = vpop.f32.mrb[13].mxu0 }
  0xff   : > { %v527_v21 = vadd.f32 %v753_v19, %v883_v33  ;;  %v521_v23 = vpop.f32.mrb[13].mxu1  ;;  %v442_v24 = vadd.f32 %v883_v33, %v441_v22 }
 0x100   : > { %v522_v25 = vadd.f32 %v883_v33, %v521_v23  ;;  %554 = vst.msk [vmem:[%s890_s25 + $0x68] sm:$0xff] %vm540_vm2, %v447_v20 }
 0x101   : > { %570 = vst.msk [vmem:[%s890_s25 + $0xe8] sm:$0xff] %vm540_vm2, %v527_v21  ;;  %553 = vst.msk [vmem:[%s890_s25 + $0x60] sm:$0xff] %vm540_vm2, %v442_v24  ;;  %v732_v26 = vpop.f32.mrb[14].mxu0 }
 0x102   : > { %569 = vst.msk [vmem:[%s890_s25 + $0xe0] sm:$0xff] %vm540_vm2, %v522_v25  ;;  %v756_v27 = vpop.f32.mrb[14].mxu1  ;;  %v457_v28 = vadd.f32 %v732_v26, %v883_v33  ;;  %v451_v30 = vpop.f32.mrb[15].mxu0 }
 0x103   : > { %v537_v29 = vadd.f32 %v756_v27, %v883_v33  ;;  %v531_v31 = vpop.f32.mrb[15].mxu1  ;;  %v452_v32 = vadd.f32 %v883_v33, %v451_v30 }
 0x104   : > { %v532_v34 = vadd.f32 %v883_v33, %v531_v31  ;;  %556 = vst.msk [vmem:[%s890_s25 + $0x78] sm:$0xff] %vm540_vm2, %v457_v28 }
 0x105   : > { %572 = vst.msk [vmem:[%s890_s25 + $0xf8] sm:$0xff] %vm540_vm2, %v537_v29  ;;  %555 = vst.msk [vmem:[%s890_s25 + $0x70] sm:$0xff] %vm540_vm2, %v452_v32 }
 0x106   : > { %571 = vst.msk [vmem:[%s890_s25 + $0xf0] sm:$0xff] %vm540_vm2, %v532_v34 }
 0x107 PF: > { %s13_s12 = sadd.s32 1, %s773_s12  }
 0x108   : > { %p10_p4 = scmp.ge.s32.totalorder %s13_s12, 4  }
 0x10a   :  { %12 = sbr.rel (!%p10_p4) target bundleno = 1 (0x1), region = 62 }

// kernel: fno_forward.11
= control target key start
LH: loop header
LB: loop body
LE: loop exit
PB: predicated region body
PF: predicated region fallthrough
CT: control target
= control target key end

     0   :  { %s1926_s9 = smov 0   ;;  %s2152_s0 = inlined_call_operand.vmem [shape: f32[32,2,32], index: 0, kind: input, shape index: {}]   ;;  %s2153_s1 = inlined_call_operand.vmem [shape: f32[32,32,32], index: 1, kind: input, shape index: {}]   ;;  %s2154_s2 = inlined_call_operand.vmem [shape: f32[32,2,32], index: 2, kind: output, shape index: {}]  }
   0x1 LB: > { %s1506_s10 = sadd.s32 4294967295, %s1906_s9   ;;  %p1510_p0 = scmp.ge.s32.totalorder %s1906_s9, 1  ;;  %s1906_s9 = sphi %s1926_s9, %s12_s9  }
   0x2   : > { %p125_p1 = scmp.lt.s32.totalorder %s1906_s9, 3 }
   0x4   : > { %p126_p2 = pnand %p1510_p0, %p125_p1 }
   0x5   : > { %s1511_s11 = sshll.u32 (!%p126_p2), %s1506_s10, 4  ;;  %v1908_v0 = vmov (!%p126_p2), 0.0|0.0   ;;  %vm1909_vm0 = vmmov (!%p126_p2), 0   ;;  %v1910_v1 = vmov (!%p126_p2), 0.0   ;;  %vm252_vm1 = vcmask (!%p126_p2), 261120  }
   0x6   : > { %129 = sbr.rel (%p126_p2) target bundleno = 296 (0x128), region = 28  ;;  %1793 = vmatprep.subr.bf16.mxu0 (!%p126_p2), %v1908_v0  ;;  %1799 = vmatprep.subr.bf16.mxu1 (!%p126_p2), %v1908_v0  ;;  %p154_p3 = scmp.lt.s32.totalorder (!%p126_p2), %s1511_s11, 31  ;;  %vm1421_vm2 = vcmask (!%p126_p2), 254976  }
   0x7   : > { %1625 = vmatprep.mubr.msk.f32.mxu0 (!%p126_p2), %vm1909_vm0, %v1910_v1  ;;  %1636 = vmatprep.mubr.msk.f32.mxu1 (!%p126_p2), %vm1909_vm0, %v1910_v1 }
   0xd   : > { %s2156_s11 = smov (!%p154_p3, %s1511_s11), 31 }
   0xe   : > { %s1536_s12 = sshll.u32 %s2156_s11, 5  ;;  %s1512_s16 = sshll.u32 %s2156_s11, 1 }
   0xf   : > { %s1946_s15 = scalar_lea.vmem %s2153_s1, %s1536_s12  ;;  %s1963_s19 = scalar_lea.vmem %s2152_s0, %s1512_s16 }
  0x10   : > { %v188_v2 = vld [vmem:[%s1946_s15] sm:$0xff]  ;;  %v189_v3 = vld [vmem:[%s1946_s15 + $0x8] sm:$0xff]  ;;  %v190_v7 = vld [vmem:[%s1946_s15 + $0x10] sm:$0xff]  ;;  %s2115_s22 = scalar_lea.vmem %s2154_s2, %s1512_s16 }
  0x11   : > { %v192_v4 = vld [vmem:[%s1946_s15 + $0x20] sm:$0xff]  ;;  %v1794_v5 = vpack.c.bf16 %v189_v3, %v188_v2  ;;  %v193_v6 = vld [vmem:[%s1946_s15 + $0x28] sm:$0xff]  ;;  %v191_v8 = vld [vmem:[%s1946_s15 + $0x18] sm:$0xff] }
  0x12   : > { %v1800_v9 = vpack.c.bf16 %v193_v6, %v192_v4  ;;  %v194_v10 = vld [vmem:[%s1946_s15 + $0x30] sm:$0xff]  ;;  %v195_v11 = vld [vmem:[%s1946_s15 + $0x38] sm:$0xff]  ;;  %v1797_v12 = vpack.c.bf16 %v191_v8, %v190_v7  ;;  %v196_v14 = vld [vmem:[%s1946_s15 + $0x40] sm:$0xff] }
  0x13   : > { %1795 = vmatpush3.bf16.msra.mxu0 %v1794_v5  ;;  %v1803_v13 = vpack.c.bf16 %v195_v11, %v194_v10  ;;  %v197_v15 = vld [vmem:[%s1946_s15 + $0x48] sm:$0xff]  ;;  %v200_v16 = vld [vmem:[%s1946_s15 + $0x60] sm:$0xff]  ;;  %v198_v22 = vld [vmem:[%s1946_s15 + $0x50] sm:$0xff] }
  0x14   : > { %1801 = vmatpush3.bf16.msra.mxu1 %v1800_v9  ;;  %1796 = vmatprep.subr.bf16.mxu0 %v1908_v0  ;;  %v201_v17 = vld [vmem:[%s1946_s15 + $0x68] sm:$0xff]  ;;  %v172_v18 = vld [vmem:[%s1963_s19] sm:$0x3]  ;;  %v1806_v19 = vpack.c.bf16 %v197_v15, %v196_v14  ;;  %v173_v20 = vld [vmem:[%s1963_s19 + $0x2] sm:$0x3] }
  0x15   : > { %1802 = vmatprep.subr.bf16.mxu1 %v1908_v0  ;;  %v1812_v21 = vpack.c.bf16 %v201_v17, %v200_v16  ;;  %v199_v23 = vld [vmem:[%s1946_s15 + $0x58] sm:$0xff]  ;;  %v202_v24 = vld [vmem:[%s1946_s15 + $0x70] sm:$0xff]  ;;  %v204_v28 = vld [vmem:[%s1946_s15 + $0x80] sm:$0xff] }
  0x16   : > { %v203_v25 = vld [vmem:[%s1946_s15 + $0x78] sm:$0xff]  ;;  %v1809_v26 = vpack.c.bf16 %v199_v23, %v198_v22  ;;  %v205_v29 = vld [vmem:[%s1946_s15 + $0x88] sm:$0xff]  ;;  %v208_v30 = vld [vmem:[%s1946_s15 + $0xa0] sm:$0xff] }
  0x17   : > { %1798 = vmatpush3.bf16.msra.mxu0 %v1797_v12  ;;  %v1815_v27 = vpack.c.bf16 %v203_v25, %v202_v24  ;;  %v209_v31 = vld [vmem:[%s1946_s15 + $0xa8] sm:$0xff]  ;;  %v174_v32 = vld [vmem:[%s1963_s19 + $0x4] sm:$0x3]  ;;  %v1818_v33 = vpack.c.bf16 %v205_v29, %v204_v28  ;;  %v175_v34 = vld [vmem:[%s1963_s19 + $0x6] sm:$0x3] }
  0x18   : > { %1804 = vmatpush3.bf16.msra.mxu1 %v1803_v13  ;;  %1805 = vmatprep.subr.bf16.mxu0 %v1908_v0  ;;  %v1824_v35 = vpack.c.bf16 %v209_v31, %v208_v30  ;;  %v206_v36 = vld [vmem:[%s1946_s15 + $0x90] sm:$0xff]  ;;  %v207_v37 = vld [vmem:[%s1946_s15 + $0x98] sm:$0xff]  ;;  %v212_v42 = vld [vmem:[%s1946_s15 + $0xc0] sm:$0xff] }
  0x19   : > { %1811 = vmatprep.subr.bf16.mxu1 %v1908_v0  ;;  %v210_v38 = vld [vmem:[%s1946_s15 + $0xb0] sm:$0xff]  ;;  %v211_v39 = vld [vmem:[%s1946_s15 + $0xb8] sm:$0xff]  ;;  %v1821_v40 = vpack.c.bf16 %v207_v37, %v206_v36  ;;  %v213_v43 = vld [vmem:[%s1946_s15 + $0xc8] sm:$0xff] }
  0x1a   : > { %1626 = vmatmul.mubr.msk.f32.vlgmr.msra.gmra.mrb[0].mxu0 %vm252_vm1, %v172_v18  ;;  %v1827_v41 = vpack.c.bf16 %v211_v39, %v210_v38  ;;  %v216_v44 = vld [vmem:[%s1946_s15 + $0xe0] sm:$0xff]  ;;  %v217_v45 = vld [vmem:[%s1946_s15 + $0xe8] sm:$0xff]  ;;  %v1830_v47 = vpack.c.bf16 %v213_v43, %v212_v42  ;;  %v214_v50 = vld [vmem:[%s1946_s15 + $0xd0] sm:$0xff] }
  0x1b   : > { %1637 = vmatmul.mubr.msk.f32.vlgmr.msra.gmra.mrb[0].mxu1 %vm252_vm1, %v173_v20  ;;  %1807 = vmatpush3.bf16.msra.mxu0 %v1806_v19  ;;  %v176_v46 = vld [vmem:[%s1963_s19 + $0x8] sm:$0x3]  ;;  %v177_v48 = vld [vmem:[%s1963_s19 + $0xa] sm:$0x3]  ;;  %v1836_v49 = vpack.c.bf16 %v217_v45, %v216_v44  ;;  %v215_v51 = vld [vmem:[%s1946_s15 + $0xd8] sm:$0xff] }
  0x1c   : > { %1813 = vmatpush3.bf16.msra.mxu1 %v1812_v21  ;;  %1808 = vmatprep.subr.bf16.mxu0 %v1908_v0  ;;  %v218_v52 = vld [vmem:[%s1946_s15 + $0xf0] sm:$0xff]  ;;  %v219_v53 = vld [vmem:[%s1946_s15 + $0xf8] sm:$0xff]  ;;  %v1833_v54 = vpack.c.bf16 %v215_v51, %v214_v50  ;;  %v220_v56 = vld [vmem:[%s1946_s15 + $0x100] sm:$0xff] }
  0x1d   : > { %1814 = vmatprep.subr.bf16.mxu1 %v1908_v0  ;;  %1647 = vmatprep.mubr.msk.f32.mxu0 %vm1909_vm0, %v1910_v1  ;;  %v1839_v55 = vpack.c.bf16 %v219_v53, %v218_v52  ;;  %v221_v57 = vld [vmem:[%s1946_s15 + $0x108] sm:$0xff]  ;;  %v224_v58 = vld [vmem:[%s1946_s15 + $0x120] sm:$0xff]  ;;  %v222_v2 = vld [vmem:[%s1946_s15 + $0x110] sm:$0xff] }
  0x1e   : > { %1658 = vmatprep.mubr.msk.f32.mxu1 %vm1909_vm0, %v1910_v1  ;;  %v225_v59 = vld [vmem:[%s1946_s15 + $0x128] sm:$0xff]  ;;  %v1842_v61 = vpack.c.bf16 %v221_v57, %v220_v56  ;;  %v223_v3 = vld [vmem:[%s1946_s15 + $0x118] sm:$0xff]  ;;  %v226_v4 = vld [vmem:[%s1946_s15 + $0x130] sm:$0xff] }
  0x1f   : > { %1810 = vmatpush3.bf16.msra.mxu0 %v1809_v26  ;;  %v178_v60 = vld [vmem:[%s1963_s19 + $0xc] sm:$0x3]  ;;  %v179_v62 = vld [vmem:[%s1963_s19 + $0xe] sm:$0x3]  ;;  %v1848_v63 = vpack.c.bf16 %v225_v59, %v224_v58  ;;  %v227_v5 = vld [vmem:[%s1946_s15 + $0x138] sm:$0xff]  ;;  %v1845_v6 = vpack.c.bf16 %v223_v3, %v222_v2 }
  0x20   : > { %1816 = vmatpush3.bf16.msra.mxu1 %v1815_v27  ;;  %1817 = vmatprep.subr.bf16.mxu0 %v1908_v0  ;;  %v1851_v7 = vpack.c.bf16 %v227_v5, %v226_v4  ;;  %v228_v8 = vld [vmem:[%s1946_s15 + $0x140] sm:$0xff]  ;;  %v229_v9 = vld [vmem:[%s1946_s15 + $0x148] sm:$0xff]  ;;  %v180_v12 = vld [vmem:[%s1963_s19 + $0x10] sm:$0x3] }
  0x21   : > { %1823 = vmatprep.subr.bf16.mxu1 %v1908_v0  ;;  %v232_v10 = vld [vmem:[%s1946_s15 + $0x160] sm:$0xff]  ;;  %v233_v11 = vld [vmem:[%s1946_s15 + $0x168] sm:$0xff]  ;;  %v1854_v13 = vpack.c.bf16 %v229_v9, %v228_v8  ;;  %v181_v14 = vld [vmem:[%s1963_s19 + $0x12] sm:$0x3] }
  0x22   : > { %1648 = vmatmul.mubr.msk.f32.vlgmr.msra.gmra.mrb[2].mxu0 %vm252_vm1, %v174_v32  ;;  %v1860_v15 = vpack.c.bf16 %v233_v11, %v232_v10  ;;  %v230_v16 = vld [vmem:[%s1946_s15 + $0x150] sm:$0xff]  ;;  %v231_v17 = vld [vmem:[%s1946_s15 + $0x158] sm:$0xff]  ;;  %v236_v22 = vld [vmem:[%s1946_s15 + $0x180] sm:$0xff] }
  0x23   : > { %1659 = vmatmul.mubr.msk.f32.vlgmr.msra.gmra.mrb[2].mxu1 %vm252_vm1, %v175_v34  ;;  %1819 = vmatpush3.bf16.msra.mxu0 %v1818_v33  ;;  %v234_v18 = vld [vmem:[%s1946_s15 + $0x170] sm:$0xff]  ;;  %v235_v19 = vld [vmem:[%s1946_s15 + $0x178] sm:$0xff]  ;;  %v1857_v20 = vpack.c.bf16 %v231_v17, %v230_v16  ;;  %v237_v23 = vld [vmem:[%s1946_s15 + $0x188] sm:$0xff] }
  0x24   : > { %1825 = vmatpush3.bf16.msra.mxu1 %v1824_v35  ;;  %1820 = vmatprep.subr.bf16.mxu0 %v1908_v0  ;;  %v1863_v21 = vpack.c.bf16 %v235_v19, %v234_v18  ;;  %v240_v24 = vld [vmem:[%s1946_s15 + $0x1a0] sm:$0xff]  ;;  %v241_v25 = vld [vmem:[%s1946_s15 + $0x1a8] sm:$0xff]  ;;  %v182_v26 = vld [vmem:[%s1963_s19 + $0x14] sm:$0x3]  ;;  %v1866_v27 = vpack.c.bf16 %v237_v23, %v236_v22 }
  0x25   : > { %1826 = vmatprep.subr.bf16.mxu1 %v1908_v0  ;;  %1669 = vmatprep.mubr.msk.f32.mxu0 %vm1909_vm0, %v1910_v1  ;;  %v183_v28 = vld [vmem:[%s1963_s19 + $0x16] sm:$0x3]  ;;  %v1872_v29 = vpack.c.bf16 %v241_v25, %v240_v24  ;;  %v239_v31 = vld [vmem:[%s1946_s15 + $0x198] sm:$0xff]  ;;  %v244_v36 = vld [vmem:[%s1946_s15 + $0x1c0] sm:$0xff] }
  0x26   : > { %1680 = vmatprep.mubr.msk.f32.mxu1 %vm1909_vm0, %v1910_v1  ;;  %v238_v30 = vld [vmem:[%s1946_s15 + $0x190] sm:$0xff]  ;;  %v243_v33 = vld [vmem:[%s1946_s15 + $0x1b8] sm:$0xff]  ;;  %v245_v37 = vld [vmem:[%s1946_s15 + $0x1c8] sm:$0xff] }
  0x27   : > { %1822 = vmatpush3.bf16.msra.mxu0 %v1821_v40  ;;  %v242_v32 = vld [vmem:[%s1946_s15 + $0x1b0] sm:$0xff]  ;;  %v1869_v34 = vpack.c.bf16 %v239_v31, %v238_v30  ;;  %v248_v38 = vld [vmem:[%s1946_s15 + $0x1e0] sm:$0xff]  ;;  %v249_v39 = vld [vmem:[%s1946_s15 + $0x1e8] sm:$0xff] }
  0x28   : > { %1828 = vmatpush3.bf16.msra.mxu1 %v1827_v41  ;;  %1829 = vmatprep.subr.bf16.mxu0 %v1908_v0  ;;  %v1875_v35 = vpack.c.bf16 %v243_v33, %v242_v32  ;;  %v184_v40 = vld [vmem:[%s1963_s19 + $0x18] sm:$0x3]  ;;  %v1878_v41 = vpack.c.bf16 %v245_v37, %v244_v36  ;;  %v185_v42 = vld [vmem:[%s1963_s19 + $0x1a] sm:$0x3]  ;;  %v1884_v43 = vpack.c.bf16 %v249_v39, %v248_v38  ;;  %v246_v44 = vld [vmem:[%s1946_s15 + $0x1d0] sm:$0xff] }
  0x29   : > { %1835 = vmatprep.subr.bf16.mxu1 %v1908_v0  ;;  %v247_v45 = vld [vmem:[%s1946_s15 + $0x1d8] sm:$0xff] }
  0x2a   : > { %1670 = vmatmul.mubr.msk.f32.vlgmr.msra.gmra.mrb[4].mxu0 %vm252_vm1, %v176_v46  ;;  %v250_v46 = vld [vmem:[%s1946_s15 + $0x1f0] sm:$0xff]  ;;  %v186_v50 = vld [vmem:[%s1963_s19 + $0x1c] sm:$0x3]  ;;  %v187_v51 = vld [vmem:[%s1963_s19 + $0x1e] sm:$0x3] }
  0x2b   : > { %1681 = vmatmul.mubr.msk.f32.vlgmr.msra.gmra.mrb[4].mxu1 %vm252_vm1, %v177_v48  ;;  %1831 = vmatpush3.bf16.msra.mxu0 %v1830_v47  ;;  %v251_v47 = vld [vmem:[%s1946_s15 + $0x1f8] sm:$0xff]  ;;  %v1881_v48 = vpack.c.bf16 %v247_v45, %v246_v44 }
  0x2c   : > { %1837 = vmatpush3.bf16.msra.mxu1 %v1836_v49  ;;  %1832 = vmatprep.subr.bf16.mxu0 %v1908_v0  ;;  %v1887_v49 = vpack.c.bf16 %v251_v47, %v250_v46 }
  0x2d   : > { %1838 = vmatprep.subr.bf16.mxu1 %v1908_v0  ;;  %1691 = vmatprep.mubr.msk.f32.mxu0 %vm1909_vm0, %v1910_v1 }
  0x2e   : > { %1702 = vmatprep.mubr.msk.f32.mxu1 %vm1909_vm0, %v1910_v1 }
  0x2f   : > { %1834 = vmatpush3.bf16.msra.mxu0 %v1833_v54 }
  0x30   : > { %1840 = vmatpush3.bf16.msra.mxu1 %v1839_v55  ;;  %1841 = vmatprep.subr.bf16.mxu0 %v1908_v0 }
  0x31   : > { %1847 = vmatprep.subr.bf16.mxu1 %v1908_v0 }
  0x32   : > { %1692 = vmatmul.mubr.msk.f32.vlgmr.msra.gmra.mrb[6].mxu0 %vm252_vm1, %v178_v60 }
  0x33   : > { %1703 = vmatmul.mubr.msk.f32.vlgmr.msra.gmra.mrb[6].mxu1 %vm252_vm1, %v179_v62  ;;  %1843 = vmatpush3.bf16.msra.mxu0 %v1842_v61 }
  0x34   : > { %1849 = vmatpush3.bf16.msra.mxu1 %v1848_v63  ;;  %1844 = vmatprep.subr.bf16.mxu0 %v1908_v0 }
  0x35   : > { %1850 = vmatprep.subr.bf16.mxu1 %v1908_v0  ;;  %1713 = vmatprep.mubr.msk.f32.mxu0 %vm1909_vm0, %v1910_v1 }
  0x36   : > { %1724 = vmatprep.mubr.msk.f32.mxu1 %vm1909_vm0, %v1910_v1 }
  0x37   : > { %1846 = vmatpush3.bf16.msra.mxu0 %v1845_v6 }
  0x38   : > { %1852 = vmatpush3.bf16.msra.mxu1 %v1851_v7  ;;  %1853 = vmatprep.subr.bf16.mxu0 %v1908_v0 }
  0x39   : > { %1859 = vmatprep.subr.bf16.mxu1 %v1908_v0 }
  0x3a   : > { %1714 = vmatmul.mubr.msk.f32.vlgmr.msra.gmra.mrb[8].mxu0 %vm252_vm1, %v180_v12 }
  0x3b   : > { %1725 = vmatmul.mubr.msk.f32.vlgmr.msra.gmra.mrb[8].mxu1 %vm252_vm1, %v181_v14  ;;  %1855 = vmatpush3.bf16.msra.mxu0 %v1854_v13 }
  0x3c   : > { %1861 = vmatpush3.bf16.msra.mxu1 %v1860_v15  ;;  %1856 = vmatprep.subr.bf16.mxu0 %v1908_v0 }
  0x3d   : > { %1862 = vmatprep.subr.bf16.mxu1 %v1908_v0  ;;  %1735 = vmatprep.mubr.msk.f32.mxu0 %vm1909_vm0, %v1910_v1 }
  0x3e   : > { %1746 = vmatprep.mubr.msk.f32.mxu1 %vm1909_vm0, %v1910_v1 }
  0x3f   : > { %1858 = vmatpush3.bf16.msra.mxu0 %v1857_v20 }
  0x40   : > { %1864 = vmatpush3.bf16.msra.mxu1 %v1863_v21  ;;  %1865 = vmatprep.subr.bf16.mxu0 %v1908_v0 }
  0x41   : > { %1871 = vmatprep.subr.bf16.mxu1 %v1908_v0 }
  0x42   : > { %1736 = vmatmul.mubr.msk.f32.vlgmr.msra.gmra.mrb[10].mxu0 %vm252_vm1, %v182_v26 }
  0x43   : > { %1747 = vmatmul.mubr.msk.f32.vlgmr.msra.gmra.mrb[10].mxu1 %vm252_vm1, %v183_v28  ;;  %1867 = vmatpush3.bf16.msra.mxu0 %v1866_v27 }
  0x44   : > { %1873 = vmatpush3.bf16.msra.mxu1 %v1872_v29  ;;  %1868 = vmatprep.subr.bf16.mxu0 %v1908_v0 }
  0x45   : > { %1874 = vmatprep.subr.bf16.mxu1 %v1908_v0  ;;  %1757 = vmatprep.mubr.msk.f32.mxu0 %vm1909_vm0, %v1910_v1 }
  0x46   : > { %1768 = vmatprep.mubr.msk.f32.mxu1 %vm1909_vm0, %v1910_v1 }
  0x47   : > { %1870 = vmatpush3.bf16.msra.mxu0 %v1869_v34 }
  0x48   : > { %1876 = vmatpush3.bf16.msra.mxu1 %v1875_v35  ;;  %1877 = vmatprep.subr.bf16.mxu0 %v1908_v0 }
  0x49   : > { %1883 = vmatprep.subr.bf16.mxu1 %v1908_v0 }
  0x4a   : > { %1758 = vmatmul.mubr.msk.f32.vlgmr.msra.gmra.mrb[12].mxu0 %vm252_vm1, %v184_v40 }
  0x4b   : > { %1769 = vmatmul.mubr.msk.f32.vlgmr.msra.gmra.mrb[12].mxu1 %vm252_vm1, %v185_v42  ;;  %1879 = vmatpush3.bf16.msra.mxu0 %v1878_v41 }
  0x4c   : > { %1885 = vmatpush3.bf16.msra.mxu1 %v1884_v43  ;;  %1880 = vmatprep.subr.bf16.mxu0 %v1908_v0 }
  0x4d   : > { %1886 = vmatprep.subr.bf16.mxu1 %v1908_v0  ;;  %1779 = vmatprep.mubr.msk.f32.mxu0 %vm1909_vm0, %v1910_v1 }
  0x4e   : > { %1790 = vmatprep.mubr.msk.f32.mxu1 %vm1909_vm0, %v1910_v1 }
  0x4f   : > { %1882 = vmatpush3.bf16.msra.mxu0 %v1881_v48 }
  0x50   : > { %1888 = vmatpush3.bf16.msra.mxu1 %v1887_v49 }
  0x52   : > { %1780 = vmatmul.mubr.msk.f32.vlgmr.msra.gmra.mrb[14].mxu0 %vm252_vm1, %v186_v50 }
  0x53   : > { %1791 = vmatmul.mubr.msk.f32.vlgmr.msra.gmra.mrb[14].mxu1 %vm252_vm1, %v187_v51 }
  0xed   : > { %v322_v0 = vpop.f32.mrb[0].mxu0 }
  0xee   : > { %1422 = vst.msk [vmem:[%s2115_s22] sm:$0x3] %vm1421_vm2, %v322_v0  ;;  %v395_v1 = vpop.f32.mrb[0].mxu1  ;;  %v1627_v52 = vpop.f32.mrb[1].mxu0 }
  0xef   : > { %1423 = vst.msk [vmem:[%s2115_s22 + $0x2] sm:$0x3] %vm1421_vm2, %v395_v1  ;;  %v1638_v53 = vpop.f32.mrb[1].mxu1 }
  0xf5   : > { %v468_v54 = vpop.f32.mrb[2].mxu0 }
  0xf6   : > { %1424 = vst.msk [vmem:[%s2115_s22 + $0x4] sm:$0x3] %vm1421_vm2, %v468_v54  ;;  %v541_v55 = vpop.f32.mrb[2].mxu1  ;;  %v1649_v56 = vpop.f32.mrb[3].mxu0 }
  0xf7   : > { %1425 = vst.msk [vmem:[%s2115_s22 + $0x6] sm:$0x3] %vm1421_vm2, %v541_v55  ;;  %v1660_v57 = vpop.f32.mrb[3].mxu1 }
  0xfd   : > { %v614_v58 = vpop.f32.mrb[4].mxu0 }
  0xfe   : > { %1426 = vst.msk [vmem:[%s2115_s22 + $0x8] sm:$0x3] %vm1421_vm2, %v614_v58  ;;  %v687_v59 = vpop.f32.mrb[4].mxu1  ;;  %v1671_v60 = vpop.f32.mrb[5].mxu0 }
  0xff   : > { %1427 = vst.msk [vmem:[%s2115_s22 + $0xa] sm:$0x3] %vm1421_vm2, %v687_v59  ;;  %v1682_v61 = vpop.f32.mrb[5].mxu1 }
 0x105   : > { %v760_v62 = vpop.f32.mrb[6].mxu0 }
 0x106   : > { %1428 = vst.msk [vmem:[%s2115_s22 + $0xc] sm:$0x3] %vm1421_vm2, %v760_v62  ;;  %v833_v63 = vpop.f32.mrb[6].mxu1  ;;  %v1693_v2 = vpop.f32.mrb[7].mxu0 }
 0x107   : > { %1429 = vst.msk [vmem:[%s2115_s22 + $0xe] sm:$0x3] %vm1421_vm2, %v833_v63  ;;  %v1704_v3 = vpop.f32.mrb[7].mxu1 }
 0x10d   : > { %v906_v4 = vpop.f32.mrb[8].mxu0 }
 0x10e   : > { %1430 = vst.msk [vmem:[%s2115_s22 + $0x10] sm:$0x3] %vm1421_vm2, %v906_v4  ;;  %v979_v5 = vpop.f32.mrb[8].mxu1  ;;  %v1715_v6 = vpop.f32.mrb[9].mxu0 }
 0x10f   : > { %1431 = vst.msk [vmem:[%s2115_s22 + $0x12] sm:$0x3] %vm1421_vm2, %v979_v5  ;;  %v1726_v7 = vpop.f32.mrb[9].mxu1 }
 0x115   : > { %v1052_v8 = vpop.f32.mrb[10].mxu0 }
 0x116   : > { %1432 = vst.msk [vmem:[%s2115_s22 + $0x14] sm:$0x3] %vm1421_vm2, %v1052_v8  ;;  %v1125_v9 = vpop.f32.mrb[10].mxu1  ;;  %v1737_v10 = vpop.f32.mrb[11].mxu0 }
 0x117   : > { %1433 = vst.msk [vmem:[%s2115_s22 + $0x16] sm:$0x3] %vm1421_vm2, %v1125_v9  ;;  %v1748_v11 = vpop.f32.mrb[11].mxu1 }
 0x11d   : > { %v1198_v12 = vpop.f32.mrb[12].mxu0 }
 0x11e   : > { %1434 = vst.msk [vmem:[%s2115_s22 + $0x18] sm:$0x3] %vm1421_vm2, %v1198_v12  ;;  %v1271_v13 = vpop.f32.mrb[12].mxu1  ;;  %v1759_v14 = vpop.f32.mrb[13].mxu0 }
 0x11f   : > { %1435 = vst.msk [vmem:[%s2115_s22 + $0x1a] sm:$0x3] %vm1421_vm2, %v1271_v13  ;;  %v1770_v15 = vpop.f32.mrb[13].mxu1 }
 0x125   : > { %v1344_v16 = vpop.f32.mrb[14].mxu0 }
 0x126   : > { %1436 = vst.msk [vmem:[%s2115_s22 + $0x1c] sm:$0x3] %vm1421_vm2, %v1344_v16  ;;  %v1417_v17 = vpop.f32.mrb[14].mxu1  ;;  %v1781_v18 = vpop.f32.mrb[15].mxu0 }
 0x127   : > { %1437 = vst.msk [vmem:[%s2115_s22 + $0x1e] sm:$0x3] %vm1421_vm2, %v1417_v17  ;;  %v1792_v19 = vpop.f32.mrb[15].mxu1 }
 0x128 PF: > { %s12_s9 = sadd.s32 1, %s1906_s9  }
 0x129   : > { %p9_p4 = scmp.ge.s32.totalorder %s12_s9, 4  }
 0x12b   :  { %11 = sbr.rel (!%p9_p4) target bundleno = 1 (0x1), region = 61 }

// kernel: reverse.8
= control target key start
LH: loop header
LB: loop body
LE: loop exit
PB: predicated region body
PF: predicated region fallthrough
CT: control target
= control target key end

     0   :  { %s344_s0 = inlined_call_operand.vmem [shape: f32[2,16,16,7], index: 0, kind: input, shape index: {}]   ;;  %s345_s1 = inlined_call_operand.vmem [shape: f32[2,16,16,7], index: 1, kind: output, shape index: {}]  }
   0x1   :  { %v112_v0 = vld [vmem:[%s344_s0 + $0x60] sm:$0xff]  ;;  %v113_v1 = vld [vmem:[%s344_s0 + $0xd0] sm:$0xff]  ;;  %v138_v14 = vld [vmem:[%s344_s0 + $0x68] sm:$0xff] }
   0x2   :  { %v115_v2 = vld [vmem:[%s344_s0 + $0x50] sm:$0xff]  ;;  %4 = vst [vmem:[%s345_s1] sm:$0xff] %v112_v0  ;;  %114 = vst [vmem:[%s345_s1 + $0x70] sm:$0xff] %v113_v1  ;;  %v117_v3 = vld [vmem:[%s344_s0 + $0xc0] sm:$0xff] }
   0x3   :  { %116 = vst [vmem:[%s345_s1 + $0x10] sm:$0xff] %v115_v2  ;;  %v119_v4 = vld [vmem:[%s344_s0 + $0x40] sm:$0xff]  ;;  %v121_v5 = vld [vmem:[%s344_s0 + $0xb0] sm:$0xff]  ;;  %118 = vst [vmem:[%s345_s1 + $0x80] sm:$0xff] %v117_v3 }
   0x4   :  { %120 = vst [vmem:[%s345_s1 + $0x20] sm:$0xff] %v119_v4  ;;  %122 = vst [vmem:[%s345_s1 + $0x90] sm:$0xff] %v121_v5  ;;  %v123_v6 = vld [vmem:[%s344_s0 + $0x30] sm:$0xff]  ;;  %v125_v7 = vld [vmem:[%s344_s0 + $0xa0] sm:$0xff] }
   0x5   :  { %v127_v8 = vld [vmem:[%s344_s0 + $0x20] sm:$0xff]  ;;  %124 = vst [vmem:[%s345_s1 + $0x30] sm:$0xff] %v123_v6  ;;  %126 = vst [vmem:[%s345_s1 + $0xa0] sm:$0xff] %v125_v7  ;;  %v129_v9 = vld [vmem:[%s344_s0 + $0x90] sm:$0xff] }
   0x6   :  { %128 = vst [vmem:[%s345_s1 + $0x40] sm:$0xff] %v127_v8  ;;  %v131_v10 = vld [vmem:[%s344_s0 + $0x10] sm:$0xff]  ;;  %v133_v11 = vld [vmem:[%s344_s0 + $0x80] sm:$0xff]  ;;  %130 = vst [vmem:[%s345_s1 + $0xb0] sm:$0xff] %v129_v9 }
   0x7   :  { %132 = vst [vmem:[%s345_s1 + $0x50] sm:$0xff] %v131_v10  ;;  %134 = vst [vmem:[%s345_s1 + $0xc0] sm:$0xff] %v133_v11  ;;  %v49_v12 = vld [vmem:[%s344_s0] sm:$0xff]  ;;  %v136_v13 = vld [vmem:[%s344_s0 + $0x70] sm:$0xff] }
   0x8   :  { %135 = vst [vmem:[%s345_s1 + $0x60] sm:$0xff] %v49_v12  ;;  %137 = vst [vmem:[%s345_s1 + $0xd0] sm:$0xff] %v136_v13  ;;  %v140_v15 = vld [vmem:[%s344_s0 + $0xd8] sm:$0xff]  ;;  %v144_v17 = vld [vmem:[%s344_s0 + $0xc8] sm:$0xff] }
   0x9   :  { %139 = vst [vmem:[%s345_s1 + $0x8] sm:$0xff] %v138_v14  ;;  %v142_v16 = vld [vmem:[%s344_s0 + $0x58] sm:$0xff]  ;;  %141 = vst [vmem:[%s345_s1 + $0x78] sm:$0xff] %v140_v15  ;;  %v146_v18 = vld [vmem:[%s344_s0 + $0x48] sm:$0xff] }
   0xa   :  { %143 = vst [vmem:[%s345_s1 + $0x18] sm:$0xff] %v142_v16  ;;  %145 = vst [vmem:[%s345_s1 + $0x88] sm:$0xff] %v144_v17  ;;  %v148_v19 = vld [vmem:[%s344_s0 + $0xb8] sm:$0xff]  ;;  %v152_v21 = vld [vmem:[%s344_s0 + $0xa8] sm:$0xff] }
   0xb   :  { %v150_v20 = vld [vmem:[%s344_s0 + $0x38] sm:$0xff]  ;;  %147 = vst [vmem:[%s345_s1 + $0x28] sm:$0xff] %v146_v18  ;;  %149 = vst [vmem:[%s345_s1 + $0x98] sm:$0xff] %v148_v19  ;;  %v154_v22 = vld [vmem:[%s344_s0 + $0x28] sm:$0xff] }
   0xc   :  { %151 = vst [vmem:[%s345_s1 + $0x38] sm:$0xff] %v150_v20  ;;  %v156_v23 = vld [vmem:[%s344_s0 + $0x98] sm:$0xff]  ;;  %153 = vst [vmem:[%s345_s1 + $0xa8] sm:$0xff] %v152_v21  ;;  %v160_v25 = vld [vmem:[%s344_s0 + $0x88] sm:$0xff] }
   0xd   :  { %155 = vst [vmem:[%s345_s1 + $0x48] sm:$0xff] %v154_v22  ;;  %157 = vst [vmem:[%s345_s1 + $0xb8] sm:$0xff] %v156_v23  ;;  %v158_v24 = vld [vmem:[%s344_s0 + $0x18] sm:$0xff]  ;;  %v162_v26 = vld [vmem:[%s344_s0 + $0x8] sm:$0xff] }
   0xe   :  { %159 = vst [vmem:[%s345_s1 + $0x58] sm:$0xff] %v158_v24  ;;  %161 = vst [vmem:[%s345_s1 + $0xc8] sm:$0xff] %v160_v25  ;;  %v164_v27 = vld [vmem:[%s344_s0 + $0x78] sm:$0xff] }
   0xf   :  { %163 = vst [vmem:[%s345_s1 + $0x68] sm:$0xff] %v162_v26  ;;  %165 = vst [vmem:[%s345_s1 + $0xd8] sm:$0xff] %v164_v27 }

// kernel: fno_forward.12
= control target key start
LH: loop header
LB: loop body
LE: loop exit
PB: predicated region body
PF: predicated region fallthrough
CT: control target
= control target key end

     0   :  { %s4048_s27 = smov 0   ;;  %s5887_s0 = inlined_call_operand.vmem [shape: f32[512,16], index: 0, kind: input, shape index: {}]   ;;  %s5888_s1 = inlined_call_operand.vmem [shape: f32[512,16], index: 1, kind: input, shape index: {}]   ;;  %s5889_s2 = inlined_call_operand.vmem [shape: f32[16,16], index: 2, kind: input, shape index: {}]   ;;  %s5890_s3 = inlined_call_operand.vmem [shape: f32[1,16], index: 3, kind: input, shape index: {}]   ;;  %s5891_s4 = inlined_call_operand.vmem [shape: f32[16,16], index: 4, kind: input, shape index: {}]   ;;  %s5892_s5 = inlined_call_operand.vmem [shape: f32[1,16], index: 5, kind: input, shape index: {}]   ;;  %s5893_s6 = inlined_call_operand.vmem [shape: f32[16,16], index: 6, kind: input, shape index: {}]   ;;  %s5894_s7 = inlined_call_operand.vmem [shape: f32[1,16], index: 7, kind: input, shape index: {}]   ;;  %s5895_s8 = inlined_call_operand.vmem [shape: f32[512,16], index: 8, kind: output, shape index: {}]  }
   0x1 LB: > { %s3246_s28 = sadd.s32 4294967295, %s4000_s27   ;;  %p3250_p0 = scmp.ge.s32.totalorder %s4000_s27, 1  ;;  %s4000_s27 = sphi %s4048_s27, %s18_s27  }
   0x2   : > { %p274_p1 = scmp.lt.s32.totalorder %s4000_s27, 3 }
   0x4   : > { %p275_p2 = pnand %p3250_p0, %p274_p1 }
   0x6   : > { %278 = sbr.rel (%p275_p2) target bundleno = 775 (0x307), region = 52 }
   0xd   : > { %v363_v0 = vld [vmem:[%s5889_s2] sm:$0xff]  ;;  %v364_v1 = vld [vmem:[%s5889_s2 + $0x8] sm:$0xff]  ;;  %s3251_s11 = sshll.u32 %s3246_s28, 5  ;;  %vm372_vm0 = vcmask 130048  }
   0xe   : > { %v726_v2 = vld [vmem:[%s5891_s4] sm:$0xff]  ;;  %v3616_v3 = vpack.c.bf16 %v364_v1, %v363_v0  ;;  %p314_p3 = scmp.lt.s32.totalorder %s3251_s11, 63  ;;  %v727_v4 = vld [vmem:[%s5891_s4 + $0x8] sm:$0xff] }
   0xf   : > { %v3620_v5 = vpack.c.bf16 %v727_v4, %v726_v2  ;;  %v1920_v60 = vld [vmem:[%s5893_s6] sm:$0xff]  ;;  %v1921_v61 = vld [vmem:[%s5893_s6 + $0x8] sm:$0xff] }
  0x10   : > { %3628 = vmatprep.subr.bf16.mxu1 %v3616_v3  ;;  %s5930_s11 = smov (!%p314_p3, %s3251_s11), 63  ;;  %3617 = vmatprep.subr.bf16.mxu0 %v3616_v3  ;;  %v3624_v62 = vpack.c.bf16 %v1921_v61, %v1920_v60 }
  0x11   : > { %3629 = vmatpush3.bf16.msra.mxu1 %v3616_v3  ;;  %3619 = vmatpush3.bf16.msra.mxu0 %v3616_v3  ;;  %s4068_s16 = sshll.u32 %s5930_s11, 3 }
  0x12   : > { %3621 = vmatprep.subr.bf16.mxu1 %v3620_v5  ;;  %s4074_s19 = scalar_lea.vmem %s5887_s0, %s4068_s16  ;;  %s4108_s22 = scalar_lea.vmem %s5888_s1, %s4068_s16  ;;  %3625 = vmatprep.subr.bf16.mxu0 %v3624_v62 }
  0x13   : > { %v347_v6 = vld [vmem:[%s4074_s19 + $0x80] sm:$0xff]  ;;  %v348_v7 = vld [vmem:[%s4074_s19 + $0x88] sm:$0xff]  ;;  %v349_v8 = vld [vmem:[%s4074_s19 + $0x90] sm:$0xff]  ;;  %s5156_s17 = scalar_lea.vmem %s5895_s8, %s4068_s16 }
  0x14   : > { %3488 = vmatprep.mubr.msk.f32.mxu1 %vm372_vm0, %v347_v6  ;;  %v350_v9 = vld [vmem:[%s4074_s19 + $0x98] sm:$0xff]  ;;  %v351_v10 = vld [vmem:[%s4074_s19 + $0xa0] sm:$0xff]  ;;  %v352_v11 = vld [vmem:[%s4074_s19 + $0xa8] sm:$0xff] }
  0x15   : > { %3489 = vmatmul.mubr.msk.f32.vlgmr.msra.gmra.mrb[0].mxu1 %vm372_vm0, %v348_v7  ;;  %v353_v12 = vld [vmem:[%s4074_s19 + $0xb0] sm:$0xff]  ;;  %v354_v13 = vld [vmem:[%s4074_s19 + $0xb8] sm:$0xff]  ;;  %v355_v14 = vld [vmem:[%s4074_s19 + $0xc0] sm:$0xff] }
  0x16   : > { %3623 = vmatpush3.bf16.msra.mxu1 %v3620_v5  ;;  %3491 = vmatprep.mubr.msk.f32.mxu1 %vm372_vm0, %v349_v8  ;;  %v356_v15 = vld [vmem:[%s4074_s19 + $0xc8] sm:$0xff]  ;;  %v357_v16 = vld [vmem:[%s4074_s19 + $0xd0] sm:$0xff]  ;;  %v358_v17 = vld [vmem:[%s4074_s19 + $0xd8] sm:$0xff] }
  0x17   : > { %v359_v18 = vld [vmem:[%s4074_s19 + $0xe0] sm:$0xff]  ;;  %v360_v19 = vld [vmem:[%s4074_s19 + $0xe8] sm:$0xff]  ;;  %v361_v20 = vld [vmem:[%s4074_s19 + $0xf0] sm:$0xff] }
  0x18   : > { %v362_v21 = vld [vmem:[%s4074_s19 + $0xf8] sm:$0xff]  ;;  %v694_v22 = vld [vmem:[%s4108_s22] sm:$0xff]  ;;  %v695_v23 = vld [vmem:[%s4108_s22 + $0x8] sm:$0xff] }
  0x19   : > { %3492 = vmatmul.mubr.msk.f32.gmra.mrb[2].mxu1 %vm372_vm0, %v350_v9  ;;  %v696_v24 = vld [vmem:[%s4108_s22 + $0x10] sm:$0xff]  ;;  %v697_v25 = vld [vmem:[%s4108_s22 + $0x18] sm:$0xff]  ;;  %v698_v26 = vld [vmem:[%s4108_s22 + $0x20] sm:$0xff] }
  0x1a   : > { %3494 = vmatprep.mubr.msk.f32.mxu1 %vm372_vm0, %v351_v10  ;;  %v699_v27 = vld [vmem:[%s4108_s22 + $0x28] sm:$0xff]  ;;  %v700_v28 = vld [vmem:[%s4108_s22 + $0x30] sm:$0xff]  ;;  %v701_v29 = vld [vmem:[%s4108_s22 + $0x38] sm:$0xff] }
  0x1b   : > { %v702_v30 = vld [vmem:[%s4108_s22 + $0x40] sm:$0xff]  ;;  %v703_v31 = vld [vmem:[%s4108_s22 + $0x48] sm:$0xff]  ;;  %v704_v32 = vld [vmem:[%s4108_s22 + $0x50] sm:$0xff] }
  0x1c   : > { %v705_v33 = vld [vmem:[%s4108_s22 + $0x58] sm:$0xff]  ;;  %v706_v34 = vld [vmem:[%s4108_s22 + $0x60] sm:$0xff]  ;;  %v707_v35 = vld [vmem:[%s4108_s22 + $0x68] sm:$0xff] }
  0x1d   : > { %3495 = vmatmul.mubr.msk.f32.gmra.mrb[4].mxu1 %vm372_vm0, %v352_v11  ;;  %v708_v36 = vld [vmem:[%s4108_s22 + $0x70] sm:$0xff]  ;;  %v709_v37 = vld [vmem:[%s4108_s22 + $0x78] sm:$0xff]  ;;  %v710_v38 = vld [vmem:[%s4108_s22 + $0x80] sm:$0xff] }
  0x1e   : > { %3497 = vmatprep.mubr.msk.f32.mxu1 %vm372_vm0, %v353_v12  ;;  %v711_v39 = vld [vmem:[%s4108_s22 + $0x88] sm:$0xff]  ;;  %v712_v40 = vld [vmem:[%s4108_s22 + $0x90] sm:$0xff]  ;;  %v713_v41 = vld [vmem:[%s4108_s22 + $0x98] sm:$0xff] }
  0x1f   : > { %v714_v42 = vld [vmem:[%s4108_s22 + $0xa0] sm:$0xff]  ;;  %v715_v43 = vld [vmem:[%s4108_s22 + $0xa8] sm:$0xff]  ;;  %v716_v44 = vld [vmem:[%s4108_s22 + $0xb0] sm:$0xff] }
  0x20   : > { %v717_v45 = vld [vmem:[%s4108_s22 + $0xb8] sm:$0xff]  ;;  %v718_v46 = vld [vmem:[%s4108_s22 + $0xc0] sm:$0xff]  ;;  %v719_v47 = vld [vmem:[%s4108_s22 + $0xc8] sm:$0xff] }
  0x21   : > { %3498 = vmatmul.mubr.msk.f32.gmra.mrb[6].mxu1 %vm372_vm0, %v354_v13  ;;  %v720_v48 = vld [vmem:[%s4108_s22 + $0xd0] sm:$0xff]  ;;  %v721_v49 = vld [vmem:[%s4108_s22 + $0xd8] sm:$0xff]  ;;  %v722_v50 = vld [vmem:[%s4108_s22 + $0xe0] sm:$0xff] }
  0x22   : > { %3500 = vmatprep.mubr.msk.f32.mxu1 %vm372_vm0, %v355_v14  ;;  %v723_v51 = vld [vmem:[%s4108_s22 + $0xe8] sm:$0xff]  ;;  %v724_v52 = vld [vmem:[%s4108_s22 + $0xf0] sm:$0xff]  ;;  %v725_v53 = vld [vmem:[%s4108_s22 + $0xf8] sm:$0xff] }
  0x23   : > { %v331_v54 = vld [vmem:[%s4074_s19] sm:$0xff]  ;;  %v332_v55 = vld [vmem:[%s4074_s19 + $0x8] sm:$0xff]  ;;  %v333_v56 = vld [vmem:[%s4074_s19 + $0x10] sm:$0xff] }
  0x24   : > { %3464 = vmatprep.mubr.msk.f32.mxu0 %vm372_vm0, %v331_v54  ;;  %v334_v57 = vld [vmem:[%s4074_s19 + $0x18] sm:$0xff]  ;;  %v335_v58 = vld [vmem:[%s4074_s19 + $0x20] sm:$0xff]  ;;  %v336_v59 = vld [vmem:[%s4074_s19 + $0x28] sm:$0xff] }
  0x25   : > { %3501 = vmatmul.mubr.msk.f32.gmra.mrb[8].mxu1 %vm372_vm0, %v356_v15  ;;  %3465 = vmatmul.mubr.msk.f32.vlgmr.msra.gmra.mrb[0].mxu0 %vm372_vm0, %v332_v55  ;;  %v337_v63 = vld [vmem:[%s4074_s19 + $0x30] sm:$0xff]  ;;  %v338_v0 = vld [vmem:[%s4074_s19 + $0x38] sm:$0xff]  ;;  %v339_v6 = vld [vmem:[%s4074_s19 + $0x40] sm:$0xff] }
  0x26   : > { %3503 = vmatprep.mubr.msk.f32.mxu1 %vm372_vm0, %v357_v16  ;;  %3467 = vmatprep.mubr.msk.f32.mxu0 %vm372_vm0, %v333_v56  ;;  %v340_v8 = vld [vmem:[%s4074_s19 + $0x48] sm:$0xff]  ;;  %v341_v15 = vld [vmem:[%s4074_s19 + $0x50] sm:$0xff]  ;;  %v342_v16 = vld [vmem:[%s4074_s19 + $0x58] sm:$0xff] }
  0x27   : > { %3627 = vmatpush3.bf16.msra.mxu0 %v3624_v62 }
  0x29   : > { %3504 = vmatmul.mubr.msk.f32.gmra.mrb[10].mxu1 %vm372_vm0, %v358_v17  ;;  %3468 = vmatmul.mubr.msk.f32.gmra.mrb[2].mxu0 %vm372_vm0, %v334_v57 }
  0x2a   : > { %3506 = vmatprep.mubr.msk.f32.mxu1 %vm372_vm0, %v359_v18  ;;  %3470 = vmatprep.mubr.msk.f32.mxu0 %vm372_vm0, %v335_v58 }
  0x2d   : > { %3507 = vmatmul.mubr.msk.f32.gmra.mrb[12].mxu1 %vm372_vm0, %v360_v19  ;;  %3471 = vmatmul.mubr.msk.f32.gmra.mrb[4].mxu0 %vm372_vm0, %v336_v59 }
  0x2e   : > { %3509 = vmatprep.mubr.msk.f32.mxu1 %vm372_vm0, %v361_v20  ;;  %3473 = vmatprep.mubr.msk.f32.mxu0 %vm372_vm0, %v337_v63 }
  0x31   : > { %3510 = vmatmul.mubr.msk.f32.gmra.mrb[14].mxu1 %vm372_vm0, %v362_v21  ;;  %3474 = vmatmul.mubr.msk.f32.gmra.mrb[6].mxu0 %vm372_vm0, %v338_v0  ;;  %v4243_v21 = vld [vmem:[%s5892_s5] ss:$0 sm:$0xff] }
  0x32   : > { %3516 = vmatprep.mubr.msk.f32.mxu1 %vm372_vm0, %v694_v22  ;;  %3476 = vmatprep.mubr.msk.f32.mxu0 %vm372_vm0, %v339_v6 }
  0x35   : > { %3517 = vmatmul.mubr.msk.f32.vlgmr.msra.gmra.mrb[16].mxu1 %vm372_vm0, %v695_v23  ;;  %3477 = vmatmul.mubr.msk.f32.gmra.mrb[8].mxu0 %vm372_vm0, %v340_v8  ;;  %v343_v23 = vld [vmem:[%s4074_s19 + $0x60] sm:$0xff] }
  0x36   : > { %3519 = vmatprep.mubr.msk.f32.mxu1 %vm372_vm0, %v696_v24  ;;  %3479 = vmatprep.mubr.msk.f32.mxu0 %vm372_vm0, %v341_v15 }
  0x39   : > { %3520 = vmatmul.mubr.msk.f32.gmra.mrb[18].mxu1 %vm372_vm0, %v697_v25  ;;  %3480 = vmatmul.mubr.msk.f32.gmra.mrb[10].mxu0 %vm372_vm0, %v342_v16 }
  0x3a   : > { %3522 = vmatprep.mubr.msk.f32.mxu1 %vm372_vm0, %v698_v26  ;;  %3482 = vmatprep.mubr.msk.f32.mxu0 %vm372_vm0, %v343_v23  ;;  %v344_v26 = vld [vmem:[%s4074_s19 + $0x68] sm:$0xff] }
  0x3d   : > { %3523 = vmatmul.mubr.msk.f32.gmra.mrb[20].mxu1 %vm372_vm0, %v699_v27  ;;  %3483 = vmatmul.mubr.msk.f32.gmra.mrb[12].mxu0 %vm372_vm0, %v344_v26 }
  0x3e   : > { %3525 = vmatprep.mubr.msk.f32.mxu1 %vm372_vm0, %v700_v28 }
  0x41   : > { %3526 = vmatmul.mubr.msk.f32.gmra.mrb[22].mxu1 %vm372_vm0, %v701_v29 }
  0x42   : > { %3528 = vmatprep.mubr.msk.f32.mxu1 %vm372_vm0, %v702_v30 }
  0x45   : > { %3529 = vmatmul.mubr.msk.f32.gmra.mrb[24].mxu1 %vm372_vm0, %v703_v31 }
  0x46   : > { %3531 = vmatprep.mubr.msk.f32.mxu1 %vm372_vm0, %v704_v32 }
  0x49   : > { %3532 = vmatmul.mubr.msk.f32.gmra.mrb[26].mxu1 %vm372_vm0, %v705_v33 }
  0x4a   : > { %3534 = vmatprep.mubr.msk.f32.mxu1 %vm372_vm0, %v706_v34 }
  0x4d   : > { %3535 = vmatmul.mubr.msk.f32.gmra.mrb[28].mxu1 %vm372_vm0, %v707_v35 }
  0x4e   : > { %3537 = vmatprep.mubr.msk.f32.mxu1 %vm372_vm0, %v708_v36 }
  0x51   : > { %3538 = vmatmul.mubr.msk.f32.gmra.mrb[30].mxu1 %vm372_vm0, %v709_v37 }
  0x52   : > { %3540 = vmatprep.mubr.msk.f32.mxu1 %vm372_vm0, %v710_v38 }
  0x55   : > { %3541 = vmatmul.mubr.msk.f32.gmra.mrb[32].mxu1 %vm372_vm0, %v711_v39 }
  0x56   : > { %3543 = vmatprep.mubr.msk.f32.mxu1 %vm372_vm0, %v712_v40 }
  0x59   : > { %3544 = vmatmul.mubr.msk.f32.gmra.mrb[34].mxu1 %vm372_vm0, %v713_v41 }
  0x5a   : > { %3546 = vmatprep.mubr.msk.f32.mxu1 %vm372_vm0, %v714_v42 }
  0x5d   : > { %3547 = vmatmul.mubr.msk.f32.gmra.mrb[36].mxu1 %vm372_vm0, %v715_v43 }
  0x5e   : > { %3549 = vmatprep.mubr.msk.f32.mxu1 %vm372_vm0, %v716_v44 }
  0x61   : > { %3550 = vmatmul.mubr.msk.f32.gmra.mrb[38].mxu1 %vm372_vm0, %v717_v45 }
  0x62   : > { %3552 = vmatprep.mubr.msk.f32.mxu1 %vm372_vm0, %v718_v46 }
  0x65   : > { %3553 = vmatmul.mubr.msk.f32.gmra.mrb[40].mxu1 %vm372_vm0, %v719_v47 }
  0x66   : > { %3555 = vmatprep.mubr.msk.f32.mxu1 %vm372_vm0, %v720_v48 }
  0x69   : > { %3556 = vmatmul.mubr.msk.f32.gmra.mrb[42].mxu1 %vm372_vm0, %v721_v49 }
  0x6a   : > { %3558 = vmatprep.mubr.msk.f32.mxu1 %vm372_vm0, %v722_v50 }
  0x6d   : > { %3559 = vmatmul.mubr.msk.f32.gmra.mrb[44].mxu1 %vm372_vm0, %v723_v51 }
  0x6e   : > { %3561 = vmatprep.mubr.msk.f32.mxu1 %vm372_vm0, %v724_v52  ;;  %v345_v52 = vld [vmem:[%s4074_s19 + $0x70] sm:$0xff] }
  0x6f   : > { %3485 = vmatprep.mubr.msk.f32.mxu0 %vm372_vm0, %v345_v52 }
  0x71   : > { %3562 = vmatmul.mubr.msk.f32.gmra.mrb[46].mxu1 %vm372_vm0, %v725_v53  ;;  %v346_v53 = vld [vmem:[%s4074_s19 + $0x78] sm:$0xff] }
  0x72   : > { %3486 = vmatmul.mubr.msk.f32.gmra.mrb[14].mxu0 %vm372_vm0, %v346_v53 }
  0xe8   : > { %v4200_v1 = vpop.f32.mrb[0].mxu1 }
  0xe9   : > { %v4202_v2 = vpop.f32.mrb[1].mxu1 }
  0xea   : > { %5898 = vst [vmem:[#allocation2_spill] sm:$0xff] %v4202_v2 }
  0xec   : > { %v4204_v3 = vpop.f32.mrb[2].mxu1 }
  0xed   : > { %5899 = vst [vmem:[#allocation3_spill] sm:$0xff] %v4204_v3  ;;  %v4206_v4 = vpop.f32.mrb[3].mxu1 }
  0xee   : > { %5900 = vst [vmem:[#allocation4_spill] sm:$0xff] %v4206_v4 }
  0xf0   : > { %v4208_v5 = vpop.f32.mrb[4].mxu1 }
  0xf1   : > { %5901 = vst [vmem:[#allocation5_spill] sm:$0xff] %v4208_v5  ;;  %v4211_v7 = vpop.f32.mrb[5].mxu1 }
  0xf2   : > { %5902 = vst [vmem:[#allocation6_spill] sm:$0xff] %v4211_v7 }
  0xf4   : > { %v4216_v9 = vpop.f32.mrb[6].mxu1 }
  0xf5   : > { %5903 = vst [vmem:[#allocation7_spill] sm:$0xff] %v4216_v9  ;;  %v4218_v10 = vpop.f32.mrb[7].mxu1 }
  0xf6   : > { %5904 = vst [vmem:[#allocation8_spill] sm:$0xff] %v4218_v10 }
  0xf8   : > { %v4220_v11 = vpop.f32.mrb[8].mxu1 }
  0xf9   : > { %5905 = vst [vmem:[#allocation9_spill] sm:$0xff] %v4220_v11  ;;  %v4222_v12 = vpop.f32.mrb[9].mxu1 }
  0xfa   : > { %5906 = vst [vmem:[#allocation10_spill] sm:$0xff] %v4222_v12 }
  0xfc   : > { %v4224_v13 = vpop.f32.mrb[10].mxu1 }
  0xfd   : > { %5907 = vst [vmem:[#allocation11_spill] sm:$0xff] %v4224_v13  ;;  %v4226_v14 = vpop.f32.mrb[11].mxu1 }
  0xfe   : > { %5908 = vst [vmem:[#allocation12_spill] sm:$0xff] %v4226_v14 }
 0x100   : > { %v4231_v17 = vpop.f32.mrb[12].mxu1 }
 0x101   : > { %5909 = vst [vmem:[#allocation13_spill] sm:$0xff] %v4231_v17  ;;  %v4234_v18 = vpop.f32.mrb[13].mxu1 }
 0x102   : > { %5910 = vst [vmem:[#allocation14_spill] sm:$0xff] %v4234_v18 }
 0x104   : > { %v4236_v19 = vpop.f32.mrb[14].mxu1 }
 0x105   : > { %5911 = vst [vmem:[#allocation15_spill] sm:$0xff] %v4236_v19  ;;  %v4238_v20 = vpop.f32.mrb[15].mxu1 }
 0x106   : > { %5912 = vst [vmem:[#allocation16_spill] sm:$0xff] %v4238_v20 }
 0x108   : > { %v3518_v22 = vpop.f32.mrb[16].mxu1 }
 0x109   : > { %v903_v24 = vadd.f32 %v3518_v22, %v4243_v21  ;;  %v897_v25 = vpop.f32.mrb[17].mxu1  ;;  %v5896_v22 = vmov -1.0  }
 0x10a   : > { %v898_v27 = vadd.f32 %v4243_v21, %v897_v25 }
 0x10b   : > { %v1089_v28 = vmul.f32 0.70710677, %v903_v24  ;;  %v4267_v54 = vmul.f32 0.5, %v903_v24 }
 0x10c   : > { %v1088_v29 = vmul.f32 0.70710677, %v898_v27  ;;  %v3521_v30 = vpop.f32.mrb[18].mxu1  ;;  %v4282_v0 = vmul.f32 0.5, %v898_v27 }
 0x10d   : > { %v1185_v31 = vand.u32 2147483647, %v1089_v28  ;;  %v913_v32 = vadd.f32 %v3521_v30, %v4243_v21  ;;  %v907_v33 = vpop.f32.mrb[19].mxu1  ;;  %vm1121_vm1 = vcmp.ge.f32.partialorder %v1089_v28, 0.0 }
 0x10e   : > { %v1184_v34 = vand.u32 2147483647, %v1088_v29  ;;  %v4253_v35 = vadd.f32 %v4243_v21, %v907_v33  ;;  %vm1120_vm2 = vcmp.ge.f32.partialorder %v1088_v29, 0.0  ;;  %v4289_v23 = vsel %vm1121_vm1, 1.0, %v5896_v22 }
 0x10f   : > { %v1217_v36 = vmul.f32 0.3275911, %v1185_v31  ;;  %v4255_v38 = vmul.f32 0.70710677, %v913_v32  ;;  %v1633_v45 = vsub.f32 0.0, %v1185_v31  ;;  %v4293_v24 = vsel %vm1120_vm2, 1.0, %v5896_v22 }
 0x110   : > { %v1216_v37 = vmul.f32 0.3275911, %v1184_v34  ;;  %v4258_v40 = vmul.f32 0.70710677, %v4253_v35  ;;  %v3524_v41 = vpop.f32.mrb[20].mxu1  ;;  %v1632_v48 = vsub.f32 0.0, %v1184_v34 }
 0x111   : > { %v1249_v39 = vadd.f32 1.0, %v1217_v36  ;;  %v1187_v43 = vand.u32 2147483647, %v4255_v38  ;;  %v917_v44 = vpop.f32.mrb[21].mxu1  ;;  %v4263_v50 = vadd.f32 %v3524_v41, %v4243_v21  ;;  %v1665_v60 = vmul.f32 %v1633_v45, %v1185_v31 }
 0x112   : > { %v1248_v42 = vadd.f32 1.0, %v1216_v37  ;;  %v1186_v49 = vand.u32 2147483647, %v4258_v40  ;;  %v4270_v56 = vadd.f32 %v4243_v21, %v917_v44  ;;  %v1664_v6 = vmul.f32 %v1632_v48, %v1184_v34 }
 0x113   : > { %3735 = vrcp.f32 %v1249_v39  ;;  %v1219_v46 = vmul.f32 0.3275911, %v1187_v43  ;;  %v1635_v57 = vsub.f32 0.0, %v1187_v43  ;;  %v4274_v59 = vmul.f32 0.70710677, %v4263_v50 }
 0x114   : > { %3737 = vrcp.f32 %v1248_v42  ;;  %v3527_v47 = vpop.f32.mrb[22].mxu1  ;;  %v1218_v58 = vmul.f32 0.3275911, %v1186_v49  ;;  %v1634_v61 = vsub.f32 0.0, %v1186_v49  ;;  %v4278_v62 = vmul.f32 0.70710677, %v4270_v56 }
 0x115   : > { %v927_v51 = vpop.f32.mrb[23].mxu1  ;;  %v1251_v55 = vadd.f32 1.0, %v1219_v46  ;;  %v1189_v15 = vand.u32 2147483647, %v4274_v59  ;;  %v4295_v25 = vmul.f32 0.5, %v913_v32  ;;  %v1667_v27 = vmul.f32 %v1635_v57, %v1187_v43 }
 0x116   : > { %v1250_v8 = vadd.f32 1.0, %v1218_v58  ;;  %v1188_v26 = vand.u32 2147483647, %v4278_v62  ;;  %v1698_v33 = vmul.f32 1.442695, %v1665_v60  ;;  %v1666_v34 = vmul.f32 %v1634_v61, %v1186_v49 }
 0x117   : > { %3739 = vrcp.f32 %v1251_v55  ;;  %v1221_v30 = vmul.f32 0.3275911, %v1189_v15  ;;  %v1637_v31 = vsub.f32 0.0, %v1189_v15  ;;  %v4299_v37 = vadd.f32 %v3527_v47, %v4243_v21 }
 0x118   : > { %v4280_v63 = vpop.f32.mrb[24].mxu1  ;;  %3741 = vrcp.f32 %v1250_v8  ;;  %v1220_v36 = vmul.f32 0.3275911, %v1188_v26  ;;  %v1696_v29 = vmul.f32 1.442695, %v1664_v6  ;;  %vm1123_vm3 = vcmp.ge.f32.partialorder %v4255_v38, 0.0 }
 0x119   : > { %v4285_v16 = vpop.f32.mrb[25].mxu1  ;;  %v1253_v32 = vadd.f32 1.0, %v1221_v30  ;;  %v1636_v41 = vsub.f32 0.0, %v1188_v26  ;;  %v1669_v45 = vmul.f32 %v1637_v31, %v1189_v15  ;;  %v4312_v47 = vadd.f32 %v4243_v21, %v927_v51 }
 0x11a   : > { %v1252_v46 = vadd.f32 1.0, %v1220_v36  ;;  %v1702_v49 = vmul.f32 1.442695, %v1667_v27  ;;  %v4316_v52 = vmul.f32 0.70710677, %v4299_v37  ;;  %v4319_v55 = vmul.f32 0.5, %v4253_v35 }
 0x11b   : > { %3743 = vrcp.f32 %v1253_v32  ;;  %v1700_v57 = vmul.f32 1.442695, %v1666_v34  ;;  %v4326_v51 = vsel %vm1123_vm3, 1.0, %v5896_v22  ;;  %v1706_v15 = vmul.f32 1.442695, %v1669_v45 }
 0x11c   : > { %v4301_v28 = vpop.f32.mrb[26].mxu1  ;;  %3745 = vrcp.f32 %v1252_v46  ;;  %v1191_v61 = vand.u32 2147483647, %v4316_v52  ;;  %v1668_v27 = vmul.f32 %v1636_v41, %v1188_v26  ;;  %v4335_v30 = vmul.f32 0.70710677, %v4312_v47 }
 0x11d   : > { %v4303_v39 = vpop.eup %3735  ;;  %v4306_v42 = vpop.f32.mrb[27].mxu1  ;;  %3747 = vpow2.f32 %v1698_v33  ;;  %vm1122_vm4 = vcmp.ge.f32.partialorder %v4258_v40, 0.0  ;;  %vm1125_vm5 = vcmp.ge.f32.partialorder %v4274_v59, 0.0  ;;  %vm1124_vm6 = vcmp.ge.f32.partialorder %v4278_v62, 0.0 }
 0x11e   : > { %v4308_v43 = vpop.eup %3737  ;;  %v1345_v44 = vmul.f32 1.0614054, %v4303_v39  ;;  %v1223_v38 = vmul.f32 0.3275911, %v1191_v61  ;;  %v1639_v34 = vsub.f32 0.0, %v1191_v61  ;;  %3749 = vpow2.f32 %v1696_v29 }
 0x11f   : > { %v1344_v48 = vmul.f32 1.0614054, %v4308_v43  ;;  %v1190_v32 = vand.u32 2147483647, %v4335_v30  ;;  %v4457_v62 = vadd.f32 %v4301_v28, %v4243_v21  ;;  %vm1127_vm7 = vcmp.ge.f32.partialorder %v4316_v52, 0.0 }
 0x120   : > { %v1377_v53 = vadd.f32 -1.4531521, %v1345_v44  ;;  %v4321_v58 = vpop.f32.mrb[28].mxu1  ;;  %v1255_v45 = vadd.f32 1.0, %v1223_v38  ;;  %v1061_v28 = vmul.f32 0.5, %v4263_v50  ;;  %v4477_v52 = vadd.f32 %v4243_v21, %v4306_v42 }
 0x121   : > { %v1376_v60 = vadd.f32 -1.4531521, %v1344_v48  ;;  %v4329_v6 = vpop.f32.mrb[29].mxu1  ;;  %v4331_v8 = vpop.eup %3739  ;;  %v1671_v48 = vmul.f32 %v1639_v34, %v1191_v61  ;;  %v1222_v29 = vmul.f32 0.3275911, %v1190_v32  ;;  %vm1126_vm8 = vcmp.ge.f32.partialorder %v4335_v30, 0.0 }
 0x122   : > { %v1409_v35 = vmul.f32 %v4303_v39, %v1377_v53  ;;  %v1347_v33 = vmul.f32 1.0614054, %v4331_v8  ;;  %v4343_v46 = vpop.eup %3741  ;;  %3751 = vrcp.f32 %v1255_v45 }
 0x123   : > { %v1408_v31 = vmul.f32 %v4308_v43, %v1376_v60  ;;  %v1346_v22 = vmul.f32 1.0614054, %v4343_v46  ;;  %v1710_v18 = vmul.f32 1.442695, %v1671_v48  ;;  %3753 = vpow2.f32 %v1702_v49 }
 0x124   : > { %v1441_v36 = vadd.f32 1.4214138, %v1409_v35  ;;  %v4341_v44 = vpop.f32.mrb[30].mxu1  ;;  %v1379_v41 = vadd.f32 -1.4531521, %v1347_v33  ;;  %v1638_v33 = vsub.f32 0.0, %v1190_v32 }
 0x125   : > { %v1440_v26 = vadd.f32 1.4214138, %v1408_v31  ;;  %v4345_v53 = vpop.f32.mrb[31].mxu1  ;;  %v1704_v35 = vmul.f32 1.442695, %v1668_v27  ;;  %v1254_v31 = vadd.f32 1.0, %v1222_v29  ;;  %v4351_v38 = vpop.eup %3743 }
 0x126   : > { %v1473_v60 = vmul.f32 %v4303_v39, %v1441_v36  ;;  %v1411_v19 = vmul.f32 %v4331_v8, %v1379_v41  ;;  %v1378_v14 = vadd.f32 -1.4531521, %v1346_v22  ;;  %v5913_v36 = vmov -1.0  }
 0x127   : > { %v1472_v20 = vmul.f32 %v4308_v43, %v1440_v26  ;;  %v4356_v27 = vsel %vm1122_vm4, 1.0, %v5913_v36  ;;  %v4360_v26 = vpop.eup %3745  ;;  %v1349_v45 = vmul.f32 1.0614054, %v4351_v38  ;;  %3755 = vrcp.f32 %v1254_v31 }
 0x128   : > { %v1505_v17 = vadd.f32 -0.28449672, %v1473_v60  ;;  %v1443_v34 = vadd.f32 1.4214138, %v1411_v19  ;;  %v4358_v13 = vpop.f32.mrb[32].mxu1  ;;  %v1410_v22 = vmul.f32 %v4343_v46, %v1378_v14  ;;  %v3748_v19 = vpop.eup %3747  ;;  %v1670_v60 = vmul.f32 %v1638_v33, %v1190_v32 }
 0x129   : > { %v1504_v61 = vadd.f32 -0.28449672, %v1472_v20  ;;  %v4365_v48 = vpop.f32.mrb[33].mxu1  ;;  %v1348_v49 = vmul.f32 1.0614054, %v4360_v26  ;;  %3757 = vpow2.f32 %v1700_v57  ;;  %v3750_v9 = vpop.eup %3749 }
 0x12a   : > { %v1537_v41 = vmul.f32 %v4303_v39, %v1505_v17  ;;  %v1475_v40 = vmul.f32 %v4331_v8, %v1443_v34  ;;  %v1442_v12 = vadd.f32 1.4214138, %v1410_v22  ;;  %v1381_v11 = vadd.f32 -1.4531521, %v1349_v45 }
 0x12b   : > { %v1536_v20 = vmul.f32 %v4308_v43, %v1504_v61  ;;  %3759 = vpow2.f32 %v1706_v15  ;;  %v1380_v14 = vadd.f32 -1.4531521, %v1348_v49  ;;  %v4375_v34 = vadd.f32 %v4280_v63, %v4243_v21 }
 0x12c   : > { %v1569_v29 = vadd.f32 0.2548296, %v1537_v41  ;;  %v1507_v10 = vadd.f32 -0.28449672, %v1475_v40  ;;  %v1474_v7 = vmul.f32 %v4343_v46, %v1442_v12  ;;  %v1413_v61 = vmul.f32 %v4351_v38, %v1381_v11  ;;  %v4377_v32 = vpop.f32.mrb[34].mxu1 }
 0x12d   : > { %v1568_v17 = vadd.f32 0.2548296, %v1536_v20  ;;  %v1412_v15 = vmul.f32 %v4360_v26, %v1380_v14  ;;  %v1708_v41 = vmul.f32 1.442695, %v1670_v60  ;;  %v4382_v22 = vpop.f32.mrb[35].mxu1  ;;  %3761 = vpow2.f32 %v1704_v35  ;;  %v4386_v20 = vpop.eup %3751 }
 0x12e   : > { %v1601_v31 = vmul.f32 %v4303_v39, %v1569_v29  ;;  %v1539_v33 = vmul.f32 %v4331_v8, %v1507_v10  ;;  %v1506_v45 = vadd.f32 -0.28449672, %v1474_v7  ;;  %v1445_v12 = vadd.f32 1.4214138, %v1413_v61  ;;  %v3754_v35 = vpop.eup %3753 }
 0x12f   : > { %v1600_v57 = vmul.f32 %v4308_v43, %v1568_v17  ;;  %v1444_v49 = vadd.f32 1.4214138, %v1412_v15  ;;  %3763 = vpow2.f32 %v1710_v18  ;;  %v1351_v7 = vmul.f32 1.0614054, %v4386_v20 }
 0x130   : > { %v1761_v39 = vmul.f32 %v3748_v19, %v1601_v31  ;;  %v4384_v11 = vpop.f32.mrb[36].mxu1  ;;  %v1571_v40 = vadd.f32 0.2548296, %v1539_v33  ;;  %v1538_v29 = vmul.f32 %v4343_v46, %v1506_v45  ;;  %v1477_v19 = vmul.f32 %v4351_v38, %v1445_v12 }
 0x131   : > { %v1760_v63 = vmul.f32 %v3750_v9, %v1600_v57  ;;  %v4388_v43 = vpop.f32.mrb[37].mxu1  ;;  %v1476_v9 = vmul.f32 %v4360_v26, %v1444_v49  ;;  %v4397_v14 = vmul.f32 0.70710677, %v4375_v34  ;;  %v4399_v18 = vpop.eup %3755  ;;  %v1383_v33 = vadd.f32 -1.4531521, %v1351_v7 }
 0x132   : > { %v1793_v10 = vsub.f32 1.0, %v1761_v39  ;;  %v1603_v17 = vmul.f32 %v4331_v8, %v1571_v40  ;;  %v1570_v61 = vadd.f32 0.2548296, %v1538_v29  ;;  %v1509_v57 = vadd.f32 -0.28449672, %v1477_v19 }
 0x133   : > { %v1792_v60 = vsub.f32 1.0, %v1760_v63  ;;  %v1508_v45 = vadd.f32 -0.28449672, %v1476_v9  ;;  %v1350_v8 = vmul.f32 1.0614054, %v4399_v18  ;;  %v3758_v63 = vpop.eup %3757  ;;  %3765 = vpow2.f32 %v1708_v41 }
 0x134   : > { %v1825_v31 = vmul.f32 %v1793_v10, %v4289_v23  ;;  %v1763_v39 = vmul.f32 %v3754_v35, %v1603_v17  ;;  %v4405_v12 = vpop.f32.mrb[38].mxu1  ;;  %v1602_v49 = vmul.f32 %v4343_v46, %v1570_v61  ;;  %v1541_v5 = vmul.f32 %v4351_v38, %v1509_v57 }
 0x135   : > { %v1824_v15 = vmul.f32 %v1792_v60, %v4293_v24  ;;  %v1415_v23 = vmul.f32 %v4386_v20, %v1383_v33  ;;  %v4410_v10 = vpop.f32.mrb[39].mxu1  ;;  %v3760_v29 = vpop.eup %3759  ;;  %v1540_v24 = vmul.f32 %v4360_v26, %v1508_v45  ;;  %v1382_v35 = vadd.f32 -1.4531521, %v1350_v8 }
 0x136   : > { %v1857_v40 = vadd.f32 1.0, %v1825_v31  ;;  %v1795_v7 = vsub.f32 1.0, %v1763_v39  ;;  %v1762_v17 = vmul.f32 %v3758_v63, %v1602_v49  ;;  %v1573_v9 = vadd.f32 0.2548296, %v1541_v5 }
 0x137   : > { %v1856_v19 = vadd.f32 1.0, %v1824_v15  ;;  %v1447_v4 = vadd.f32 1.4214138, %v1415_v23  ;;  %v1572_v57 = vadd.f32 0.2548296, %v1540_v24  ;;  %v1414_v33 = vmul.f32 %v4399_v18, %v1382_v35  ;;  %v3762_v15 = vpop.eup %3761 }
 0x138   : > { %v1889_v60 = vmul.f32 %v1857_v40, %v4267_v54  ;;  %v4414_v31 = vpop.f32.mrb[40].mxu1  ;;  %v1827_v61 = vmul.f32 %v1795_v7, %v4326_v51  ;;  %v1794_v39 = vsub.f32 1.0, %v1762_v17  ;;  %v1605_v45 = vmul.f32 %v4351_v38, %v1573_v9 }
 0x139   : > { %v1888_v46 = vmul.f32 %v1856_v19, %v4282_v0  ;;  %v4419_v3 = vpop.f32.mrb[41].mxu1  ;;  %v1479_v54 = vmul.f32 %v4386_v20, %v1447_v4  ;;  %v4424_v5 = vand.u32 2147483647, %v4397_v14  ;;  %v3764_v8 = vpop.eup %3763  ;;  %v1604_v63 = vmul.f32 %v4360_v26, %v1572_v57 }
 0x13a   : > { %v1446_v0 = vadd.f32 1.4214138, %v1414_v33  ;;  %v4429_v51 = vadd.f32 %v4243_v21, %v4285_v16  ;;  %v1826_v40 = vmul.f32 %v1794_v39, %v4356_v27  ;;  %v1765_v49 = vmul.f32 %v3760_v29, %v1605_v45 }
 0x13b   : > { %3568 = vmatprep.mubr.msk.f32.mxu0 %vm372_vm0, %v1888_v46  ;;  %v1511_v38 = vadd.f32 -0.28449672, %v1479_v54  ;;  %v1225_v4 = vmul.f32 0.3275911, %v4424_v5  ;;  %v1859_v19 = vadd.f32 1.0, %v1827_v61  ;;  %v1157_v26 = vsel %vm1125_vm5, 1.0, %v5913_v36 }
 0x13c   : > { %v4434_v23 = vpop.f32.mrb[42].mxu1  ;;  %3569 = vmatmul.mubr.msk.f32.vlgmr.msra.gmra.mrb[0].mxu0 %vm372_vm0, %v1889_v60  ;;  %v1764_v41 = vmul.f32 %v3762_v15, %v1604_v63  ;;  %v1478_v16 = vmul.f32 %v4399_v18, %v1446_v0  ;;  %v1858_v24 = vadd.f32 1.0, %v1826_v40  ;;  %v1797_v27 = vsub.f32 1.0, %v1765_v49 }
 0x13d   : > { %v4441_v7 = vpop.f32.mrb[43].mxu1  ;;  %v1543_v29 = vmul.f32 %v4386_v20, %v1511_v38  ;;  %v1257_v35 = vadd.f32 1.0, %v1225_v4  ;;  %v1156_v17 = vsel %vm1124_vm6, 1.0, %v5913_v36  ;;  %v4448_v46 = vmul.f32 0.70710677, %v4429_v51 }
 0x13e   : > { %v1796_v60 = vsub.f32 1.0, %v1764_v41  ;;  %v1510_v9 = vadd.f32 -0.28449672, %v1478_v16  ;;  %v1890_v59 = vmul.f32 %v1858_v24, %v4319_v55  ;;  %v1829_v61 = vmul.f32 %v1797_v27, %v1157_v26 }
 0x13f   : > { %v1575_v57 = vadd.f32 0.2548296, %v1543_v29  ;;  %3767 = vrcp.f32 %v1257_v35  ;;  %v1891_v15 = vmul.f32 %v1859_v19, %v4295_v25  ;;  %v1192_v55 = vand.u32 2147483647, %v4448_v46 }
 0x140   : > { %v4451_v33 = vpop.f32.mrb[44].mxu1  ;;  %v1828_v39 = vmul.f32 %v1796_v60, %v1156_v17  ;;  %v1542_v45 = vmul.f32 %v4399_v18, %v1510_v9  ;;  %v1861_v63 = vadd.f32 1.0, %v1829_v61  ;;  %3571 = vmatprep.mubr.msk.f32.mxu0 %vm372_vm0, %v1890_v59  ;;  %v1060_v40 = vmul.f32 0.5, %v4270_v56 }
 0x141   : > { %v4459_v54 = vpop.f32.mrb[45].mxu1  ;;  %v1607_v0 = vmul.f32 %v4386_v20, %v1575_v57  ;;  %3572 = vmatmul.mubr.msk.f32.gmra.mrb[2].mxu0 %vm372_vm0, %v1891_v15  ;;  %v1641_v4 = vsub.f32 0.0, %v4424_v5  ;;  %v1224_v19 = vmul.f32 0.3275911, %v1192_v55  ;;  %v3766_v20 = vpop.eup %3765  ;;  %v4473_v56 = vmul.f32 0.70710677, %v4457_v62 }
 0x142   : > { %v1860_v49 = vadd.f32 1.0, %v1828_v39  ;;  %v1574_v25 = vadd.f32 0.2548296, %v1542_v45  ;;  %v1893_v50 = vmul.f32 %v1861_v63, %v1061_v28  ;;  %v4492_v61 = vmul.f32 0.70710677, %v4477_v52 }
 0x143   : > { %v1767_v38 = vmul.f32 %v3764_v8, %v1607_v0  ;;  %v1159_v8 = vsel %vm1127_vm7, 1.0, %v5913_v36  ;;  %v1256_v29 = vadd.f32 1.0, %v1224_v19  ;;  %v1195_v17 = vand.u32 2147483647, %v4473_v56 }
 0x144   : > { %v4469_v26 = vpop.f32.mrb[46].mxu1  ;;  %v1892_v41 = vmul.f32 %v1860_v49, %v1060_v40  ;;  %v1606_v16 = vmul.f32 %v4399_v18, %v1574_v25  ;;  %v4486_v18 = vadd.f32 %v4321_v58, %v4243_v21  ;;  %v1673_v9 = vmul.f32 %v1641_v4, %v4424_v5 }
 0x145   : > { %v4479_v24 = vpop.f32.mrb[47].mxu1  ;;  %v1799_v27 = vsub.f32 1.0, %v1767_v38  ;;  %3769 = vrcp.f32 %v1256_v29  ;;  %v1227_v59 = vmul.f32 0.3275911, %v1195_v17  ;;  %v1158_v57 = vsel %vm1126_vm8, 1.0, %v5913_v36 }
 0x146   : > { %v1766_v35 = vmul.f32 %v3766_v20, %v1606_v16  ;;  %3574 = vmatprep.mubr.msk.f32.mxu0 %vm372_vm0, %v1892_v41  ;;  %v1640_v15 = vsub.f32 0.0, %v1192_v55  ;;  %v4499_v63 = vmul.f32 0.70710677, %v4486_v18  ;;  %v1062_v40 = vmul.f32 0.5, %v4312_v47 }
 0x147   : > { %v1831_v42 = vmul.f32 %v1799_v27, %v1159_v8  ;;  %3575 = vmatmul.mubr.msk.f32.gmra.mrb[4].mxu0 %vm372_vm0, %v1893_v50  ;;  %v1259_v45 = vadd.f32 1.0, %v1227_v59  ;;  %v1194_v5 = vand.u32 2147483647, %v4492_v61  ;;  %v1714_v28 = vmul.f32 1.442695, %v1673_v9 }
 0x148   : > { %v1798_v60 = vsub.f32 1.0, %v1766_v35  ;;  %v1063_v38 = vmul.f32 0.5, %v4299_v37  ;;  %vm1129_vm9 = vcmp.ge.f32.partialorder %v4397_v14, 0.0  ;;  %v1672_v41 = vmul.f32 %v1640_v15, %v1192_v55 }
 0x149   : > { %v4494_v30 = vpop.eup %3767  ;;  %v1863_v0 = vadd.f32 1.0, %v1831_v42  ;;  %3771 = vrcp.f32 %v1259_v45  ;;  %v1226_v4 = vmul.f32 0.3275911, %v1194_v5  ;;  %v1197_v16 = vand.u32 2147483647, %v4499_v63 }
 0x14a   : > { %v1830_v58 = vmul.f32 %v1798_v60, %v1158_v57  ;;  %v1353_v39 = vmul.f32 1.0614054, %v4494_v30  ;;  %v1643_v8 = vsub.f32 0.0, %v1195_v17  ;;  %v4509_v27 = vadd.f32 %v4243_v21, %v4329_v6 }
 0x14b   : > { %v1895_v50 = vmul.f32 %v1863_v0, %v1063_v38  ;;  %v1258_v47 = vadd.f32 1.0, %v1226_v4  ;;  %v4512_v29 = vmul.f32 0.5, %v4375_v34  ;;  %3773 = vpow2.f32 %v1714_v28 }
 0x14c   : > { %v1862_v49 = vadd.f32 1.0, %v1830_v58  ;;  %v1385_v25 = vadd.f32 -1.4531521, %v1353_v39  ;;  %v1229_v35 = vmul.f32 0.3275911, %v1197_v16  ;;  %v4520_v55 = vsel %vm1129_vm9, 1.0, %v5913_v36 }
 0x14d   : > { %3775 = vrcp.f32 %v1258_v47  ;;  %v4523_v60 = vmul.f32 0.70710677, %v4509_v27  ;;  %v4527_v6 = vadd.f32 %v4341_v44, %v4243_v21  ;;  %vm1128_vm10 = vcmp.ge.f32.partialorder %v4448_v46, 0.0 }
 0x14e   : > { %v1894_v19 = vmul.f32 %v1862_v49, %v1062_v40  ;;  %v1417_v20 = vmul.f32 %v4494_v30, %v1385_v25  ;;  %v1261_v59 = vadd.f32 1.0, %v1229_v35  ;;  %v4534_v14 = vmul.f32 0.5, %v4429_v51 }
 0x14f   : > { %v4515_v42 = vpop.eup %3769  ;;  %v1712_v57 = vmul.f32 1.442695, %v1672_v41  ;;  %v1675_v15 = vmul.f32 %v1643_v8, %v1195_v17  ;;  %v1196_v58 = vand.u32 2147483647, %v4523_v60  ;;  %v1642_v44 = vsub.f32 0.0, %v1194_v5 }
 0x150   : > { %v1449_v37 = vadd.f32 1.4214138, %v1417_v20  ;;  %3577 = vmatprep.mubr.msk.f32.mxu0 %vm372_vm0, %v1894_v19  ;;  %v1352_v9 = vmul.f32 1.0614054, %v4515_v42  ;;  %3777 = vrcp.f32 %v1261_v59  ;;  %v4538_v0 = vsel %vm1128_vm10, 1.0, %v5913_v36 }
 0x151   : > { %3578 = vmatmul.mubr.msk.f32.gmra.mrb[6].mxu0 %vm372_vm0, %v1895_v50  ;;  %v1645_v40 = vsub.f32 0.0, %v1197_v16  ;;  %v1228_v49 = vmul.f32 0.3275911, %v1196_v58  ;;  %v4541_v46 = vmul.f32 0.70710677, %v4527_v6  ;;  %v4548_v28 = vmul.f32 0.5, %v4457_v62 }
 0x152   : > { %v1481_v34 = vmul.f32 %v4494_v30, %v1449_v37  ;;  %v1384_v45 = vadd.f32 -1.4531521, %v1352_v9  ;;  %v4552_v38 = vadd.f32 %v4243_v21, %v4345_v53  ;;  %3779 = vpow2.f32 %v1712_v57 }
 0x153   : > { %v4543_v25 = vpop.eup %3771  ;;  %vm1131_vm11 = vcmp.ge.f32.partialorder %v4473_v56, 0.0  ;;  %v1260_v19 = vadd.f32 1.0, %v1228_v49  ;;  %v1718_v50 = vmul.f32 1.442695, %v1675_v15  ;;  %v1674_v8 = vmul.f32 %v1642_v44, %v1194_v5 }
 0x154   : > { %v1513_v39 = vadd.f32 -0.28449672, %v1481_v34  ;;  %v1416_v17 = vmul.f32 %v4515_v42, %v1384_v45  ;;  %v1355_v4 = vmul.f32 1.0614054, %v4543_v25  ;;  %v1677_v37 = vmul.f32 %v1645_v40, %v1197_v16 }
 0x155   : > { %3781 = vrcp.f32 %v1260_v19  ;;  %v1199_v62 = vand.u32 2147483647, %v4541_v46  ;;  %v3774_v35 = vpop.eup %3773  ;;  %v1644_v9 = vsub.f32 0.0, %v1196_v58  ;;  %v4560_v59 = vmul.f32 0.70710677, %v4552_v38 }
 0x156   : > { %v1545_v51 = vmul.f32 %v4494_v30, %v1513_v39  ;;  %v1448_v41 = vadd.f32 1.4214138, %v1416_v17  ;;  %v1387_v47 = vadd.f32 -1.4531521, %v1355_v4  ;;  %v4567_v5 = vsel %vm1131_vm11, 1.0, %v5913_v36 }
 0x157   : > { %v4562_v57 = vpop.eup %3775  ;;  %v4571_v15 = vmul.f32 0.5, %v4477_v52  ;;  %v1231_v39 = vmul.f32 0.3275911, %v1199_v62  ;;  %v1716_v40 = vmul.f32 1.442695, %v1674_v8  ;;  %3783 = vpow2.f32 %v1718_v50 }
 0x158   : > { %v1577_v20 = vadd.f32 0.2548296, %v1545_v51  ;;  %v1480_v53 = vmul.f32 %v4515_v42, %v1448_v41  ;;  %v1419_v16 = vmul.f32 %v4543_v25, %v1387_v47  ;;  %v1354_v44 = vmul.f32 1.0614054, %v4562_v57 }
 0x159   : > { %v1722_v51 = vmul.f32 1.442695, %v1677_v37  ;;  %v1263_v17 = vadd.f32 1.0, %v1231_v39  ;;  %v1198_v41 = vand.u32 2147483647, %v4560_v59  ;;  %v4583_v37 = vadd.f32 %v4358_v13, %v4243_v21 }
 0x15a   : > { %v1609_v34 = vmul.f32 %v4494_v30, %v1577_v20  ;;  %v1512_v45 = vadd.f32 -0.28449672, %v1480_v53  ;;  %v1451_v49 = vadd.f32 1.4214138, %v1419_v16  ;;  %v4574_v4 = vpop.eup %3777  ;;  %v1386_v19 = vadd.f32 -1.4531521, %v1354_v44 }
 0x15b   : > { %v1676_v20 = vmul.f32 %v1644_v9, %v1196_v58  ;;  %3785 = vrcp.f32 %v1263_v17  ;;  %v1230_v50 = vmul.f32 0.3275911, %v1198_v41  ;;  %v1647_v9 = vsub.f32 0.0, %v1199_v62 }
 0x15c   : > { %v1769_v30 = vmul.f32 %v3774_v35, %v1609_v34  ;;  %v1544_v56 = vmul.f32 %v4515_v42, %v1512_v45  ;;  %v1483_v47 = vmul.f32 %v4543_v25, %v1451_v49  ;;  %v1357_v35 = vmul.f32 1.0614054, %v4574_v4  ;;  %v3780_v53 = vpop.eup %3779 }
 0x15d   : > { %v1418_v8 = vmul.f32 %v4562_v57, %v1386_v19  ;;  %3787 = vpow2.f32 %v1716_v40  ;;  %v1262_v45 = vadd.f32 1.0, %v1230_v50  ;;  %vm1130_vm12 = vcmp.ge.f32.partialorder %v4492_v61, 0.0 }
 0x15e   : > { %v1801_v52 = vsub.f32 1.0, %v1769_v30  ;;  %v1576_v34 = vadd.f32 0.2548296, %v1544_v56  ;;  %v1515_v16 = vadd.f32 -0.28449672, %v1483_v47  ;;  %3789 = vpow2.f32 %v1722_v51 }
 0x15f   : > { %v1389_v58 = vadd.f32 -1.4531521, %v1357_v35  ;;  %v1450_v30 = vadd.f32 1.4214138, %v1418_v8  ;;  %v4586_v44 = vpop.eup %3781  ;;  %v1720_v56 = vmul.f32 1.442695, %v1676_v20  ;;  %3791 = vrcp.f32 %v1262_v45 }
 0x160   : > { %v1608_v39 = vmul.f32 %v4515_v42, %v1576_v34  ;;  %v1833_v49 = vmul.f32 %v1801_v52, %v4520_v55  ;;  %v1547_v17 = vmul.f32 %v4543_v25, %v1515_v16  ;;  %v1356_v47 = vmul.f32 1.0614054, %v4586_v44 }
 0x161   : > { %v1421_v13 = vmul.f32 %v4574_v4, %v1389_v58  ;;  %v1482_v40 = vmul.f32 %v4562_v57, %v1450_v30  ;;  %v4595_v42 = vmul.f32 0.70710677, %v4583_v37  ;;  %v1679_v34 = vmul.f32 %v1647_v9, %v1199_v62  ;;  %v3784_v16 = vpop.eup %3783 }
 0x162   : > { %v1768_v19 = vmul.f32 %v3780_v53, %v1608_v39  ;;  %v1579_v51 = vadd.f32 0.2548296, %v1547_v17  ;;  %v1388_v8 = vadd.f32 -1.4531521, %v1356_v47  ;;  %v1646_v50 = vsub.f32 0.0, %v1198_v41 }
 0x163   : > { %v1453_v35 = vadd.f32 1.4214138, %v1421_v13  ;;  %v1514_v52 = vadd.f32 -0.28449672, %v1482_v40  ;;  %v1865_v2 = vadd.f32 1.0, %v1833_v49  ;;  %vm1133_vm13 = vcmp.ge.f32.partialorder %v4499_v63, 0.0 }
 0x164   : > { %v1800_v55 = vsub.f32 1.0, %v1768_v19  ;;  %v1611_v20 = vmul.f32 %v4543_v25, %v1579_v51  ;;  %v1420_v30 = vmul.f32 %v4586_v44, %v1388_v8  ;;  %v4604_v62 = vand.u32 2147483647, %v4595_v42 }
 0x165   : > { %v1485_v53 = vmul.f32 %v4574_v4, %v1453_v35  ;;  %v1546_v39 = vmul.f32 %v4562_v57, %v1514_v52  ;;  %v4606_v9 = vpop.eup %3785  ;;  %3793 = vpow2.f32 %v1720_v56  ;;  %v1726_v49 = vmul.f32 1.442695, %v1679_v34 }
 0x166   : > { %v1832_v58 = vmul.f32 %v1800_v55, %v4538_v0  ;;  %v1771_v45 = vmul.f32 %v3784_v16, %v1611_v20  ;;  %v1452_v19 = vadd.f32 1.4214138, %v1420_v30  ;;  %v1678_v40 = vmul.f32 %v1646_v50, %v1198_v41 }
 0x167   : > { %v1517_v17 = vadd.f32 -0.28449672, %v1485_v53  ;;  %v1578_v13 = vadd.f32 0.2548296, %v1546_v39  ;;  %v3788_v47 = vpop.eup %3787  ;;  %v1359_v35 = vmul.f32 1.0614054, %v4606_v9  ;;  %v1897_v8 = vmul.f32 %v1865_v2, %v4512_v29 }
 0x168   : > { %v1864_v25 = vadd.f32 1.0, %v1832_v58  ;;  %v1803_v51 = vsub.f32 1.0, %v1771_v45  ;;  %v1233_v55 = vmul.f32 0.3275911, %v4604_v62  ;;  %v3790_v52 = vpop.eup %3789  ;;  %v1484_v34 = vmul.f32 %v4586_v44, %v1452_v19 }
 0x169   : > { %v1549_v0 = vmul.f32 %v4574_v4, %v1517_v17  ;;  %v1610_v56 = vmul.f32 %v4562_v57, %v1578_v13  ;;  %v1391_v53 = vadd.f32 -1.4531521, %v1359_v35  ;;  %v4617_v50 = vadd.f32 %v4243_v21, %v4365_v48 }
 0x16a   : > { %v1896_v16 = vmul.f32 %v1864_v25, %v4534_v14  ;;  %v1265_v41 = vadd.f32 1.0, %v1233_v55  ;;  %v1162_v58 = vsel %vm1130_vm12, 1.0, %v5913_v36  ;;  %v1165_v2 = vsel %vm1133_vm13, 1.0, %v5913_v36  ;;  %v4626_v14 = vpop.eup %3791 }
 0x16b   : > { %v1581_v20 = vadd.f32 0.2548296, %v1549_v0  ;;  %v1770_v39 = vmul.f32 %v3788_v47, %v1610_v56  ;;  %v1516_v29 = vadd.f32 -0.28449672, %v1484_v34  ;;  %v1835_v57 = vmul.f32 %v1803_v51, %v4567_v5 }
 0x16c   : > { %3580 = vmatprep.mubr.msk.f32.mxu0 %vm372_vm0, %v1896_v16  ;;  %v1423_v48 = vmul.f32 %v4606_v9, %v1391_v53  ;;  %3795 = vrcp.f32 %v1265_v41  ;;  %v1358_v63 = vmul.f32 1.0614054, %v4626_v14  ;;  %v1724_v13 = vmul.f32 1.442695, %v1678_v40 }
 0x16d   : > { %v1613_v30 = vmul.f32 %v4574_v4, %v1581_v20  ;;  %3581 = vmatmul.mubr.msk.f32.gmra.mrb[8].mxu0 %vm372_vm0, %v1897_v8  ;;  %v1802_v61 = vsub.f32 1.0, %v1770_v39  ;;  %v1548_v45 = vmul.f32 %v4586_v44, %v1516_v29  ;;  %3797 = vpow2.f32 %v1726_v49 }
 0x16e   : > { %v1455_v25 = vadd.f32 1.4214138, %v1423_v48  ;;  %v4635_v19 = vmul.f32 0.70710677, %v4617_v50  ;;  %v1390_v4 = vadd.f32 -1.4531521, %v1358_v63  ;;  %v4639_v51 = vadd.f32 %v4377_v32, %v4243_v21 }
 0x16f   : > { %v1773_v17 = vmul.f32 %v3790_v52, %v1613_v30  ;;  %v1834_v5 = vmul.f32 %v1802_v61, %v1162_v58  ;;  %v1580_v47 = vadd.f32 0.2548296, %v1548_v45  ;;  %v3794_v0 = vpop.eup %3793  ;;  %v1867_v35 = vadd.f32 1.0, %v1835_v57 }
 0x170   : > { %v1487_v49 = vmul.f32 %v4606_v9, %v1455_v25  ;;  %v1200_v8 = vand.u32 2147483647, %v4635_v19  ;;  %vm1132_vm14 = vcmp.ge.f32.partialorder %v4523_v60, 0.0  ;;  %v1422_v16 = vmul.f32 %v4626_v14, %v1390_v4 }
 0x171   : > { %v1805_v55 = vsub.f32 1.0, %v1773_v17  ;;  %v1866_v52 = vadd.f32 1.0, %v1834_v5  ;;  %v1612_v40 = vmul.f32 %v4586_v44, %v1580_v47  ;;  %3799 = vpow2.f32 %v1724_v13 }
 0x172   : > { %v1519_v56 = vadd.f32 -0.28449672, %v1487_v49  ;;  %v1649_v34 = vsub.f32 0.0, %v4604_v62  ;;  %v1232_v21 = vmul.f32 0.3275911, %v1200_v8  ;;  %v1899_v58 = vmul.f32 %v1867_v35, %v4548_v28 }
 0x173   : > { %v1898_v32 = vmul.f32 %v1866_v52, %v4571_v15  ;;  %v1772_v20 = vmul.f32 %v3794_v0, %v1612_v40  ;;  %v1454_v53 = vadd.f32 1.4214138, %v1422_v16  ;;  %v4649_v41 = vmul.f32 0.70710677, %v4639_v51  ;;  %v4675_v35 = vld [vmem:[%s5892_s5] ss:$0 sm:$0xff] }
 0x174   : > { %v1837_v39 = vmul.f32 %v1805_v55, %v1165_v2  ;;  %v1551_v29 = vmul.f32 %v4606_v9, %v1519_v56  ;;  %v1264_v44 = vadd.f32 1.0, %v1232_v21  ;;  %v1069_v57 = vmul.f32 0.5, %v4486_v18 }
 0x175   : > { %v1804_v30 = vsub.f32 1.0, %v1772_v20  ;;  %v1486_v48 = vmul.f32 %v4626_v14, %v1454_v53  ;;  %v4656_v61 = vand.u32 2147483647, %v4649_v41  ;;  %3583 = vmatprep.mubr.msk.f32.mxu0 %vm372_vm0, %v1898_v32  ;;  %v1068_v45 = vmul.f32 0.5, %v4509_v27 }
 0x176   : > { %v4659_v15 = vpop.eup %3795  ;;  %v1164_v28 = vsel %vm1132_vm14, 1.0, %v5913_v36  ;;  %v1583_v2 = vadd.f32 0.2548296, %v1551_v29  ;;  %3801 = vrcp.f32 %v1264_v44  ;;  %3584 = vmatmul.mubr.msk.f32.gmra.mrb[10].mxu0 %vm372_vm0, %v1899_v58  ;;  %v1681_v13 = vmul.f32 %v1649_v34, %v4604_v62 }
 0x177   : > { %v3798_v18 = vpop.eup %3797  ;;  %v1836_v63 = vmul.f32 %v1804_v30, %v1164_v28  ;;  %v1518_v17 = vadd.f32 -0.28449672, %v1486_v48  ;;  %v1361_v25 = vmul.f32 1.0614054, %v4659_v15  ;;  %v1869_v5 = vadd.f32 1.0, %v1837_v39 }
 0x178   : > { %vm1135_vm15 = vcmp.ge.f32.partialorder %v4541_v46, 0.0  ;;  %v1615_v27 = vmul.f32 %v4606_v9, %v1583_v2  ;;  %v1235_v47 = vmul.f32 0.3275911, %v4656_v61  ;;  %v4679_v55 = vadd.f32 %v4675_v35, %v4382_v22 }
 0x179   : > { %v1868_v60 = vadd.f32 1.0, %v1836_v63  ;;  %v1550_v4 = vmul.f32 %v4626_v14, %v1518_v17  ;;  %v1393_v0 = vadd.f32 -1.4531521, %v1361_v25  ;;  %v1648_v49 = vsub.f32 0.0, %v1200_v8 }
 0x17a   : > { %v1775_v62 = vmul.f32 %v3798_v18, %v1615_v27  ;;  %v1267_v52 = vadd.f32 1.0, %v1235_v47  ;;  %v4683_v9 = vadd.f32 %v4675_v35, %v4384_v11  ;;  %v1730_v34 = vmul.f32 1.442695, %v1681_v13 }
 0x17b   : > { %v1900_v40 = vmul.f32 %v1868_v60, %v1068_v45  ;;  %v1582_v16 = vadd.f32 0.2548296, %v1550_v4  ;;  %v1425_v56 = vmul.f32 %v4659_v15, %v1393_v0  ;;  %v3800_v21 = vpop.eup %3799  ;;  %v1901_v32 = vmul.f32 %v1869_v5, %v1069_v57 }
 0x17c   : > { %v1807_v20 = vsub.f32 1.0, %v1775_v62  ;;  %3803 = vrcp.f32 %v1267_v52  ;;  %v4687_v53 = vmul.f32 0.70710677, %v4679_v55  ;;  %vm1134_vm1 = vcmp.ge.f32.partialorder %v4560_v59, 0.0 }
 0x17d   : > { %v1614_v22 = vmul.f32 %v4626_v14, %v1582_v16  ;;  %v1457_v58 = vadd.f32 1.4214138, %v1425_v56  ;;  %3586 = vmatprep.mubr.msk.f32.mxu0 %vm372_vm0, %v1900_v40  ;;  %v1680_v11 = vmul.f32 %v1648_v49, %v1200_v8  ;;  %v4696_v29 = vmul.f32 0.70710677, %v4683_v9 }
 0x17e   : > { %v4693_v39 = vand.u32 2147483647, %v4687_v53  ;;  %3587 = vmatmul.mubr.msk.f32.gmra.mrb[12].mxu0 %vm372_vm0, %v1901_v32  ;;  %v1071_v44 = vmul.f32 0.5, %v4527_v6  ;;  %v1167_v59 = vsel %vm1135_vm15, 1.0, %v5913_v36  ;;  %v1166_v48 = vsel %vm1134_vm1, 1.0, %v5913_v36 }
 0x17f   : > { %v1774_v57 = vmul.f32 %v3800_v21, %v1614_v22  ;;  %v1489_v14 = vmul.f32 %v4659_v15, %v1457_v58  ;;  %v1839_v8 = vmul.f32 %v1807_v20, %v1167_v59  ;;  %3805 = vpow2.f32 %v1730_v34 }
 0x180   : > { %v4704_v30 = vpop.eup %3801  ;;  %v1234_v45 = vmul.f32 0.3275911, %v4693_v39  ;;  %v4711_v6 = vadd.f32 %v4675_v35, %v4388_v43  ;;  %v1728_v46 = vmul.f32 1.442695, %v1680_v11  ;;  %v1651_v63 = vsub.f32 0.0, %v4656_v61 }
 0x181   : > { %v1806_v28 = vsub.f32 1.0, %v1774_v57  ;;  %v1521_v2 = vadd.f32 -0.28449672, %v1489_v14  ;;  %v1360_v18 = vmul.f32 1.0614054, %v4704_v30  ;;  %v1070_v13 = vmul.f32 0.5, %v4552_v38 }
 0x182   : > { %v1266_v17 = vadd.f32 1.0, %v1234_v45  ;;  %v1205_v25 = vand.u32 2147483647, %v4696_v29  ;;  %v1871_v60 = vadd.f32 1.0, %v1839_v8  ;;  %v4718_v4 = vmul.f32 0.5, %v4583_v37 }
 0x183   : > { %v1838_v5 = vmul.f32 %v1806_v28, %v1166_v48  ;;  %v1553_v27 = vmul.f32 %v4659_v15, %v1521_v2  ;;  %v1392_v47 = vadd.f32 -1.4531521, %v1360_v18  ;;  %v4722_v52 = vmul.f32 0.70710677, %v4711_v6 }
 0x184   : > { %3807 = vrcp.f32 %v1266_v17  ;;  %v1237_v0 = vmul.f32 0.3275911, %v1205_v25  ;;  %vm1137_vm2 = vcmp.ge.f32.partialorder %v4595_v42, 0.0  ;;  %v1683_v38 = vmul.f32 %v1651_v63, %v4656_v61 }
 0x185   : > { %v1870_v43 = vadd.f32 1.0, %v1838_v5  ;;  %v1585_v62 = vadd.f32 0.2548296, %v1553_v27  ;;  %v1424_v49 = vmul.f32 %v4704_v30, %v1392_v47  ;;  %3809 = vpow2.f32 %v1728_v46 }
 0x186   : > { %v4724_v40 = vpop.eup %3803  ;;  %v1269_v16 = vadd.f32 1.0, %v1237_v0  ;;  %v4731_v21 = vadd.f32 %v4675_v35, %v4405_v12  ;;  %v1903_v32 = vmul.f32 %v1871_v60, %v1071_v44  ;;  %v1204_v22 = vand.u32 2147483647, %v4722_v52 }
 0x187   : > { %v1902_v56 = vmul.f32 %v1870_v43, %v1070_v13  ;;  %v1456_v37 = vadd.f32 1.4214138, %v1424_v49  ;;  %v1363_v34 = vmul.f32 1.0614054, %v4724_v40  ;;  %v1617_v20 = vmul.f32 %v4659_v15, %v1585_v62 }
 0x188   : > { %3811 = vrcp.f32 %v1269_v16  ;;  %vm1136_vm3 = vcmp.ge.f32.partialorder %v4635_v19, 0.0  ;;  %v1650_v11 = vsub.f32 0.0, %v4693_v39  ;;  %v1169_v12 = vsel %vm1137_vm2, 1.0, %v5913_v36 }
 0x189   : > { %v1488_v58 = vmul.f32 %v4704_v30, %v1456_v37  ;;  %v1395_v61 = vadd.f32 -1.4531521, %v1363_v34  ;;  %3589 = vmatprep.mubr.msk.f32.mxu0 %vm372_vm0, %v1902_v56  ;;  %v3806_v59 = vpop.eup %3805  ;;  %v4743_v44 = vmul.f32 0.5, %v4617_v50  ;;  %v1653_v15 = vsub.f32 0.0, %v1205_v25 }
 0x18a   : > { %v1236_v57 = vmul.f32 0.3275911, %v1204_v22  ;;  %3590 = vmatmul.mubr.msk.f32.gmra.mrb[14].mxu0 %vm372_vm0, %v1903_v32  ;;  %v1734_v48 = vmul.f32 1.442695, %v1683_v38  ;;  %v4748_v45 = vmul.f32 0.70710677, %v4731_v21  ;;  %v1777_v28 = vmul.f32 %v3806_v59, %v1617_v20 }
 0x18b   : > { %v1520_v14 = vadd.f32 -0.28449672, %v1488_v58  ;;  %v1427_v8 = vmul.f32 %v4724_v40, %v1395_v61  ;;  %v1168_v42 = vsel %vm1136_vm3, 1.0, %v5913_v36  ;;  %v4754_v2 = vmul.f32 0.5, %v4639_v51 }
 0x18c   : > { %v1268_v50 = vadd.f32 1.0, %v1236_v57  ;;  %vm1139_vm4 = vcmp.ge.f32.partialorder %v4649_v41, 0.0  ;;  %v1682_v63 = vmul.f32 %v1650_v11, %v4693_v39  ;;  %v1685_v13 = vmul.f32 %v1653_v15, %v1205_v25 }
 0x18d   : > { %v1552_v18 = vmul.f32 %v4704_v30, %v1520_v14  ;;  %v1459_v46 = vadd.f32 1.4214138, %v1427_v8  ;;  %v1207_v5 = vand.u32 2147483647, %v4748_v45  ;;  %v4764_v19 = vadd.f32 %v4675_v35, %v4410_v10 }
 0x18e   : > { %v4759_v17 = vpop.eup %3807  ;;  %3813 = vrcp.f32 %v1268_v50  ;;  %v1809_v60 = vsub.f32 1.0, %v1777_v28  ;;  %v4769_v39 = vsel %vm1139_vm4, 1.0, %v5913_v36  ;;  %v4772_v25 = vmul.f32 0.5, %v4679_v55 }
 0x18f   : > { %v1584_v51 = vadd.f32 0.2548296, %v1552_v18  ;;  %v1491_v27 = vmul.f32 %v4724_v40, %v1459_v46  ;;  %3815 = vpow2.f32 %v1734_v48  ;;  %v1362_v47 = vmul.f32 1.0614054, %v4759_v17  ;;  %v3810_v41 = vpop.eup %3809 }
 0x190   : > { %v1239_v0 = vmul.f32 0.3275911, %v1207_v5  ;;  %v1732_v49 = vmul.f32 1.442695, %v1682_v63  ;;  %v1738_v16 = vmul.f32 1.442695, %v1685_v13  ;;  %v1841_v61 = vmul.f32 %v1809_v60, %v1169_v12 }
 0x191   : > { %v1616_v43 = vmul.f32 %v4704_v30, %v1584_v51  ;;  %v1523_v62 = vadd.f32 -0.28449672, %v1491_v27  ;;  %v1394_v10 = vadd.f32 -1.4531521, %v1362_v47  ;;  %v1652_v56 = vsub.f32 0.0, %v1204_v22 }
 0x192   : > { %v4775_v38 = vpop.eup %3811  ;;  %v1271_v37 = vadd.f32 1.0, %v1239_v0  ;;  %v4778_v34 = vmul.f32 0.70710677, %v4764_v19  ;;  %v4788_v11 = vadd.f32 %v4675_v35, %v4414_v31  ;;  %v4791_v14 = vmul.f32 0.5, %v4683_v9 }
 0x193   : > { %v1776_v32 = vmul.f32 %v3810_v41, %v1616_v43  ;;  %v1555_v20 = vmul.f32 %v4724_v40, %v1523_v62  ;;  %v1426_v55 = vmul.f32 %v4759_v17, %v1394_v10  ;;  %v1365_v58 = vmul.f32 1.0614054, %v4775_v38 }
 0x194   : > { %3817 = vrcp.f32 %v1271_v37  ;;  %v4784_v30 = vand.u32 2147483647, %v4778_v34  ;;  %v1684_v48 = vmul.f32 %v1652_v56, %v1204_v22  ;;  %v1655_v46 = vsub.f32 0.0, %v1207_v5 }
 0x195   : > { %v1808_v59 = vsub.f32 1.0, %v1776_v32  ;;  %v1587_v15 = vadd.f32 0.2548296, %v1555_v20  ;;  %v1458_v57 = vadd.f32 1.4214138, %v1426_v55  ;;  %3819 = vpow2.f32 %v1732_v49 }
 0x196   : > { %v1397_v8 = vadd.f32 -1.4531521, %v1365_v58  ;;  %v1238_v28 = vmul.f32 0.3275911, %v4784_v30  ;;  %v1873_v31 = vadd.f32 1.0, %v1841_v61  ;;  %3821 = vpow2.f32 %v1738_v16 }
 0x197   : > { %v1840_v12 = vmul.f32 %v1808_v59, %v1168_v42  ;;  %v1619_v50 = vmul.f32 %v4724_v40, %v1587_v15  ;;  %v1490_v18 = vmul.f32 %v4759_v17, %v1458_v57  ;;  %v4800_v9 = vmul.f32 0.70710677, %v4788_v11 }
 0x198   : > { %v4796_v63 = vpop.eup %3813  ;;  %v1429_v13 = vmul.f32 %v4775_v38, %v1397_v8  ;;  %v1270_v51 = vadd.f32 1.0, %v1238_v28  ;;  %v1736_v60 = vmul.f32 1.442695, %v1684_v48  ;;  %v1687_v10 = vmul.f32 %v1655_v46, %v1207_v5 }
 0x199   : > { %v3816_v27 = vpop.eup %3815  ;;  %v1872_v47 = vadd.f32 1.0, %v1840_v12  ;;  %v1522_v22 = vadd.f32 -0.28449672, %v1490_v18  ;;  %v1364_v42 = vmul.f32 1.0614054, %v4796_v63  ;;  %v1905_v49 = vmul.f32 %v1873_v31, %v4718_v4 }
 0x19a   : > { %v1779_v41 = vmul.f32 %v3816_v27, %v1619_v50  ;;  %v1461_v40 = vadd.f32 1.4214138, %v1429_v13  ;;  %3823 = vrcp.f32 %v1270_v51  ;;  %v4808_v37 = vand.u32 2147483647, %v4800_v9 }
 0x19b   : > { %v1904_v0 = vmul.f32 %v1872_v47, %v4743_v44  ;;  %v1554_v43 = vmul.f32 %v4759_v17, %v1522_v22  ;;  %v1396_v62 = vadd.f32 -1.4531521, %v1364_v42  ;;  %v4812_v16 = vadd.f32 %v4675_v35, %v4419_v3 }
 0x19c   : > { %v1493_v56 = vmul.f32 %v4775_v38, %v1461_v40  ;;  %vm1138_vm5 = vcmp.ge.f32.partialorder %v4687_v53, 0.0  ;;  %vm1141_vm6 = vcmp.ge.f32.partialorder %v4696_v29, 0.0  ;;  %v1811_v4 = vsub.f32 1.0, %v1779_v41 }
 0x19d   : > { %v1586_v32 = vadd.f32 0.2548296, %v1554_v43  ;;  %v1428_v44 = vmul.f32 %v4796_v63, %v1396_v62  ;;  %3592 = vmatprep.mubr.msk.f32.mxu0 %vm372_vm0, %v1904_v0  ;;  %3825 = vpow2.f32 %v1736_v60  ;;  %v1241_v55 = vmul.f32 0.3275911, %v4808_v37 }
 0x19e   : > { %v4818_v5 = vpop.eup %3817  ;;  %v1525_v20 = vadd.f32 -0.28449672, %v1493_v56  ;;  %3593 = vmatmul.mubr.msk.f32.gmra.mrb[16].mxu0 %vm372_vm0, %v1905_v49  ;;  %v1742_v59 = vmul.f32 1.442695, %v1687_v10  ;;  %v1654_v8 = vsub.f32 0.0, %v4784_v30  ;;  %v1170_v12 = vsel %vm1138_vm5, 1.0, %v5913_v36 }
 0x19f   : > { %v1618_v3 = vmul.f32 %v4759_v17, %v1586_v32  ;;  %v1460_v58 = vadd.f32 1.4214138, %v1428_v44  ;;  %v1367_v61 = vmul.f32 1.0614054, %v4818_v5  ;;  %v3820_v15 = vpop.eup %3819  ;;  %v1273_v48 = vadd.f32 1.0, %v1241_v55 }
 0x1a0   : > { %v1557_v57 = vmul.f32 %v4775_v38, %v1525_v20  ;;  %v4827_v28 = vmul.f32 0.70710677, %v4812_v16  ;;  %v1843_v46 = vmul.f32 %v1811_v4, %v4769_v39  ;;  %v4836_v13 = vadd.f32 %v4675_v35, %v4434_v23  ;;  %v3822_v51 = vpop.eup %3821 }
 0x1a1   : > { %v1778_v50 = vmul.f32 %v3820_v15, %v1618_v3  ;;  %v1492_v17 = vmul.f32 %v4796_v63, %v1460_v58  ;;  %v1399_v18 = vadd.f32 -1.4531521, %v1367_v61  ;;  %3827 = vrcp.f32 %v1273_v48 }
 0x1a2   : > { %v1589_v31 = vadd.f32 0.2548296, %v1557_v57  ;;  %v1173_v47 = vsel %vm1141_vm6, 1.0, %v5913_v36  ;;  %3829 = vpow2.f32 %v1742_v59  ;;  %v1686_v39 = vmul.f32 %v1654_v8, %v4784_v30 }
 0x1a3   : > { %v1810_v27 = vsub.f32 1.0, %v1778_v50  ;;  %v1524_v53 = vadd.f32 -0.28449672, %v1492_v17  ;;  %v1431_v22 = vmul.f32 %v4818_v5, %v1399_v18  ;;  %v1208_v40 = vand.u32 2147483647, %v4827_v28 }
 0x1a4   : > { %v4842_v42 = vpop.eup %3823  ;;  %v1621_v41 = vmul.f32 %v4775_v38, %v1589_v31  ;;  %v1875_v29 = vadd.f32 1.0, %v1843_v46  ;;  %v4850_v49 = vmul.f32 0.70710677, %v4836_v13  ;;  %v1740_v20 = vmul.f32 1.442695, %v1686_v39 }
 0x1a5   : > { %v1842_v23 = vmul.f32 %v1810_v27, %v1170_v12  ;;  %v1556_v60 = vmul.f32 %v4796_v63, %v1524_v53  ;;  %v1463_v0 = vadd.f32 1.4214138, %v1431_v22  ;;  %v1366_v43 = vmul.f32 1.0614054, %v4842_v42 }
 0x1a6   : > { %v1781_v62 = vmul.f32 %v3822_v51, %v1621_v41  ;;  %v1240_v10 = vmul.f32 0.3275911, %v1208_v40  ;;  %v1657_v55 = vsub.f32 0.0, %v4808_v37  ;;  %v1907_v57 = vmul.f32 %v1875_v29, %v4754_v2 }
 0x1a7   : > { %v1874_v56 = vadd.f32 1.0, %v1842_v23  ;;  %v1588_v32 = vadd.f32 0.2548296, %v1556_v60  ;;  %v1495_v38 = vmul.f32 %v4818_v5, %v1463_v0  ;;  %v1398_v44 = vadd.f32 -1.4531521, %v1366_v43  ;;  %v3826_v30 = vpop.eup %3825 }
 0x1a8   : > { %v1813_v4 = vsub.f32 1.0, %v1781_v62  ;;  %v1272_v3 = vadd.f32 1.0, %v1240_v10  ;;  %v1076_v8 = vmul.f32 0.5, %v4711_v6  ;;  %vm1140_vm7 = vcmp.ge.f32.partialorder %v4722_v52, 0.0 }
 0x1a9   : > { %v1906_v58 = vmul.f32 %v1874_v56, %v4772_v25  ;;  %v1620_v61 = vmul.f32 %v4796_v63, %v1588_v32  ;;  %v1527_v59 = vadd.f32 -0.28449672, %v1495_v38  ;;  %v1430_v15 = vmul.f32 %v4842_v42, %v1398_v44 }
 0x1aa   : > { %3831 = vrcp.f32 %v1272_v3  ;;  %v4862_v17 = vand.u32 2147483647, %v4850_v49  ;;  %v1845_v63 = vmul.f32 %v1813_v4, %v1173_v47  ;;  %v1689_v2 = vmul.f32 %v1657_v55, %v4808_v37 }
 0x1ab   : > { %v1780_v48 = vmul.f32 %v3826_v30, %v1620_v61  ;;  %v1559_v12 = vmul.f32 %v4818_v5, %v1527_v59  ;;  %v1462_v50 = vadd.f32 1.4214138, %v1430_v15  ;;  %3595 = vmatprep.mubr.msk.f32.mxu0 %vm372_vm0, %v1906_v58  ;;  %v4865_v25 = vpop.eup %3827  ;;  %3833 = vpow2.f32 %v1740_v20 }
 0x1ac   : > { %v4870_v6 = vadd.f32 %v4675_v35, %v4441_v7  ;;  %3596 = vmatmul.mubr.msk.f32.gmra.mrb[18].mxu0 %vm372_vm0, %v1907_v57  ;;  %v1369_v51 = vmul.f32 1.0614054, %v4865_v25  ;;  %v3830_v27 = vpop.eup %3829  ;;  %v1172_v47 = vsel %vm1140_vm7, 1.0, %v5913_v36  ;;  %vm1143_vm8 = vcmp.ge.f32.partialorder %v4748_v45, 0.0 }
 0x1ad   : > { %v1812_v18 = vsub.f32 1.0, %v1780_v48  ;;  %v1591_v46 = vadd.f32 0.2548296, %v1559_v12  ;;  %v1494_v31 = vmul.f32 %v4842_v42, %v1462_v50  ;;  %v1656_v37 = vsub.f32 0.0, %v1208_v40 }
 0x1ae   : > { %v1243_v53 = vmul.f32 0.3275911, %v4862_v17  ;;  %v1401_v39 = vadd.f32 -1.4531521, %v1369_v51  ;;  %v1877_v23 = vadd.f32 1.0, %v1845_v63  ;;  %v1175_v55 = vsel %vm1143_vm8, 1.0, %v5913_v36 }
 0x1af   : > { %v1844_v7 = vmul.f32 %v1812_v18, %v1172_v47  ;;  %v1623_v22 = vmul.f32 %v4818_v5, %v1591_v46  ;;  %v1526_v41 = vadd.f32 -0.28449672, %v1494_v31  ;;  %v1746_v60 = vmul.f32 1.442695, %v1689_v2 }
 0x1b0   : > { %v1275_v0 = vadd.f32 1.0, %v1243_v53  ;;  %v4882_v43 = vmul.f32 0.70710677, %v4870_v6  ;;  %v1433_v10 = vmul.f32 %v4865_v25, %v1401_v39  ;;  %v1688_v56 = vmul.f32 %v1656_v37, %v1208_v40 }
 0x1b1   : > { %v1876_v29 = vadd.f32 1.0, %v1844_v7  ;;  %v1783_v62 = vmul.f32 %v3830_v27, %v1623_v22  ;;  %v1558_v52 = vmul.f32 %v4842_v42, %v1526_v41  ;;  %v4889_v5 = vadd.f32 %v4675_v35, %v4451_v33 }
 0x1b2   : > { %3835 = vrcp.f32 %v1275_v0  ;;  %v1210_v32 = vand.u32 2147483647, %v4882_v43  ;;  %v1465_v30 = vadd.f32 1.4214138, %v1433_v10  ;;  %v1909_v20 = vmul.f32 %v1877_v23, %v4791_v14 }
 0x1b3   : > { %v1908_v38 = vmul.f32 %v1876_v29, %v1076_v8  ;;  %v1590_v44 = vadd.f32 0.2548296, %v1558_v52  ;;  %v1815_v3 = vsub.f32 1.0, %v1783_v62  ;;  %3837 = vpow2.f32 %v1746_v60 }
 0x1b4   : > { %v4891_v4 = vpop.eup %3831  ;;  %v1242_v40 = vmul.f32 0.3275911, %v1210_v32  ;;  %v1497_v61 = vmul.f32 %v4865_v25, %v1465_v30  ;;  %vm1142_vm9 = vcmp.ge.f32.partialorder %v4778_v34, 0.0  ;;  %v1744_v15 = vmul.f32 1.442695, %v1688_v56 }
 0x1b5   : > { %v1622_v58 = vmul.f32 %v4842_v42, %v1590_v44  ;;  %v1368_v33 = vmul.f32 1.0614054, %v4891_v4  ;;  %3598 = vmatprep.mubr.msk.f32.mxu0 %vm372_vm0, %v1908_v38  ;;  %v3834_v59 = vpop.eup %3833  ;;  %v4903_v57 = vmul.f32 0.70710677, %v4889_v5  ;;  %v1659_v48 = vsub.f32 0.0, %v4862_v17 }
 0x1b6   : > { %v1274_v14 = vadd.f32 1.0, %v1242_v40  ;;  %3599 = vmatmul.mubr.msk.f32.gmra.mrb[20].mxu0 %vm372_vm0, %v1909_v20  ;;  %v1529_v8 = vadd.f32 -0.28449672, %v1497_v61  ;;  %v1847_v12 = vmul.f32 %v1815_v3, %v1175_v55  ;;  %v4910_v63 = vadd.f32 %v4675_v35, %v4459_v54 }
 0x1b7   : > { %v1782_v45 = vmul.f32 %v3834_v59, %v1622_v58  ;;  %v1400_v42 = vadd.f32 -1.4531521, %v1368_v33  ;;  %v1213_v50 = vand.u32 2147483647, %v4903_v57  ;;  %v1079_v2 = vmul.f32 0.5, %v4731_v21 }
 0x1b8   : > { %3839 = vrcp.f32 %v1274_v14  ;;  %v1561_v46 = vmul.f32 %v4865_v25, %v1529_v8  ;;  %v1078_v51 = vmul.f32 0.5, %v4764_v19  ;;  %v1174_v27 = vsel %vm1142_vm9, 1.0, %v5913_v36 }
 0x1b9   : > { %v1814_v18 = vsub.f32 1.0, %v1782_v45  ;;  %v1432_v31 = vmul.f32 %v4891_v4, %v1400_v42  ;;  %v1658_v47 = vsub.f32 0.0, %v1210_v32  ;;  %v1245_v37 = vmul.f32 0.3275911, %v1213_v50 }
 0x1ba   : > { %v1593_v7 = vadd.f32 0.2548296, %v1561_v46  ;;  %v1691_v54 = vmul.f32 %v1659_v48, %v4862_v17  ;;  %v1879_v21 = vadd.f32 1.0, %v1847_v12  ;;  %3841 = vpow2.f32 %v1744_v15 }
 0x1bb   : > { %v1846_v53 = vmul.f32 %v1814_v18, %v1174_v27  ;;  %v1464_v22 = vadd.f32 1.4214138, %v1432_v31  ;;  %v1277_v39 = vadd.f32 1.0, %v1245_v37  ;;  %v4923_v23 = vmul.f32 0.70710677, %v4910_v63 }
 0x1bc   : > { %v4920_v41 = vpop.eup %3835  ;;  %v1625_v60 = vmul.f32 %v4865_v25, %v1593_v7  ;;  %v1690_v29 = vmul.f32 %v1658_v47, %v1210_v32  ;;  %v4933_v17 = vadd.f32 %v4675_v35, %v4469_v26  ;;  %v1750_v44 = vmul.f32 1.442695, %v1691_v54 }
 0x1bd   : > { %v1878_v19 = vadd.f32 1.0, %v1846_v53  ;;  %v1496_v34 = vmul.f32 %v4891_v4, %v1464_v22  ;;  %v1371_v0 = vmul.f32 1.0614054, %v4920_v41  ;;  %3843 = vrcp.f32 %v1277_v39  ;;  %v3838_v52 = vpop.eup %3837 }
 0x1be   : > { %v4929_v62 = vand.u32 2147483647, %v4923_v23  ;;  %v1911_v30 = vmul.f32 %v1879_v21, %v1079_v2  ;;  %v1785_v25 = vmul.f32 %v3838_v52, %v1625_v60  ;;  %vm1145_vm10 = vcmp.ge.f32.partialorder %v4800_v9, 0.0 }
 0x1bf   : > { %v1910_v10 = vmul.f32 %v1878_v19, %v1078_v51  ;;  %v1528_v56 = vadd.f32 -0.28449672, %v1496_v34  ;;  %v1403_v38 = vadd.f32 -1.4531521, %v1371_v0  ;;  %vm1144_vm11 = vcmp.ge.f32.partialorder %v4827_v28, 0.0 }
 0x1c0   : > { %v1244_v20 = vmul.f32 0.3275911, %v4929_v62  ;;  %v1748_v3 = vmul.f32 1.442695, %v1690_v29  ;;  %v1661_v40 = vsub.f32 0.0, %v1213_v50  ;;  %3845 = vpow2.f32 %v1750_v44 }
 0x1c1   : > { %v1560_v32 = vmul.f32 %v4891_v4, %v1528_v56  ;;  %v1435_v55 = vmul.f32 %v4920_v41, %v1403_v38  ;;  %3601 = vmatprep.mubr.msk.f32.mxu0 %vm372_vm0, %v1910_v10  ;;  %v4944_v61 = vmul.f32 0.70710677, %v4933_v17  ;;  %v1817_v14 = vsub.f32 1.0, %v1785_v25 }
 0x1c2   : > { %v4941_v26 = vpop.eup %3839  ;;  %v1276_v58 = vadd.f32 1.0, %v1244_v20  ;;  %3602 = vmatmul.mubr.msk.f32.gmra.mrb[22].mxu0 %vm372_vm0, %v1911_v30  ;;  %v4953_v8 = vadd.f32 %v4675_v35, %v4479_v24  ;;  %v1177_v18 = vsel %vm1145_vm10, 1.0, %v5913_v36  ;;  %v1693_v46 = vmul.f32 %v1661_v40, %v1213_v50 }
 0x1c3   : > { %v1592_v33 = vadd.f32 0.2548296, %v1560_v32  ;;  %v1467_v59 = vadd.f32 1.4214138, %v1435_v55  ;;  %v1370_v15 = vmul.f32 1.0614054, %v4941_v26  ;;  %v1849_v47 = vmul.f32 %v1817_v14, %v1177_v18 }
 0x1c4   : > { %3847 = vrcp.f32 %v1276_v58  ;;  %v4949_v45 = vand.u32 2147483647, %v4944_v61  ;;  %v3842_v2 = vpop.eup %3841  ;;  %v1176_v51 = vsel %vm1144_vm11, 1.0, %v5913_v36  ;;  %v4968_v53 = vmul.f32 0.70710677, %v4953_v8 }
 0x1c5   : > { %v1624_v42 = vmul.f32 %v4891_v4, %v1592_v33  ;;  %v1499_v48 = vmul.f32 %v4920_v41, %v1467_v59  ;;  %v1402_v12 = vadd.f32 -1.4531521, %v1370_v15  ;;  %3849 = vpow2.f32 %v1748_v3 }
 0x1c6   : > { %v1247_v31 = vmul.f32 0.3275911, %v4949_v45  ;;  %v1754_v28 = vmul.f32 1.442695, %v1693_v46  ;;  %v1660_v54 = vsub.f32 0.0, %v4929_v62  ;;  %v1881_v0 = vadd.f32 1.0, %v1849_v47 }
 0x1c7   : > { %v1784_v27 = vmul.f32 %v3842_v2, %v1624_v42  ;;  %v1531_v24 = vadd.f32 -0.28449672, %v1499_v48  ;;  %v1434_v35 = vmul.f32 %v4941_v26, %v1402_v12  ;;  %v4965_v4 = vpop.eup %3843  ;;  %v4974_v21 = vand.u32 2147483647, %v4968_v53 }
 0x1c8   : > { %v1279_v37 = vadd.f32 1.0, %v1247_v31  ;;  %v1373_v22 = vmul.f32 1.0614054, %v4965_v4  ;;  %v1080_v29 = vmul.f32 0.5, %v4812_v16  ;;  %v1081_v20 = vmul.f32 0.5, %v4788_v11 }
 0x1c9   : > { %v1816_v9 = vsub.f32 1.0, %v1784_v27  ;;  %v1563_v50 = vmul.f32 %v4920_v41, %v1531_v24  ;;  %v1466_v7 = vadd.f32 1.4214138, %v1434_v35  ;;  %v1246_v52 = vmul.f32 0.3275911, %v4974_v21 }
 0x1ca   : > { %3851 = vrcp.f32 %v1279_v37  ;;  %v1405_v34 = vadd.f32 -1.4531521, %v1373_v22  ;;  %v3846_v10 = vpop.eup %3845  ;;  %v1692_v32 = vmul.f32 %v1660_v54, %v4929_v62  ;;  %v1913_v33 = vmul.f32 %v1881_v0, %v1081_v20 }
 0x1cb   : > { %v1848_v39 = vmul.f32 %v1816_v9, %v1176_v51  ;;  %v1595_v19 = vadd.f32 0.2548296, %v1563_v50  ;;  %v1498_v60 = vmul.f32 %v4941_v26, %v1466_v7  ;;  %3853 = vpow2.f32 %v1754_v28 }
 0x1cc   : > { %v1437_v30 = vmul.f32 %v4965_v4, %v1405_v34  ;;  %v1278_v55 = vadd.f32 1.0, %v1246_v52  ;;  %vm1147_vm12 = vcmp.ge.f32.partialorder %v4850_v49, 0.0  ;;  %v1752_v2 = vmul.f32 1.442695, %v1692_v32 }
 0x1cd   : > { %v1880_v56 = vadd.f32 1.0, %v1848_v39  ;;  %v1627_v38 = vmul.f32 %v4920_v41, %v1595_v19  ;;  %v1530_v44 = vadd.f32 -0.28449672, %v1498_v60  ;;  %v1663_v41 = vsub.f32 0.0, %v4949_v45 }
 0x1ce   : > { %v4981_v25 = vpop.eup %3847  ;;  %v1469_v58 = vadd.f32 1.4214138, %v1437_v30  ;;  %3855 = vrcp.f32 %v1278_v55  ;;  %v1179_v46 = vsel %vm1147_vm12, 1.0, %v5913_v36  ;;  %vm1146_vm13 = vcmp.ge.f32.partialorder %v4882_v43, 0.0 }
 0x1cf   : > { %v1912_v3 = vmul.f32 %v1880_v56, %v1080_v29  ;;  %v1787_v40 = vmul.f32 %v3846_v10, %v1627_v38  ;;  %v1562_v16 = vmul.f32 %v4941_v26, %v1530_v44  ;;  %v1372_v59 = vmul.f32 1.0614054, %v4981_v25  ;;  %v3850_v62 = vpop.eup %3849 }
 0x1d0   : > { %v1501_v11 = vmul.f32 %v4965_v4, %v1469_v58  ;;  %v1695_v49 = vmul.f32 %v1663_v41, %v4949_v45  ;;  %v1662_v37 = vsub.f32 0.0, %v4974_v21  ;;  %3857 = vpow2.f32 %v1752_v2 }
 0x1d1   : > { %v1594_v15 = vadd.f32 0.2548296, %v1562_v16  ;;  %3604 = vmatprep.mubr.msk.f32.mxu0 %vm372_vm0, %v1912_v3  ;;  %v1819_v14 = vsub.f32 1.0, %v1787_v40  ;;  %v1404_v42 = vadd.f32 -1.4531521, %v1372_v59  ;;  %v1178_v22 = vsel %vm1146_vm13, 1.0, %v5913_v36 }
 0x1d2   : > { %3605 = vmatmul.mubr.msk.f32.gmra.mrb[24].mxu0 %vm372_vm0, %v1913_v33  ;;  %v1533_v12 = vadd.f32 -0.28449672, %v1501_v11  ;;  %v1758_v45 = vmul.f32 1.442695, %v1695_v49  ;;  %v1082_v34 = vmul.f32 0.5, %v4870_v6  ;;  %v1694_v29 = vmul.f32 %v1662_v37, %v4974_v21 }
 0x1d3   : > { %v1626_v48 = vmul.f32 %v4941_v26, %v1594_v15  ;;  %v1436_v31 = vmul.f32 %v4981_v25, %v1404_v42  ;;  %v1851_v35 = vmul.f32 %v1819_v14, %v1179_v46  ;;  %v1083_v44 = vmul.f32 0.5, %v4836_v13 }
 0x1d4   : > { %v3852_v18 = vpop.eup %3851  ;;  %v1565_v27 = vmul.f32 %v4965_v4, %v1533_v12  ;;  %3859 = vpow2.f32 %v1758_v45  ;;  %v1756_v40 = vmul.f32 1.442695, %v1694_v29  ;;  %vm1149_vm14 = vcmp.ge.f32.partialorder %v4903_v57, 0.0 }
 0x1d5   : > { %v1786_v51 = vmul.f32 %v3850_v62, %v1626_v48  ;;  %v1375_v24 = vmul.f32 1.0614054, %v3852_v18  ;;  %v1468_v47 = vadd.f32 1.4214138, %v1436_v31  ;;  %v3854_v7 = vpop.eup %3853  ;;  %v1883_v60 = vadd.f32 1.0, %v1851_v35 }
 0x1d6   : > { %v1597_v9 = vadd.f32 0.2548296, %v1565_v27  ;;  %v1181_v41 = vsel %vm1149_vm14, 1.0, %v5913_v36  ;;  %vm1148_vm15 = vcmp.ge.f32.partialorder %v4923_v23, 0.0  ;;  %3861 = vpow2.f32 %v1756_v40 }
 0x1d7   : > { %v1818_v26 = vsub.f32 1.0, %v1786_v51  ;;  %v1407_v50 = vadd.f32 -1.4531521, %v1375_v24  ;;  %v1500_v28 = vmul.f32 %v4981_v25, %v1468_v47  ;;  %v1915_v55 = vmul.f32 %v1883_v60, %v1083_v44 }
 0x1d8   : > { %v1629_v43 = vmul.f32 %v4965_v4, %v1597_v9  ;;  %v3856_v19 = vpop.eup %3855  ;;  %v1180_v42 = vsel %vm1148_vm15, 1.0, %v5913_v36  ;;  %v1084_v51 = vmul.f32 0.5, %v4910_v63  ;;  %v1085_v23 = vmul.f32 0.5, %v4889_v5 }
 0x1d9   : > { %v1850_v54 = vmul.f32 %v1818_v26, %v1178_v22  ;;  %v1439_v39 = vmul.f32 %v3852_v18, %v1407_v50  ;;  %v1532_v0 = vadd.f32 -0.28449672, %v1500_v28  ;;  %v1374_v38 = vmul.f32 1.0614054, %v3856_v19 }
 0x1da   : > { %v1789_v10 = vmul.f32 %v3854_v7, %v1629_v43  ;;  %v3858_v13 = vpop.eup %3857  ;;  %vm1151_vm1 = vcmp.ge.f32.partialorder %v4944_v61, 0.0  ;;  %vm1150_vm2 = vcmp.ge.f32.partialorder %v4968_v53, 0.0  ;;  %v1086_v61 = vmul.f32 0.5, %v4953_v8  ;;  %v5028_v53 = vld [vmem:[%s5890_s3] ss:$0 sm:$0xff] }
 0x1db   : > { %v1882_v52 = vadd.f32 1.0, %v1850_v54  ;;  %v1471_v56 = vadd.f32 1.4214138, %v1439_v39  ;;  %v1564_v30 = vmul.f32 %v4981_v25, %v1532_v0  ;;  %v1406_v4 = vadd.f32 -1.4531521, %v1374_v38 }
 0x1dc   : > { %v1821_v6 = vsub.f32 1.0, %v1789_v10  ;;  %v1182_v5 = vsel %vm1150_vm2, 1.0, %v5913_v36  ;;  %v1087_v54 = vmul.f32 0.5, %v4933_v17  ;;  %v5034_v8 = vld [vmem:[%s5894_s7] ss:$0 sm:$0xff] }
 0x1dd   : > { %v1914_v20 = vmul.f32 %v1882_v52, %v1082_v34  ;;  %v1503_v32 = vmul.f32 %v3852_v18, %v1471_v56  ;;  %v1596_v3 = vadd.f32 0.2548296, %v1564_v30  ;;  %v1438_v21 = vmul.f32 %v3856_v19, %v1406_v4 }
 0x1de   : > { %v1853_v11 = vmul.f32 %v1821_v6, %v1181_v41  ;;  %v5041_v52 = vadd.f32 %v5034_v8, %v5028_v53 }
 0x1df   : > { %v1535_v16 = vadd.f32 -0.28449672, %v1503_v32  ;;  %3607 = vmatprep.mubr.msk.f32.mxu0 %vm372_vm0, %v1914_v20  ;;  %v1628_v58 = vmul.f32 %v4981_v25, %v1596_v3  ;;  %v1470_v59 = vadd.f32 1.4214138, %v1438_v21  ;;  %v3860_v25 = vpop.eup %3859 }
 0x1e0   : > { %3608 = vmatmul.mubr.msk.f32.gmra.mrb[26].mxu0 %vm372_vm0, %v1915_v55  ;;  %v1885_v46 = vadd.f32 1.0, %v1853_v11  ;;  %v3862_v9 = vpop.eup %3861 }
 0x1e1   : > { %v1567_v33 = vmul.f32 %v3852_v18, %v1535_v16  ;;  %v1788_v15 = vmul.f32 %v3858_v13, %v1628_v58  ;;  %v1502_v62 = vmul.f32 %v3856_v19, %v1470_v59 }
 0x1e2   : > { %v1917_v37 = vmul.f32 %v1885_v46, %v1085_v23 }
 0x1e3   : > { %v1599_v57 = vadd.f32 0.2548296, %v1567_v33  ;;  %v1820_v14 = vsub.f32 1.0, %v1788_v15  ;;  %v1534_v12 = vadd.f32 -0.28449672, %v1502_v62 }
 0x1e5   : > { %v1631_v48 = vmul.f32 %v3852_v18, %v1599_v57  ;;  %v1852_v2 = vmul.f32 %v1820_v14, %v1180_v42  ;;  %v1566_v49 = vmul.f32 %v3856_v19, %v1534_v12  ;;  %v1183_v18 = vsel %vm1151_vm1, 1.0, %v5913_v36 }
 0x1e7   : > { %v1791_v31 = vmul.f32 %v3860_v25, %v1631_v48  ;;  %v1884_v27 = vadd.f32 1.0, %v1852_v2  ;;  %v1598_v24 = vadd.f32 0.2548296, %v1566_v49 }
 0x1e9   : > { %v1916_v35 = vmul.f32 %v1884_v27, %v1084_v51  ;;  %v1823_v47 = vsub.f32 1.0, %v1791_v31  ;;  %v1630_v26 = vmul.f32 %v3856_v19, %v1598_v24 }
 0x1eb   : > { %3610 = vmatprep.mubr.msk.f32.mxu0 %vm372_vm0, %v1916_v35  ;;  %v1790_v50 = vmul.f32 %v3862_v9, %v1630_v26  ;;  %v1855_v63 = vmul.f32 %v1823_v47, %v1183_v18 }
 0x1ec   : > { %3611 = vmatmul.mubr.msk.f32.gmra.mrb[28].mxu0 %vm372_vm0, %v1917_v37 }
 0x1ed   : > { %v1822_v7 = vsub.f32 1.0, %v1790_v50  ;;  %v1887_v28 = vadd.f32 1.0, %v1855_v63 }
 0x1ef   : > { %v1854_v22 = vmul.f32 %v1822_v7, %v1182_v5  ;;  %v1919_v39 = vmul.f32 %v1887_v28, %v1087_v54 }
 0x1f1   : > { %v1886_v45 = vadd.f32 1.0, %v1854_v22 }
 0x1f3   : > { %v1918_v43 = vmul.f32 %v1886_v45, %v1086_v61 }
 0x1f5   : > { %3613 = vmatprep.mubr.msk.f32.mxu0 %vm372_vm0, %v1918_v43 }
 0x1f6   : > { %3614 = vmatmul.mubr.msk.f32.gmra.mrb[30].mxu0 %vm372_vm0, %v1919_v39 }
 0x20f   : > { %v3570_v19 = vpop.f32.mrb[0].mxu0 }
 0x210   : > { %v3630_v60 = vadd.f32 %v3570_v19, %v5028_v53  ;;  %v2091_v34 = vpop.f32.mrb[1].mxu0 }
 0x211   : > { %v3632_v17 = vadd.f32 %v5028_v53, %v2091_v34 }
 0x212   : > { %v3631_v0 = vadd.f32 %v3630_v60, %v5034_v8 }
 0x213   : > { %v3633_v29 = vadd.f32 %v3632_v17, %v5034_v8 }
 0x214   : > { %v2315_v10 = vmul.f32 0.70710677, %v3631_v0  ;;  %v3573_v44 = vpop.f32.mrb[2].mxu0  ;;  %v5051_v57 = vmul.f32 0.5, %v3631_v0 }
 0x215   : > { %v2314_v56 = vmul.f32 0.70710677, %v3633_v29  ;;  %v3635_v20 = vadd.f32 %v5041_v52, %v3573_v44  ;;  %v2101_v32 = vpop.f32.mrb[3].mxu0  ;;  %v5059_v2 = vmul.f32 0.5, %v3633_v29 }
 0x216   : > { %v2411_v38 = vand.u32 2147483647, %v2315_v10  ;;  %v3637_v55 = vadd.f32 %v5041_v52, %v2101_v32  ;;  %vm2347_vm3 = vcmp.ge.f32.partialorder %v2315_v10, 0.0 }
 0x217   : > { %v2410_v30 = vand.u32 2147483647, %v2314_v56  ;;  %v2317_v40 = vmul.f32 0.70710677, %v3635_v20  ;;  %vm2346_vm4 = vcmp.ge.f32.partialorder %v2314_v56, 0.0  ;;  %v5066_v27 = vsel %vm2347_vm3, 1.0, %v5913_v36 }
 0x218   : > { %v2443_v4 = vmul.f32 0.3275911, %v2411_v38  ;;  %v5045_v16 = vmul.f32 0.70710677, %v3637_v55  ;;  %v2859_v59 = vsub.f32 0.0, %v2411_v38  ;;  %v5069_v23 = vsel %vm2346_vm4, 1.0, %v5913_v36 }
 0x219   : > { %v2442_v3 = vmul.f32 0.3275911, %v2410_v30  ;;  %v2413_v58 = vand.u32 2147483647, %v2317_v40  ;;  %v2858_v42 = vsub.f32 0.0, %v2410_v30  ;;  %vm2349_vm5 = vcmp.ge.f32.partialorder %v2317_v40, 0.0 }
 0x21a   : > { %v2475_v6 = vadd.f32 1.0, %v2443_v4  ;;  %v3576_v13 = vpop.f32.mrb[4].mxu0  ;;  %v2412_v15 = vand.u32 2147483647, %v5045_v16  ;;  %v2891_v25 = vmul.f32 %v2859_v59, %v2411_v38  ;;  %v5071_v24 = vmul.f32 0.5, %v3635_v20 }
 0x21b   : > { %v2474_v21 = vadd.f32 1.0, %v2442_v3  ;;  %v2111_v33 = vpop.f32.mrb[5].mxu0  ;;  %v2445_v41 = vmul.f32 0.3275911, %v2413_v58  ;;  %v5049_v11 = vadd.f32 %v5041_v52, %v3576_v13  ;;  %v2861_v31 = vsub.f32 0.0, %v2413_v58 }
 0x21c   : > { %3863 = vrcp.f32 %v2475_v6  ;;  %v5054_v14 = vadd.f32 %v5041_v52, %v2111_v33  ;;  %v2444_v48 = vmul.f32 0.3275911, %v2412_v15  ;;  %v2890_v47 = vmul.f32 %v2858_v42, %v2410_v30 }
 0x21d   : > { %3865 = vrcp.f32 %v2474_v21  ;;  %v2477_v62 = vadd.f32 1.0, %v2445_v41  ;;  %v5057_v12 = vmul.f32 0.70710677, %v5049_v11  ;;  %v5074_v37 = vmul.f32 0.5, %v3637_v55 }
 0x21e   : > { %v5062_v46 = vmul.f32 0.70710677, %v5054_v14  ;;  %v2476_v49 = vadd.f32 1.0, %v2444_v48  ;;  %v2924_v9 = vmul.f32 1.442695, %v2891_v25  ;;  %v5077_v18 = vsel %vm2349_vm5, 1.0, %v5913_v36 }
 0x21f   : > { %3867 = vrcp.f32 %v2477_v62  ;;  %v2415_v51 = vand.u32 2147483647, %v5057_v12  ;;  %v2893_v5 = vmul.f32 %v2861_v31, %v2413_v58  ;;  %vm2348_vm6 = vcmp.ge.f32.partialorder %v5045_v16, 0.0 }
 0x220   : > { %v2414_v35 = vand.u32 2147483647, %v5062_v46  ;;  %3869 = vrcp.f32 %v2476_v49  ;;  %v2860_v43 = vsub.f32 0.0, %v2412_v15  ;;  %v2922_v34 = vmul.f32 1.442695, %v2890_v47 }
 0x221   : > { %v2447_v26 = vmul.f32 0.3275911, %v2415_v51  ;;  %v2863_v17 = vsub.f32 0.0, %v2415_v51  ;;  %v2928_v38 = vmul.f32 1.442695, %v2893_v5  ;;  %v5107_v40 = vsel %vm2348_vm6, 1.0, %v5913_v36 }
 0x222   : > { %v2446_v50 = vmul.f32 0.3275911, %v2414_v35  ;;  %v2862_v29 = vsub.f32 0.0, %v2414_v35  ;;  %v2892_v32 = vmul.f32 %v2860_v43, %v2412_v15  ;;  %vm2351_vm7 = vcmp.ge.f32.partialorder %v5057_v12, 0.0 }
 0x223   : > { %v2479_v22 = vadd.f32 1.0, %v2447_v26  ;;  %v2895_v6 = vmul.f32 %v2863_v17, %v2415_v51  ;;  %vm2350_vm8 = vcmp.ge.f32.partialorder %v5062_v46, 0.0  ;;  %v2286_v46 = vmul.f32 0.5, %v5054_v14 }
 0x224   : > { %v3579_v63 = vpop.f32.mrb[6].mxu0  ;;  %v2478_v39 = vadd.f32 1.0, %v2446_v50  ;;  %v2894_v58 = vmul.f32 %v2862_v29, %v2414_v35  ;;  %v2926_v48 = vmul.f32 1.442695, %v2892_v32 }
 0x225   : > { %v5083_v28 = vadd.f32 %v5041_v52, %v3579_v63  ;;  %v2121_v61 = vpop.f32.mrb[7].mxu0  ;;  %3871 = vrcp.f32 %v2479_v22  ;;  %v2932_v49 = vmul.f32 1.442695, %v2895_v6 }
 0x226   : > { %v5079_v7 = vpop.eup %3863  ;;  %v5089_v19 = vadd.f32 %v5041_v52, %v2121_v61  ;;  %3873 = vrcp.f32 %v2478_v39  ;;  %v2930_v26 = vmul.f32 1.442695, %v2894_v58 }
 0x227   : > { %v5085_v45 = vpop.eup %3865  ;;  %v2571_v54 = vmul.f32 1.0614054, %v5079_v7  ;;  %v5093_v10 = vmul.f32 0.70710677, %v5083_v28  ;;  %3875 = vpow2.f32 %v2924_v9 }
 0x228   : > { %v2570_v60 = vmul.f32 1.0614054, %v5085_v45  ;;  %v5096_v44 = vmul.f32 0.70710677, %v5089_v19  ;;  %3877 = vpow2.f32 %v2922_v34 }
 0x229   : > { %v2603_v0 = vadd.f32 -1.4531521, %v2571_v54  ;;  %v5098_v30 = vpop.eup %3867  ;;  %v2417_v4 = vand.u32 2147483647, %v5093_v10  ;;  %3879 = vpow2.f32 %v2928_v38  ;;  %vm2353_vm9 = vcmp.ge.f32.partialorder %v5093_v10, 0.0 }
 0x22a   : > { %v2602_v56 = vadd.f32 -1.4531521, %v2570_v60  ;;  %v2573_v3 = vmul.f32 1.0614054, %v5098_v30  ;;  %v5109_v33 = vpop.eup %3869  ;;  %v2416_v15 = vand.u32 2147483647, %v5096_v44 }
 0x22b   : > { %v2635_v20 = vmul.f32 %v5079_v7, %v2603_v0  ;;  %v2449_v13 = vmul.f32 0.3275911, %v2417_v4  ;;  %v2572_v42 = vmul.f32 1.0614054, %v5109_v33  ;;  %v2865_v5 = vsub.f32 0.0, %v2417_v4 }
 0x22c   : > { %v2634_v55 = vmul.f32 %v5085_v45, %v2602_v56  ;;  %v2605_v41 = vadd.f32 -1.4531521, %v2573_v3  ;;  %v2448_v51 = vmul.f32 0.3275911, %v2416_v15  ;;  %v2864_v60 = vsub.f32 0.0, %v2416_v15 }
 0x22d   : > { %v2667_v21 = vadd.f32 1.4214138, %v2635_v20  ;;  %v2481_v16 = vadd.f32 1.0, %v2449_v13  ;;  %v2604_v47 = vadd.f32 -1.4531521, %v2572_v42  ;;  %v5128_v56 = vadd.f32 %v4200_v1, %v5028_v53 }
 0x22e   : > { %v2666_v59 = vadd.f32 1.4214138, %v2634_v55  ;;  %v2637_v31 = vmul.f32 %v5098_v30, %v2605_v41  ;;  %v2480_v22 = vadd.f32 1.0, %v2448_v51  ;;  %v2897_v41 = vmul.f32 %v2865_v5, %v2417_v4 }
 0x22f   : > { %v2699_v62 = vmul.f32 %v5079_v7, %v2667_v21  ;;  %3881 = vrcp.f32 %v2481_v16  ;;  %v5116_v9 = vpop.eup %3871  ;;  %v2636_v43 = vmul.f32 %v5109_v33, %v2604_v47  ;;  %v2896_v51 = vmul.f32 %v2864_v60, %v2416_v15 }
 0x230   : > { %v2698_v25 = vmul.f32 %v5085_v45, %v2666_v59  ;;  %v2669_v63 = vadd.f32 1.4214138, %v2637_v31  ;;  %v5118_v61 = vpop.eup %3873  ;;  %v2575_v39 = vmul.f32 1.0614054, %v5116_v9  ;;  %3883 = vrcp.f32 %v2480_v22 }
 0x231   : > { %v2731_v35 = vadd.f32 -0.28449672, %v2699_v62  ;;  %v2574_v0 = vmul.f32 1.0614054, %v5118_v61  ;;  %v3876_v29 = vpop.eup %3875  ;;  %v2668_v20 = vadd.f32 1.4214138, %v2636_v43  ;;  %3885 = vpow2.f32 %v2926_v48 }
 0x232   : > { %v2730_v50 = vadd.f32 -0.28449672, %v2698_v25  ;;  %v2701_v17 = vmul.f32 %v5098_v30, %v2669_v63  ;;  %v2607_v32 = vadd.f32 -1.4531521, %v2575_v39  ;;  %v3878_v21 = vpop.eup %3877  ;;  %3887 = vpow2.f32 %v2932_v49 }
 0x233   : > { %v2763_v54 = vmul.f32 %v5079_v7, %v2731_v35  ;;  %v2606_v6 = vadd.f32 -1.4531521, %v2574_v0  ;;  %v2700_v13 = vmul.f32 %v5109_v33, %v2668_v20  ;;  %v3880_v62 = vpop.eup %3879  ;;  %3889 = vpow2.f32 %v2930_v26 }
 0x234   : > { %v2762_v34 = vmul.f32 %v5085_v45, %v2730_v50  ;;  %v2733_v3 = vadd.f32 -0.28449672, %v2701_v17  ;;  %v2639_v59 = vmul.f32 %v5116_v9, %v2607_v32  ;;  %v2936_v5 = vmul.f32 1.442695, %v2897_v41 }
 0x235   : > { %v2795_v38 = vadd.f32 0.2548296, %v2763_v54  ;;  %v2638_v16 = vmul.f32 %v5118_v61, %v2606_v6  ;;  %v2732_v31 = vadd.f32 -0.28449672, %v2700_v13  ;;  %v2934_v60 = vmul.f32 1.442695, %v2896_v51 }
 0x236   : > { %v2794_v55 = vadd.f32 0.2548296, %v2762_v34  ;;  %v2765_v1 = vmul.f32 %v5098_v30, %v2733_v3  ;;  %v2671_v48 = vadd.f32 1.4214138, %v2639_v59  ;;  %3891 = vpow2.f32 %v2936_v5 }
 0x237   : > { %v2827_v58 = vmul.f32 %v5079_v7, %v2795_v38  ;;  %v2670_v7 = vadd.f32 1.4214138, %v2638_v16  ;;  %v2764_v4 = vmul.f32 %v5109_v33, %v2732_v31  ;;  %3893 = vpow2.f32 %v2934_v60 }
 0x238   : > { %v2826_v42 = vmul.f32 %v5085_v45, %v2794_v55  ;;  %v2797_v47 = vadd.f32 0.2548296, %v2765_v1  ;;  %v2703_v45 = vmul.f32 %v5116_v9, %v2671_v48  ;;  %vm2352_vm10 = vcmp.ge.f32.partialorder %v5096_v44, 0.0 }
 0x239   : > { %v2987_v25 = vmul.f32 %v3876_v29, %v2827_v58  ;;  %v5136_v50 = vpop.eup %3881  ;;  %v2702_v54 = vmul.f32 %v5118_v61, %v2670_v7  ;;  %v2796_v39 = vadd.f32 0.2548296, %v2764_v4 }
 0x23a   : > { %v2986_v35 = vmul.f32 %v3878_v21, %v2826_v42  ;;  %v2829_v49 = vmul.f32 %v5098_v30, %v2797_v47  ;;  %v2577_v43 = vmul.f32 1.0614054, %v5136_v50  ;;  %v2735_v26 = vadd.f32 -0.28449672, %v2703_v45  ;;  %v5145_v34 = vpop.eup %3883 }
 0x23b   : > { %v3019_v63 = vsub.f32 1.0, %v2987_v25  ;;  %v2734_v30 = vadd.f32 -0.28449672, %v2702_v54  ;;  %v2828_v20 = vmul.f32 %v5109_v33, %v2796_v39  ;;  %v2576_v32 = vmul.f32 1.0614054, %v5145_v34  ;;  %v3886_v55 = vpop.eup %3885 }
 0x23c   : > { %v3018_v22 = vsub.f32 1.0, %v2986_v35  ;;  %v2989_v0 = vmul.f32 %v3880_v62, %v2829_v49  ;;  %v2609_v29 = vadd.f32 -1.4531521, %v2577_v43  ;;  %v3888_v41 = vpop.eup %3887 }
 0x23d   : > { %v3051_v15 = vmul.f32 %v3019_v63, %v5066_v27  ;;  %v2767_v27 = vmul.f32 %v5116_v9, %v2735_v26  ;;  %v2766_v6 = vmul.f32 %v5118_v61, %v2734_v30  ;;  %v2988_v33 = vmul.f32 %v3886_v55, %v2828_v20  ;;  %v3890_v51 = vpop.eup %3889 }
 0x23e   : > { %v3050_v17 = vmul.f32 %v3018_v22, %v5069_v23  ;;  %v3021_v3 = vsub.f32 1.0, %v2989_v0  ;;  %v2641_v21 = vmul.f32 %v5136_v50, %v2609_v29  ;;  %v2608_v59 = vadd.f32 -1.4531521, %v2576_v32  ;;  %v5914_v29 = vld [vmem:[#allocation2_spill] sm:$0xff] }
 0x23f   : > { %v3083_v38 = vadd.f32 1.0, %v3051_v15  ;;  %v2799_v13 = vadd.f32 0.2548296, %v2767_v27  ;;  %v2798_v1 = vadd.f32 0.2548296, %v2766_v6  ;;  %v3020_v25 = vsub.f32 1.0, %v2988_v33 }
 0x240   : > { %v3082_v23 = vadd.f32 1.0, %v3050_v17  ;;  %v3053_v42 = vmul.f32 %v3021_v3, %v5077_v18  ;;  %v2673_v16 = vadd.f32 1.4214138, %v2641_v21  ;;  %v2640_v48 = vmul.f32 %v5145_v34, %v2608_v59  ;;  %v5915_v33 = vld [vmem:[#allocation3_spill] sm:$0xff] }
 0x241   : > { %v3115_v58 = vmul.f32 %v3083_v38, %v5051_v57  ;;  %v2831_v31 = vmul.f32 %v5116_v9, %v2799_v13  ;;  %v3582_v57 = vpop.f32.mrb[8].mxu0  ;;  %v2830_v47 = vmul.f32 %v5118_v61, %v2798_v1  ;;  %v3052_v63 = vmul.f32 %v3020_v25, %v5107_v40  ;;  %v5916_v25 = vld [vmem:[#allocation4_spill] sm:$0xff] }
 0x242   : > { %v3114_v62 = vmul.f32 %v3082_v23, %v5059_v2  ;;  %v3085_v35 = vadd.f32 1.0, %v3053_v42  ;;  %v2705_v2 = vmul.f32 %v5136_v50, %v2673_v16  ;;  %v5172_v18 = vadd.f32 %v5041_v52, %v3582_v57  ;;  %v2131_v7 = vpop.f32.mrb[9].mxu0 }
 0x243   : > { %3147 = vst.msk [vmem:[%s5156_s17 + $0x8] sm:$0xff] %vm372_vm0, %v3115_v58  ;;  %v2991_v9 = vmul.f32 %v3888_v41, %v2831_v31  ;;  %v2672_v4 = vadd.f32 1.4214138, %v2640_v48  ;;  %v5176_v45 = vadd.f32 %v5041_v52, %v2131_v7  ;;  %v2990_v22 = vmul.f32 %v3890_v51, %v2830_v47  ;;  %v3892_v58 = vpop.eup %3891  ;;  %v5917_v7 = vld [vmem:[#allocation5_spill] sm:$0xff] }
 0x244   : > { %3146 = vst.msk [vmem:[%s5156_s17] sm:$0xff] %vm372_vm0, %v3114_v62  ;;  %v3117_v5 = vmul.f32 %v3085_v35, %v5071_v24  ;;  %v2737_v49 = vadd.f32 -0.28449672, %v2705_v2  ;;  %v3084_v61 = vadd.f32 1.0, %v3052_v63  ;;  %v5181_v15 = vmul.f32 0.70710677, %v5172_v18  ;;  %v3894_v51 = vpop.eup %3893 }
 0x245   : > { %v3023_v54 = vsub.f32 1.0, %v2991_v9  ;;  %v2704_v43 = vmul.f32 %v5145_v34, %v2672_v4  ;;  %v2383_v40 = vsel %vm2351_vm7, 1.0, %v5913_v36  ;;  %v3022_v39 = vsub.f32 1.0, %v2990_v22  ;;  %v5918_v22 = vld [vmem:[#allocation6_spill] sm:$0xff] }
 0x246   : > { %3149 = vst.msk [vmem:[%s5156_s17 + $0x18] sm:$0xff] %vm372_vm0, %v3117_v5  ;;  %v2769_v24 = vmul.f32 %v5136_v50, %v2737_v49  ;;  %v5190_v26 = vmul.f32 0.70710677, %v5176_v45  ;;  %v3116_v60 = vmul.f32 %v3084_v61, %v5074_v37  ;;  %v2382_v0 = vsel %vm2350_vm8, 1.0, %v5913_v36 }
 0x247   : > { %v3055_v17 = vmul.f32 %v3023_v54, %v2383_v40  ;;  %v2736_v30 = vadd.f32 -0.28449672, %v2704_v43  ;;  %v616_v38 = vadd.f32 %v5028_v53, %v5914_v29  ;;  %v3054_v20 = vmul.f32 %v3022_v39, %v2382_v0 }
 0x248   : > { %v2801_v12 = vadd.f32 0.2548296, %v2769_v24  ;;  %v5199_v27 = vand.u32 2147483647, %v5181_v15  ;;  %3148 = vst.msk [vmem:[%s5156_s17 + $0x10] sm:$0xff] %vm372_vm0, %v3116_v60  ;;  %v2287_v32 = vmul.f32 0.5, %v5049_v11  ;;  %v631_v13 = vadd.f32 %v5915_v33, %v5028_v53 }
 0x249   : > { %v3087_v55 = vadd.f32 1.0, %v3055_v17  ;;  %v2768_v37 = vmul.f32 %v5145_v34, %v2736_v30  ;;  %v5206_v23 = vand.u32 2147483647, %v5190_v26  ;;  %v3086_v3 = vadd.f32 1.0, %v3054_v20  ;;  %v3585_v62 = vpop.f32.mrb[10].mxu0  ;;  %v5919_v24 = vld [vmem:[#allocation7_spill] sm:$0xff] }
 0x24a   : > { %v2833_v6 = vmul.f32 %v5136_v50, %v2801_v12  ;;  %v2451_v21 = vmul.f32 0.3275911, %v5199_v27  ;;  %v2141_v16 = vpop.f32.mrb[11].mxu0  ;;  %v626_v50 = vadd.f32 %v5028_v53, %v5916_v25  ;;  %v5221_v57 = vadd.f32 %v5041_v52, %v3585_v62 }
 0x24b   : > { %v3119_v11 = vmul.f32 %v3087_v55, %v2287_v32  ;;  %v2800_v59 = vadd.f32 0.2548296, %v2768_v37  ;;  %v2450_v41 = vmul.f32 0.3275911, %v5206_v23  ;;  %v3118_v42 = vmul.f32 %v3086_v3, %v2286_v46 }
 0x24c   : > { %v2993_v14 = vmul.f32 %v3892_v58, %v2833_v6  ;;  %v2483_v1 = vadd.f32 1.0, %v2451_v21  ;;  %v5226_v10 = vadd.f32 %v5041_v52, %v2141_v16  ;;  %v5230_v47 = vadd.f32 %v5034_v8, %v5128_v56  ;;  %v5920_v6 = vld [vmem:[#allocation8_spill] sm:$0xff] }
 0x24d   : > { %3151 = vst.msk [vmem:[%s5156_s17 + $0x28] sm:$0xff] %vm372_vm0, %v3119_v11  ;;  %v2832_v31 = vmul.f32 %v5145_v34, %v2800_v59  ;;  %v2482_v48 = vadd.f32 1.0, %v2450_v41  ;;  %3150 = vst.msk [vmem:[%s5156_s17 + $0x20] sm:$0xff] %vm372_vm0, %v3118_v42  ;;  %v2385_v2 = vsel %vm2353_vm9, 1.0, %v5913_v36  ;;  %v641_v63 = vadd.f32 %v5917_v7, %v5028_v53 }
 0x24e   : > { %v3025_v35 = vsub.f32 1.0, %v2993_v14  ;;  %3895 = vrcp.f32 %v2483_v1  ;;  %v5237_v4 = vmul.f32 0.70710677, %v5221_v57  ;;  %v5240_v5 = vadd.f32 %v5034_v8, %v616_v38  ;;  %v5922_v14 = vld [vmem:[#allocation10_spill] sm:$0xff] }
 0x24f   : > { %v2992_v34 = vmul.f32 %v3894_v51, %v2832_v31  ;;  %3897 = vrcp.f32 %v2482_v48  ;;  %v636_v56 = vadd.f32 %v5028_v53, %v5918_v22  ;;  %v5245_v61 = vmul.f32 0.70710677, %v5226_v10 }
 0x250   : > { %v3057_v9 = vmul.f32 %v3025_v35, %v2385_v2  ;;  %v5248_v44 = vadd.f32 %v5034_v8, %v631_v13  ;;  %v2289_v54 = vmul.f32 0.5, %v5083_v28  ;;  %v2384_v40 = vsel %vm2352_vm10, 1.0, %v5913_v36 }
 0x251   : > { %v3024_v49 = vsub.f32 1.0, %v2992_v34  ;;  %v2421_v39 = vand.u32 2147483647, %v5237_v4  ;;  %v5255_v60 = vadd.f32 %v5919_v24, %v5028_v53  ;;  %v2867_v0 = vsub.f32 0.0, %v5199_v27  ;;  %v3588_v30 = vpop.f32.mrb[12].mxu0 }
 0x252   : > { %v3089_v43 = vadd.f32 1.0, %v3057_v9  ;;  %v5259_v29 = vadd.f32 %v5034_v8, %v626_v50  ;;  %v2288_v28 = vmul.f32 0.5, %v5089_v19  ;;  %v2866_v20 = vsub.f32 0.0, %v5206_v23  ;;  %v2151_v32 = vpop.f32.mrb[13].mxu0  ;;  %v5921_v19 = vld [vmem:[#allocation9_spill] sm:$0xff] }
 0x253   : > { %v3056_v17 = vmul.f32 %v3024_v49, %v2384_v40  ;;  %v2453_v12 = vmul.f32 0.3275911, %v2421_v39  ;;  %v2420_v37 = vand.u32 2147483647, %v5245_v61  ;;  %v5265_v46 = vadd.f32 %v5041_v52, %v3588_v30 }
 0x254   : > { %v3121_v38 = vmul.f32 %v3089_v43, %v2289_v54  ;;  %v5268_v3 = vadd.f32 %v5041_v52, %v2151_v32  ;;  %v5272_v21 = vadd.f32 %v5028_v53, %v5920_v6  ;;  %v5276_v58 = vadd.f32 %v5921_v19, %v5028_v53 }
 0x255   : > { %v3088_v55 = vadd.f32 1.0, %v3056_v17  ;;  %v2485_v33 = vadd.f32 1.0, %v2453_v12  ;;  %v5281_v13 = vadd.f32 %v5034_v8, %v641_v63  ;;  %v2899_v59 = vmul.f32 %v2867_v0, %v5199_v27 }
 0x256   : > { %3153 = vst.msk [vmem:[%s5156_s17 + $0x38] sm:$0xff] %vm372_vm0, %v3121_v38  ;;  %v2452_v41 = vmul.f32 0.3275911, %v2420_v37  ;;  %v5285_v62 = vadd.f32 %v5034_v8, %v636_v56  ;;  %v5291_v1 = vadd.f32 %v5028_v53, %v5922_v14  ;;  %vm2355_vm11 = vcmp.ge.f32.partialorder %v5181_v15, 0.0 }
 0x257   : > { %v3120_v11 = vmul.f32 %v3088_v55, %v2288_v28  ;;  %3899 = vrcp.f32 %v2485_v33  ;;  %v5295_v16 = vmul.f32 0.70710677, %v5265_v46  ;;  %v2898_v50 = vmul.f32 %v2866_v20, %v5206_v23 }
 0x258   : > { %v5287_v42 = vpop.eup %3895  ;;  %v2484_v31 = vadd.f32 1.0, %v2452_v41  ;;  %v5304_v48 = vmul.f32 0.70710677, %v5268_v3  ;;  %v5307_v51 = vmul.f32 0.5, %v5172_v18  ;;  %v2869_v2 = vsub.f32 0.0, %v2421_v39 }
 0x259   : > { %v5297_v25 = vpop.eup %3897  ;;  %3152 = vst.msk [vmem:[%s5156_s17 + $0x30] sm:$0xff] %vm372_vm0, %v3120_v11  ;;  %v2579_v27 = vmul.f32 1.0614054, %v5287_v42  ;;  %v2423_v34 = vand.u32 2147483647, %v5295_v16  ;;  %vm2354_vm12 = vcmp.ge.f32.partialorder %v5190_v26, 0.0 }
 0x25a   : > { %v2578_v35 = vmul.f32 1.0614054, %v5297_v25  ;;  %v2940_v63 = vmul.f32 1.442695, %v2899_v59  ;;  %3901 = vrcp.f32 %v2484_v31  ;;  %v5315_v23 = vsel %vm2355_vm11, 1.0, %v5913_v36 }
 0x25b   : > { %v2611_v7 = vadd.f32 -1.4531521, %v2579_v27  ;;  %v5318_v9 = vmul.f32 0.5, %v5176_v45  ;;  %v2455_v22 = vmul.f32 0.3275911, %v2423_v34  ;;  %v2868_v54 = vsub.f32 0.0, %v2420_v37 }
 0x25c   : > { %v2610_v18 = vadd.f32 -1.4531521, %v2578_v35  ;;  %v2938_v49 = vmul.f32 1.442695, %v2898_v50  ;;  %v5322_v43 = vand.u32 2147483647, %v5304_v48  ;;  %v2901_v15 = vmul.f32 %v2869_v2, %v2421_v39 }
 0x25d   : > { %v2643_v56 = vmul.f32 %v5287_v42, %v2611_v7  ;;  %v5325_v26 = vsel %vm2354_vm12, 1.0, %v5913_v36  ;;  %v2487_v24 = vadd.f32 1.0, %v2455_v22  ;;  %3903 = vpow2.f32 %v2940_v63  ;;  %v3591_v30 = vpop.f32.mrb[14].mxu0 }
 0x25e   : > { %v2642_v40 = vmul.f32 %v5297_v25, %v2610_v18  ;;  %v5329_v45 = vmul.f32 0.5, %v5221_v57  ;;  %v2454_v0 = vmul.f32 0.3275911, %v5322_v43  ;;  %vm2357_vm13 = vcmp.ge.f32.partialorder %v5237_v4, 0.0  ;;  %v2161_v20 = vpop.f32.mrb[15].mxu0 }
 0x25f   : > { %v2675_v17 = vadd.f32 1.4214138, %v2643_v56  ;;  %3905 = vrcp.f32 %v2487_v24  ;;  %v5334_v28 = vadd.f32 %v5041_v52, %v3591_v30  ;;  %v2900_v39 = vmul.f32 %v2868_v54, %v2420_v37 }
 0x260   : > { %v2674_v38 = vadd.f32 1.4214138, %v2642_v40  ;;  %3907 = vpow2.f32 %v2938_v49  ;;  %v2486_v32 = vadd.f32 1.0, %v2454_v0  ;;  %v2944_v6 = vmul.f32 1.442695, %v2901_v15 }
 0x261   : > { %v2707_v12 = vmul.f32 %v5287_v42, %v2675_v17  ;;  %v5337_v55 = vpop.eup %3899  ;;  %v5341_v19 = vmul.f32 0.5, %v5226_v10  ;;  %v5344_v33 = vmul.f32 0.70710677, %v5334_v28  ;;  %v5348_v41 = vadd.f32 %v5041_v52, %v2161_v20 }
 0x262   : > { %v2706_v57 = vmul.f32 %v5297_v25, %v2674_v38  ;;  %v2581_v59 = vmul.f32 1.0614054, %v5337_v55  ;;  %3909 = vrcp.f32 %v2486_v32  ;;  %v5353_v14 = vsel %vm2357_vm13, 1.0, %v5913_v36 }
 0x263   : > { %v2739_v11 = vadd.f32 -0.28449672, %v2707_v12  ;;  %v2871_v27 = vsub.f32 0.0, %v2423_v34  ;;  %v2425_v10 = vand.u32 2147483647, %v5344_v33  ;;  %vm2356_vm14 = vcmp.ge.f32.partialorder %v5245_v61, 0.0 }
 0x264   : > { %v2738_v37 = vadd.f32 -0.28449672, %v2706_v57  ;;  %v5356_v50 = vpop.eup %3901  ;;  %v2613_v35 = vadd.f32 -1.4531521, %v2581_v59  ;;  %v2942_v2 = vmul.f32 1.442695, %v2900_v39  ;;  %3911 = vpow2.f32 %v2944_v6 }
 0x265   : > { %v2771_v31 = vmul.f32 %v5287_v42, %v2739_v11  ;;  %v2580_v7 = vmul.f32 1.0614054, %v5356_v50  ;;  %v2457_v63 = vmul.f32 0.3275911, %v2425_v10  ;;  %v2870_v22 = vsub.f32 0.0, %v5322_v43 }
 0x266   : > { %v2770_v52 = vmul.f32 %v5297_v25, %v2738_v37  ;;  %v2645_v18 = vmul.f32 %v5337_v55, %v2613_v35  ;;  %v5365_v56 = vmul.f32 0.70710677, %v5348_v41  ;;  %v2903_v40 = vmul.f32 %v2871_v27, %v2423_v34 }
 0x267   : > { %v2803_v4 = vadd.f32 0.2548296, %v2771_v31  ;;  %v2612_v54 = vadd.f32 -1.4531521, %v2580_v7  ;;  %v2489_v15 = vadd.f32 1.0, %v2457_v63  ;;  %v3904_v24 = vpop.eup %3903  ;;  %3913 = vpow2.f32 %v2942_v2 }
 0x268   : > { %v2802_v49 = vadd.f32 0.2548296, %v2770_v52  ;;  %v2677_v0 = vadd.f32 1.4214138, %v2645_v18  ;;  %v5369_v30 = vand.u32 2147483647, %v5365_v56  ;;  %v2902_v6 = vmul.f32 %v2870_v22, %v5322_v43 }
 0x269   : > { %v2835_v17 = vmul.f32 %v5287_v42, %v2803_v4  ;;  %v5371_v38 = vpop.eup %3905  ;;  %v5377_v12 = vsel %vm2356_vm14, 1.0, %v5913_v36  ;;  %v2644_v34 = vmul.f32 %v5356_v50, %v2612_v54  ;;  %3915 = vrcp.f32 %v2489_v15 }
 0x26a   : > { %v2834_v20 = vmul.f32 %v5297_v25, %v2802_v49  ;;  %v3908_v39 = vpop.eup %3907  ;;  %v2709_v42 = vmul.f32 %v5337_v55, %v2677_v0  ;;  %v2583_v57 = vmul.f32 1.0614054, %v5371_v38  ;;  %v2948_v37 = vmul.f32 1.442695, %v2903_v40 }
 0x26b   : > { %v2995_v32 = vmul.f32 %v3904_v24, %v2835_v17  ;;  %v2676_v59 = vadd.f32 1.4214138, %v2644_v34  ;;  %v2456_v25 = vmul.f32 0.3275911, %v5369_v30  ;;  %v2873_v2 = vsub.f32 0.0, %v2425_v10 }
 0x26c   : > { %v2994_v11 = vmul.f32 %v3908_v39, %v2834_v20  ;;  %v5384_v27 = vpop.eup %3909  ;;  %v2741_v31 = vadd.f32 -0.28449672, %v2709_v42  ;;  %v2615_v35 = vadd.f32 -1.4531521, %v2583_v57  ;;  %v2946_v49 = vmul.f32 1.442695, %v2902_v6 }
 0x26d   : > { %v3027_v61 = vsub.f32 1.0, %v2995_v32  ;;  %v2708_v7 = vmul.f32 %v5356_v50, %v2676_v59  ;;  %v2582_v63 = vmul.f32 1.0614054, %v5384_v27  ;;  %v2488_v4 = vadd.f32 1.0, %v2456_v25 }
 0x26e   : > { %v3026_v52 = vsub.f32 1.0, %v2994_v11  ;;  %v2773_v43 = vmul.f32 %v5337_v55, %v2741_v31  ;;  %v2647_v22 = vmul.f32 %v5371_v38, %v2615_v35  ;;  %v3912_v54 = vpop.eup %3911  ;;  %v2905_v32 = vmul.f32 %v2873_v2, %v2425_v10 }
 0x26f   : > { %v3059_v18 = vmul.f32 %v3027_v61, %v5315_v23  ;;  %v2740_v15 = vadd.f32 -0.28449672, %v2708_v7  ;;  %v2614_v24 = vadd.f32 -1.4531521, %v2582_v63  ;;  %3917 = vrcp.f32 %v2488_v4 }
 0x270   : > { %v3058_v40 = vmul.f32 %v3026_v52, %v5325_v26  ;;  %v2805_v0 = vadd.f32 0.2548296, %v2773_v43  ;;  %v2679_v20 = vadd.f32 1.4214138, %v2647_v22  ;;  %3919 = vpow2.f32 %v2948_v37 }
 0x271   : > { %v3091_v17 = vadd.f32 1.0, %v3059_v18  ;;  %v2772_v39 = vmul.f32 %v5356_v50, %v2740_v15  ;;  %v2646_v23 = vmul.f32 %v5384_v27, %v2614_v24  ;;  %v3914_v42 = vpop.eup %3913  ;;  %3921 = vpow2.f32 %v2946_v49  ;;  %v3594_v11 = vpop.f32.mrb[16].mxu0 }
 0x272   : > { %v3090_v34 = vadd.f32 1.0, %v3058_v40  ;;  %v2837_v26 = vmul.f32 %v5337_v55, %v2805_v0  ;;  %v2711_v6 = vmul.f32 %v5371_v38, %v2679_v20  ;;  %v2872_v31 = vsub.f32 0.0, %v5369_v30  ;;  %v2171_v35 = vpop.f32.mrb[17].mxu0 }
 0x273   : > { %v3123_v57 = vmul.f32 %v3091_v17, %v5307_v51  ;;  %v5397_v59 = vpop.eup %3915  ;;  %v2804_v25 = vadd.f32 0.2548296, %v2772_v39  ;;  %v2678_v61 = vadd.f32 1.4214138, %v2646_v23  ;;  %v5405_v55 = vadd.f32 %v5230_v47, %v3594_v11 }
 0x274   : > { %v3122_v37 = vmul.f32 %v3090_v34, %v5318_v9  ;;  %v2997_v10 = vmul.f32 %v3912_v54, %v2837_v26  ;;  %v2743_v51 = vadd.f32 -0.28449672, %v2711_v6  ;;  %v2585_v2 = vmul.f32 1.0614054, %v5397_v59 }
 0x275   : > { %3155 = vst.msk [vmem:[%s5156_s17 + $0x48] sm:$0xff] %vm372_vm0, %v3123_v57  ;;  %v2836_v52 = vmul.f32 %v5356_v50, %v2804_v25  ;;  %v2710_v9 = vmul.f32 %v5384_v27, %v2678_v61  ;;  %v2952_v7 = vmul.f32 1.442695, %v2905_v32  ;;  %v5412_v63 = vadd.f32 %v5240_v5, %v2171_v35 }
 0x276   : > { %3154 = vst.msk [vmem:[%s5156_s17 + $0x40] sm:$0xff] %vm372_vm0, %v3122_v37  ;;  %v3029_v4 = vsub.f32 1.0, %v2997_v10  ;;  %vm2359_vm15 = vcmp.ge.f32.partialorder %v5295_v16, 0.0  ;;  %v2775_v18 = vmul.f32 %v5371_v38, %v2743_v51  ;;  %v2617_v43 = vadd.f32 -1.4531521, %v2585_v2 }
 0x277   : > { %v2996_v22 = vmul.f32 %v3914_v42, %v2836_v52  ;;  %v2742_v49 = vadd.f32 -0.28449672, %v2710_v9  ;;  %v2904_v47 = vmul.f32 %v2872_v31, %v5369_v30  ;;  %v5418_v54 = vmul.f32 0.70710677, %v5405_v55 }
 0x278   : > { %v3061_v50 = vmul.f32 %v3029_v4, %v5353_v14  ;;  %v2807_v40 = vadd.f32 0.2548296, %v2775_v18  ;;  %vm2358_vm1 = vcmp.ge.f32.partialorder %v5304_v48, 0.0  ;;  %v2649_v5 = vmul.f32 %v5397_v59, %v2617_v43 }
 0x279   : > { %v5423_v15 = vpop.eup %3917  ;;  %v3028_v24 = vsub.f32 1.0, %v2996_v22  ;;  %v2774_v17 = vmul.f32 %v5384_v27, %v2742_v49  ;;  %3923 = vpow2.f32 %v2952_v7  ;;  %v5427_v0 = vand.u32 2147483647, %v5418_v54 }
 0x27a   : > { %v3920_v30 = vpop.eup %3919  ;;  %v3093_v20 = vadd.f32 1.0, %v3061_v50  ;;  %v2839_v34 = vmul.f32 %v5371_v38, %v2807_v40  ;;  %v2681_v14 = vadd.f32 1.4214138, %v2649_v5  ;;  %v2584_v39 = vmul.f32 1.0614054, %v5423_v15  ;;  %v5923_v5 = vld [vmem:[#allocation11_spill] sm:$0xff] }
 0x27b   : > { %v3060_v23 = vmul.f32 %v3028_v24, %v5377_v12  ;;  %v2806_v32 = vadd.f32 0.2548296, %v2774_v17  ;;  %v2950_v42 = vmul.f32 1.442695, %v2904_v47  ;;  %v2459_v57 = vmul.f32 0.3275911, %v5427_v0  ;;  %v3922_v26 = vpop.eup %3921 }
 0x27c   : > { %v3125_v6 = vmul.f32 %v3093_v20, %v5329_v45  ;;  %v2999_v11 = vmul.f32 %v3920_v30, %v2839_v34  ;;  %v2713_v37 = vmul.f32 %v5397_v59, %v2681_v14  ;;  %v2616_v25 = vadd.f32 -1.4531521, %v2584_v39 }
 0x27d   : > { %v3092_v61 = vadd.f32 1.0, %v3060_v23  ;;  %v2838_v38 = vmul.f32 %v5384_v27, %v2806_v32  ;;  %v2491_v31 = vadd.f32 1.0, %v2459_v57  ;;  %v5437_v35 = vmul.f32 0.70710677, %v5412_v63 }
 0x27e   : > { %3157 = vst.msk [vmem:[%s5156_s17 + $0x58] sm:$0xff] %vm372_vm0, %v3125_v6  ;;  %v2295_v12 = vmul.f32 0.5, %v5265_v46  ;;  %v3031_v10 = vsub.f32 1.0, %v2999_v11  ;;  %v2745_v51 = vadd.f32 -0.28449672, %v2713_v37  ;;  %v2648_v45 = vmul.f32 %v5423_v15, %v2616_v25 }
 0x27f   : > { %v3124_v2 = vmul.f32 %v3092_v61, %v5341_v19  ;;  %v2391_v52 = vsel %vm2359_vm15, 1.0, %v5913_v36  ;;  %v2998_v27 = vmul.f32 %v3922_v26, %v2838_v38  ;;  %3925 = vrcp.f32 %v2491_v31  ;;  %v3597_v18 = vpop.f32.mrb[18].mxu0  ;;  %v5494_v6 = vld [vmem:[%s5894_s7] ss:$0 sm:$0xff] }
 0x280   : > { %v3063_v9 = vmul.f32 %v3031_v10, %v2391_v52  ;;  %v2390_v7 = vsel %vm2358_vm1, 1.0, %v5913_v36  ;;  %v2777_v4 = vmul.f32 %v5397_v59, %v2745_v51  ;;  %v2680_v46 = vadd.f32 1.4214138, %v2648_v45  ;;  %v2181_v22 = vpop.f32.mrb[19].mxu0 }
 0x281   : > { %3156 = vst.msk [vmem:[%s5156_s17 + $0x50] sm:$0xff] %vm372_vm0, %v3124_v2  ;;  %v3030_v43 = vsub.f32 1.0, %v2998_v27  ;;  %3927 = vpow2.f32 %v2950_v42  ;;  %v2426_v19 = vand.u32 2147483647, %v5437_v35  ;;  %v5455_v16 = vadd.f32 %v5248_v44, %v3597_v18 }
 0x282   : > { %v3095_v49 = vadd.f32 1.0, %v3063_v9  ;;  %v2809_v47 = vadd.f32 0.2548296, %v2777_v4  ;;  %v2712_v48 = vmul.f32 %v5423_v15, %v2680_v46  ;;  %v5459_v50 = vadd.f32 %v5259_v29, %v2181_v22 }
 0x283   : > { %v3924_v40 = vpop.eup %3923  ;;  %v5463_v24 = vadd.f32 %v5923_v5, %v5028_v53  ;;  %v3062_v17 = vmul.f32 %v3030_v43, %v2390_v7  ;;  %v2458_v30 = vmul.f32 0.3275911, %v2426_v19  ;;  %v5467_v44 = vadd.f32 %v5034_v8, %v5255_v60  ;;  %v5925_v7 = vld [vmem:[#allocation13_spill] sm:$0xff] }
 0x284   : > { %v3127_v20 = vmul.f32 %v3095_v49, %v2295_v12  ;;  %v2294_v34 = vmul.f32 0.5, %v5268_v3  ;;  %v2841_v14 = vmul.f32 %v5397_v59, %v2809_v47  ;;  %v2744_v39 = vadd.f32 -0.28449672, %v2712_v48  ;;  %v5485_v3 = vld [vmem:[%s5890_s3] ss:$0 sm:$0xff]  ;;  %v5924_v59 = vld [vmem:[#allocation12_spill] sm:$0xff] }
 0x285   : > { %v3094_v23 = vadd.f32 1.0, %v3062_v17  ;;  %v2875_v29 = vsub.f32 0.0, %v5427_v0  ;;  %v2490_v32 = vadd.f32 1.0, %v2458_v30  ;;  %v5473_v42 = vmul.f32 0.70710677, %v5455_v16 }
 0x286   : > { %3159 = vst.msk [vmem:[%s5156_s17 + $0x68] sm:$0xff] %vm372_vm0, %v3127_v20  ;;  %vm2361_vm2 = vcmp.ge.f32.partialorder %v5344_v33, 0.0  ;;  %v3001_v53 = vmul.f32 %v3924_v40, %v2841_v14  ;;  %v2776_v8 = vmul.f32 %v5423_v15, %v2744_v39  ;;  %v5480_v60 = vmul.f32 0.70710677, %v5459_v50 }
 0x287   : > { %v5489_v57 = vadd.f32 %v5485_v3, %v5924_v59  ;;  %v3126_v26 = vmul.f32 %v3094_v23, %v2294_v34  ;;  %3929 = vrcp.f32 %v2490_v32  ;;  %v5498_v11 = vadd.f32 %v5494_v6, %v5272_v21 }
 0x288   : > { %v3033_v37 = vsub.f32 1.0, %v3001_v53  ;;  %v2808_v25 = vadd.f32 0.2548296, %v2776_v8  ;;  %v5501_v61 = vand.u32 2147483647, %v5473_v42  ;;  %v5505_v38 = vadd.f32 %v5494_v6, %v5276_v58 }
 0x289   : > { %v5507_v31 = vpop.eup %3925  ;;  %3158 = vst.msk [vmem:[%s5156_s17 + $0x60] sm:$0xff] %vm372_vm0, %v3126_v26  ;;  %v2393_v12 = vsel %vm2361_vm2, 1.0, %v5913_v36  ;;  %v2907_v21 = vmul.f32 %v2875_v29, %v5427_v0  ;;  %v2874_v10 = vsub.f32 0.0, %v2426_v19  ;;  %v2428_v51 = vand.u32 2147483647, %v5480_v60  ;;  %v3600_v27 = vpop.f32.mrb[20].mxu0 }
 0x28a   : > { %v3065_v45 = vmul.f32 %v3033_v37, %v2393_v12  ;;  %v2840_v2 = vmul.f32 %v5423_v15, %v2808_v25  ;;  %v2587_v52 = vmul.f32 1.0614054, %v5507_v31  ;;  %v2461_v58 = vmul.f32 0.3275911, %v5501_v61  ;;  %v2191_v46 = vpop.f32.mrb[21].mxu0 }
 0x28b   : > { %v3928_v9 = vpop.eup %3927  ;;  %v5521_v4 = vadd.f32 %v5485_v3, %v5925_v7  ;;  %v2297_v33 = vmul.f32 0.5, %v5334_v28  ;;  %vm2360_vm3 = vcmp.ge.f32.partialorder %v5365_v56, 0.0  ;;  %v2460_v0 = vmul.f32 0.3275911, %v2428_v51  ;;  %v5926_v28 = vld [vmem:[#allocation14_spill] sm:$0xff] }
 0x28c   : > { %v3097_v18 = vadd.f32 1.0, %v3065_v45  ;;  %v3000_v43 = vmul.f32 %v3928_v9, %v2840_v2  ;;  %v2619_v15 = vadd.f32 -1.4531521, %v2587_v52  ;;  %v2493_v22 = vadd.f32 1.0, %v2461_v58 }
 0x28d   : > { %v2956_v49 = vmul.f32 1.442695, %v2907_v21  ;;  %v2906_v47 = vmul.f32 %v2874_v10, %v2426_v19  ;;  %v2492_v48 = vadd.f32 1.0, %v2460_v0  ;;  %v5526_v40 = vadd.f32 %v5281_v13, %v3600_v27 }
 0x28e   : > { %v3129_v5 = vmul.f32 %v3097_v18, %v2297_v33  ;;  %v3032_v17 = vsub.f32 1.0, %v3000_v43  ;;  %v2651_v30 = vmul.f32 %v5507_v31, %v2619_v15  ;;  %3931 = vrcp.f32 %v2493_v22 }
 0x28f   : > { %v5531_v20 = vadd.f32 %v5485_v3, %v5926_v28  ;;  %v2392_v34 = vsel %vm2360_vm3, 1.0, %v5913_v36  ;;  %3933 = vrcp.f32 %v2492_v48  ;;  %v5538_v19 = vadd.f32 %v5494_v6, %v5291_v1  ;;  %v5928_v28 = vld [vmem:[#allocation16_spill] sm:$0xff] }
 0x290   : > { %3161 = vst.msk [vmem:[%s5156_s17 + $0x78] sm:$0xff] %vm372_vm0, %v3129_v5  ;;  %v3064_v13 = vmul.f32 %v3032_v17, %v2392_v34  ;;  %v2683_v14 = vadd.f32 1.4214138, %v2651_v30  ;;  %v5543_v39 = vmul.f32 0.70710677, %v5526_v40  ;;  %v5546_v23 = vadd.f32 %v5285_v62, %v2191_v46  ;;  %v5927_v62 = vld [vmem:[#allocation15_spill] sm:$0xff] }
 0x291   : > { %v5548_v29 = vpop.eup %3929  ;;  %v2296_v56 = vmul.f32 0.5, %v5348_v41  ;;  %3935 = vpow2.f32 %v2956_v49  ;;  %v2954_v32 = vmul.f32 1.442695, %v2906_v47  ;;  %v5553_v1 = vadd.f32 %v5494_v6, %v5463_v24 }
 0x292   : > { %v3096_v53 = vadd.f32 1.0, %v3064_v13  ;;  %v2715_v8 = vmul.f32 %v5507_v31, %v2683_v14  ;;  %v2586_v59 = vmul.f32 1.0614054, %v5548_v29  ;;  %v2877_v26 = vsub.f32 0.0, %v5501_v61 }
 0x293   : > { %v5560_v37 = vadd.f32 %v5485_v3, %v5927_v62  ;;  %v2876_v25 = vsub.f32 0.0, %v2428_v51  ;;  %v2431_v41 = vand.u32 2147483647, %v5543_v39  ;;  %v5564_v12 = vmul.f32 0.70710677, %v5546_v23 }
 0x294   : > { %v3128_v24 = vmul.f32 %v3096_v53, %v2296_v56  ;;  %v2747_v21 = vadd.f32 -0.28449672, %v2715_v8  ;;  %v2618_v10 = vadd.f32 -1.4531521, %v2586_v59  ;;  %v5568_v45 = vadd.f32 %v5494_v6, %v5489_v57 }
 0x295   : > { %v5571_v2 = vmul.f32 0.5, %v5405_v55  ;;  %v5574_v52 = vmul.f32 0.5, %v5412_v63  ;;  %v2463_v58 = vmul.f32 0.3275911, %v2431_v41  ;;  %v5577_v27 = vand.u32 2147483647, %v5564_v12 }
 0x296   : > { %3160 = vst.msk [vmem:[%s5156_s17 + $0x70] sm:$0xff] %vm372_vm0, %v3128_v24  ;;  %vm2363_vm4 = vcmp.ge.f32.partialorder %v5418_v54, 0.0  ;;  %v2779_v9 = vmul.f32 %v5507_v31, %v2747_v21  ;;  %v2650_v7 = vmul.f32 %v5548_v29, %v2618_v10  ;;  %v2909_v57 = vmul.f32 %v2877_v26, %v5501_v61  ;;  %v3603_v33 = vpop.f32.mrb[22].mxu0 }
 0x297   : > { %3937 = vpow2.f32 %v2954_v32  ;;  %v2908_v55 = vmul.f32 %v2876_v25, %v2428_v51  ;;  %v2495_v0 = vadd.f32 1.0, %v2463_v58  ;;  %v2462_v63 = vmul.f32 0.3275911, %v5577_v27  ;;  %v2201_v46 = vpop.f32.mrb[23].mxu0 }
 0x298   : > { %v5586_v18 = vpop.eup %3931  ;;  %v2811_v43 = vadd.f32 0.2548296, %v2779_v9  ;;  %v2682_v15 = vadd.f32 1.4214138, %v2650_v7  ;;  %v5589_v22 = vadd.f32 %v5467_v44, %v3603_v33  ;;  %v5592_v49 = vadd.f32 %v5498_v11, %v2201_v46 }
 0x299   : > { %v5594_v47 = vpop.eup %3933  ;;  %vm2362_vm5 = vcmp.ge.f32.partialorder %v5437_v35, 0.0  ;;  %v2589_v61 = vmul.f32 1.0614054, %v5586_v18  ;;  %3939 = vrcp.f32 %v2495_v0  ;;  %v2494_v51 = vadd.f32 1.0, %v2462_v63 }
 0x29a   : > { %v2843_v48 = vmul.f32 %v5507_v31, %v2811_v43  ;;  %v2714_v5 = vmul.f32 %v5548_v29, %v2682_v15  ;;  %v2960_v17 = vmul.f32 1.442695, %v2909_v57  ;;  %v2588_v30 = vmul.f32 1.0614054, %v5594_v47 }
 0x29b   : > { %v3936_v44 = vpop.eup %3935  ;;  %v5603_v11 = vadd.f32 %v5485_v3, %v5928_v28  ;;  %v2621_v34 = vadd.f32 -1.4531521, %v2589_v61  ;;  %v2958_v13 = vmul.f32 1.442695, %v2908_v55  ;;  %v5606_v14 = vmul.f32 0.70710677, %v5589_v22 }
 0x29c   : > { %v3003_v56 = vmul.f32 %v3936_v44, %v2843_v48  ;;  %v2746_v32 = vadd.f32 -0.28449672, %v2714_v5  ;;  %v2620_v53 = vadd.f32 -1.4531521, %v2588_v30  ;;  %3941 = vrcp.f32 %v2494_v51 }
 0x29d   : > { %v2395_v31 = vsel %vm2363_vm4, 1.0, %v5913_v36  ;;  %v2653_v8 = vmul.f32 %v5586_v18, %v2621_v34  ;;  %v2879_v59 = vsub.f32 0.0, %v2431_v41  ;;  %v5613_v26 = vand.u32 2147483647, %v5606_v14 }
 0x29e   : > { %v3035_v3 = vsub.f32 1.0, %v3003_v56  ;;  %v2394_v62 = vsel %vm2362_vm5, 1.0, %v5913_v36  ;;  %v2778_v25 = vmul.f32 %v5548_v29, %v2746_v32  ;;  %v2652_v24 = vmul.f32 %v5594_v47, %v2620_v53 }
 0x29f   : > { %vm2365_vm6 = vcmp.ge.f32.partialorder %v5473_v42, 0.0  ;;  %v2685_v21 = vadd.f32 1.4214138, %v2653_v8  ;;  %3943 = vpow2.f32 %v2960_v17  ;;  %v2465_v54 = vmul.f32 0.3275911, %v5613_v26 }
 0x2a0   : > { %v3067_v10 = vmul.f32 %v3035_v3, %v2395_v31  ;;  %v2810_v58 = vadd.f32 0.2548296, %v2778_v25  ;;  %v2684_v9 = vadd.f32 1.4214138, %v2652_v24  ;;  %3945 = vpow2.f32 %v2958_v13 }
 0x2a1   : > { %v3938_v7 = vpop.eup %3937  ;;  %v2717_v57 = vmul.f32 %v5586_v18, %v2685_v21  ;;  %v2911_v33 = vmul.f32 %v2879_v59, %v2431_v41  ;;  %v2497_v35 = vadd.f32 1.0, %v2465_v54  ;;  %v5624_v55 = vmul.f32 0.70710677, %v5592_v49 }
 0x2a2   : > { %v3099_v0 = vadd.f32 1.0, %v3067_v10  ;;  %v2842_v63 = vmul.f32 %v5548_v29, %v2810_v58  ;;  %v2716_v46 = vmul.f32 %v5594_v47, %v2684_v9  ;;  %v2878_v43 = vsub.f32 0.0, %v5577_v27 }
 0x2a3   : > { %v5629_v15 = vpop.eup %3939  ;;  %v5632_v61 = vmul.f32 0.5, %v5455_v16  ;;  %v2397_v41 = vsel %vm2365_vm6, 1.0, %v5913_v36  ;;  %v2749_v51 = vadd.f32 -0.28449672, %v2717_v57  ;;  %3947 = vrcp.f32 %v2497_v35 }
 0x2a4   : > { %v3131_v48 = vmul.f32 %v3099_v0, %v5571_v2  ;;  %v3002_v5 = vmul.f32 %v3938_v7, %v2842_v63  ;;  %v2748_v29 = vadd.f32 -0.28449672, %v2716_v46  ;;  %v2591_v17 = vmul.f32 1.0614054, %v5629_v15 }
 0x2a5   : > { %v2781_v30 = vmul.f32 %v5586_v18, %v2749_v51  ;;  %vm2364_vm7 = vcmp.ge.f32.partialorder %v5480_v60, 0.0  ;;  %v2964_v44 = vmul.f32 1.442695, %v2911_v33  ;;  %v5642_v16 = vand.u32 2147483647, %v5624_v55  ;;  %v3606_v56 = vpop.f32.mrb[24].mxu0 }
 0x2a6   : > { %v5644_v28 = vpop.eup %3941  ;;  %3163 = vst.msk [vmem:[%s5156_s17 + $0x88] sm:$0xff] %vm372_vm0, %v3131_v48  ;;  %v3034_v42 = vsub.f32 1.0, %v3002_v5  ;;  %v2780_v34 = vmul.f32 %v5594_v47, %v2748_v29  ;;  %v2623_v2 = vadd.f32 -1.4531521, %v2591_v17  ;;  %v2910_v13 = vmul.f32 %v2878_v43, %v5577_v27  ;;  %v2211_v21 = vpop.f32.mrb[25].mxu0 }
 0x2a7   : > { %v2813_v32 = vadd.f32 0.2548296, %v2781_v30  ;;  %v2590_v53 = vmul.f32 1.0614054, %v5644_v28  ;;  %v2464_v31 = vmul.f32 0.3275911, %v5642_v16  ;;  %v5653_v8 = vadd.f32 %v5505_v38, %v3606_v56 }
 0x2a8   : > { %v3066_v59 = vmul.f32 %v3034_v42, %v2394_v62  ;;  %v2812_v3 = vadd.f32 0.2548296, %v2780_v34  ;;  %v2655_v25 = vmul.f32 %v5629_v15, %v2623_v2  ;;  %v2881_v24 = vsub.f32 0.0, %v5613_v26 }
 0x2a9   : > { %v3944_v54 = vpop.eup %3943  ;;  %v2845_v10 = vmul.f32 %v5586_v18, %v2813_v32  ;;  %3949 = vpow2.f32 %v2964_v44  ;;  %v2622_v27 = vadd.f32 -1.4531521, %v2590_v53  ;;  %v2496_v58 = vadd.f32 1.0, %v2464_v31 }
 0x2aa   : > { %v3946_v9 = vpop.eup %3945  ;;  %v3098_v7 = vadd.f32 1.0, %v3066_v59  ;;  %v2844_v57 = vmul.f32 %v5594_v47, %v2812_v3  ;;  %v2687_v38 = vadd.f32 1.4214138, %v2655_v25  ;;  %v2962_v33 = vmul.f32 1.442695, %v2910_v13 }
 0x2ab   : > { %v3005_v62 = vmul.f32 %v3944_v54, %v2845_v10  ;;  %v2654_v35 = vmul.f32 %v5644_v28, %v2622_v27  ;;  %3951 = vrcp.f32 %v2496_v58  ;;  %v5661_v0 = vmul.f32 0.70710677, %v5653_v8 }
 0x2ac   : > { %v3130_v63 = vmul.f32 %v3098_v7, %v5574_v52  ;;  %v3004_v18 = vmul.f32 %v3946_v9, %v2844_v57  ;;  %v2719_v46 = vmul.f32 %v5629_v15, %v2687_v38  ;;  %v2913_v43 = vmul.f32 %v2881_v24, %v5613_v26 }
 0x2ad   : > { %v5666_v51 = vpop.eup %3947  ;;  %v3037_v47 = vsub.f32 1.0, %v3005_v62  ;;  %v2396_v48 = vsel %vm2364_vm7, 1.0, %v5913_v36  ;;  %v2686_v5 = vadd.f32 1.4214138, %v2654_v35  ;;  %v5672_v29 = vand.u32 2147483647, %v5661_v0 }
 0x2ae   : > { %3162 = vst.msk [vmem:[%s5156_s17 + $0x80] sm:$0xff] %vm372_vm0, %v3130_v63  ;;  %v3036_v17 = vsub.f32 1.0, %v3004_v18  ;;  %v2751_v52 = vadd.f32 -0.28449672, %v2719_v46  ;;  %3953 = vpow2.f32 %v2962_v33  ;;  %v2593_v30 = vmul.f32 1.0614054, %v5666_v51 }
 0x2af   : > { %v3069_v44 = vmul.f32 %v3037_v47, %v2397_v41  ;;  %v2718_v26 = vmul.f32 %v5644_v28, %v2686_v5  ;;  %v2880_v42 = vsub.f32 0.0, %v5642_v16  ;;  %v2467_v34 = vmul.f32 0.3275911, %v5672_v29 }
 0x2b0   : > { %v3068_v60 = vmul.f32 %v3036_v17, %v2396_v48  ;;  %v2783_v2 = vmul.f32 %v5629_v15, %v2751_v52  ;;  %v2625_v13 = vadd.f32 -1.4531521, %v2593_v30  ;;  %v2968_v56 = vmul.f32 1.442695, %v2913_v43 }
 0x2b1   : > { %v3101_v32 = vadd.f32 1.0, %v3069_v44  ;;  %v2750_v53 = vadd.f32 -0.28449672, %v2718_v26  ;;  %v2499_v31 = vadd.f32 1.0, %v2467_v34  ;;  %v5682_v59 = vadd.f32 %v5538_v19, %v2211_v21 }
 0x2b2   : > { %v2300_v41 = vmul.f32 0.5, %v5459_v50  ;;  %v3100_v3 = vadd.f32 1.0, %v3068_v60  ;;  %v2815_v25 = vadd.f32 0.2548296, %v2783_v2  ;;  %v2657_v24 = vmul.f32 %v5666_v51, %v2625_v13 }
 0x2b3   : > { %v3950_v54 = vpop.eup %3949  ;;  %v3133_v10 = vmul.f32 %v3101_v32, %v5632_v61  ;;  %v2782_v27 = vmul.f32 %v5644_v28, %v2750_v53  ;;  %v2912_v58 = vmul.f32 %v2880_v42, %v5642_v16  ;;  %3955 = vrcp.f32 %v2499_v31  ;;  %v3609_v50 = vpop.f32.mrb[26].mxu0 }
 0x2b4   : > { %v3132_v9 = vmul.f32 %v3100_v3, %v2300_v41  ;;  %vm2367_vm8 = vcmp.ge.f32.partialorder %v5543_v39, 0.0  ;;  %v2847_v19 = vmul.f32 %v5629_v15, %v2815_v25  ;;  %v2689_v21 = vadd.f32 1.4214138, %v2657_v24  ;;  %v2221_v16 = vpop.f32.mrb[27].mxu0 }
 0x2b5   : > { %v5691_v7 = vpop.eup %3951  ;;  %3165 = vst.msk [vmem:[%s5156_s17 + $0x98] sm:$0xff] %vm372_vm0, %v3133_v10  ;;  %v2814_v57 = vadd.f32 0.2548296, %v2782_v27  ;;  %3957 = vpow2.f32 %v2968_v56  ;;  %v5696_v61 = vmul.f32 0.70710677, %v5682_v59  ;;  %v5699_v38 = vadd.f32 %v5553_v1, %v3609_v50 }
 0x2b6   : > { %3164 = vst.msk [vmem:[%s5156_s17 + $0x90] sm:$0xff] %vm372_vm0, %v3132_v9  ;;  %v3007_v33 = vmul.f32 %v3950_v54, %v2847_v19  ;;  %v2721_v15 = vmul.f32 %v5666_v51, %v2689_v21  ;;  %v2592_v62 = vmul.f32 1.0614054, %v5691_v7  ;;  %v3699_v35 = vadd.f32 %v5494_v6, %v5521_v4 }
 0x2b7   : > { %v2399_v63 = vsel %vm2367_vm8, 1.0, %v5913_v36  ;;  %v2846_v18 = vmul.f32 %v5644_v28, %v2814_v57  ;;  %v2966_v46 = vmul.f32 1.442695, %v2912_v58  ;;  %v2434_v1 = vand.u32 2147483647, %v5696_v61 }
 0x2b8   : > { %v3954_v43 = vpop.eup %3953  ;;  %v3039_v47 = vsub.f32 1.0, %v3007_v33  ;;  %vm2366_vm9 = vcmp.ge.f32.partialorder %v5564_v12, 0.0  ;;  %v2753_v48 = vadd.f32 -0.28449672, %v2721_v15  ;;  %v2624_v5 = vadd.f32 -1.4531521, %v2592_v62 }
 0x2b9   : > { %v3006_v17 = vmul.f32 %v3954_v43, %v2846_v18  ;;  %v2883_v52 = vsub.f32 0.0, %v5672_v29  ;;  %v2466_v30 = vmul.f32 0.3275911, %v2434_v1  ;;  %v5715_v4 = vmul.f32 0.70710677, %v5699_v38 }
 0x2ba   : > { %v3071_v39 = vmul.f32 %v3039_v47, %v2399_v63  ;;  %v2785_v44 = vmul.f32 %v5666_v51, %v2753_v48  ;;  %v2656_v28 = vmul.f32 %v5691_v7, %v2624_v5  ;;  %v5720_v26 = vadd.f32 %v5568_v45, %v2221_v16 }
 0x2bb   : > { %v2303_v42 = vmul.f32 0.5, %v5526_v40  ;;  %v2398_v12 = vsel %vm2366_vm9, 1.0, %v5913_v36  ;;  %v3038_v34 = vsub.f32 1.0, %v3006_v17  ;;  %v2498_v60 = vadd.f32 1.0, %v2466_v30 }
 0x2bc   : > { %v3103_v2 = vadd.f32 1.0, %v3071_v39  ;;  %v2817_v13 = vadd.f32 0.2548296, %v2785_v44  ;;  %v2688_v56 = vadd.f32 1.4214138, %v2656_v28  ;;  %3959 = vpow2.f32 %v2966_v46 }
 0x2bd   : > { %v5724_v32 = vpop.eup %3955  ;;  %v3070_v53 = vmul.f32 %v3038_v34, %v2398_v12  ;;  %v2915_v31 = vmul.f32 %v2883_v52, %v5672_v29  ;;  %3961 = vrcp.f32 %v2498_v60  ;;  %v2437_v45 = vand.u32 2147483647, %v5715_v4 }
 0x2be   : > { %v3135_v41 = vmul.f32 %v3103_v2, %v2303_v42  ;;  %v2849_v40 = vmul.f32 %v5666_v51, %v2817_v13  ;;  %v2720_v3 = vmul.f32 %v5691_v7, %v2688_v56  ;;  %v2595_v25 = vmul.f32 1.0614054, %v5724_v32 }
 0x2bf   : > { %v3958_v24 = vpop.eup %3957  ;;  %v2302_v54 = vmul.f32 0.5, %v5546_v23  ;;  %v3102_v10 = vadd.f32 1.0, %v3070_v53  ;;  %v2882_v27 = vsub.f32 0.0, %v2434_v1  ;;  %v2469_v58 = vmul.f32 0.3275911, %v2437_v45  ;;  %v3612_v16 = vpop.f32.mrb[28].mxu0 }
 0x2c0   : > { %3167 = vst.msk [vmem:[%s5156_s17 + $0xa8] sm:$0xff] %vm372_vm0, %v3135_v41  ;;  %vm2369_vm10 = vcmp.ge.f32.partialorder %v5606_v14, 0.0  ;;  %v3009_v29 = vmul.f32 %v3958_v24, %v2849_v40  ;;  %v2752_v9 = vadd.f32 -0.28449672, %v2720_v3  ;;  %v2627_v19 = vadd.f32 -1.4531521, %v2595_v25 }
 0x2c1   : > { %v3134_v21 = vmul.f32 %v3102_v10, %v2302_v54  ;;  %v2972_v51 = vmul.f32 1.442695, %v2915_v31  ;;  %v2501_v50 = vadd.f32 1.0, %v2469_v58  ;;  %v5736_v57 = vmul.f32 0.70710677, %v5720_v26  ;;  %v2231_v63 = vpop.f32.mrb[29].mxu0 }
 0x2c2   : > { %v3041_v33 = vsub.f32 1.0, %v3009_v29  ;;  %v2784_v23 = vmul.f32 %v5691_v7, %v2752_v9  ;;  %v2659_v15 = vmul.f32 %v5724_v32, %v2627_v19  ;;  %v5740_v62 = vadd.f32 %v3699_v35, %v3612_v16 }
 0x2c3   : > { %3166 = vst.msk [vmem:[%s5156_s17 + $0xa0] sm:$0xff] %vm372_vm0, %v3134_v21  ;;  %v2401_v14 = vsel %vm2369_vm10, 1.0, %v5913_v36  ;;  %v2914_v18 = vmul.f32 %v2882_v27, %v2434_v1  ;;  %3963 = vrcp.f32 %v2501_v50  ;;  %v2436_v46 = vand.u32 2147483647, %v5736_v57 }
 0x2c4   : > { %v3073_v43 = vmul.f32 %v3041_v33, %v2401_v14  ;;  %v2816_v47 = vadd.f32 0.2548296, %v2784_v23  ;;  %v2691_v48 = vadd.f32 1.4214138, %v2659_v15  ;;  %v3702_v5 = vadd.f32 %v5494_v6, %v5531_v20 }
 0x2c5   : > { %v2305_v17 = vmul.f32 0.5, %v5589_v22  ;;  %3965 = vpow2.f32 %v2972_v51  ;;  %v2885_v35 = vsub.f32 0.0, %v2437_v45  ;;  %v2468_v52 = vmul.f32 0.3275911, %v2436_v46 }
 0x2c6   : > { %v3960_v30 = vpop.eup %3959  ;;  %v3105_v39 = vadd.f32 1.0, %v3073_v43  ;;  %v2848_v44 = vmul.f32 %v5691_v7, %v2816_v47  ;;  %v2723_v1 = vmul.f32 %v5724_v32, %v2691_v48  ;;  %v5752_v28 = vmul.f32 0.70710677, %v5740_v62 }
 0x2c7   : > { %v5754_v42 = vpop.eup %3961  ;;  %vm2368_vm11 = vcmp.ge.f32.partialorder %v5624_v55, 0.0  ;;  %v2970_v20 = vmul.f32 1.442695, %v2914_v18  ;;  %v2500_v12 = vadd.f32 1.0, %v2468_v52  ;;  %v5757_v22 = vadd.f32 %v3702_v5, %v2231_v63 }
 0x2c8   : > { %v3137_v34 = vmul.f32 %v3105_v39, %v2305_v17  ;;  %v3008_v60 = vmul.f32 %v3960_v30, %v2848_v44  ;;  %v2755_v2 = vadd.f32 -0.28449672, %v2723_v1  ;;  %v2594_v13 = vmul.f32 1.0614054, %v5754_v42 }
 0x2c9   : > { %v2917_v7 = vmul.f32 %v2885_v35, %v2437_v45  ;;  %3967 = vrcp.f32 %v2500_v12  ;;  %v2439_v56 = vand.u32 2147483647, %v5752_v28  ;;  %v3705_v53 = vadd.f32 %v5494_v6, %v5560_v37 }
 0x2ca   : > { %3169 = vst.msk [vmem:[%s5156_s17 + $0xb8] sm:$0xff] %vm372_vm0, %v3137_v34  ;;  %v2304_v31 = vmul.f32 0.5, %v5592_v49  ;;  %v3040_v41 = vsub.f32 1.0, %v3008_v60  ;;  %v2787_v40 = vmul.f32 %v5724_v32, %v2755_v2  ;;  %v2626_v3 = vadd.f32 -1.4531521, %v2594_v13  ;;  %v3615_v49 = vpop.f32.mrb[30].mxu0 }
 0x2cb   : > { %v2400_v25 = vsel %vm2368_vm11, 1.0, %v5913_v36  ;;  %vm2371_vm12 = vcmp.ge.f32.partialorder %v5661_v0, 0.0  ;;  %3969 = vpow2.f32 %v2970_v20  ;;  %v2471_v45 = vmul.f32 0.3275911, %v2439_v56  ;;  %v2241_v55 = vpop.f32.mrb[31].mxu0 }
 0x2cc   : > { %v3072_v24 = vmul.f32 %v3040_v41, %v2400_v25  ;;  %v2819_v54 = vadd.f32 0.2548296, %v2787_v40  ;;  %v2658_v37 = vmul.f32 %v5754_v42, %v2626_v3  ;;  %v5773_v10 = vmul.f32 0.70710677, %v5757_v22 }
 0x2cd   : > { %v5775_v27 = vpop.eup %3963  ;;  %v2976_v58 = vmul.f32 1.442695, %v2917_v7  ;;  %v2884_v29 = vsub.f32 0.0, %v2436_v46  ;;  %v2503_v9 = vadd.f32 1.0, %v2471_v45  ;;  %v5777_v19 = vadd.f32 %v3705_v53, %v3615_v49 }
 0x2ce   : > { %v3104_v21 = vadd.f32 1.0, %v3072_v24  ;;  %v2851_v51 = vmul.f32 %v5724_v32, %v2819_v54  ;;  %v2690_v50 = vadd.f32 1.4214138, %v2658_v37  ;;  %v2597_v16 = vmul.f32 1.0614054, %v5775_v27 }
 0x2cf   : > { %v3966_v33 = vpop.eup %3965  ;;  %3971 = vrcp.f32 %v2503_v9  ;;  %v5782_v23 = vand.u32 2147483647, %v5773_v10  ;;  %v2403_v43 = vsel %vm2371_vm12, 1.0, %v5913_v36  ;;  %v2916_v47 = vmul.f32 %v2884_v29, %v2436_v46 }
 0x2d0   : > { %v3136_v15 = vmul.f32 %v3104_v21, %v2304_v31  ;;  %v3011_v63 = vmul.f32 %v3966_v33, %v2851_v51  ;;  %v2722_v14 = vmul.f32 %v5754_v42, %v2690_v50  ;;  %v2629_v18 = vadd.f32 -1.4531521, %v2597_v16 }
 0x2d1   : > { %v2470_v32 = vmul.f32 0.3275911, %v5782_v23  ;;  %v3708_v48 = vadd.f32 %v5494_v6, %v5603_v11  ;;  %3973 = vpow2.f32 %v2976_v58  ;;  %v2887_v30 = vsub.f32 0.0, %v2439_v56 }
 0x2d2   : > { %3168 = vst.msk [vmem:[%s5156_s17 + $0xb0] sm:$0xff] %vm372_vm0, %v3136_v15  ;;  %v3043_v5 = vsub.f32 1.0, %v3011_v63  ;;  %v2754_v17 = vadd.f32 -0.28449672, %v2722_v14  ;;  %v2661_v35 = vmul.f32 %v5775_v27, %v2629_v18  ;;  %v5797_v0 = vmul.f32 0.70710677, %v5777_v19 }
 0x2d3   : > { %v5794_v52 = vpop.eup %3967  ;;  %v2502_v39 = vadd.f32 1.0, %v2470_v32  ;;  %v5799_v46 = vadd.f32 %v3708_v48, %v2241_v55  ;;  %v2307_v12 = vmul.f32 0.5, %v5653_v8  ;;  %v2974_v34 = vmul.f32 1.442695, %v2916_v47 }
 0x2d4   : > { %v3075_v44 = vmul.f32 %v3043_v5, %v2403_v43  ;;  %v2786_v1 = vmul.f32 %v5754_v42, %v2754_v17  ;;  %v2693_v6 = vadd.f32 1.4214138, %v2661_v35  ;;  %v2596_v11 = vmul.f32 1.0614054, %v5794_v52 }
 0x2d5   : > { %v3970_v20 = vpop.eup %3969  ;;  %3975 = vrcp.f32 %v2502_v39  ;;  %v5805_v60 = vand.u32 2147483647, %v5797_v0  ;;  %v2919_v31 = vmul.f32 %v2887_v30, %v2439_v56  ;;  %vm2370_vm13 = vcmp.ge.f32.partialorder %v5696_v61, 0.0 }
 0x2d6   : > { %v3107_v2 = vadd.f32 1.0, %v3075_v44  ;;  %v2818_v13 = vadd.f32 0.2548296, %v2786_v1  ;;  %v2725_v7 = vmul.f32 %v5775_v27, %v2693_v6  ;;  %v2628_v53 = vadd.f32 -1.4531521, %v2596_v11 }
 0x2d7   : > { %v2473_v41 = vmul.f32 0.3275911, %v5805_v60  ;;  %3977 = vpow2.f32 %v2974_v34  ;;  %v5815_v54 = vmul.f32 0.70710677, %v5799_v46  ;;  %v2980_v58 = vmul.f32 1.442695, %v2919_v31 }
 0x2d8   : > { %v3139_v40 = vmul.f32 %v3107_v2, %v2307_v12  ;;  %v2850_v3 = vmul.f32 %v5754_v42, %v2818_v13  ;;  %v2757_v25 = vadd.f32 -0.28449672, %v2725_v7  ;;  %v2660_v8 = vmul.f32 %v5794_v52, %v2628_v53 }
 0x2d9   : > { %v5811_v45 = vpop.eup %3971  ;;  %v2505_v24 = vadd.f32 1.0, %v2473_v41  ;;  %v2886_v29 = vsub.f32 0.0, %v5782_v23  ;;  %v5823_v9 = vand.u32 2147483647, %v5815_v54  ;;  %v2306_v33 = vmul.f32 0.5, %v5682_v59 }
 0x2da   : > { %3171 = vst.msk [vmem:[%s5156_s17 + $0xc8] sm:$0xff] %vm372_vm0, %v3139_v40  ;;  %v3010_v56 = vmul.f32 %v3970_v20, %v2850_v3  ;;  %v2789_v37 = vmul.f32 %v5775_v27, %v2757_v25  ;;  %v2692_v49 = vadd.f32 1.4214138, %v2660_v8  ;;  %v2599_v42 = vmul.f32 1.0614054, %v5811_v45 }
 0x2db   : > { %3979 = vrcp.f32 %v2505_v24  ;;  %v3974_v55 = vpop.eup %3973  ;;  %v2402_v15 = vsel %vm2370_vm13, 1.0, %v5913_v36  ;;  %v2472_v63 = vmul.f32 0.3275911, %v5823_v9  ;;  %vm2373_vm14 = vcmp.ge.f32.partialorder %v5715_v4, 0.0 }
 0x2dc   : > { %v3042_v21 = vsub.f32 1.0, %v3010_v56  ;;  %v2821_v51 = vadd.f32 0.2548296, %v2789_v37  ;;  %v2724_v50 = vmul.f32 %v5794_v52, %v2692_v49  ;;  %v2631_v16 = vadd.f32 -1.4531521, %v2599_v42 }
 0x2dd   : > { %3981 = vpow2.f32 %v2980_v58  ;;  %v2918_v48 = vmul.f32 %v2886_v29, %v5782_v23  ;;  %v2504_v59 = vadd.f32 1.0, %v2472_v63  ;;  %v2405_v23 = vsel %vm2373_vm14, 1.0, %v5913_v36 }
 0x2de   : > { %v3074_v14 = vmul.f32 %v3042_v21, %v2402_v15  ;;  %v2853_v18 = vmul.f32 %v5775_v27, %v2821_v51  ;;  %v2756_v43 = vadd.f32 -0.28449672, %v2724_v50  ;;  %v2663_v47 = vmul.f32 %v5811_v45, %v2631_v16 }
 0x2df   : > { %v5833_v32 = vpop.eup %3975  ;;  %v2889_v27 = vsub.f32 0.0, %v5805_v60  ;;  %3983 = vrcp.f32 %v2504_v59  ;;  %v2978_v12 = vmul.f32 1.442695, %v2918_v48  ;;  %v2309_v53 = vmul.f32 0.5, %v5699_v38 }
 0x2e0   : > { %v3106_v5 = vadd.f32 1.0, %v3074_v14  ;;  %v3013_v61 = vmul.f32 %v3974_v55, %v2853_v18  ;;  %v2788_v17 = vmul.f32 %v5794_v52, %v2756_v43  ;;  %v2695_v35 = vadd.f32 1.4214138, %v2663_v47 }
 0x2e1   : > { %v2598_v30 = vmul.f32 1.0614054, %v5833_v32  ;;  %v3978_v11 = vpop.eup %3977  ;;  %vm2372_vm15 = vcmp.ge.f32.partialorder %v5736_v57, 0.0  ;;  %v2921_v41 = vmul.f32 %v2889_v27, %v5805_v60  ;;  %3985 = vpow2.f32 %v2978_v12 }
 0x2e2   : > { %v3138_v39 = vmul.f32 %v3106_v5, %v2306_v33  ;;  %v3045_v44 = vsub.f32 1.0, %v3013_v61  ;;  %v2820_v1 = vadd.f32 0.2548296, %v2788_v17  ;;  %v2727_v6 = vmul.f32 %v5811_v45, %v2695_v35 }
 0x2e3   : > { %v2630_v20 = vadd.f32 -1.4531521, %v2598_v30  ;;  %v2404_v57 = vsel %vm2372_vm15, 1.0, %v5913_v36  ;;  %v2984_v60 = vmul.f32 1.442695, %v2921_v41  ;;  %v2308_v51 = vmul.f32 0.5, %v5720_v26 }
 0x2e4   : > { %3170 = vst.msk [vmem:[%s5156_s17 + $0xc0] sm:$0xff] %vm372_vm0, %v3138_v39  ;;  %v3077_v34 = vmul.f32 %v3045_v44, %v2405_v23  ;;  %v2852_v2 = vmul.f32 %v5794_v52, %v2820_v1  ;;  %v2759_v13 = vadd.f32 -0.28449672, %v2727_v6  ;;  %v2888_v52 = vsub.f32 0.0, %v5823_v9 }
 0x2e5   : > { %v3980_v7 = vpop.eup %3979  ;;  %v2662_v31 = vmul.f32 %v5833_v32, %v2630_v20  ;;  %vm2375_vm1 = vcmp.ge.f32.partialorder %v5752_v28, 0.0  ;;  %3987 = vpow2.f32 %v2984_v60  ;;  %v2311_v30 = vmul.f32 0.5, %v5740_v62 }
 0x2e6   : > { %v3109_v4 = vadd.f32 1.0, %v3077_v34  ;;  %v3012_v40 = vmul.f32 %v3978_v11, %v2852_v2  ;;  %v2791_v3 = vmul.f32 %v5811_v45, %v2759_v13  ;;  %v2601_v25 = vmul.f32 1.0614054, %v3980_v7 }
 0x2e7   : > { %v2694_v8 = vadd.f32 1.4214138, %v2662_v31  ;;  %v3982_v49 = vpop.eup %3981  ;;  %v2920_v16 = vmul.f32 %v2888_v52, %v5823_v9  ;;  %v2407_v59 = vsel %vm2375_vm1, 1.0, %v5913_v36  ;;  %vm2374_vm2 = vcmp.ge.f32.partialorder %v5773_v10, 0.0 }
 0x2e8   : > { %v3141_v24 = vmul.f32 %v3109_v4, %v2309_v53  ;;  %v3044_v56 = vsub.f32 1.0, %v3012_v40  ;;  %v2823_v37 = vadd.f32 0.2548296, %v2791_v3  ;;  %v2633_v38 = vadd.f32 -1.4531521, %v2601_v25 }
 0x2e9   : > { %v2726_v42 = vmul.f32 %v5833_v32, %v2694_v8  ;;  %v3984_v21 = vpop.eup %3983  ;;  %v2982_v5 = vmul.f32 1.442695, %v2920_v16  ;;  %v2406_v12 = vsel %vm2374_vm2, 1.0, %v5913_v36  ;;  %vm2377_vm3 = vcmp.ge.f32.partialorder %v5797_v0, 0.0 }
 0x2ea   : > { %3173 = vst.msk [vmem:[%s5156_s17 + $0xd8] sm:$0xff] %vm372_vm0, %v3141_v24  ;;  %v3076_v58 = vmul.f32 %v3044_v56, %v2404_v57  ;;  %v2855_v29 = vmul.f32 %v5811_v45, %v2823_v37  ;;  %v2665_v55 = vmul.f32 %v3980_v7, %v2633_v38  ;;  %v2600_v14 = vmul.f32 1.0614054, %v3984_v21 }
 0x2eb   : > { %v2758_v50 = vadd.f32 -0.28449672, %v2726_v42  ;;  %v3986_v17 = vpop.eup %3985  ;;  %3989 = vpow2.f32 %v2982_v5  ;;  %v2310_v10 = vmul.f32 0.5, %v5757_v22  ;;  %v2409_v3 = vsel %vm2377_vm3, 1.0, %v5913_v36 }
 0x2ec   : > { %v3108_v33 = vadd.f32 1.0, %v3076_v58  ;;  %v3015_v15 = vmul.f32 %v3982_v49, %v2855_v29  ;;  %v2697_v63 = vadd.f32 1.4214138, %v2665_v55  ;;  %v2632_v48 = vadd.f32 -1.4531521, %v2600_v14 }
 0x2ed   : > { %v2790_v18 = vmul.f32 %v5833_v32, %v2758_v50  ;;  %v2313_v52 = vmul.f32 0.5, %v5777_v19  ;;  %vm2376_vm4 = vcmp.ge.f32.partialorder %v5815_v54, 0.0  ;;  %v2312_v49 = vmul.f32 0.5, %v5799_v46 }
 0x2ee   : > { %v3140_v43 = vmul.f32 %v3108_v33, %v2308_v51  ;;  %v3047_v47 = vsub.f32 1.0, %v3015_v15  ;;  %v2729_v45 = vmul.f32 %v3980_v7, %v2697_v63  ;;  %v2664_v61 = vmul.f32 %v3984_v21, %v2632_v48 }
 0x2ef   : > { %v2822_v26 = vadd.f32 0.2548296, %v2790_v18  ;;  %v3988_v2 = vpop.eup %3987  ;;  %v2408_v37 = vsel %vm2376_vm4, 1.0, %v5913_v36 }
 0x2f0   : > { %3172 = vst.msk [vmem:[%s5156_s17 + $0xd0] sm:$0xff] %vm372_vm0, %v3140_v43  ;;  %v3079_v28 = vmul.f32 %v3047_v47, %v2407_v59  ;;  %v2761_v9 = vadd.f32 -0.28449672, %v2729_v45  ;;  %v2696_v44 = vadd.f32 1.4214138, %v2664_v61 }
 0x2f1   : > { %v2854_v35 = vmul.f32 %v5833_v32, %v2822_v26 }
 0x2f2   : > { %v3111_v27 = vadd.f32 1.0, %v3079_v28  ;;  %v2793_v39 = vmul.f32 %v3980_v7, %v2761_v9  ;;  %v2728_v23 = vmul.f32 %v3984_v21, %v2696_v44 }
 0x2f3   : > { %v3014_v1 = vmul.f32 %v3986_v17, %v2854_v35 }
 0x2f4   : > { %v3143_v6 = vmul.f32 %v3111_v27, %v2311_v30  ;;  %v2825_v11 = vadd.f32 0.2548296, %v2793_v39  ;;  %v2760_v32 = vadd.f32 -0.28449672, %v2728_v23 }
 0x2f5   : > { %v3046_v20 = vsub.f32 1.0, %v3014_v1  ;;  %v3990_v8 = vpop.eup %3989 }
 0x2f6   : > { %3175 = vst.msk [vmem:[%s5156_s17 + $0xe8] sm:$0xff] %vm372_vm0, %v3143_v6  ;;  %v2857_v34 = vmul.f32 %v3980_v7, %v2825_v11  ;;  %v2792_v53 = vmul.f32 %v3984_v21, %v2760_v32 }
 0x2f7   : > { %v3078_v62 = vmul.f32 %v3046_v20, %v2406_v12 }
 0x2f8   : > { %v3017_v13 = vmul.f32 %v3988_v2, %v2857_v34  ;;  %v2824_v4 = vadd.f32 0.2548296, %v2792_v53 }
 0x2f9   : > { %v3110_v31 = vadd.f32 1.0, %v3078_v62 }
 0x2fa   : > { %v3049_v41 = vsub.f32 1.0, %v3017_v13  ;;  %v2856_v7 = vmul.f32 %v3984_v21, %v2824_v4 }
 0x2fb   : > { %v3142_v40 = vmul.f32 %v3110_v31, %v2310_v10 }
 0x2fc   : > { %v3081_v25 = vmul.f32 %v3049_v41, %v2409_v3  ;;  %v3016_v24 = vmul.f32 %v3990_v8, %v2856_v7 }
 0x2fd   : > { %3174 = vst.msk [vmem:[%s5156_s17 + $0xe0] sm:$0xff] %vm372_vm0, %v3142_v40 }
 0x2fe   : > { %v3113_v0 = vadd.f32 1.0, %v3081_v25  ;;  %v3048_v56 = vsub.f32 1.0, %v3016_v24 }
 0x300   : > { %v3145_v22 = vmul.f32 %v3113_v0, %v2313_v52  ;;  %v3080_v38 = vmul.f32 %v3048_v56, %v2408_v37 }
 0x302   : > { %3177 = vst.msk [vmem:[%s5156_s17 + $0xf8] sm:$0xff] %vm372_vm0, %v3145_v22  ;;  %v3112_v57 = vadd.f32 1.0, %v3080_v38 }
 0x304   : > { %v3144_v42 = vmul.f32 %v3112_v57, %v2312_v49 }
 0x306   : > { %3176 = vst.msk [vmem:[%s5156_s17 + $0xf0] sm:$0xff] %vm372_vm0, %v3144_v42 }
 0x307 PF: > { %s18_s27 = sadd.s32 1, %s4000_s27  }
 0x308   : > { %p15_p4 = scmp.ge.s32.totalorder %s18_s27, 4  }
 0x30a   :  { %17 = sbr.rel (!%p15_p4) target bundleno = 1 (0x1), region = 85 }

// kernel: fno_forward.19
= control target key start
LH: loop header
LB: loop body
LE: loop exit
PB: predicated region body
PF: predicated region fallthrough
CT: control target
= control target key end

     0   :  { %s2358_s20 = smov 0   ;;  %s3650_s0 = inlined_call_operand.vmem [shape: f32[512,16], index: 0, kind: input, shape index: {}]   ;;  %s3651_s1 = inlined_call_operand.vmem [shape: f32[16,64], index: 1, kind: input, shape index: {}]   ;;  %s3652_s2 = inlined_call_operand.vmem [shape: f32[1,64], index: 2, kind: input, shape index: {}]   ;;  %s3653_s3 = inlined_call_operand.vmem [shape: f32[64,1], index: 3, kind: input, shape index: {}]   ;;  %s3654_s4 = inlined_call_operand.<no memory space> [shape: f32[1,1], index: 4, kind: input, shape index: {}]   ;;  %s3655_s5 = inlined_call_operand.vmem [shape: f32[512,1], index: 5, kind: output, shape index: {}]  }
   0x1   :  { %v10_v0 = vstv %s3654_s4 }
   0x2   :  { %11 = vst [vmem:[#allocation2] sm:$0x1] %v10_v0 }
   0x3 LB: > { %s1883_s21 = sadd.s32 4294967295, %s2322_s20   ;;  %p1887_p0 = scmp.ge.s32.totalorder %s2322_s20, 1  ;;  %s2322_s20 = sphi %s2358_s20, %s17_s20  }
   0x4   : > { %p190_p1 = scmp.lt.s32.totalorder %s2322_s20, 3 }
   0x6   : > { %p191_p2 = pnand %p1887_p0, %p190_p1 }
   0x8   : > { %194 = sbr.rel (%p191_p2) target bundleno = 695 (0x2b7), region = 40 }
   0xf   : > { %v262_v1 = vld [vmem:[%s3651_s1] sm:$0xff]  ;;  %v263_v2 = vld [vmem:[%s3651_s1 + $0x8] sm:$0xff]  ;;  %s1888_s25 = sshll.u32 %s1883_s21, 5  ;;  %vm271_vm0 = vcmask 130048   ;;  %v1459_v39 = vld [vmem:[%s3653_s3 + $0x10] sm:$0xff] }
  0x10   : > { %v2150_v3 = vpack.c.bf16 %v263_v2, %v262_v1  ;;  %p219_p3 = scmp.lt.s32.totalorder %s1888_s25, 63  ;;  %v1457_v36 = vld [vmem:[%s3653_s3] sm:$0xff]  ;;  %v1458_v37 = vld [vmem:[%s3653_s3 + $0x8] sm:$0xff]  ;;  %v1460_v40 = vld [vmem:[%s3653_s3 + $0x18] sm:$0xff] }
  0x11   : > { %v2154_v38 = vpack.c.bf16 %v1458_v37, %v1457_v36  ;;  %v2158_v41 = vpack.c.bf16 %v1460_v40, %v1459_v39  ;;  %v2461_v42 = vld [vmem:[%s3652_s2] ss:$0 sm:$0xff]  ;;  %v1462_v47 = vld [vmem:[%s3653_s3 + $0x28] sm:$0xff] }
  0x12   : > { %2151 = vmatprep.subr.bf16.mxu0 %v2150_v3  ;;  %s3770_s25 = smov (!%p219_p3, %s1888_s25), 63  ;;  %v1461_v46 = vld [vmem:[%s3653_s3 + $0x20] sm:$0xff] }
  0x13   : > { %2153 = vmatpush3.bf16.msra.mxu0 %v2150_v3  ;;  %s1889_s26 = sshll.u32 %s3770_s25, 3  ;;  %2170 = vmatprep.subr.bf16.mxu1 %v2154_v38  ;;  %v2162_v48 = vpack.c.bf16 %v1462_v47, %v1461_v46 }
  0x14   : > { %s2380_s29 = scalar_lea.vmem %s3650_s0, %s1889_s26  ;;  %2155 = vmatprep.subr.bf16.mxu0 %v2154_v38  ;;  %2174 = vmatpush3.bf16.msra.mxu1 %v2154_v38 }
  0x15   : > { %v230_v4 = vld [vmem:[%s2380_s29] sm:$0xff]  ;;  %v231_v5 = vld [vmem:[%s2380_s29 + $0x8] sm:$0xff]  ;;  %v232_v6 = vld [vmem:[%s2380_s29 + $0x10] sm:$0xff]  ;;  %2171 = vmatprep.subr.bf16.mxu1 %v2158_v41 }
  0x16   : > { %2038 = vmatprep.mubr.msk.f32.mxu0 %vm271_vm0, %v230_v4  ;;  %v233_v7 = vld [vmem:[%s2380_s29 + $0x18] sm:$0xff]  ;;  %v234_v8 = vld [vmem:[%s2380_s29 + $0x20] sm:$0xff]  ;;  %v235_v9 = vld [vmem:[%s2380_s29 + $0x28] sm:$0xff] }
  0x17   : > { %2039 = vmatmul.mubr.msk.f32.vlgmr.msra.gmra.mrb[0].mxu0 %vm271_vm0, %v231_v5  ;;  %v236_v10 = vld [vmem:[%s2380_s29 + $0x30] sm:$0xff]  ;;  %v237_v11 = vld [vmem:[%s2380_s29 + $0x38] sm:$0xff]  ;;  %v238_v12 = vld [vmem:[%s2380_s29 + $0x40] sm:$0xff] }
  0x18   : > { %2041 = vmatprep.mubr.msk.f32.mxu0 %vm271_vm0, %v232_v6  ;;  %v239_v13 = vld [vmem:[%s2380_s29 + $0x48] sm:$0xff]  ;;  %v240_v14 = vld [vmem:[%s2380_s29 + $0x50] sm:$0xff]  ;;  %v241_v15 = vld [vmem:[%s2380_s29 + $0x58] sm:$0xff]  ;;  %2157 = vmatpush3.bf16.msra.mxu0 %v2154_v38 }
  0x19   : > { %v242_v16 = vld [vmem:[%s2380_s29 + $0x60] sm:$0xff]  ;;  %v243_v17 = vld [vmem:[%s2380_s29 + $0x68] sm:$0xff]  ;;  %v244_v18 = vld [vmem:[%s2380_s29 + $0x70] sm:$0xff]  ;;  %2159 = vmatprep.subr.bf16.mxu0 %v2158_v41  ;;  %2175 = vmatpush3.bf16.msra.mxu1 %v2158_v41 }
  0x1a   : > { %v245_v19 = vld [vmem:[%s2380_s29 + $0x78] sm:$0xff]  ;;  %v246_v20 = vld [vmem:[%s2380_s29 + $0x80] sm:$0xff]  ;;  %v247_v21 = vld [vmem:[%s2380_s29 + $0x88] sm:$0xff]  ;;  %2172 = vmatprep.subr.bf16.mxu1 %v2162_v48 }
  0x1b   : > { %2042 = vmatmul.mubr.msk.f32.gmra.mrb[2].mxu0 %vm271_vm0, %v233_v7  ;;  %v248_v22 = vld [vmem:[%s2380_s29 + $0x90] sm:$0xff]  ;;  %v249_v23 = vld [vmem:[%s2380_s29 + $0x98] sm:$0xff]  ;;  %v250_v24 = vld [vmem:[%s2380_s29 + $0xa0] sm:$0xff] }
  0x1c   : > { %2044 = vmatprep.mubr.msk.f32.mxu0 %vm271_vm0, %v234_v8  ;;  %v251_v25 = vld [vmem:[%s2380_s29 + $0xa8] sm:$0xff]  ;;  %v252_v26 = vld [vmem:[%s2380_s29 + $0xb0] sm:$0xff]  ;;  %v253_v27 = vld [vmem:[%s2380_s29 + $0xb8] sm:$0xff]  ;;  %2161 = vmatpush3.bf16.msra.mxu0 %v2158_v41 }
  0x1d   : > { %v254_v28 = vld [vmem:[%s2380_s29 + $0xc0] sm:$0xff]  ;;  %v255_v29 = vld [vmem:[%s2380_s29 + $0xc8] sm:$0xff]  ;;  %v256_v30 = vld [vmem:[%s2380_s29 + $0xd0] sm:$0xff]  ;;  %2163 = vmatprep.subr.bf16.mxu0 %v2162_v48  ;;  %2176 = vmatpush3.bf16.msra.mxu1 %v2162_v48 }
  0x1e   : > { %v257_v31 = vld [vmem:[%s2380_s29 + $0xd8] sm:$0xff]  ;;  %v258_v32 = vld [vmem:[%s2380_s29 + $0xe0] sm:$0xff]  ;;  %v259_v33 = vld [vmem:[%s2380_s29 + $0xe8] sm:$0xff] }
  0x1f   : > { %2045 = vmatmul.mubr.msk.f32.gmra.mrb[4].mxu0 %vm271_vm0, %v235_v9  ;;  %v260_v34 = vld [vmem:[%s2380_s29 + $0xf0] sm:$0xff]  ;;  %v261_v35 = vld [vmem:[%s2380_s29 + $0xf8] sm:$0xff]  ;;  %s3549_s29 = scalar_lea.vmem %s3655_s5, %s1889_s26 }
  0x20   : > { %2047 = vmatprep.mubr.msk.f32.mxu0 %vm271_vm0, %v236_v10  ;;  %2165 = vmatpush3.bf16.msra.mxu0 %v2162_v48 }
  0x23   : > { %2048 = vmatmul.mubr.msk.f32.gmra.mrb[6].mxu0 %vm271_vm0, %v237_v11 }
  0x24   : > { %2050 = vmatprep.mubr.msk.f32.mxu0 %vm271_vm0, %v238_v12 }
  0x27   : > { %2051 = vmatmul.mubr.msk.f32.gmra.mrb[8].mxu0 %vm271_vm0, %v239_v13 }
  0x28   : > { %2053 = vmatprep.mubr.msk.f32.mxu0 %vm271_vm0, %v240_v14 }
  0x2b   : > { %2054 = vmatmul.mubr.msk.f32.gmra.mrb[10].mxu0 %vm271_vm0, %v241_v15 }
  0x2c   : > { %2056 = vmatprep.mubr.msk.f32.mxu0 %vm271_vm0, %v242_v16 }
  0x2f   : > { %2057 = vmatmul.mubr.msk.f32.gmra.mrb[12].mxu0 %vm271_vm0, %v243_v17 }
  0x30   : > { %2059 = vmatprep.mubr.msk.f32.mxu0 %vm271_vm0, %v244_v18 }
  0x33   : > { %2060 = vmatmul.mubr.msk.f32.gmra.mrb[14].mxu0 %vm271_vm0, %v245_v19 }
  0x34   : > { %2062 = vmatprep.mubr.msk.f32.mxu0 %vm271_vm0, %v246_v20 }
  0x37   : > { %2063 = vmatmul.mubr.msk.f32.gmra.mrb[16].mxu0 %vm271_vm0, %v247_v21 }
  0x38   : > { %2065 = vmatprep.mubr.msk.f32.mxu0 %vm271_vm0, %v248_v22 }
  0x3b   : > { %2066 = vmatmul.mubr.msk.f32.gmra.mrb[18].mxu0 %vm271_vm0, %v249_v23 }
  0x3c   : > { %2068 = vmatprep.mubr.msk.f32.mxu0 %vm271_vm0, %v250_v24 }
  0x3f   : > { %2069 = vmatmul.mubr.msk.f32.gmra.mrb[20].mxu0 %vm271_vm0, %v251_v25 }
  0x40   : > { %2071 = vmatprep.mubr.msk.f32.mxu0 %vm271_vm0, %v252_v26 }
  0x43   : > { %2072 = vmatmul.mubr.msk.f32.gmra.mrb[22].mxu0 %vm271_vm0, %v253_v27 }
  0x44   : > { %2074 = vmatprep.mubr.msk.f32.mxu0 %vm271_vm0, %v254_v28 }
  0x47   : > { %2075 = vmatmul.mubr.msk.f32.gmra.mrb[24].mxu0 %vm271_vm0, %v255_v29 }
  0x48   : > { %2077 = vmatprep.mubr.msk.f32.mxu0 %vm271_vm0, %v256_v30 }
  0x4b   : > { %2078 = vmatmul.mubr.msk.f32.gmra.mrb[26].mxu0 %vm271_vm0, %v257_v31 }
  0x4c   : > { %2080 = vmatprep.mubr.msk.f32.mxu0 %vm271_vm0, %v258_v32 }
  0x4f   : > { %2081 = vmatmul.mubr.msk.f32.gmra.mrb[28].mxu0 %vm271_vm0, %v259_v33 }
  0x50   : > { %2083 = vmatprep.mubr.msk.f32.mxu0 %vm271_vm0, %v260_v34 }
  0x53   : > { %2084 = vmatmul.mubr.msk.f32.gmra.mrb[30].mxu0 %vm271_vm0, %v261_v35 }
  0xea   : > { %v2040_v43 = vpop.f32.mrb[0].mxu0 }
  0xeb   : > { %v2464_v44 = vadd.f32 %v2040_v43, %v2461_v42  ;;  %v434_v45 = vpop.f32.mrb[1].mxu0 }
  0xec   : > { %v2473_v49 = vadd.f32 %v2461_v42, %v434_v45 }
  0xed   : > { %v2476_v51 = vmul.f32 0.70710677, %v2464_v44 }
  0xee   : > { %v2043_v50 = vpop.f32.mrb[2].mxu0  ;;  %v2479_v53 = vmul.f32 0.70710677, %v2473_v49 }
  0xef   : > { %v444_v52 = vpop.f32.mrb[3].mxu0  ;;  %v2482_v54 = vand.u32 2147483647, %v2476_v51  ;;  %v2485_v55 = vadd.f32 %v2043_v50, %v2461_v42  ;;  %vm658_vm1 = vcmp.ge.f32.partialorder %v2476_v51, 0.0 }
  0xf0   : > { %v2488_v58 = vand.u32 2147483647, %v2479_v53  ;;  %v445_v35 = vadd.f32 %v2461_v42, %v444_v52  ;;  %vm657_vm2 = vcmp.ge.f32.partialorder %v2479_v53, 0.0 }
  0xf1   : > { %v754_v60 = vmul.f32 0.3275911, %v2482_v54  ;;  %v2492_v61 = vmul.f32 0.70710677, %v2485_v55  ;;  %v1170_v37 = vsub.f32 0.0, %v2482_v54 }
  0xf2   : > { %v2046_v56 = vpop.f32.mrb[4].mxu0  ;;  %v753_v0 = vmul.f32 0.3275911, %v2488_v58  ;;  %v1169_v45 = vsub.f32 0.0, %v2488_v58  ;;  %v2575_v48 = vmul.f32 0.70710677, %v445_v35 }
  0xf3   : > { %v454_v57 = vpop.f32.mrb[5].mxu0  ;;  %v2495_v63 = vadd.f32 %v2046_v56, %v2461_v42  ;;  %v786_v3 = vadd.f32 1.0, %v754_v60  ;;  %v2502_v4 = vand.u32 2147483647, %v2492_v61  ;;  %v1202_v52 = vmul.f32 %v1170_v37, %v2482_v54 }
  0xf4   : > { %v2499_v1 = vadd.f32 %v2461_v42, %v454_v57  ;;  %v785_v7 = vadd.f32 1.0, %v753_v0  ;;  %3682 = vst [vmem:[#allocation5_spill] sm:$0xff] %v2575_v48  ;;  %v2594_v54 = vmul.f32 0.5, %v2473_v49  ;;  %vm660_vm3 = vcmp.ge.f32.partialorder %v2492_v61, 0.0 }
  0xf5   : > { %v2507_v6 = vmul.f32 0.70710677, %v2495_v63  ;;  %2187 = vrcp.f32 %v786_v3  ;;  %v756_v10 = vmul.f32 0.3275911, %v2502_v4  ;;  %v2591_v3 = vmul.f32 0.5, %v2464_v44 }
  0xf6   : > { %v2049_v59 = vpop.f32.mrb[6].mxu0  ;;  %v2510_v8 = vmul.f32 0.70710677, %v2499_v1  ;;  %2189 = vrcp.f32 %v785_v7  ;;  %v1172_v7 = vsub.f32 0.0, %v2502_v4 }
  0xf7   : > { %v464_v62 = vpop.f32.mrb[7].mxu0  ;;  %v2518_v12 = vadd.f32 %v2049_v59, %v2461_v42  ;;  %v2521_v13 = vand.u32 2147483647, %v2507_v6  ;;  %v788_v16 = vadd.f32 1.0, %v756_v10  ;;  %v723_v10 = vand.u32 2147483647, %v2575_v48 }
  0xf8   : > { %v2524_v14 = vand.u32 2147483647, %v2510_v8  ;;  %v2535_v20 = vadd.f32 %v2461_v42, %v464_v62  ;;  %v1201_v62 = vmul.f32 %v1169_v45, %v2488_v58  ;;  %v2627_v45 = vmul.f32 0.5, %v445_v35 }
  0xf9   : > { %v2531_v18 = vmul.f32 0.70710677, %v2518_v12  ;;  %v758_v19 = vmul.f32 0.3275911, %v2521_v13  ;;  %2191 = vrcp.f32 %v788_v16  ;;  %v755_v35 = vmul.f32 0.3275911, %v723_v10 }
  0xfa   : > { %v2052_v2 = vpop.f32.mrb[8].mxu0  ;;  %v757_v21 = vmul.f32 0.3275911, %v2524_v14  ;;  %v2548_v27 = vmul.f32 0.70710677, %v2535_v20  ;;  %3687 = vst [vmem:[#allocation10_spill] sm:$0xff] %v2627_v45 }
  0xfb   : > { %v2504_v5 = vpop.f32.mrb[9].mxu0  ;;  %v2541_v23 = vand.u32 2147483647, %v2531_v18  ;;  %v790_v26 = vadd.f32 1.0, %v758_v19  ;;  %v2573_v47 = vadd.f32 %v2052_v2, %v2461_v42  ;;  %v3656_v19 = vmov -1.0  }
  0xfc   : > { %v789_v28 = vadd.f32 1.0, %v757_v21  ;;  %v2559_v34 = vand.u32 2147483647, %v2548_v27  ;;  %v2605_v58 = vsel %vm658_vm1, 1.0, %v3656_v19  ;;  %v1235_v21 = vmul.f32 1.442695, %v1202_v52 }
  0xfd   : > { %v760_v33 = vmul.f32 0.3275911, %v2541_v23  ;;  %2193 = vrcp.f32 %v790_v26  ;;  %v2588_v2 = vmul.f32 0.70710677, %v2573_v47  ;;  %v2608_v44 = vsel %vm657_vm2, 1.0, %v3656_v19 }
  0xfe   : > { %v2512_v9 = vpop.f32.mrb[10].mxu0  ;;  %2195 = vrcp.f32 %v789_v28  ;;  %v759_v46 = vmul.f32 0.3275911, %v2559_v34  ;;  %v1233_v51 = vmul.f32 1.442695, %v1201_v62  ;;  %v1174_v62 = vsub.f32 0.0, %v2521_v13 }
  0xff   : > { %v2515_v11 = vpop.f32.mrb[11].mxu0  ;;  %v2545_v25 = vpop.eup %2187  ;;  %v792_v40 = vadd.f32 1.0, %v760_v33  ;;  %v2616_v33 = vmul.f32 0.5, %v2485_v55  ;;  %vm662_vm4 = vcmp.ge.f32.partialorder %v2507_v6, 0.0  ;;  %vm661_vm5 = vcmp.ge.f32.partialorder %v2510_v8, 0.0 }
 0x100   : > { %v2554_v31 = vpop.eup %2189  ;;  %v882_v32 = vmul.f32 1.0614054, %v2545_v25  ;;  %v791_v0 = vadd.f32 1.0, %v759_v46  ;;  %v1171_v46 = vsub.f32 0.0, %v723_v10  ;;  %vm664_vm6 = vcmp.ge.f32.partialorder %v2531_v18, 0.0 }
 0x101   : > { %v881_v38 = vmul.f32 1.0614054, %v2554_v31  ;;  %2197 = vrcp.f32 %v792_v40  ;;  %v1204_v40 = vmul.f32 %v1172_v7, %v2502_v4  ;;  %vm663_vm7 = vcmp.ge.f32.partialorder %v2548_v27, 0.0 }
 0x102   : > { %v2526_v15 = vpop.f32.mrb[12].mxu0  ;;  %v914_v39 = vadd.f32 -1.4531521, %v882_v32  ;;  %2199 = vrcp.f32 %v791_v0  ;;  %v2642_v0 = vmul.f32 0.5, %v2495_v63  ;;  %v1203_v45 = vmul.f32 %v1171_v46, %v723_v10 }
 0x103   : > { %v2528_v17 = vpop.f32.mrb[13].mxu0  ;;  %v2568_v43 = vpop.eup %2191  ;;  %v913_v56 = vadd.f32 -1.4531521, %v881_v38  ;;  %v2620_v38 = vand.u32 2147483647, %v2588_v2  ;;  %2201 = vpow2.f32 %v1235_v21  ;;  %v1173_v10 = vsub.f32 0.0, %v2524_v14 }
 0x104   : > { %v946_v59 = vmul.f32 %v2545_v25, %v914_v39  ;;  %v884_v60 = vmul.f32 1.0614054, %v2568_v43  ;;  %v2624_v39 = vadd.f32 %v2461_v42, %v2504_v5  ;;  %2203 = vpow2.f32 %v1233_v51 }
 0x105   : > { %v945_v49 = vmul.f32 %v2554_v31, %v913_v56  ;;  %v2633_v56 = vsel %vm660_vm3, 1.0, %v3656_v19  ;;  %v762_v7 = vmul.f32 0.3275911, %v2620_v38  ;;  %v1239_v19 = vmul.f32 1.442695, %v1204_v40 }
 0x106   : > { %v2538_v22 = vpop.f32.mrb[14].mxu0  ;;  %v978_v32 = vadd.f32 1.4214138, %v946_v59  ;;  %v916_v37 = vadd.f32 -1.4531521, %v884_v60  ;;  %v1206_v40 = vmul.f32 %v1174_v62, %v2521_v13  ;;  %v787_v46 = vadd.f32 1.0, %v755_v35 }
 0x107   : > { %v2543_v24 = vpop.f32.mrb[15].mxu0  ;;  %v2600_v16 = vpop.eup %2193  ;;  %v977_v61 = vadd.f32 1.4214138, %v945_v49  ;;  %v2646_v21 = vmul.f32 0.70710677, %v2624_v39  ;;  %2205 = vpow2.f32 %v1239_v19  ;;  %v2682_v19 = vadd.f32 %v2512_v9, %v2461_v42 }
 0x108   : > { %v2613_v28 = vpop.eup %2195  ;;  %v886_v55 = vmul.f32 1.0614054, %v2600_v16  ;;  %v1010_v5 = vmul.f32 %v2545_v25, %v978_v32  ;;  %v948_v4 = vmul.f32 %v2568_v43, %v916_v37  ;;  %v2651_v32 = vmul.f32 0.5, %v2499_v1 }
 0x109   : > { %v885_v59 = vmul.f32 1.0614054, %v2613_v28  ;;  %v1009_v51 = vmul.f32 %v2554_v31, %v977_v61  ;;  %v2666_v6 = vmul.f32 1.442695, %v1203_v45  ;;  %v3692_v61 = vmov -1.0  }
 0x10a   : > { %v2550_v29 = vpop.f32.mrb[16].mxu0  ;;  %v918_v48 = vadd.f32 -1.4531521, %v886_v55  ;;  %v794_v55 = vadd.f32 1.0, %v762_v7  ;;  %v2677_v35 = vsel %vm661_vm5, 1.0, %v3692_v61  ;;  %v2693_v9 = vmul.f32 0.5, %v2518_v12 }
 0x10b   : > { %v2552_v30 = vpop.f32.mrb[17].mxu0  ;;  %v2648_v49 = vpop.eup %2197  ;;  %v917_v63 = vadd.f32 -1.4531521, %v885_v59  ;;  %v2669_v59 = vsel %vm662_vm4, 1.0, %v3692_v61  ;;  %v1041_v13 = vadd.f32 -0.28449672, %v1009_v51 }
 0x10c   : > { %v888_v1 = vmul.f32 1.0614054, %v2648_v49  ;;  %2207 = vrcp.f32 %v794_v55  ;;  %3693 = vst [vmem:[#allocation15_spill] sm:$0xff] %v2693_v9  ;;  %v2708_v9 = vadd.f32 %v2526_v15, %v2461_v42  ;;  %vm666_vm8 = vcmp.ge.f32.partialorder %v2588_v2, 0.0 }
 0x10d   : > { %v949_v62 = vmul.f32 %v2613_v28, %v917_v63  ;;  %2209 = vrcp.f32 %v787_v46  ;;  %vm665_vm9 = vcmp.ge.f32.partialorder %v2646_v21, 0.0  ;;  %vm1472_vm3 = vcmask 523264  }
 0x10e   : > { %v2562_v36 = vpop.f32.mrb[18].mxu0  ;;  %v920_v51 = vadd.f32 -1.4531521, %v888_v1  ;;  %v2700_v1 = vmul.f32 0.70710677, %v2682_v19  ;;  %3694 = vst [vmem:[#allocation16_spill] sm:$0xff] %v2708_v9 }
 0x10f   : > { %3680 = vst [vmem:[#allocation3_spill] sm:$0xff] %v2562_v36  ;;  %v2566_v41 = vpop.f32.mrb[19].mxu0  ;;  %v2727_v18 = vmul.f32 0.70710677, %v2708_v9 }
 0x110   : > { %3681 = vst [vmem:[#allocation4_spill] sm:$0xff] %v2566_v41  ;;  %v952_v12 = vmul.f32 %v2648_v49, %v920_v51  ;;  %v2719_v51 = vand.u32 2147483647, %v2700_v1  ;;  %vm668_vm10 = vcmp.ge.f32.partialorder %v2700_v1, 0.0 }
 0x111   : > { %3696 = vst [vmem:[#allocation18_spill] sm:$0xff] %v2727_v18 }
 0x112   : > { %v2577_v50 = vpop.f32.mrb[20].mxu0 }
 0x113   : > { %3683 = vst [vmem:[#allocation6_spill] sm:$0xff] %v2577_v50  ;;  %v2581_v57 = vpop.f32.mrb[21].mxu0 }
 0x114   : > { %3684 = vst [vmem:[#allocation7_spill] sm:$0xff] %v2581_v57  ;;  %v2690_v57 = vadd.f32 %v2461_v42, %v2515_v11 }
 0x116   : > { %v2598_v53 = vpop.f32.mrb[22].mxu0  ;;  %v2704_v41 = vmul.f32 0.70710677, %v2690_v57 }
 0x117   : > { %3685 = vst [vmem:[#allocation8_spill] sm:$0xff] %v2598_v53  ;;  %v2611_v26 = vpop.f32.mrb[23].mxu0  ;;  %v980_v53 = vadd.f32 1.4214138, %v948_v4  ;;  %v2672_v4 = vpop.eup %2199 }
 0x118   : > { %3686 = vst [vmem:[#allocation9_spill] sm:$0xff] %v2611_v26  ;;  %v2202_v26 = vpop.eup %2201  ;;  %vm667_vm11 = vcmp.ge.f32.partialorder %v2704_v41, 0.0 }
 0x119   : > { %v1012_v7 = vmul.f32 %v2568_v43, %v980_v53  ;;  %v887_v53 = vmul.f32 1.0614054, %v2672_v4 }
 0x11a   : > { %v2630_v52 = vpop.f32.mrb[24].mxu0 }
 0x11b   : > { %3688 = vst [vmem:[#allocation11_spill] sm:$0xff] %v2630_v52  ;;  %v2636_v60 = vpop.f32.mrb[25].mxu0  ;;  %v1044_v11 = vadd.f32 -0.28449672, %v1012_v7  ;;  %v919_v46 = vadd.f32 -1.4531521, %v887_v53 }
 0x11c   : > { %3689 = vst [vmem:[#allocation12_spill] sm:$0xff] %v2636_v60  ;;  %v1042_v60 = vadd.f32 -0.28449672, %v1010_v5  ;;  %v950_v5 = vmul.f32 %v2600_v16, %v918_v48  ;;  %v1205_v48 = vmul.f32 %v1173_v10, %v2524_v14  ;;  %v1073_v14 = vmul.f32 %v2554_v31, %v1041_v13 }
 0x11d   : > { %v1176_v10 = vsub.f32 0.0, %v2541_v23  ;;  %v984_v53 = vadd.f32 1.4214138, %v952_v12  ;;  %v2750_v12 = vadd.f32 %v2461_v42, %v2528_v17 }
 0x11e   : > { %v2653_v37 = vpop.f32.mrb[26].mxu0  ;;  %v1074_v45 = vmul.f32 %v2545_v25, %v1042_v60  ;;  %v982_v63 = vadd.f32 1.4214138, %v950_v5  ;;  %v2204_v60 = vpop.eup %2203  ;;  %v1241_v5 = vmul.f32 1.442695, %v1205_v48 }
 0x11f   : > { %3690 = vst [vmem:[#allocation13_spill] sm:$0xff] %v2653_v37  ;;  %v2658_v52 = vpop.f32.mrb[27].mxu0  ;;  %v2664_v37 = vand.u32 2147483647, %v2646_v21  ;;  %v1208_v48 = vmul.f32 %v1176_v10, %v2541_v23  ;;  %v2731_v23 = vand.u32 2147483647, %v2704_v41 }
 0x120   : > { %3691 = vst [vmem:[#allocation14_spill] sm:$0xff] %v2658_v52  ;;  %v1243_v52 = vmul.f32 1.442695, %v1206_v40  ;;  %v981_v40 = vadd.f32 1.4214138, %v949_v62  ;;  %v1014_v13 = vmul.f32 %v2600_v16, %v982_v63  ;;  %v2714_v62 = vsel %vm664_vm6, 1.0, %v3692_v61 }
 0x121   : > { %v761_v8 = vmul.f32 0.3275911, %v2664_v37  ;;  %v1106_v55 = vadd.f32 0.2548296, %v1074_v45  ;;  %v1105_v45 = vadd.f32 0.2548296, %v1073_v14 }
 0x122   : > { %2211 = vpow2.f32 %v1243_v52  ;;  %v1013_v7 = vmul.f32 %v2613_v28, %v981_v40  ;;  %v2723_v63 = vmul.f32 0.5, %v2535_v20  ;;  %v1076_v52 = vmul.f32 %v2568_v43, %v1044_v11  ;;  %3700 = vst [vmem:[#allocation22_spill] sm:$0xff] %v2750_v12 }
 0x123   : > { %v793_v50 = vadd.f32 1.0, %v761_v8  ;;  %v2206_v8 = vpop.eup %2205  ;;  %v1138_v15 = vmul.f32 %v2545_v25, %v1106_v55  ;;  %v1046_v14 = vadd.f32 -0.28449672, %v1014_v13  ;;  %v951_v40 = vmul.f32 %v2672_v4, %v919_v46 }
 0x124   : > { %3695 = vst [vmem:[#allocation17_spill] sm:$0xff] %v2723_v63  ;;  %v1175_v25 = vsub.f32 0.0, %v2559_v34  ;;  %v2735_v20 = vpop.eup %2207  ;;  %v1137_v27 = vmul.f32 %v2554_v31, %v1105_v45  ;;  %v1045_v10 = vadd.f32 -0.28449672, %v1013_v7  ;;  %v1247_v55 = vmul.f32 1.442695, %v1208_v48 }
 0x125   : > { %2213 = vrcp.f32 %v793_v50  ;;  %v764_v63 = vmul.f32 0.3275911, %v2719_v51  ;;  %v2740_v11 = vsel %vm663_vm7, 1.0, %v3692_v61  ;;  %v2743_v50 = vmul.f32 0.5, %v2573_v47  ;;  %v2754_v7 = vpop.eup %2209 }
 0x126   : > { %2215 = vpow2.f32 %v1241_v5  ;;  %3697 = vst [vmem:[#allocation19_spill] sm:$0xff] %v2740_v11  ;;  %v2746_v5 = vand.u32 2147483647, %v2727_v18  ;;  %v1298_v13 = vmul.f32 %v2202_v26, %v1138_v15  ;;  %v1108_v46 = vadd.f32 0.2548296, %v1076_v52  ;;  %3701 = vst [vmem:[#allocation23_spill] sm:$0xff] %v2754_v7 }
 0x127   : > { %3698 = vst [vmem:[#allocation20_spill] sm:$0xff] %v2743_v50  ;;  %v1016_v31 = vmul.f32 %v2648_v49, %v984_v53  ;;  %v763_v45 = vmul.f32 0.3275911, %v2731_v23  ;;  %v1078_v48 = vmul.f32 %v2600_v16, %v1046_v14  ;;  %v983_v36 = vadd.f32 1.4214138, %v951_v40 }
 0x128   : > { %3699 = vst [vmem:[#allocation21_spill] sm:$0xff] %v2746_v5  ;;  %v1207_v47 = vmul.f32 %v1175_v25, %v2559_v34  ;;  %v890_v50 = vmul.f32 1.0614054, %v2735_v20  ;;  %v1297_v18 = vmul.f32 %v2204_v60, %v1137_v27  ;;  %v1077_v9 = vmul.f32 %v2613_v28, %v1045_v10 }
 0x129   : > { %2217 = vpow2.f32 %v1247_v55  ;;  %v796_v17 = vadd.f32 1.0, %v764_v63  ;;  %v1178_v15 = vsub.f32 0.0, %v2620_v38  ;;  %v766_v52 = vmul.f32 0.3275911, %v2746_v5 }
 0x12a   : > { %v2763_v53 = vmul.f32 0.70710677, %v2750_v12  ;;  %v2767_v14 = vadd.f32 %v2538_v22, %v2461_v42  ;;  %v1330_v34 = vsub.f32 1.0, %v1298_v13  ;;  %v1140_v40 = vmul.f32 %v2568_v43, %v1108_v46 }
 0x12b   : > { %v1048_v60 = vadd.f32 -0.28449672, %v1016_v31  ;;  %v795_v25 = vadd.f32 1.0, %v763_v45  ;;  %v1110_v27 = vadd.f32 0.2548296, %v1078_v48  ;;  %v1015_v63 = vmul.f32 %v2672_v4, %v983_v36  ;;  %v2789_v48 = vpop.f32.mrb[28].mxu0 }
 0x12c   : > { %v2212_v26 = vpop.eup %2211  ;;  %v1245_v10 = vmul.f32 1.442695, %v1207_v47  ;;  %v922_v55 = vadd.f32 -1.4531521, %v890_v50  ;;  %v1329_v5 = vsub.f32 1.0, %v1297_v18  ;;  %2219 = vrcp.f32 %v796_v17  ;;  %3702 = vst [vmem:[#allocation24_spill] sm:$0xff] %v2789_v48 }
 0x12d   : > { %v1109_v11 = vadd.f32 0.2548296, %v1077_v9  ;;  %v2775_v12 = vadd.f32 %v2461_v42, %v2543_v24  ;;  %v1210_v13 = vmul.f32 %v1178_v15, %v2620_v38  ;;  %v798_v43 = vadd.f32 1.0, %v766_v52 }
 0x12e   : > { %v2779_v46 = vand.u32 2147483647, %v2763_v53  ;;  %v2782_v36 = vmul.f32 0.70710677, %v2767_v14  ;;  %v1362_v50 = vmul.f32 %v1330_v34, %v2605_v58  ;;  %v1300_v31 = vmul.f32 %v2206_v8, %v1140_v40  ;;  %v2799_v8 = vpop.f32.mrb[29].mxu0 }
 0x12f   : > { %v2771_v7 = vpop.eup %2213  ;;  %v1080_v9 = vmul.f32 %v2648_v49, %v1048_v60  ;;  %2221 = vrcp.f32 %v795_v25  ;;  %v1142_v18 = vmul.f32 %v2600_v16, %v1110_v27  ;;  %v1047_v24 = vadd.f32 -0.28449672, %v1015_v63  ;;  %v2805_v48 = vpop.f32.mrb[30].mxu0 }
 0x130   : > { %v2216_v22 = vpop.eup %2215  ;;  %v954_v45 = vmul.f32 %v2735_v20, %v922_v55  ;;  %v889_v38 = vmul.f32 1.0614054, %v2771_v7  ;;  %2223 = vpow2.f32 %v2666_v6  ;;  %v2794_v47 = vand.u32 2147483647, %v2782_v36  ;;  %3703 = vst [vmem:[#allocation25_spill] sm:$0xff] %v2805_v48 }
 0x131   : > { %v2797_v58 = vmul.f32 0.70710677, %v2775_v12  ;;  %v1361_v16 = vmul.f32 %v1329_v5, %v2608_v44  ;;  %v1141_v17 = vmul.f32 %v2613_v28, %v1109_v11  ;;  %2225 = vrcp.f32 %v798_v43  ;;  %v2816_v5 = vpop.f32.mrb[31].mxu0 }
 0x132   : > { %v765_v15 = vmul.f32 0.3275911, %v2779_v46  ;;  %v1394_v34 = vadd.f32 1.0, %v1362_v50  ;;  %v1332_v6 = vsub.f32 1.0, %v1300_v31  ;;  %v1112_v40 = vadd.f32 0.2548296, %v1080_v9 }
 0x133   : > { %v2218_v52 = vpop.eup %2217  ;;  %v1251_v60 = vmul.f32 1.442695, %v1210_v13  ;;  %v1302_v25 = vmul.f32 %v2212_v26, %v1142_v18  ;;  %v1079_v27 = vmul.f32 %v2672_v4, %v1047_v24  ;;  %v986_v63 = vadd.f32 1.4214138, %v954_v45  ;;  %3704 = vst [vmem:[#allocation26_spill] sm:$0xff] %v2816_v5 }
 0x134   : > { %v921_v55 = vadd.f32 -1.4531521, %v889_v38  ;;  %2227 = vpow2.f32 %v1245_v10  ;;  %v2810_v44 = vsel %vm666_vm8, 1.0, %v3692_v61  ;;  %v768_v28 = vmul.f32 0.3275911, %v2794_v47 }
 0x135   : > { %v2814_v11 = vand.u32 2147483647, %v2797_v58  ;;  %v1301_v26 = vmul.f32 %v2216_v22, %v1141_v17  ;;  %v2819_v13 = vmul.f32 0.5, %v2624_v39  ;;  %v1177_v43 = vsub.f32 0.0, %v2664_v37 }
 0x136   : > { %v797_v50 = vadd.f32 1.0, %v765_v15  ;;  %v2822_v10 = vpop.eup %2219  ;;  %v2825_v2 = vmul.f32 %v1394_v34, %v2591_v3  ;;  %v1393_v31 = vadd.f32 1.0, %v1361_v16  ;;  %v1144_v9 = vmul.f32 %v2648_v49, %v1112_v40 }
 0x137   : > { %v1364_v18 = vmul.f32 %v1332_v6, %v2633_v56  ;;  %v1334_v24 = vsub.f32 1.0, %v1302_v25  ;;  %v1111_v22 = vadd.f32 0.2548296, %v1079_v27  ;;  %2229 = vpow2.f32 %v1251_v60 }
 0x138   : > { %v1018_v45 = vmul.f32 %v2735_v20, %v986_v63  ;;  %v953_v38 = vmul.f32 %v2771_v7, %v921_v55  ;;  %v800_v17 = vadd.f32 1.0, %v768_v28  ;;  %v767_v3 = vmul.f32 0.3275911, %v2814_v11 }
 0x139   : > { %v2830_v39 = vpop.eup %2221  ;;  %v1333_v15 = vsub.f32 1.0, %v1301_v26  ;;  %v1209_v16 = vmul.f32 %v1177_v43, %v2664_v37  ;;  %v892_v49 = vmul.f32 1.0614054, %v2822_v10  ;;  %2231 = vrcp.f32 %v797_v50 }
 0x13a   : > { %v2837_v34 = vpop.eup %2223  ;;  %v2840_v56 = vmul.f32 %v1393_v31, %v2594_v54  ;;  %v1304_v6 = vmul.f32 %v2218_v52, %v1144_v9  ;;  %v2845_v40 = vsel %vm665_vm9, 1.0, %v3692_v61  ;;  %v2849_v60 = vadd.f32 %v2550_v29, %v2461_v42 }
 0x13b   : > { %3705 = vst [vmem:[#allocation27_spill] sm:$0xff] %v2837_v34  ;;  %v2851_v25 = vpop.eup %2225  ;;  %v1396_v37 = vadd.f32 1.0, %v1364_v18  ;;  %v1366_v27 = vmul.f32 %v1334_v24, %v2669_v59  ;;  %v1143_v63 = vmul.f32 %v2672_v4, %v1111_v22  ;;  %v891_v54 = vmul.f32 1.0614054, %v2830_v39 }
 0x13c   : > { %v1050_v55 = vadd.f32 -0.28449672, %v1018_v45  ;;  %v985_v52 = vadd.f32 1.4214138, %v953_v38  ;;  %2233 = vrcp.f32 %v800_v17  ;;  %v799_v28 = vadd.f32 1.0, %v767_v3  ;;  %2102 = vmatprep.mubr.msk.f32.mxu0 %vm1472_vm3, %v2840_v56 }
 0x13d   : > { %v1365_v21 = vmul.f32 %v1333_v15, %v2677_v35  ;;  %v1249_v26 = vmul.f32 1.442695, %v1209_v16  ;;  %v924_v43 = vadd.f32 -1.4531521, %v892_v49  ;;  %v1180_v29 = vsub.f32 0.0, %v2719_v51 }
 0x13e   : > { %v2228_v50 = vpop.eup %2227  ;;  %v1336_v31 = vsub.f32 1.0, %v1304_v6  ;;  %v894_v59 = vmul.f32 1.0614054, %v2851_v25  ;;  %v2861_v4 = vmul.f32 0.70710677, %v2849_v60  ;;  %v2864_v9 = vmul.f32 %v1396_v37, %v2616_v33 }
 0x13f   : > { %v1303_v18 = vmul.f32 %v2228_v50, %v1143_v63  ;;  %v2867_v24 = vmul.f32 0.5, %v2682_v19  ;;  %v923_v35 = vadd.f32 -1.4531521, %v891_v54  ;;  %v1398_v22 = vadd.f32 1.0, %v1366_v27 }
 0x140   : > { %3706 = vst [vmem:[#allocation28_spill] sm:$0xff] %v2864_v9  ;;  %v1082_v45 = vmul.f32 %v2735_v20, %v1050_v55  ;;  %v1017_v38 = vmul.f32 %v2771_v7, %v985_v52  ;;  %2235 = vrcp.f32 %v799_v28  ;;  %v1397_v17 = vadd.f32 1.0, %v1365_v21 }
 0x141   : > { %v2230_v1 = vpop.eup %2229  ;;  %v2872_v3 = vsel %vm668_vm10, 1.0, %v3692_v61  ;;  %v956_v15 = vmul.f32 %v2822_v10, %v924_v43  ;;  %v1212_v33 = vmul.f32 %v1180_v29, %v2719_v51  ;;  %v1368_v16 = vmul.f32 %v1336_v31, %v2714_v62  ;;  %v3709_v31 = vld [vmem:[#allocation19_spill] sm:$0xff] }
 0x142   : > { %2237 = vpow2.f32 %v1249_v26  ;;  %v926_v19 = vadd.f32 -1.4531521, %v894_v59  ;;  %v2878_v49 = vand.u32 2147483647, %v2861_v4  ;;  %v1335_v37 = vsub.f32 1.0, %v1303_v18 }
 0x143   : > { %v2880_v6 = vpop.eup %2231  ;;  %v955_v27 = vmul.f32 %v2830_v39, %v923_v35  ;;  %v2886_v63 = vadd.f32 %v2461_v42, %v2552_v30  ;;  %v2889_v51 = vmul.f32 %v1398_v22, %v2642_v0  ;;  %v1114_v62 = vadd.f32 0.2548296, %v1082_v45  ;;  %v3710_v45 = vld [vmem:[#allocation21_spill] sm:$0xff] }
 0x144   : > { %v1049_v54 = vadd.f32 -0.28449672, %v1017_v38  ;;  %v1179_v55 = vsub.f32 0.0, %v2731_v23  ;;  %v2893_v52 = vmul.f32 %v1397_v17, %v2651_v32  ;;  %v988_v28 = vadd.f32 1.4214138, %v956_v15  ;;  %v3711_v15 = vld [vmem:[#allocation16_spill] sm:$0xff] }
 0x145   : > { %3707 = vst [vmem:[#allocation29_spill] sm:$0xff] %v2889_v51  ;;  %v1255_v21 = vmul.f32 1.442695, %v1212_v33  ;;  %v2896_v41 = vmul.f32 0.5, %v2690_v57  ;;  %v2901_v30 = vsel %vm667_vm11, 1.0, %v3692_v61  ;;  %v958_v0 = vmul.f32 %v2851_v25, %v926_v19 }
 0x146   : > { %3708 = vst [vmem:[#allocation30_spill] sm:$0xff] %v2893_v52  ;;  %v2898_v26 = vpop.eup %2233  ;;  %v893_v43 = vmul.f32 1.0614054, %v2880_v6  ;;  %v770_v29 = vmul.f32 0.3275911, %v2878_v49  ;;  %v1400_v50 = vadd.f32 1.0, %v1368_v16  ;;  %v1367_v32 = vmul.f32 %v1335_v37, %v3709_v31 }
 0x147   : > { %v987_v59 = vadd.f32 1.4214138, %v955_v27  ;;  %v2908_v18 = vmul.f32 0.70710677, %v2886_v63  ;;  %v1146_v57 = vmul.f32 %v2735_v20, %v1114_v62  ;;  %v1081_v35 = vmul.f32 %v2771_v7, %v1049_v54  ;;  %v3712_v20 = vld [vmem:[#allocation3_spill] sm:$0xff] }
 0x148   : > { %v1211_v22 = vmul.f32 %v1179_v55, %v2731_v23  ;;  %v1182_v38 = vsub.f32 0.0, %v3710_v45  ;;  %v1020_v17 = vmul.f32 %v2822_v10, %v988_v28  ;;  %2239 = vpow2.f32 %v1255_v21  ;;  %v3713_v55 = vld [vmem:[#allocation18_spill] sm:$0xff] }
 0x149   : > { %v2916_v33 = vmul.f32 0.5, %v3711_v15  ;;  %v896_v16 = vmul.f32 1.0614054, %v2898_v26  ;;  %v990_v37 = vadd.f32 1.4214138, %v958_v0  ;;  %v802_v31 = vadd.f32 1.0, %v770_v29 }
 0x14a   : > { %v2919_v19 = vpop.eup %2235  ;;  %v925_v27 = vadd.f32 -1.4531521, %v893_v43  ;;  %v2923_v62 = vadd.f32 %v3712_v20, %v2461_v42  ;;  %v1399_v23 = vadd.f32 1.0, %v1367_v32  ;;  %v1019_v54 = vmul.f32 %v2830_v39, %v987_v59  ;;  %v3714_v43 = vld [vmem:[#allocation15_spill] sm:$0xff] }
 0x14b   : > { %vm670_vm12 = vcmp.ge.f32.partialorder %v3713_v55, 0.0  ;;  %v2928_v28 = vand.u32 2147483647, %v2908_v18  ;;  %v1306_v15 = vmul.f32 %v2230_v1, %v1146_v57  ;;  %v1113_v51 = vadd.f32 0.2548296, %v1081_v35  ;;  %v3716_v1 = vld [vmem:[#allocation17_spill] sm:$0xff] }
 0x14c   : > { %v2238_v21 = vpop.eup %2237  ;;  %v1253_v52 = vmul.f32 1.442695, %v1211_v22  ;;  %v1214_v0 = vmul.f32 %v1182_v38, %v3710_v45  ;;  %v2932_v29 = vmul.f32 %v1400_v50, %v3714_v43  ;;  %v1052_v9 = vadd.f32 -0.28449672, %v1020_v17  ;;  %v3718_v17 = vld [vmem:[#allocation22_spill] sm:$0xff] }
 0x14d   : > { %v928_v20 = vadd.f32 -1.4531521, %v896_v16  ;;  %v895_v32 = vmul.f32 1.0614054, %v2919_v19  ;;  %v1022_v59 = vmul.f32 %v2851_v25, %v990_v37  ;;  %v957_v5 = vmul.f32 %v2880_v6, %v925_v27 }
 0x14e   : > { %3715 = vst [vmem:[#allocation19_spill] sm:$0xff] %v2932_v29  ;;  %2241 = vrcp.f32 %v802_v31  ;;  %v2938_v48 = vmul.f32 0.70710677, %v2923_v62  ;;  %v2941_v57 = vmul.f32 %v1399_v23, %v3716_v1  ;;  %v1051_v35 = vadd.f32 -0.28449672, %v1019_v54 }
 0x14f   : > { %v2946_v50 = vsel %vm670_vm12, 1.0, %v3692_v61  ;;  %v769_v22 = vmul.f32 0.3275911, %v2928_v28  ;;  %v1338_v45 = vsub.f32 1.0, %v1306_v15  ;;  %2243 = vpow2.f32 %v1253_v52 }
 0x150   : > { %3717 = vst [vmem:[#allocation21_spill] sm:$0xff] %v2941_v57  ;;  %v1259_v38 = vmul.f32 1.442695, %v1214_v0  ;;  %v2950_v16 = vmul.f32 0.5, %v3718_v17  ;;  %v1145_v37 = vmul.f32 %v2771_v7, %v1113_v51  ;;  %vm669_vm13 = vcmp.ge.f32.partialorder %v2763_v53, 0.0  ;;  %v3719_v17 = vld [vmem:[#allocation4_spill] sm:$0xff] }
 0x151   : > { %v960_v27 = vmul.f32 %v2898_v26, %v928_v20  ;;  %v927_v31 = vadd.f32 -1.4531521, %v895_v32  ;;  %v1084_v23 = vmul.f32 %v2822_v10, %v1052_v9  ;;  %v1054_v54 = vadd.f32 -0.28449672, %v1022_v59 }
 0x152   : > { %v989_v55 = vadd.f32 1.4214138, %v957_v5  ;;  %v2957_v43 = vand.u32 2147483647, %v2938_v48  ;;  %v2240_v15 = vpop.eup %2239  ;;  %v1083_v52 = vmul.f32 %v2830_v39, %v1051_v35  ;;  %v1181_v0 = vsub.f32 0.0, %v2779_v46 }
 0x153   : > { %v801_v1 = vadd.f32 1.0, %v769_v22  ;;  %v2963_v7 = vadd.f32 %v2461_v42, %v3719_v17  ;;  %v1370_v51 = vmul.f32 %v1338_v45, %v2810_v44  ;;  %2245 = vpow2.f32 %v1259_v38 }
 0x154   : > { %v2967_v9 = vmul.f32 0.5, %v2767_v14  ;;  %v1184_v5 = vsub.f32 0.0, %v2794_v47  ;;  %v1305_v20 = vmul.f32 %v2238_v21, %v1145_v37  ;;  %v2973_v32 = vsel %vm669_vm13, 1.0, %v3692_v61 }
 0x155   : > { %v992_v59 = vadd.f32 1.4214138, %v960_v27  ;;  %v959_v35 = vmul.f32 %v2919_v19, %v927_v31  ;;  %v1116_v22 = vadd.f32 0.2548296, %v1084_v23  ;;  %v1086_v17 = vmul.f32 %v2851_v25, %v1054_v54 }
 0x156   : > { %v1021_v44 = vmul.f32 %v2880_v6, %v989_v55  ;;  %v772_v45 = vmul.f32 0.3275911, %v2957_v43  ;;  %v1115_v14 = vadd.f32 0.2548296, %v1083_v52  ;;  %v1213_v38 = vmul.f32 %v1181_v0, %v2779_v46 }
 0x157   : > { %2247 = vrcp.f32 %v801_v1  ;;  %v2981_v21 = vmul.f32 0.70710677, %v2963_v7  ;;  %v1402_v37 = vadd.f32 1.0, %v1370_v51  ;;  %vm672_vm14 = vcmp.ge.f32.partialorder %v2782_v36, 0.0 }
 0x158   : > { %v2983_v53 = vpop.eup %2241  ;;  %v1216_v27 = vmul.f32 %v1184_v5, %v2794_v47  ;;  %v2988_v31 = vmul.f32 0.5, %v2775_v12  ;;  %v1337_v23 = vsub.f32 1.0, %v1305_v20  ;;  %v1024_v54 = vmul.f32 %v2898_v26, %v992_v59  ;;  %v3720_v5 = vld [vmem:[#allocation20_spill] sm:$0xff] }
 0x159   : > { %v991_v55 = vadd.f32 1.4214138, %v959_v35  ;;  %v1183_v46 = vsub.f32 0.0, %v2814_v11  ;;  %v2244_v52 = vpop.eup %2243  ;;  %v1148_v0 = vmul.f32 %v2822_v10, %v1116_v22  ;;  %v1118_v1 = vadd.f32 0.2548296, %v1086_v17  ;;  %v3721_v35 = vld [vmem:[#allocation6_spill] sm:$0xff] }
 0x15a   : > { %v1053_v29 = vadd.f32 -0.28449672, %v1021_v44  ;;  %v804_v57 = vadd.f32 1.0, %v772_v45  ;;  %v1147_v51 = vmul.f32 %v2830_v39, %v1115_v14  ;;  %v1257_v34 = vmul.f32 1.442695, %v1213_v38 }
 0x15b   : > { %v898_v47 = vmul.f32 1.0614054, %v2983_v53  ;;  %v2996_v12 = vand.u32 2147483647, %v2981_v21  ;;  %v2999_v20 = vmul.f32 %v1402_v37, %v3720_v5  ;;  %v1263_v59 = vmul.f32 1.442695, %v1216_v27 }
 0x15c   : > { %vm671_vm15 = vcmp.ge.f32.partialorder %v2797_v58, 0.0  ;;  %v3004_v10 = vadd.f32 %v3721_v35, %v2461_v42  ;;  %v1369_v22 = vmul.f32 %v1337_v23, %v2845_v40  ;;  %v1056_v17 = vadd.f32 -0.28449672, %v1024_v54 }
 0x15d   : > { %v1023_v39 = vmul.f32 %v2919_v19, %v991_v55  ;;  %v1215_v44 = vmul.f32 %v1183_v46, %v2814_v11  ;;  %v2246_v45 = vpop.eup %2245  ;;  %v1308_v14 = vmul.f32 %v2240_v15, %v1148_v0  ;;  %v1150_v38 = vmul.f32 %v2851_v25, %v1118_v1 }
 0x15e   : > { %v1085_v37 = vmul.f32 %v2880_v6, %v1053_v29  ;;  %2249 = vrcp.f32 %v804_v57  ;;  %v1307_v27 = vmul.f32 %v2244_v52, %v1147_v51  ;;  %v930_v5 = vadd.f32 -1.4531521, %v898_v47 }
 0x15f   : > { %2251 = vpow2.f32 %v1257_v34  ;;  %v771_v35 = vmul.f32 0.3275911, %v2996_v12  ;;  %v3015_v40 = vsel %vm672_vm14, 1.0, %v3692_v61  ;;  %v3020_v11 = vsel %vm671_vm15, 1.0, %v3692_v61 }
 0x160   : > { %v3023_v25 = vmul.f32 0.5, %v2849_v60  ;;  %v3026_v29 = vmul.f32 0.70710677, %v3004_v10  ;;  %v1401_v57 = vadd.f32 1.0, %v1369_v22  ;;  %v1088_v15 = vmul.f32 %v2898_v26, %v1056_v17 }
 0x161   : > { %v3028_v34 = vpop.eup %2247  ;;  %2253 = vpow2.f32 %v1263_v59  ;;  %v1055_v36 = vadd.f32 -0.28449672, %v1023_v39  ;;  %v1340_v23 = vsub.f32 1.0, %v1308_v14  ;;  %v1310_v54 = vmul.f32 %v2246_v45, %v1150_v38  ;;  %v3722_v59 = vld [vmem:[#allocation7_spill] sm:$0xff] }
 0x162   : > { %v1117_v55 = vadd.f32 0.2548296, %v1085_v37  ;;  %v1261_v46 = vmul.f32 1.442695, %v1215_v44  ;;  %v1339_v58 = vsub.f32 1.0, %v1307_v27  ;;  %v962_v52 = vmul.f32 %v2983_v53, %v930_v5 }
 0x163   : > { %v1186_v60 = vsub.f32 0.0, %v2878_v49  ;;  %v803_v0 = vadd.f32 1.0, %v771_v35  ;;  %v3034_v1 = vmul.f32 0.5, %v2886_v63  ;;  %v897_v51 = vmul.f32 1.0614054, %v3028_v34 }
 0x164   : > { %v3038_v47 = vand.u32 2147483647, %v3026_v29  ;;  %v3042_v22 = vadd.f32 %v2461_v42, %v3722_v59  ;;  %v1120_v17 = vadd.f32 0.2548296, %v1088_v15  ;;  %v1087_v39 = vmul.f32 %v2919_v19, %v1055_v36 }
 0x165   : > { %vm674_vm0 = vcmp.ge.f32.partialorder %v2861_v4, 0.0  ;;  %v1185_v44 = vsub.f32 0.0, %v2928_v28  ;;  %v1372_v45 = vmul.f32 %v1340_v23, %v2872_v3  ;;  %v1342_v63 = vsub.f32 1.0, %v1310_v54 }
 0x166   : > { %v1149_v14 = vmul.f32 %v2880_v6, %v1117_v55  ;;  %2255 = vpow2.f32 %v1261_v46  ;;  %v1371_v38 = vmul.f32 %v1339_v58, %v2901_v30  ;;  %v994_v37 = vadd.f32 1.4214138, %v962_v52 }
 0x167   : > { %v1218_v27 = vmul.f32 %v1186_v60, %v2878_v49  ;;  %2257 = vrcp.f32 %v803_v0  ;;  %v3054_v5 = vmul.f32 %v1401_v57, %v2819_v13  ;;  %v929_v35 = vadd.f32 -1.4531521, %v897_v51 }
 0x168   : > { %v3051_v42 = vpop.eup %2249  ;;  %v774_v15 = vmul.f32 0.3275911, %v3038_v47  ;;  %v3058_v3 = vmul.f32 0.70710677, %v3042_v22  ;;  %v1152_v6 = vmul.f32 %v2898_v26, %v1120_v17  ;;  %v1119_v23 = vadd.f32 0.2548296, %v1087_v39 }
 0x169   : > { %v2252_v36 = vpop.eup %2251  ;;  %v3064_v49 = vsel %vm674_vm0, 1.0, %v3692_v61  ;;  %v1217_v30 = vmul.f32 %v1185_v44, %v2928_v28  ;;  %v1404_v54 = vadd.f32 1.0, %v1372_v45  ;;  %v1374_v13 = vmul.f32 %v1342_v63, %v2946_v50 }
 0x16a   : > { %v1309_v57 = vmul.f32 %v2252_v36, %v1149_v14  ;;  %vm673_vm1 = vcmp.ge.f32.partialorder %v2908_v18, 0.0  ;;  %v1403_v46 = vadd.f32 1.0, %v1371_v38  ;;  %v1267_v58 = vmul.f32 1.442695, %v1218_v27 }
 0x16b   : > { %v2254_v55 = vpop.eup %2253  ;;  %v3070_v52 = vmul.f32 0.5, %v2923_v62  ;;  %v900_v26 = vmul.f32 1.0614054, %v3051_v42  ;;  %v1026_v4 = vmul.f32 %v2983_v53, %v994_v37  ;;  %v961_v60 = vmul.f32 %v3028_v34, %v929_v35 }
 0x16c   : > { %v806_v0 = vadd.f32 1.0, %v774_v15  ;;  %v3076_v28 = vand.u32 2147483647, %v3058_v3  ;;  %v1312_v50 = vmul.f32 %v2254_v55, %v1152_v6  ;;  %v1151_v51 = vmul.f32 %v2919_v19, %v1119_v23  ;;  %v1463_v19 = vld [vmem:[%s3653_s3 + $0x30] sm:$0xff] }
 0x16d   : > { %v3080_v18 = vsel %vm673_vm1, 1.0, %v3692_v61  ;;  %v1265_v59 = vmul.f32 1.442695, %v1217_v30  ;;  %v3083_v62 = vmul.f32 %v1404_v54, %v2867_v24  ;;  %v1406_v17 = vadd.f32 1.0, %v1374_v13  ;;  %v1464_v24 = vld [vmem:[%s3653_s3 + $0x38] sm:$0xff] }
 0x16e   : > { %v1341_v39 = vsub.f32 1.0, %v1309_v57  ;;  %vm676_vm2 = vcmp.ge.f32.partialorder %v2938_v48, 0.0  ;;  %v3087_v44 = vmul.f32 %v1403_v46, %v2896_v41  ;;  %2259 = vpow2.f32 %v1267_v58  ;;  %v3114_v54 = vld [vmem:[%s3652_s2] ss:$0 sm:$0xff]  ;;  %v3723_v13 = vld [vmem:[#allocation9_spill] sm:$0xff] }
 0x16f   : > { %v932_v45 = vadd.f32 -1.4531521, %v900_v26  ;;  %v1188_v63 = vsub.f32 0.0, %v2957_v43  ;;  %v1058_v38 = vadd.f32 -0.28449672, %v1026_v4  ;;  %2261 = vrcp.f32 %v806_v0  ;;  %v3724_v0 = vld [vmem:[#allocation8_spill] sm:$0xff] }
 0x170   : > { %v2256_v14 = vpop.eup %2255  ;;  %v993_v37 = vadd.f32 1.4214138, %v961_v60  ;;  %v773_v27 = vmul.f32 0.3275911, %v3076_v28  ;;  %v1344_v35 = vsub.f32 1.0, %v1312_v50  ;;  %2263 = vpow2.f32 %v1265_v59  ;;  %v3726_v59 = vld [vmem:[#allocation12_spill] sm:$0xff] }
 0x171   : > { %v3097_v41 = vpop.eup %2257  ;;  %v1311_v15 = vmul.f32 %v2256_v14, %v1151_v51  ;;  %v3102_v36 = vsel %vm676_vm2, 1.0, %v3692_v61  ;;  %v3105_v6 = vmul.f32 %v1406_v17, %v2916_v33  ;;  %v1373_v23 = vmul.f32 %v1341_v39, %v2973_v32 }
 0x172   : > { %v3109_v30 = vmul.f32 0.5, %v2963_v7  ;;  %v3118_v57 = vadd.f32 %v3114_v54, %v3723_v13  ;;  %v964_v48 = vmul.f32 %v3051_v42, %v932_v45  ;;  %v1220_v55 = vmul.f32 %v1188_v63, %v2957_v43 }
 0x173   : > { %v1187_v33 = vsub.f32 0.0, %v2996_v12  ;;  %v2166_v46 = vpack.c.bf16 %v1464_v24, %v1463_v19  ;;  %v1090_v32 = vmul.f32 %v2983_v53, %v1058_v38  ;;  %v1025_v7 = vmul.f32 %v3028_v34, %v993_v37 }
 0x174   : > { %v899_v58 = vmul.f32 1.0614054, %v3097_v41  ;;  %v805_v26 = vadd.f32 1.0, %v773_v27  ;;  %v1376_v4 = vmul.f32 %v1344_v35, %v3015_v40  ;;  %v1343_v60 = vsub.f32 1.0, %v1311_v15  ;;  %v3728_v15 = vld [vmem:[#allocation11_spill] sm:$0xff] }
 0x175   : > { %v3129_v50 = vadd.f32 %v3114_v54, %v3724_v0  ;;  %2167 = vmatprep.subr.bf16.mxu0 %v2166_v46  ;;  %2173 = vmatprep.subr.bf16.mxu1 %v2166_v46  ;;  %vm675_vm4 = vcmp.ge.f32.partialorder %v2981_v21, 0.0  ;;  %v3133_v43 = vmul.f32 0.5, %v3004_v10  ;;  %v3136_v51 = vmul.f32 0.70710677, %v3118_v57 }
 0x176   : > { %v3140_v17 = vadd.f32 %v3114_v54, %v3726_v59  ;;  %2169 = vmatpush3.bf16.msra.mxu0 %v2166_v46  ;;  %v1405_v40 = vadd.f32 1.0, %v1373_v23  ;;  %v996_v39 = vadd.f32 1.4214138, %v964_v48  ;;  %v1271_v45 = vmul.f32 1.442695, %v1220_v55  ;;  %2177 = vmatpush3.bf16.msra.mxu1 %v2166_v46 }
 0x177   : > { %3725 = vst [vmem:[#allocation16_spill] sm:$0xff] %v3133_v43  ;;  %v1219_v63 = vmul.f32 %v1187_v33, %v2996_v12  ;;  %v1122_v19 = vadd.f32 0.2548296, %v1090_v32  ;;  %v1057_v10 = vadd.f32 -0.28449672, %v1025_v7  ;;  %2265 = vrcp.f32 %v805_v26 }
 0x178   : > { %3727 = vst [vmem:[#allocation3_spill] sm:$0xff] %v3140_v17  ;;  %v931_v24 = vadd.f32 -1.4531521, %v899_v58  ;;  %v2260_v14 = vpop.eup %2259  ;;  %v1408_v38 = vadd.f32 1.0, %v1376_v4  ;;  %v1375_v37 = vmul.f32 %v1343_v60, %v3020_v11  ;;  %v3149_v27 = vsel %vm675_vm4, 1.0, %v3692_v61 }
 0x179   : > { %v3152_v56 = vmul.f32 0.70710677, %v3129_v50  ;;  %2103 = vmatmul.mubr.msk.f32.vlgmr.msra.gmra.mrb[32].mxu0 %vm1472_vm3, %v2825_v2  ;;  %v3156_v12 = vpop.eup %2261  ;;  %vm678_vm5 = vcmp.ge.f32.partialorder %v3026_v29, 0.0  ;;  %v3160_v35 = vand.u32 2147483647, %v3136_v51  ;;  %v3164_v11 = vadd.f32 %v3114_v54, %v3728_v15 }
 0x17a   : > { %v3167_v21 = vmul.f32 0.70710677, %v3140_v17  ;;  %v2264_v23 = vpop.eup %2263  ;;  %v3170_v13 = vmul.f32 %v1405_v40, %v2950_v16  ;;  %v1028_v2 = vmul.f32 %v3051_v42, %v996_v39  ;;  %2267 = vpow2.f32 %v1271_v45  ;;  %v3730_v39 = vld [vmem:[#allocation13_spill] sm:$0xff] }
 0x17b   : > { %3729 = vst [vmem:[#allocation18_spill] sm:$0xff] %v3164_v11  ;;  %v1190_v48 = vsub.f32 0.0, %v3038_v47  ;;  %v1154_v29 = vmul.f32 %v2983_v53, %v1122_v19  ;;  %v1089_v55 = vmul.f32 %v3028_v34, %v1057_v10  ;;  %v963_v33 = vmul.f32 %v3097_v41, %v931_v24 }
 0x17c   : > { %v1269_v46 = vmul.f32 1.442695, %v1219_v63  ;;  %v1407_v32 = vadd.f32 1.0, %v1375_v37  ;;  %v3178_v7 = vsel %vm678_vm5, 1.0, %v3692_v61  ;;  %v902_v58 = vmul.f32 1.0614054, %v3156_v12 }
 0x17d   : > { %v3182_v16 = vand.u32 2147483647, %v3152_v56  ;;  %v3185_v26 = vmul.f32 %v1408_v38, %v2967_v9  ;;  %v775_v4 = vmul.f32 0.3275911, %v3160_v35  ;;  %v3189_v53 = vmul.f32 0.70710677, %v3164_v11 }
 0x17e   : > { %v3192_v60 = vand.u32 2147483647, %v3167_v21  ;;  %v1060_v0 = vadd.f32 -0.28449672, %v1028_v2  ;;  %v1222_v59 = vmul.f32 %v1190_v48, %v3038_v47  ;;  %v3196_v40 = vmul.f32 0.5, %v3042_v22 }
 0x17f   : > { %v3200_v45 = vadd.f32 %v3114_v54, %v3730_v39  ;;  %v1314_v9 = vmul.f32 %v2260_v14, %v1154_v29  ;;  %v1121_v63 = vadd.f32 0.2548296, %v1089_v55  ;;  %v995_v19 = vadd.f32 1.4214138, %v963_v33  ;;  %v3732_v14 = vld [vmem:[#allocation14_spill] sm:$0xff] }
 0x180   : > { %2269 = vpow2.f32 %v1269_v46  ;;  %v3203_v10 = vmul.f32 %v1407_v32, %v2988_v31  ;;  %v934_v24 = vadd.f32 -1.4531521, %v902_v58  ;;  %vm677_vm6 = vcmp.ge.f32.partialorder %v3058_v3, 0.0 }
 0x181   : > { %3731 = vst [vmem:[#allocation15_spill] sm:$0xff] %v3200_v45  ;;  %v776_v38 = vmul.f32 0.3275911, %v3182_v16  ;;  %v3207_v47 = vpop.eup %2265  ;;  %v807_v22 = vadd.f32 1.0, %v775_v4  ;;  %v3210_v37 = vand.u32 2147483647, %v3189_v53  ;;  %v3215_v2 = vadd.f32 %v3114_v54, %v3732_v14 }
 0x182   : > { %v777_v15 = vmul.f32 0.3275911, %v3192_v60  ;;  %v1092_v31 = vmul.f32 %v3051_v42, %v1060_v0  ;;  %v1275_v48 = vmul.f32 1.442695, %v1222_v59  ;;  %v1189_v29 = vsub.f32 0.0, %v3076_v28 }
 0x183   : > { %3733 = vst [vmem:[#allocation17_spill] sm:$0xff] %v3215_v2  ;;  %v3220_v3 = vmul.f32 0.70710677, %v3200_v45  ;;  %v1346_v55 = vsub.f32 1.0, %v1314_v9  ;;  %v1153_v33 = vmul.f32 %v3028_v34, %v1121_v63  ;;  %v1027_v46 = vmul.f32 %v3097_v41, %v995_v19  ;;  %v3735_v45 = vld [vmem:[#allocation23_spill] sm:$0xff] }
 0x184   : > { %v3225_v32 = vsel %vm677_vm6, 1.0, %v3692_v61  ;;  %v2268_v58 = vpop.eup %2267  ;;  %v966_v4 = vmul.f32 %v3156_v12, %v934_v24  ;;  %v901_v39 = vmul.f32 1.0614054, %v3207_v47  ;;  %v808_v0 = vadd.f32 1.0, %v776_v38 }
 0x185   : > { %3734 = vst [vmem:[#allocation22_spill] sm:$0xff] %v3220_v3  ;;  %v3230_v59 = vmul.f32 0.70710677, %v3215_v2  ;;  %2271 = vrcp.f32 %v807_v22  ;;  %v778_v14 = vmul.f32 0.3275911, %v3210_v37  ;;  %v809_v9 = vadd.f32 1.0, %v777_v15 }
 0x186   : > { %v883_v34 = vmul.f32 1.0614054, %v3735_v45  ;;  %v1124_v63 = vadd.f32 0.2548296, %v1092_v31  ;;  %2273 = vpow2.f32 %v1275_v48  ;;  %v1221_v19 = vmul.f32 %v1189_v29, %v3076_v28 }
 0x187   : > { %v3236_v11 = vand.u32 2147483647, %v3220_v3  ;;  %v1378_v24 = vmul.f32 %v1346_v55, %v3064_v49  ;;  %v1313_v17 = vmul.f32 %v2264_v23, %v1153_v33  ;;  %v1059_v38 = vadd.f32 -0.28449672, %v1027_v46 }
 0x188   : > { %v3240_v2 = vmul.f32 0.5, %v3129_v50  ;;  %v998_v22 = vadd.f32 1.4214138, %v966_v4  ;;  %v933_v43 = vadd.f32 -1.4531521, %v901_v39  ;;  %2275 = vrcp.f32 %v808_v0 }
 0x189   : > { %v3243_v15 = vand.u32 2147483647, %v3230_v59  ;;  %v1192_v28 = vsub.f32 0.0, %v3182_v16  ;;  %v810_v48 = vadd.f32 1.0, %v778_v14  ;;  %2277 = vrcp.f32 %v809_v9 }
 0x18a   : > { %3736 = vst [vmem:[#allocation4_spill] sm:$0xff] %v3240_v2  ;;  %v3245_v31 = vpop.eup %2269  ;;  %v915_v29 = vadd.f32 -1.4531521, %v883_v34  ;;  %v1156_v49 = vmul.f32 %v3051_v42, %v1124_v63  ;;  %v1273_v23 = vmul.f32 1.442695, %v1221_v19  ;;  %v3250_v55 = vmul.f32 0.5, %v3118_v57 }
 0x18b   : > { %v780_v50 = vmul.f32 0.3275911, %v3236_v11  ;;  %v1410_v33 = vadd.f32 1.0, %v1378_v24  ;;  %v1345_v46 = vsub.f32 1.0, %v1313_v17  ;;  %vm680_vm7 = vcmp.ge.f32.partialorder %v3152_v56, 0.0  ;;  %v3738_v34 = vld [vmem:[#allocation24_spill] sm:$0xff] }
 0x18c   : > { %3737 = vst [vmem:[#allocation20_spill] sm:$0xff] %v3250_v55  ;;  %v779_v4 = vmul.f32 0.3275911, %v3243_v15  ;;  %v1091_v39 = vmul.f32 %v3097_v41, %v1059_v38  ;;  %v1030_v0 = vmul.f32 %v3156_v12, %v998_v22  ;;  %v965_v14 = vmul.f32 %v3207_v47, %v933_v43 }
 0x18d   : > { %v947_v42 = vmul.f32 %v3735_v45, %v915_v29  ;;  %v1224_v9 = vmul.f32 %v1192_v28, %v3182_v16  ;;  %2279 = vrcp.f32 %v810_v48  ;;  %v3262_v63 = vadd.f32 %v3114_v54, %v3738_v34 }
 0x18e   : > { %v811_v57 = vadd.f32 1.0, %v779_v4  ;;  %v1316_v17 = vmul.f32 %v2268_v58, %v1156_v49  ;;  %2281 = vpow2.f32 %v1273_v23  ;;  %v812_v56 = vadd.f32 1.0, %v780_v50 }
 0x18f   : > { %3739 = vst [vmem:[#allocation6_spill] sm:$0xff] %v3262_v63  ;;  %v979_v19 = vadd.f32 1.4214138, %v947_v42  ;;  %v3264_v24 = vpop.eup %2271  ;;  %v3267_v38 = vsel %vm680_vm7, 1.0, %v3692_v61  ;;  %vm679_vm8 = vcmp.ge.f32.partialorder %v3136_v51, 0.0  ;;  %v1191_v43 = vsub.f32 0.0, %v3160_v35 }
 0x190   : > { %2283 = vrcp.f32 %v811_v57  ;;  %v3271_v16 = vpop.eup %2273  ;;  %v1123_v22 = vadd.f32 0.2548296, %v1091_v39  ;;  %v1062_v28 = vadd.f32 -0.28449672, %v1030_v0  ;;  %v997_v48 = vadd.f32 1.4214138, %v965_v14 }
 0x191   : > { %v1011_v58 = vmul.f32 %v3735_v45, %v979_v19  ;;  %v3275_v29 = vmul.f32 %v1410_v33, %v3023_v25  ;;  %v1377_v49 = vmul.f32 %v1345_v46, %v3080_v18  ;;  %v1279_v23 = vmul.f32 1.442695, %v1224_v9  ;;  %v3741_v14 = vld [vmem:[#allocation5_spill] sm:$0xff] }
 0x192   : > { %v3279_v50 = vmul.f32 0.70710677, %v3262_v63  ;;  %v3281_v4 = vpop.eup %2275  ;;  %v1348_v42 = vsub.f32 1.0, %v1316_v17  ;;  %v903_v57 = vmul.f32 1.0614054, %v3264_v24  ;;  %2285 = vrcp.f32 %v812_v56 }
 0x193   : > { %v1043_v39 = vadd.f32 -0.28449672, %v1011_v58  ;;  %v3284_v0 = vpop.eup %2277  ;;  %vm659_vm9 = vcmp.ge.f32.partialorder %v3741_v14, 0.0  ;;  %v3290_v25 = vsel %vm679_vm8, 1.0, %v3692_v61  ;;  %v1223_v18 = vmul.f32 %v1191_v43, %v3160_v35 }
 0x194   : > { %3740 = vst [vmem:[#allocation7_spill] sm:$0xff] %v3279_v50  ;;  %v3294_v33 = vand.u32 2147483647, %v3279_v50  ;;  %v3298_v46 = vadd.f32 %v3114_v54, %v2799_v8  ;;  %v1155_v9 = vmul.f32 %v3097_v41, %v1123_v22  ;;  %v1094_v34 = vmul.f32 %v3156_v12, %v1062_v28 }
 0x195   : > { %v1029_v17 = vmul.f32 %v3207_v47, %v997_v48  ;;  %v1075_v56 = vmul.f32 %v3735_v45, %v1043_v39  ;;  %v1409_v51 = vadd.f32 1.0, %v1377_v49  ;;  %v904_v19 = vmul.f32 1.0614054, %v3281_v4 }
 0x196   : > { %3742 = vst [vmem:[#allocation9_spill] sm:$0xff] %v3298_v46  ;;  %2287 = vpow2.f32 %v1279_v23  ;;  %v782_v35 = vmul.f32 0.3275911, %v3294_v33  ;;  %v1380_v43 = vmul.f32 %v1348_v42, %v3102_v36  ;;  %v935_v58 = vadd.f32 -1.4531521, %v903_v57 }
 0x197   : > { %v905_v8 = vmul.f32 1.0614054, %v3284_v0  ;;  %v1107_v63 = vadd.f32 0.2548296, %v1075_v56  ;;  %v3308_v50 = vpop.eup %2279  ;;  %v1277_v41 = vmul.f32 1.442695, %v1223_v18  ;;  %v1315_v23 = vmul.f32 %v3245_v31, %v1155_v9 }
 0x198   : > { %v1194_v22 = vsub.f32 0.0, %v3210_v37  ;;  %v814_v28 = vadd.f32 1.0, %v782_v35  ;;  %v3312_v48 = vmul.f32 0.70710677, %v3298_v46  ;;  %v3314_v49 = vpop.eup %2281  ;;  %v1126_v39 = vadd.f32 0.2548296, %v1094_v34 }
 0x199   : > { %v1061_v2 = vadd.f32 -0.28449672, %v1029_v17  ;;  %v1139_v36 = vmul.f32 %v3735_v45, %v1107_v63  ;;  %v3321_v57 = vmul.f32 %v1409_v51, %v3034_v1  ;;  %v936_v18 = vadd.f32 -1.4531521, %v904_v19  ;;  %v3744_v45 = vld [vmem:[#allocation27_spill] sm:$0xff] }
 0x19a   : > { %3743 = vst [vmem:[#allocation8_spill] sm:$0xff] %v3312_v48  ;;  %v3318_v42 = vpop.eup %2283  ;;  %2289 = vrcp.f32 %v814_v28  ;;  %v3324_v56 = vand.u32 2147483647, %v3312_v48  ;;  %v1412_v35 = vadd.f32 1.0, %v1380_v43  ;;  %v967_v46 = vmul.f32 %v3264_v24, %v935_v58 }
 0x19b   : > { %v906_v55 = vmul.f32 1.0614054, %v3308_v50  ;;  %v937_v31 = vadd.f32 -1.4531521, %v905_v8  ;;  %2291 = vpow2.f32 %v1277_v41  ;;  %v907_v9 = vmul.f32 1.0614054, %v3318_v42 }
 0x19c   : > { %v1299_v63 = vmul.f32 %v3744_v45, %v1139_v36  ;;  %v781_v34 = vmul.f32 0.3275911, %v3324_v56  ;;  %v3331_v1 = vpop.eup %2285  ;;  %v1347_v17 = vsub.f32 1.0, %v1315_v23  ;;  %v1158_v51 = vmul.f32 %v3156_v12, %v1126_v39  ;;  %v3745_v41 = vld [vmem:[#allocation25_spill] sm:$0xff] }
 0x19d   : > { %v1093_v19 = vmul.f32 %v3207_v47, %v1061_v2  ;;  %v1226_v43 = vmul.f32 %v1194_v22, %v3210_v37  ;;  %v968_v58 = vmul.f32 %v3281_v4, %v936_v18  ;;  %v3339_v48 = vadd.f32 %v3114_v54, %v3745_v41 }
 0x19e   : > { %v1331_v28 = vsub.f32 1.0, %v1299_v63  ;;  %v813_v8 = vadd.f32 1.0, %v781_v34  ;;  %v999_v36 = vadd.f32 1.4214138, %v967_v46  ;;  %v938_v45 = vadd.f32 -1.4531521, %v906_v55 }
 0x19f   : > { %3746 = vst [vmem:[#allocation12_spill] sm:$0xff] %v3339_v48  ;;  %v969_v3 = vmul.f32 %v3284_v0, %v937_v31  ;;  %v691_v12 = vsel %vm659_vm9, 1.0, %v3692_v61  ;;  %v908_v37 = vmul.f32 1.0614054, %v3331_v1  ;;  %v939_v2 = vadd.f32 -1.4531521, %v907_v9 }
 0x1a0   : > { %v3345_v23 = vpop.eup %2287  ;;  %v1363_v22 = vmul.f32 %v1331_v28, %v691_v12  ;;  %2293 = vrcp.f32 %v813_v8  ;;  %v3349_v39 = vmul.f32 %v1412_v35, %v3070_v52  ;;  %v1379_v18 = vmul.f32 %v1347_v17, %v3149_v27  ;;  %v3747_v34 = vld [vmem:[#allocation26_spill] sm:$0xff] }
 0x1a1   : > { %v1283_v46 = vmul.f32 1.442695, %v1226_v43  ;;  %v3353_v55 = vmul.f32 0.70710677, %v3339_v48  ;;  %v1125_v31 = vadd.f32 0.2548296, %v1093_v19  ;;  %v3357_v41 = vadd.f32 %v3114_v54, %v3747_v34 }
 0x1a2   : > { %v1000_v63 = vadd.f32 1.4214138, %v968_v58  ;;  %v1395_v14 = vadd.f32 1.0, %v1363_v22  ;;  %v3360_v9 = vmul.f32 %v3271_v16, %v1158_v51  ;;  %v1031_v28 = vmul.f32 %v3264_v24, %v999_v36  ;;  %v3749_v19 = vld [vmem:[#allocation10_spill] sm:$0xff] }
 0x1a3   : > { %3748 = vst [vmem:[#allocation11_spill] sm:$0xff] %v3357_v41  ;;  %v970_v52 = vmul.f32 %v3308_v50, %v938_v45  ;;  %v1001_v35 = vadd.f32 1.4214138, %v969_v3  ;;  %v940_v17 = vadd.f32 -1.4531521, %v908_v37  ;;  %v971_v43 = vmul.f32 %v3318_v42, %v939_v2 }
 0x1a4   : > { %v3364_v27 = vpop.eup %2289  ;;  %v1427_v58 = vmul.f32 %v1395_v14, %v3749_v19  ;;  %v3369_v8 = vand.u32 2147483647, %v3353_v55  ;;  %v1411_v54 = vadd.f32 1.0, %v1379_v18  ;;  %2295 = vpow2.f32 %v1283_v46  ;;  %v3750_v14 = vld [vmem:[#allocation28_spill] sm:$0xff] }
 0x1a5   : > { %v1193_v16 = vsub.f32 0.0, %v3192_v60  ;;  %v910_v51 = vmul.f32 1.0614054, %v3364_v27  ;;  %v3373_v36 = vpop.eup %2291  ;;  %v1157_v3 = vmul.f32 %v3207_v47, %v1125_v31  ;;  %v1032_v45 = vmul.f32 %v3281_v4, %v1000_v63  ;;  %v3751_v63 = vld [vmem:[#allocation30_spill] sm:$0xff] }
 0x1a6   : > { %2105 = vmatprep.mubr.msk.f32.mxu1 %vm1472_vm3, %v1427_v58  ;;  %v784_v12 = vmul.f32 0.3275911, %v3369_v8  ;;  %v3380_v37 = vmul.f32 0.70710677, %v3357_v41  ;;  %v1063_v2 = vadd.f32 -0.28449672, %v1031_v28  ;;  %v1033_v18 = vmul.f32 %v3284_v0, %v1001_v35 }
 0x1a7   : > { %v1002_v22 = vadd.f32 1.4214138, %v970_v52  ;;  %v1195_v46 = vsub.f32 0.0, %v3243_v15  ;;  %2106 = vmatmul.mubr.msk.f32.vlgmr.msra.gmra.mrb[0].mxu1 %vm1472_vm3, %v3750_v14  ;;  %v972_v47 = vmul.f32 %v3331_v1, %v940_v17  ;;  %v1003_v31 = vadd.f32 1.4214138, %v971_v43 }
 0x1a8   : > { %2108 = vmatprep.mubr.msk.f32.mxu1 %vm1472_vm3, %v3751_v63  ;;  %v816_v34 = vadd.f32 1.0, %v784_v12  ;;  %v3390_v19 = vand.u32 2147483647, %v3380_v37  ;;  %v3393_v28 = vmul.f32 %v1411_v54, %v3109_v30  ;;  %v1350_v52 = vsub.f32 1.0, %v3360_v9  ;;  %v3752_v54 = vld [vmem:[#allocation29_spill] sm:$0xff] }
 0x1a9   : > { %v1225_v35 = vmul.f32 %v1193_v16, %v3192_v60  ;;  %v942_v58 = vadd.f32 -1.4531521, %v910_v51  ;;  %v1317_v17 = vmul.f32 %v3314_v49, %v1157_v3  ;;  %v1064_v43 = vadd.f32 -0.28449672, %v1032_v45  ;;  %v3753_v51 = vld [vmem:[#allocation21_spill] sm:$0xff] }
 0x1aa   : > { %v3397_v48 = vpop.eup %2293  ;;  %2297 = vrcp.f32 %v816_v34  ;;  %v783_v14 = vmul.f32 0.3275911, %v3390_v19  ;;  %v1095_v12 = vmul.f32 %v3264_v24, %v1063_v2  ;;  %v1034_v63 = vmul.f32 %v3308_v50, %v1002_v22 }
 0x1ab   : > { %v1065_v41 = vadd.f32 -0.28449672, %v1033_v18  ;;  %v909_v30 = vmul.f32 1.0614054, %v3397_v48  ;;  %2109 = vmatmul.mubr.msk.f32.gmra.mrb[2].mxu1 %vm1472_vm3, %v3752_v54  ;;  %v1004_v60 = vadd.f32 1.4214138, %v972_v47  ;;  %v1035_v9 = vmul.f32 %v3318_v42, %v1003_v31 }
 0x1ac   : > { %v1227_v16 = vmul.f32 %v1195_v46, %v3243_v15  ;;  %v815_v49 = vadd.f32 1.0, %v783_v14  ;;  %2111 = vmatprep.mubr.msk.f32.mxu1 %vm1472_vm3, %v3753_v51  ;;  %v1281_v3 = vmul.f32 1.442695, %v1225_v35  ;;  %v974_v45 = vmul.f32 %v3364_v27, %v942_v58  ;;  %v3754_v35 = vld [vmem:[#allocation19_spill] sm:$0xff] }
 0x1ad   : > { %v941_v2 = vadd.f32 -1.4531521, %v909_v30  ;;  %v1197_v22 = vsub.f32 0.0, %v3324_v56  ;;  %v1349_v18 = vsub.f32 1.0, %v1317_v17  ;;  %v1096_v34 = vmul.f32 %v3281_v4, %v1064_v43 }
 0x1ae   : > { %v1196_v54 = vsub.f32 0.0, %v3236_v11  ;;  %2299 = vrcp.f32 %v815_v49  ;;  %v3414_v47 = vpop.eup %2295  ;;  %v1127_v31 = vadd.f32 0.2548296, %v1095_v12  ;;  %v1066_v15 = vadd.f32 -0.28449672, %v1034_v63 }
 0x1af   : > { %v1097_v46 = vmul.f32 %v3284_v0, %v1065_v41  ;;  %v973_v14 = vmul.f32 %v3397_v48, %v941_v2  ;;  %2112 = vmatmul.mubr.msk.f32.gmra.mrb[4].mxu1 %vm1472_vm3, %v3754_v35  ;;  %v3421_v58 = vmul.f32 %v1350_v52, %v3178_v7  ;;  %v1036_v17 = vmul.f32 %v3331_v1, %v1004_v60 }
 0x1b0   : > { %v1067_v43 = vadd.f32 -0.28449672, %v1035_v9  ;;  %v1285_v30 = vmul.f32 1.442695, %v1227_v16  ;;  %2114 = vmatprep.mubr.msk.f32.mxu1 %vm1472_vm3, %v3054_v5  ;;  %2301 = vpow2.f32 %v1281_v3  ;;  %v1006_v12 = vadd.f32 1.4214138, %v974_v45 }
 0x1b1   : > { %v1005_v63 = vadd.f32 1.4214138, %v973_v14  ;;  %v1229_v41 = vmul.f32 %v1197_v22, %v3324_v56  ;;  %v1381_v49 = vmul.f32 %v1349_v18, %v3225_v32  ;;  %v1128_v51 = vadd.f32 0.2548296, %v1096_v34 }
 0x1b2   : > { %v1228_v2 = vmul.f32 %v1196_v54, %v3236_v11  ;;  %v1198_v7 = vsub.f32 0.0, %v3294_v33  ;;  %v1159_v52 = vmul.f32 %v3264_v24, %v1127_v31  ;;  %v1098_v60 = vmul.f32 %v3308_v50, %v1066_v15 }
 0x1b3   : > { %v1129_v9 = vadd.f32 0.2548296, %v1097_v46  ;;  %v1037_v16 = vmul.f32 %v3397_v48, %v1005_v63  ;;  %2115 = vmatmul.mubr.msk.f32.gmra.mrb[6].mxu1 %vm1472_vm3, %v2999_v20  ;;  %v1068_v56 = vadd.f32 -0.28449672, %v1036_v17  ;;  %v1099_v32 = vmul.f32 %v3318_v42, %v1067_v43 }
 0x1b4   : > { %v3435_v5 = vpop.eup %2297  ;;  %2303 = vpow2.f32 %v1285_v30  ;;  %v1199_v11 = vsub.f32 0.0, %v3390_v19  ;;  %2117 = vmatprep.mubr.msk.f32.mxu1 %vm1472_vm3, %v3087_v44  ;;  %v1038_v24 = vmul.f32 %v3364_v27, %v1006_v12  ;;  %v1289_v45 = vmul.f32 1.442695, %v1229_v41 }
 0x1b5   : > { %v1069_v3 = vadd.f32 -0.28449672, %v1037_v16  ;;  %v912_v22 = vmul.f32 1.0614054, %v3435_v5  ;;  %v1160_v18 = vmul.f32 %v3281_v4, %v1128_v51  ;;  %v1287_v20 = vmul.f32 1.442695, %v1228_v2 }
 0x1b6   : > { %v1230_v34 = vmul.f32 %v1198_v7, %v3294_v33  ;;  %v1200_v54 = vsub.f32 0.0, %v3369_v8  ;;  %v1319_v31 = vmul.f32 %v3373_v36, %v1159_v52  ;;  %v1130_v15 = vadd.f32 0.2548296, %v1098_v60 }
 0x1b7   : > { %vm681_vm10 = vcmp.ge.f32.partialorder %v3167_v21, 0.0  ;;  %v1161_v44 = vmul.f32 %v3284_v0, %v1129_v9  ;;  %v944_v46 = vadd.f32 -1.4531521, %v912_v22  ;;  %2118 = vmatmul.mubr.msk.f32.gmra.mrb[8].mxu1 %vm1472_vm3, %v3083_v62  ;;  %v1100_v4 = vmul.f32 %v3331_v1, %v1068_v56 }
 0x1b8   : > { %v3451_v14 = vpop.eup %2299  ;;  %v1131_v35 = vadd.f32 0.2548296, %v1099_v32  ;;  %v1101_v33 = vmul.f32 %v3397_v48, %v1069_v3  ;;  %v1231_v17 = vmul.f32 %v1199_v11, %v3390_v19  ;;  %2120 = vmatprep.mubr.msk.f32.mxu1 %vm1472_vm3, %v3170_v13  ;;  %v1070_v36 = vadd.f32 -0.28449672, %v1038_v24 }
 0x1b9   : > { %2305 = vpow2.f32 %v1289_v45  ;;  %v976_v0 = vmul.f32 %v3435_v5, %v944_v46  ;;  %v911_v43 = vmul.f32 1.0614054, %v3451_v14  ;;  %v1320_v62 = vmul.f32 %v3345_v23, %v1160_v18 }
 0x1ba   : > { %2307 = vpow2.f32 %v1287_v20  ;;  %v1291_v30 = vmul.f32 1.442695, %v1230_v34  ;;  %v1232_v12 = vmul.f32 %v1200_v54, %v3369_v8  ;;  %v2302_v63 = vpop.eup %2301  ;;  %v1351_v41 = vsub.f32 1.0, %v1319_v31 }
 0x1bb   : > { %vm682_vm11 = vcmp.ge.f32.partialorder %v3189_v53, 0.0  ;;  %v1162_v19 = vmul.f32 %v3308_v50, %v1130_v15  ;;  %v1008_v51 = vadd.f32 1.4214138, %v976_v0  ;;  %v943_v13 = vadd.f32 -1.4531521, %v911_v43  ;;  %2121 = vmatmul.mubr.msk.f32.gmra.mrb[10].mxu1 %vm1472_vm3, %v3105_v6  ;;  %v3757_v0 = vld [vmem:[#allocation20_spill] sm:$0xff] }
 0x1bc   : > { %v1321_v2 = vmul.f32 %v2302_v63, %v1161_v44  ;;  %v1163_v7 = vmul.f32 %v3318_v42, %v1131_v35  ;;  %v1133_v52 = vadd.f32 0.2548296, %v1101_v33  ;;  %v1293_v23 = vmul.f32 1.442695, %v1231_v17  ;;  %2123 = vmatprep.mubr.msk.f32.mxu1 %vm1472_vm3, %v3203_v10  ;;  %v3755_v33 = vld [vmem:[#allocation16_spill] sm:$0xff] }
 0x1bd   : > { %v1132_v8 = vadd.f32 0.2548296, %v1100_v4  ;;  %v1102_v60 = vmul.f32 %v3364_v27, %v1070_v36  ;;  %v1040_v9 = vmul.f32 %v3435_v5, %v1008_v51  ;;  %v975_v50 = vmul.f32 %v3451_v14, %v943_v13 }
 0x1be   : > { %v2304_v16 = vpop.eup %2303  ;;  %v1413_v56 = vadd.f32 1.0, %v1381_v49  ;;  %v1352_v32 = vsub.f32 1.0, %v1320_v62  ;;  %2309 = vpow2.f32 %v1291_v30  ;;  %v1295_v6 = vmul.f32 1.442695, %v1232_v12 }
 0x1bf   : > { %v1383_v11 = vmul.f32 %v1351_v41, %v3290_v25  ;;  %v1322_v42 = vmul.f32 %v3414_v47, %v1162_v19  ;;  %v1072_v24 = vadd.f32 -0.28449672, %v1040_v9  ;;  %v1007_v3 = vadd.f32 1.4214138, %v975_v50  ;;  %2124 = vmatmul.mubr.msk.f32.gmra.mrb[12].mxu1 %vm1472_vm3, %v3185_v26  ;;  %v3758_v41 = vld [vmem:[#allocation8_spill] sm:$0xff]  ;;  %v3761_v9 = vld [vmem:[#allocation7_spill] sm:$0xff] }
 0x1c0   : > { %v1353_v10 = vsub.f32 1.0, %v1321_v2  ;;  %v1323_v45 = vmul.f32 %v2304_v16, %v1163_v7  ;;  %v1165_v22 = vmul.f32 %v3397_v48, %v1133_v52  ;;  %2311 = vpow2.f32 %v1293_v23  ;;  %2126 = vmatprep.mubr.msk.f32.mxu1 %vm1472_vm3, %v3321_v57  ;;  %v3759_v7 = vld [vmem:[#allocation4_spill] sm:$0xff]  ;;  %v3760_v23 = vld [vmem:[#allocation3_spill] sm:$0xff] }
 0x1c1   : > { %v1164_v49 = vmul.f32 %v3331_v1, %v1132_v8  ;;  %v1134_v18 = vadd.f32 0.2548296, %v1102_v60  ;;  %v1104_v25 = vmul.f32 %v3435_v5, %v1072_v24  ;;  %v1039_v47 = vmul.f32 %v3451_v14, %v1007_v3  ;;  %v3762_v3 = vld [vmem:[#allocation18_spill] sm:$0xff] }
 0x1c2   : > { %v1414_v20 = vadd.f32 1.0, %v3421_v58  ;;  %v1384_v34 = vmul.f32 %v1352_v32, %v3267_v38  ;;  %v713_v26 = vsel %vm681_vm10, 1.0, %v3692_v61  ;;  %2313 = vpow2.f32 %v1295_v6 }
 0x1c3   : > { %v2306_v48 = vpop.eup %2305  ;;  %v1415_v54 = vadd.f32 1.0, %v1383_v11  ;;  %v1354_v31 = vsub.f32 1.0, %v1322_v42  ;;  %vm683_vm12 = vcmp.ge.f32.partialorder %v3230_v59, 0.0  ;;  %v1071_v57 = vadd.f32 -0.28449672, %v1039_v47  ;;  %2127 = vmatmul.mubr.msk.f32.gmra.mrb[14].mxu1 %vm1472_vm3, %v3275_v29 }
 0x1c4   : > { %v2308_v1 = vpop.eup %2307  ;;  %v1445_v15 = vmul.f32 %v1413_v56, %v3196_v40  ;;  %v1385_v58 = vmul.f32 %v1353_v10, %v713_v26  ;;  %v1355_v44 = vsub.f32 1.0, %v1323_v45  ;;  %v1325_v38 = vmul.f32 %v2306_v48, %v1165_v22  ;;  %2129 = vmatprep.mubr.msk.f32.mxu1 %vm1472_vm3, %v3393_v28  ;;  %v3756_v40 = vld [vmem:[#allocation22_spill] sm:$0xff]  ;;  %v3763_v45 = vld [vmem:[#allocation17_spill] sm:$0xff] }
 0x1c5   : > { %v1324_v21 = vmul.f32 %v2308_v1, %v1164_v49  ;;  %v1166_v46 = vmul.f32 %v3364_v27, %v1134_v18  ;;  %v1136_v4 = vadd.f32 0.2548296, %v1104_v25  ;;  %v1103_v35 = vmul.f32 %v3451_v14, %v1071_v57  ;;  %v3765_v57 = vld [vmem:[#allocation15_spill] sm:$0xff] }
 0x1c6   : > { %v1446_v17 = vmul.f32 %v1414_v20, %v3755_v33  ;;  %v1416_v36 = vadd.f32 1.0, %v1384_v34  ;;  %v714_v29 = vsel %vm682_vm11, 1.0, %v3692_v61  ;;  %vm684_vm13 = vcmp.ge.f32.partialorder %v3756_v40, 0.0  ;;  %v3768_v40 = vld [vmem:[#allocation12_spill] sm:$0xff] }
 0x1c7   : > { %v1447_v43 = vmul.f32 %v1415_v54, %v3757_v0  ;;  %v1386_v62 = vmul.f32 %v1354_v31, %v714_v29  ;;  %v715_v28 = vsel %vm683_vm12, 1.0, %v3692_v61  ;;  %v1135_v27 = vadd.f32 0.2548296, %v1103_v35  ;;  %2130 = vmatmul.mubr.msk.f32.gmra.mrb[16].mxu1 %vm1472_vm3, %v3349_v39  ;;  %v3764_v54 = vld [vmem:[#allocation9_spill] sm:$0xff] }
 0x1c8   : > { %v2310_v30 = vpop.eup %2309  ;;  %v1417_v12 = vadd.f32 1.0, %v1385_v58  ;;  %v1387_v63 = vmul.f32 %v1355_v44, %v715_v28  ;;  %vm685_vm14 = vcmp.ge.f32.partialorder %v3758_v41, 0.0  ;;  %v1357_v53 = vsub.f32 1.0, %v1325_v38  ;;  %2132 = vmatprep.mubr.msk.f32.mxu1 %vm1472_vm3, %v1445_v15 }
 0x1c9   : > { %v1356_v19 = vsub.f32 1.0, %v1324_v21  ;;  %v1326_v51 = vmul.f32 %v2310_v30, %v1166_v46  ;;  %v1168_v13 = vmul.f32 %v3435_v5, %v1136_v4  ;;  %v1167_v2 = vmul.f32 %v3451_v14, %v1135_v27  ;;  %v3766_v4 = vld [vmem:[#allocation11_spill] sm:$0xff] }
 0x1ca   : > { %v2312_v59 = vpop.eup %2311  ;;  %v1448_v52 = vmul.f32 %v1416_v36, %v3759_v7  ;;  %v617_v8 = vmul.f32 0.5, %v3760_v23  ;;  %v716_v39 = vsel %vm684_vm13, 1.0, %v3692_v61  ;;  %v1418_v60 = vadd.f32 1.0, %v1386_v62 }
 0x1cb   : > { %vm686_vm15 = vcmp.ge.f32.partialorder %v3761_v9, 0.0  ;;  %v717_v50 = vsel %vm685_vm14, 1.0, %v3692_v61  ;;  %v1327_v16 = vmul.f32 %v2312_v59, %v1167_v2  ;;  %2133 = vmatmul.mubr.msk.f32.gmra.mrb[18].mxu1 %vm1472_vm3, %v1446_v17  ;;  %v1419_v14 = vadd.f32 1.0, %v1387_v63 }
 0x1cc   : > { %v2314_v5 = vpop.eup %2313  ;;  %v1449_v56 = vmul.f32 %v1417_v12, %v617_v8  ;;  %v1389_v32 = vmul.f32 %v1357_v53, %v717_v50  ;;  %vm687_vm0 = vcmp.ge.f32.partialorder %v3380_v37, 0.0  ;;  %2135 = vmatprep.mubr.msk.f32.mxu1 %vm1472_vm3, %v1447_v43  ;;  %v1388_v6 = vmul.f32 %v1356_v19, %v716_v39  ;;  %v3542_v43 = vld [vmem:[#allocation2] ss:$0 sm:$0xff] }
 0x1cd   : > { %v1358_v11 = vsub.f32 1.0, %v1326_v51  ;;  %v1328_v42 = vmul.f32 %v2314_v5, %v1168_v13  ;;  %v1359_v24 = vsub.f32 1.0, %v1327_v16  ;;  %v618_v10 = vmul.f32 0.5, %v3762_v3 }
 0x1ce   : > { %v619_v22 = vmul.f32 0.5, %v3763_v45  ;;  %v718_v49 = vsel %vm686_vm15, 1.0, %v3692_v61  ;;  %v719_v18 = vsel %vm687_vm0, 1.0, %v3692_v61  ;;  %v1421_v47 = vadd.f32 1.0, %v1389_v32 }
 0x1cf   : > { %2136 = vmatmul.mubr.msk.f32.gmra.mrb[20].mxu1 %vm1472_vm3, %v1448_v52  ;;  %v1450_v25 = vmul.f32 %v1418_v60, %v618_v10  ;;  %v1391_v20 = vmul.f32 %v1359_v24, %v719_v18  ;;  %v1420_v34 = vadd.f32 1.0, %v1388_v6  ;;  %v1390_v26 = vmul.f32 %v1358_v11, %v718_v49 }
 0x1d0   : > { %v1451_v37 = vmul.f32 %v1419_v14, %v619_v22  ;;  %2138 = vmatprep.mubr.msk.f32.mxu1 %vm1472_vm3, %v1449_v56  ;;  %vm688_vm1 = vcmp.ge.f32.partialorder %v3353_v55, 0.0  ;;  %v1360_v48 = vsub.f32 1.0, %v1328_v42  ;;  %v621_v31 = vmul.f32 0.5, %v3764_v54  ;;  %v3767_v55 = vld [vmem:[#allocation6_spill] sm:$0xff] }
 0x1d1   : > { %v620_v1 = vmul.f32 0.5, %v3765_v57  ;;  %v720_v58 = vsel %vm688_vm1, 1.0, %v3692_v61  ;;  %v1423_v44 = vadd.f32 1.0, %v1391_v20  ;;  %v1422_v21 = vadd.f32 1.0, %v1390_v26 }
 0x1d2   : > { %v1453_v15 = vmul.f32 %v1421_v47, %v621_v31  ;;  %v1392_v46 = vmul.f32 %v1360_v48, %v720_v58  ;;  %v623_v35 = vmul.f32 0.5, %v3766_v4  ;;  %v622_v33 = vmul.f32 0.5, %v3767_v55 }
 0x1d3   : > { %2139 = vmatmul.mubr.msk.f32.gmra.mrb[22].mxu1 %vm1472_vm3, %v1450_v25  ;;  %v1452_v38 = vmul.f32 %v1420_v34, %v620_v1  ;;  %v624_v61 = vmul.f32 0.5, %v3768_v40  ;;  %vm1794_vm2 = vcmask 7168  }
 0x1d4   : > { %2141 = vmatprep.mubr.msk.f32.mxu1 %vm1472_vm3, %v1451_v37  ;;  %v1455_v17 = vmul.f32 %v1423_v44, %v623_v35  ;;  %v1454_v36 = vmul.f32 %v1422_v21, %v622_v33  ;;  %v1424_v29 = vadd.f32 1.0, %v1392_v46 }
 0x1d6   : > { %v1456_v0 = vmul.f32 %v1424_v29, %v624_v61 }
 0x1d7   : > { %2142 = vmatmul.mubr.msk.f32.gmra.mrb[24].mxu1 %vm1472_vm3, %v1452_v38 }
 0x1d8   : > { %2144 = vmatprep.mubr.msk.f32.mxu1 %vm1472_vm3, %v1453_v15 }
 0x1db   : > { %2145 = vmatmul.mubr.msk.f32.gmra.mrb[26].mxu1 %vm1472_vm3, %v1454_v36 }
 0x1dc   : > { %2147 = vmatprep.mubr.msk.f32.mxu1 %vm1472_vm3, %v1455_v17 }
 0x1df   : > { %2148 = vmatmul.mubr.msk.f32.gmra.mrb[28].mxu1 %vm1472_vm3, %v1456_v0 }
 0x24c   : > { %v2104_v62 = vpop.f32.mrb[32].mxu0 }
 0x24d   : > { %v1641_v28 = vadd.f32 %v2104_v62, %v3542_v43  ;;  %v1635_v27 = vpop.f32.mrb[33].mxu0 }
 0x24e   : > { %v1636_v30 = vadd.f32 %v3542_v43, %v1635_v27 }
 0x24f   : > { %1796 = vst.msk [vmem:[%s3549_s29 + $0x8] sm:$0xff] %vm1794_vm2, %v1641_v28 }
 0x250   : > { %1795 = vst.msk [vmem:[%s3549_s29] sm:$0xff] %vm1794_vm2, %v1636_v30 }
 0x27a   : > { %v2107_v12 = vpop.f32.mrb[0].mxu1 }
 0x27b   : > { %v1651_v63 = vadd.f32 %v2107_v12, %v3542_v43  ;;  %v1645_v41 = vpop.f32.mrb[1].mxu1 }
 0x27c   : > { %v1646_v53 = vadd.f32 %v3542_v43, %v1645_v41 }
 0x27d   : > { %1798 = vst.msk [vmem:[%s3549_s29 + $0x18] sm:$0xff] %vm1794_vm2, %v1651_v63 }
 0x27e   : > { %1797 = vst.msk [vmem:[%s3549_s29 + $0x10] sm:$0xff] %vm1794_vm2, %v1646_v53  ;;  %v2110_v19 = vpop.f32.mrb[2].mxu1 }
 0x27f   : > { %v1661_v51 = vadd.f32 %v2110_v19, %v3542_v43  ;;  %v1655_v13 = vpop.f32.mrb[3].mxu1 }
 0x280   : > { %v1656_v2 = vadd.f32 %v3542_v43, %v1655_v13 }
 0x281   : > { %1800 = vst.msk [vmem:[%s3549_s29 + $0x28] sm:$0xff] %vm1794_vm2, %v1661_v51 }
 0x282   : > { %1799 = vst.msk [vmem:[%s3549_s29 + $0x20] sm:$0xff] %vm1794_vm2, %v1656_v2  ;;  %v2113_v59 = vpop.f32.mrb[4].mxu1 }
 0x283   : > { %v1671_v7 = vadd.f32 %v2113_v59, %v3542_v43  ;;  %v1665_v52 = vpop.f32.mrb[5].mxu1 }
 0x284   : > { %v1666_v23 = vadd.f32 %v3542_v43, %v1665_v52 }
 0x285   : > { %1802 = vst.msk [vmem:[%s3549_s29 + $0x38] sm:$0xff] %vm1794_vm2, %v1671_v7 }
 0x286   : > { %1801 = vst.msk [vmem:[%s3549_s29 + $0x30] sm:$0xff] %vm1794_vm2, %v1666_v23  ;;  %v2116_v8 = vpop.f32.mrb[6].mxu1 }
 0x287   : > { %v1681_v39 = vadd.f32 %v2116_v8, %v3542_v43  ;;  %v1675_v60 = vpop.f32.mrb[7].mxu1 }
 0x288   : > { %v1676_v9 = vadd.f32 %v3542_v43, %v1675_v60 }
 0x289   : > { %1804 = vst.msk [vmem:[%s3549_s29 + $0x48] sm:$0xff] %vm1794_vm2, %v1681_v39 }
 0x28a   : > { %1803 = vst.msk [vmem:[%s3549_s29 + $0x40] sm:$0xff] %vm1794_vm2, %v1676_v9  ;;  %v2119_v50 = vpop.f32.mrb[8].mxu1 }
 0x28b   : > { %v1691_v16 = vadd.f32 %v2119_v50, %v3542_v43  ;;  %v1685_v5 = vpop.f32.mrb[9].mxu1 }
 0x28c   : > { %v1686_v56 = vadd.f32 %v3542_v43, %v1685_v5 }
 0x28d   : > { %1806 = vst.msk [vmem:[%s3549_s29 + $0x58] sm:$0xff] %vm1794_vm2, %v1691_v16 }
 0x28e   : > { %1805 = vst.msk [vmem:[%s3549_s29 + $0x50] sm:$0xff] %vm1794_vm2, %v1686_v56  ;;  %v2122_v14 = vpop.f32.mrb[10].mxu1 }
 0x28f   : > { %v1701_v32 = vadd.f32 %v2122_v14, %v3542_v43  ;;  %v1695_v6 = vpop.f32.mrb[11].mxu1 }
 0x290   : > { %v1696_v11 = vadd.f32 %v3542_v43, %v1695_v6 }
 0x291   : > { %1808 = vst.msk [vmem:[%s3549_s29 + $0x68] sm:$0xff] %vm1794_vm2, %v1701_v32 }
 0x292   : > { %1807 = vst.msk [vmem:[%s3549_s29 + $0x60] sm:$0xff] %vm1794_vm2, %v1696_v11  ;;  %v2125_v42 = vpop.f32.mrb[12].mxu1 }
 0x293   : > { %v1711_v24 = vadd.f32 %v2125_v42, %v3542_v43  ;;  %v1705_v3 = vpop.f32.mrb[13].mxu1 }
 0x294   : > { %v1706_v10 = vadd.f32 %v3542_v43, %v1705_v3 }
 0x295   : > { %1810 = vst.msk [vmem:[%s3549_s29 + $0x78] sm:$0xff] %vm1794_vm2, %v1711_v24 }
 0x296   : > { %1809 = vst.msk [vmem:[%s3549_s29 + $0x70] sm:$0xff] %vm1794_vm2, %v1706_v10  ;;  %v2128_v45 = vpop.f32.mrb[14].mxu1 }
 0x297   : > { %v1721_v22 = vadd.f32 %v2128_v45, %v3542_v43  ;;  %v1715_v49 = vpop.f32.mrb[15].mxu1 }
 0x298   : > { %v1716_v18 = vadd.f32 %v3542_v43, %v1715_v49 }
 0x299   : > { %1812 = vst.msk [vmem:[%s3549_s29 + $0x88] sm:$0xff] %vm1794_vm2, %v1721_v22 }
 0x29a   : > { %1811 = vst.msk [vmem:[%s3549_s29 + $0x80] sm:$0xff] %vm1794_vm2, %v1716_v18  ;;  %v2131_v25 = vpop.f32.mrb[16].mxu1 }
 0x29b   : > { %v1731_v37 = vadd.f32 %v2131_v25, %v3542_v43  ;;  %v1725_v47 = vpop.f32.mrb[17].mxu1 }
 0x29c   : > { %v1726_v20 = vadd.f32 %v3542_v43, %v1725_v47 }
 0x29d   : > { %1814 = vst.msk [vmem:[%s3549_s29 + $0x98] sm:$0xff] %vm1794_vm2, %v1731_v37 }
 0x29e   : > { %1813 = vst.msk [vmem:[%s3549_s29 + $0x90] sm:$0xff] %vm1794_vm2, %v1726_v20  ;;  %v2134_v34 = vpop.f32.mrb[18].mxu1 }
 0x29f   : > { %v1741_v26 = vadd.f32 %v2134_v34, %v3542_v43  ;;  %v1735_v48 = vpop.f32.mrb[19].mxu1 }
 0x2a0   : > { %v1736_v54 = vadd.f32 %v3542_v43, %v1735_v48 }
 0x2a1   : > { %1816 = vst.msk [vmem:[%s3549_s29 + $0xa8] sm:$0xff] %vm1794_vm2, %v1741_v26 }
 0x2a2   : > { %1815 = vst.msk [vmem:[%s3549_s29 + $0xa0] sm:$0xff] %vm1794_vm2, %v1736_v54  ;;  %v2137_v31 = vpop.f32.mrb[20].mxu1 }
 0x2a3   : > { %v1751_v57 = vadd.f32 %v2137_v31, %v3542_v43  ;;  %v1745_v1 = vpop.f32.mrb[21].mxu1 }
 0x2a4   : > { %v1746_v15 = vadd.f32 %v3542_v43, %v1745_v1 }
 0x2a5   : > { %1818 = vst.msk [vmem:[%s3549_s29 + $0xb8] sm:$0xff] %vm1794_vm2, %v1751_v57 }
 0x2a6   : > { %1817 = vst.msk [vmem:[%s3549_s29 + $0xb0] sm:$0xff] %vm1794_vm2, %v1746_v15  ;;  %v2140_v58 = vpop.f32.mrb[22].mxu1 }
 0x2a7   : > { %v1761_v44 = vadd.f32 %v2140_v58, %v3542_v43  ;;  %v1755_v38 = vpop.f32.mrb[23].mxu1 }
 0x2a8   : > { %v1756_v21 = vadd.f32 %v3542_v43, %v1755_v38 }
 0x2a9   : > { %1820 = vst.msk [vmem:[%s3549_s29 + $0xc8] sm:$0xff] %vm1794_vm2, %v1761_v44 }
 0x2aa   : > { %1819 = vst.msk [vmem:[%s3549_s29 + $0xc0] sm:$0xff] %vm1794_vm2, %v1756_v21  ;;  %v2143_v46 = vpop.f32.mrb[24].mxu1 }
 0x2ab   : > { %v1771_v4 = vadd.f32 %v2143_v46, %v3542_v43  ;;  %v1765_v35 = vpop.f32.mrb[25].mxu1 }
 0x2ac   : > { %v1766_v55 = vadd.f32 %v3542_v43, %v1765_v35 }
 0x2ad   : > { %1822 = vst.msk [vmem:[%s3549_s29 + $0xd8] sm:$0xff] %vm1794_vm2, %v1771_v4 }
 0x2ae   : > { %1821 = vst.msk [vmem:[%s3549_s29 + $0xd0] sm:$0xff] %vm1794_vm2, %v1766_v55  ;;  %v2146_v33 = vpop.f32.mrb[26].mxu1 }
 0x2af   : > { %v1781_v17 = vadd.f32 %v2146_v33, %v3542_v43  ;;  %v1775_v36 = vpop.f32.mrb[27].mxu1 }
 0x2b0   : > { %v1776_v29 = vadd.f32 %v3542_v43, %v1775_v36 }
 0x2b1   : > { %1824 = vst.msk [vmem:[%s3549_s29 + $0xe8] sm:$0xff] %vm1794_vm2, %v1781_v17 }
 0x2b2   : > { %1823 = vst.msk [vmem:[%s3549_s29 + $0xe0] sm:$0xff] %vm1794_vm2, %v1776_v29  ;;  %v2149_v40 = vpop.f32.mrb[28].mxu1 }
 0x2b3   : > { %v1791_v61 = vadd.f32 %v2149_v40, %v3542_v43  ;;  %v1785_v0 = vpop.f32.mrb[29].mxu1 }
 0x2b4   : > { %v1786_v62 = vadd.f32 %v3542_v43, %v1785_v0 }
 0x2b5   : > { %1826 = vst.msk [vmem:[%s3549_s29 + $0xf8] sm:$0xff] %vm1794_vm2, %v1791_v61 }
 0x2b6   : > { %1825 = vst.msk [vmem:[%s3549_s29 + $0xf0] sm:$0xff] %vm1794_vm2, %v1786_v62 }
 0x2b7 PF: > { %s17_s20 = sadd.s32 1, %s2322_s20  }
 0x2b8   : > { %p14_p4 = scmp.ge.s32.totalorder %s17_s20, 4  }
 0x2ba   :  { %16 = sbr.rel (!%p14_p4) target bundleno = 3 (0x3), region = 70 }

</bundles_post_ra>
